<compile_context>
chip_gen: v7x
topology: tpu7x:2x2x1
jax: 0.10.0
libtpu: 0.0.40
codegen_flags: <defaults>
</compile_context>

<pallas_src>
import math
import functools

import jax
import jax.numpy as jnp
from jax.experimental import pallas as pl
from jax.experimental.pallas import tpu as pltpu

LN_EPS = 1e-5  # PyTorch nn.LayerNorm default


def _ln(x, g, b):
    m = jnp.mean(x, axis=-1, keepdims=True)
    v = jnp.mean(jnp.square(x - m), axis=-1, keepdims=True)
    return (x - m) * jax.lax.rsqrt(v + LN_EPS) * g + b


def _erf(x):
    # Abramowitz-Stegun 7.1.26 rational approximation (|err| < 1.5e-7 ~ f32 eps),
    # used for the exact (erf-based) GELU that PyTorch's F.gelu computes.
    p = 0.3275911
    a1, a2, a3, a4, a5 = 0.254829592, -0.284496736, 1.421413741, -1.453152027, 1.061405429
    s = jnp.where(x >= 0.0, 1.0, -1.0)
    ax = jnp.abs(x)
    t = 1.0 / (1.0 + p * ax)
    poly = t * (a1 + t * (a2 + t * (a3 + t * (a4 + t * a5))))
    return s * (1.0 - poly * jnp.exp(-ax * ax))


def _gelu(x):
    return 0.5 * x * (1.0 + _erf(x * (1.0 / math.sqrt(2.0))))


def _softmax_lastdim(s):
    s = s - jnp.max(s, axis=-1, keepdims=True)
    p = jnp.exp(s)
    return p * pl.reciprocal(jnp.sum(p, axis=-1, keepdims=True), approx=True)


def _const_spec(p):
    # Whole-array block (resident weights), constant block index.
    zeros = (0,) * p.ndim
    return pl.BlockSpec(p.shape, lambda i, _z=zeros: _z)


# ---------------------------------------------------------------------------
# Fused transformer stack kernel: all layers, one batch tile per grid step.
# Weights are stacked with a leading depth axis.
# ---------------------------------------------------------------------------
def _transformer_stack_kernel(x_ref, ln1g, ln1b, wqkv, wout, ln2g, ln2b,
                              w1, b1, w2, b2, o_ref, *, depth, heads, dim_head):
    bt, n, dim = x_ref.shape
    inner = heads * dim_head
    hidden = w2.shape[1]
    scale = dim_head ** -0.5

    # Fold batch tile into the matmul row dimension.
    xf = x_ref[...].reshape(bt * n, dim)                     # (bt*n, dim)

    for d in range(depth):                                    # fused layer stack
        # ---- pre-LN multi-head self-attention ----
        xn = _ln(xf, ln1g[d], ln1b[d])
        qkv = jnp.dot(xn, wqkv[d], preferred_element_type=jnp.float32)   # (bt*n, 3*inner)
        qkv = qkv.reshape(bt, n, 3 * inner)
        q = qkv[..., :inner] * scale
        k = qkv[..., inner:2 * inner]
        v = qkv[..., 2 * inner:]
        wout_d = wout[d]                                      # (inner, dim)

        attn_proj = jnp.zeros((bt * n, dim), jnp.float32)
        for h in range(heads):                                # static head loop; einsums batched over bt
            sl = slice(h * dim_head, (h + 1) * dim_head)
            sim = jnp.einsum('bid,bjd->bij', q[..., sl], k[..., sl],
                             preferred_element_type=jnp.float32)          # (bt, n, n)
            p = _softmax_lastdim(sim)
            oh = jnp.einsum('bij,bjd->bid', p, v[..., sl],
                            preferred_element_type=jnp.float32)           # (bt, n, dh)
            # concat-free head combine: concat(oh_h) @ Wout == sum_h oh_h @ Wout[h-slice]
            attn_proj = attn_proj + jnp.dot(oh.reshape(bt * n, dim_head), wout_d[sl, :],
                                            preferred_element_type=jnp.float32)
        xf = xf + attn_proj

        # ---- pre-LN GEGLU feed-forward ----
        xn = _ln(xf, ln2g[d], ln2b[d])
        h1 = jnp.dot(xn, w1[d], preferred_element_type=jnp.float32) + b1[d]  # (bt*n, 2*hidden)
        a = h1[:, :hidden]
        g = h1[:, hidden:]
        xf = xf + jnp.dot(a * _gelu(g), w2[d], preferred_element_type=jnp.float32) + b2[d]

    o_ref[...] = xf.reshape(bt, n, dim)


def transformer_stack(x, stacked_params, *, heads, dim_head, b_tile=None):
    b, n, dim = x.shape
    depth = stacked_params[0].shape[0]
    if b_tile is None:
        b_tile = b
    assert b % b_tile == 0, "b_tile must divide batch"
    nb = b // b_tile

    in_specs = [pl.BlockSpec((b_tile, n, dim), lambda i: (i, 0, 0))]
    in_specs += [_const_spec(p) for p in stacked_params]

    return pl.pallas_call(
        functools.partial(_transformer_stack_kernel,
                          depth=depth, heads=heads, dim_head=dim_head),
        out_shape=jax.ShapeDtypeStruct((b, n, dim), jnp.float32),
        grid=(nb,),
        in_specs=in_specs,
        out_specs=pl.BlockSpec((b_tile, n, dim), lambda i: (i, 0, 0)),
        compiler_params=pltpu.CompilerParams(
            dimension_semantics=("parallel",),
            # Explicit VMEM budget so the fused stack also fits v7x's 64 MiB
            # (tune b_tile / resident-layer count against this at production dim).
            vmem_limit_bytes=64 * 1024 * 1024),
    )(x, *stacked_params)


# ---------------------------------------------------------------------------
# Final cross-attention (CLS token attends to image context) fused with
# to_logits (LayerNorm -> ReLU -> Linear); whole batch tile per grid step.
# ---------------------------------------------------------------------------
# TODO(synk): the CrossAttention class is not defined in the provided source; it is
# implemented here as the standard stable-diffusion style cross-attention
# (Linear q/k/v with bias, scale 1/sqrt(d_head), softmax over context, out proj).
def _cross_logits_kernel(x_ref, ctx_ref, wq, bq, wk, bk, wv, bv, wo, bo,
                         lng, lnb, wl, bl, o_ref, *, n_heads):
    bt = x_ref.shape[0]
    d_embed = x_ref.shape[-1]
    n_ctx, d_cross = ctx_ref.shape[1], ctx_ref.shape[2]
    d_head = d_embed // n_heads
    dim_out = wl.shape[-1]
    scale = 1.0 / math.sqrt(d_head)

    x = x_ref[...].reshape(bt, d_embed)                        # (bt, dim)
    ctx = ctx_ref[...].reshape(bt * n_ctx, d_cross)            # (bt*n_ctx, d_cross)

    q = (jnp.dot(x, wq[...], preferred_element_type=jnp.float32) + bq[...]) * scale
    k = jnp.dot(ctx, wk[...], preferred_element_type=jnp.float32) + bk[...]
    v = jnp.dot(ctx, wv[...], preferred_element_type=jnp.float32) + bv[...]
    q = q.reshape(bt, 1, d_embed)
    k = k.reshape(bt, n_ctx, d_embed)
    v = v.reshape(bt, n_ctx, d_embed)
    wo_m = wo[...]

    out = jnp.zeros((bt, d_embed), jnp.float32)
    for h in range(n_heads):
        sl = slice(h * d_head, (h + 1) * d_head)
        sim = jnp.einsum('bqd,bjd->bqj', q[..., sl], k[..., sl],
                         preferred_element_type=jnp.float32)   # (bt, 1, n_ctx)
        p = _softmax_lastdim(sim)
        oh = jnp.einsum('bqj,bjd->bqd', p, v[..., sl],
                        preferred_element_type=jnp.float32)    # (bt, 1, d_head)
        out = out + jnp.dot(oh.reshape(bt, d_head), wo_m[sl, :],
                            preferred_element_type=jnp.float32)
    out = out + bo[...]

    # to_logits: LayerNorm -> ReLU -> Linear
    y = _ln(out, lng[...], lnb[...])
    y = jnp.maximum(y, 0.0)
    logits = jnp.dot(y, wl[...], preferred_element_type=jnp.float32) + bl[...]
    o_ref[...] = logits.reshape(bt, 1, dim_out)


def cross_attention_logits(x_cls, context, cross_params, *, n_heads, b_tile=None):
    b, _, dim = x_cls.shape
    _, n_ctx, d_cross = context.shape
    dim_out = cross_params[-1].shape[-1]
    if b_tile is None:
        b_tile = b
    assert b % b_tile == 0
    nb = b // b_tile

    in_specs = [pl.BlockSpec((b_tile, 1, dim), lambda i: (i, 0, 0)),
                pl.BlockSpec((b_tile, n_ctx, d_cross), lambda i: (i, 0, 0))]
    in_specs += [_const_spec(p) for p in cross_params]

    out = pl.pallas_call(
        functools.partial(_cross_logits_kernel, n_heads=n_heads),
        out_shape=jax.ShapeDtypeStruct((b, 1, dim_out), jnp.float32),
        grid=(nb,),
        in_specs=in_specs,
        out_specs=pl.BlockSpec((b_tile, 1, dim_out), lambda i: (i, 0, 0)),
        compiler_params=pltpu.CompilerParams(dimension_semantics=("parallel",)),
    )(x_cls, context, *cross_params)
    return out[:, 0, :]


# ---------------------------------------------------------------------------
# Parameter init (deterministic, shapes follow the module's __init__);
# per-layer weights are stacked along a leading depth axis for the fused kernel.
# ---------------------------------------------------------------------------
def init_params(key, *, categories, num_continuous, dim, depth, heads, dim_head,
                dim_out, num_special_tokens, d_cross):
    total_tokens = sum(categories) + num_special_tokens
    inner = heads * dim_head
    hidden = dim * 4
    keys = iter(jax.random.split(key, 32))

    def nrm(shape, scale=0.05):
        return (scale * jax.random.normal(next(keys), shape)).astype(jnp.float32)

    params = {}
    params["categories_offset"] = jnp.cumsum(
        jnp.asarray([num_special_tokens] + list(categories)[:-1], jnp.int32))
    params["embed_table"] = nrm((total_tokens, dim), 1.0)
    params["num_weights"] = nrm((num_continuous, dim), 1.0)
    params["num_biases"] = nrm((num_continuous, dim), 1.0)
    params["cls_token"] = nrm((1, 1, dim), 1.0)

    params["layers"] = (
        jnp.ones((depth, 1, dim), jnp.float32), jnp.zeros((depth, 1, dim), jnp.float32),  # attn LN
        nrm((depth, dim, 3 * inner)),                                                     # to_qkv (no bias)
        nrm((depth, inner, dim)),                                                         # to_out (no bias)
        jnp.ones((depth, 1, dim), jnp.float32), jnp.zeros((depth, 1, dim), jnp.float32),  # ff LN
        nrm((depth, dim, 2 * hidden)), nrm((depth, 1, 2 * hidden)),                       # ff linear 1
        nrm((depth, hidden, dim)), nrm((depth, 1, dim)),                                  # ff linear 2
    )

    params["cross"] = (
        nrm((dim, dim)), nrm((1, dim)),          # q proj
        nrm((d_cross, dim)), nrm((1, dim)),      # k proj
        nrm((d_cross, dim)), nrm((1, dim)),      # v proj
        nrm((dim, dim)), nrm((1, dim)),          # out proj
        jnp.ones((1, dim), jnp.float32), jnp.zeros((1, dim), jnp.float32),  # to_logits LN
        nrm((dim, dim_out)), nrm((1, dim_out)),  # to_logits Linear
    )
    return params


# ---------------------------------------------------------------------------
# Full forward (glue in plain JAX, hot paths in Pallas kernels)
# ---------------------------------------------------------------------------
def fttransformer_cross_img_forward(params, x_categ, x_numer, feature_img,
                                    image_condition, *, heads, dim_head, b_tile=None):
    b = x_categ.shape[0]
    dim = params["cls_token"].shape[-1]

    # categorical embeddings
    x_categ = x_categ + params["categories_offset"][None, :]
    categ_emb = jnp.take(params["embed_table"], x_categ, axis=0)            # (b, n_cat, dim)
    # numerical embedder: x[..., None] * W + B
    numer_emb = (x_numer[..., None] * params["num_weights"][None]
                 + params["num_biases"][None])                              # (b, n_cont, dim)
    x = jnp.concatenate([categ_emb, numer_emb], axis=1)

    cls = jnp.broadcast_to(params["cls_token"], (b, 1, dim))
    x = jnp.concatenate([cls, x, feature_img], axis=1).astype(jnp.float32)  # (b, n, dim)

    # fused transformer stack (all layers, one pallas_call)
    x = transformer_stack(x, params["layers"], heads=heads, dim_head=dim_head,
                          b_tile=b_tile)

    x_cls = x[:, 0:1]                                                       # (b, 1, dim)

    # rearrange 'b c h w d -> (b c) (h w) d' then transpose(1, 2)
    # TODO(synk): this transpose could be folded into the in-kernel K/V projection
    # to save a full HBM read+write of the context at production d_cross sizes.
    bc, c, h, w, d = image_condition.shape
    context = image_condition.reshape(bc * c, h * w, d).transpose(0, 2, 1)  # (b, d_tok, h*w)
    context = context.astype(jnp.float32)

    logits = cross_attention_logits(x_cls, context, params["cross"],
                                    n_heads=heads, b_tile=b_tile)
    return logits                                                            # (b, dim_out)


if __name__ == "__main__":
    # small config consistent with the module
    categories = (3, 5)
    num_continuous = 4
    dim = 32
    depth = 2
    heads = 8
    dim_head = 16
    dim_out = 1
    num_special_tokens = 2
    batch = 4
    b_tile = 2           # 2 parallel grid steps -> keeps both v7x TensorCores busy
    n_img = 3            # feature_img tokens
    img_h = img_w = 8    # d_cross = h*w = 64  (module used 160*160)
    n_ctx_tokens = 4
    d_cross = img_h * img_w

    key = jax.random.PRNGKey(0)
    kp, k1a, k2, k3, k4 = jax.random.split(key, 5)
    params = init_params(kp, categories=categories, num_continuous=num_continuous,
                         dim=dim, depth=depth, heads=heads, dim_head=dim_head,
                         dim_out=dim_out, num_special_tokens=num_special_tokens,
                         d_cross=d_cross)

    x_categ = jnp.stack(
        [jax.random.randint(k, (batch,), 0, c)
         for k, c in zip(jax.random.split(k1a, len(categories)), categories)],
        axis=-1).astype(jnp.int32)                                          # (b, n_cat)
    x_numer = jax.random.normal(k2, (batch, num_continuous), jnp.float32)
    feature_img = jax.random.normal(k3, (batch, n_img, dim), jnp.float32)
    image_condition = jax.random.normal(
        k4, (batch, 1, img_h, img_w, n_ctx_tokens), jnp.float32)            # 'b c h w d'

    logits = fttransformer_cross_img_forward(
        params, x_categ, x_numer, feature_img, image_condition,
        heads=heads, dim_head=dim_head, b_tile=b_tile)
    jax.block_until_ready(logits)
    assert logits.shape == (batch, dim_out)
    assert bool(jnp.all(jnp.isfinite(logits)))
    print("KERNEL_OK")
</pallas_src>

<mosaic_0001>
module attributes {stable_mosaic.version = 11 : i64} {
  func.func @_transformer_stack_kernel(%arg0: i32, %arg1: memref<2x10x32xf32, #tpu.memory_space<vmem>>, %arg2: memref<2x1x32xf32, #tpu.memory_space<vmem>>, %arg3: memref<2x1x32xf32, #tpu.memory_space<vmem>>, %arg4: memref<2x32x384xf32, #tpu.memory_space<vmem>>, %arg5: memref<2x128x32xf32, #tpu.memory_space<vmem>>, %arg6: memref<2x1x32xf32, #tpu.memory_space<vmem>>, %arg7: memref<2x1x32xf32, #tpu.memory_space<vmem>>, %arg8: memref<2x32x256xf32, #tpu.memory_space<vmem>>, %arg9: memref<2x1x256xf32, #tpu.memory_space<vmem>>, %arg10: memref<2x128x32xf32, #tpu.memory_space<vmem>>, %arg11: memref<2x1x32xf32, #tpu.memory_space<vmem>>, %arg12: memref<2x10x32xf32, #tpu.memory_space<vmem>>) attributes {dimension_semantics = [#tpu.dimension_semantics<parallel>], iteration_bounds = array<i64: 2>, scalar_prefetch = 0 : i64, scratch_operands = 0 : i64, tpu.core_type = #tpu.core_type<tc>, window_params = [{transform_indices = @transform_0, window_bounds = array<i64: 2, 10, 32>}, {pipeline_mode = #tpu.pipeline_mode<synchronous>, transform_indices = @transform_1, window_bounds = array<i64: 2, 1, 32>}, {pipeline_mode = #tpu.pipeline_mode<synchronous>, transform_indices = @transform_2, window_bounds = array<i64: 2, 1, 32>}, {pipeline_mode = #tpu.pipeline_mode<synchronous>, transform_indices = @transform_3, window_bounds = array<i64: 2, 32, 384>}, {pipeline_mode = #tpu.pipeline_mode<synchronous>, transform_indices = @transform_4, window_bounds = array<i64: 2, 128, 32>}, {pipeline_mode = #tpu.pipeline_mode<synchronous>, transform_indices = @transform_5, window_bounds = array<i64: 2, 1, 32>}, {pipeline_mode = #tpu.pipeline_mode<synchronous>, transform_indices = @transform_6, window_bounds = array<i64: 2, 1, 32>}, {pipeline_mode = #tpu.pipeline_mode<synchronous>, transform_indices = @transform_7, window_bounds = array<i64: 2, 32, 256>}, {pipeline_mode = #tpu.pipeline_mode<synchronous>, transform_indices = @transform_8, window_bounds = array<i64: 2, 1, 256>}, {pipeline_mode = #tpu.pipeline_mode<synchronous>, transform_indices = @transform_9, window_bounds = array<i64: 2, 128, 32>}, {pipeline_mode = #tpu.pipeline_mode<synchronous>, transform_indices = @transform_10, window_bounds = array<i64: 2, 1, 32>}, {transform_indices = @transform_11, window_bounds = array<i64: 2, 10, 32>}]} {
    %c0 = arith.constant 0 : index
    %c0_0 = arith.constant 0 : index
    %c0_1 = arith.constant 0 : index
    %0 = vector.load %arg1[%c0, %c0_0, %c0_1] : memref<2x10x32xf32, #tpu.memory_space<vmem>>, vector<2x10x32xf32>
    %1 = vector.shape_cast %0 : vector<2x10x32xf32> to vector<20x32xf32>
    %c0_2 = arith.constant 0 : index
    %c0_3 = arith.constant 0 : index
    %c0_4 = arith.constant 0 : index
    %2 = vector.load %arg2[%c0_2, %c0_3, %c0_4] : memref<2x1x32xf32, #tpu.memory_space<vmem>>, vector<1x1x32xf32>
    %3 = vector.shape_cast %2 : vector<1x1x32xf32> to vector<1x32xf32>
    %c0_5 = arith.constant 0 : index
    %c0_6 = arith.constant 0 : index
    %c0_7 = arith.constant 0 : index
    %4 = vector.load %arg3[%c0_5, %c0_6, %c0_7] : memref<2x1x32xf32, #tpu.memory_space<vmem>>, vector<1x1x32xf32>
    %5 = vector.shape_cast %4 : vector<1x1x32xf32> to vector<1x32xf32>
    %cst = arith.constant dense<0.000000e+00> : vector<20xf32>
    %6 = vector.multi_reduction <add>, %1, %cst [1] : vector<20x32xf32> to vector<20xf32>
    %7 = vector.shape_cast %6 : vector<20xf32> to vector<20x1xf32>
    %cst_8 = arith.constant 3.200000e+01 : f32
    %8 = vector.broadcast %cst_8 : f32 to vector<20x1xf32>
    %9 = arith.divf %7, %8 : vector<20x1xf32>
    %10 = vector.broadcast %9 : vector<20x1xf32> to vector<20x32xf32>
    %11 = arith.subf %1, %10 : vector<20x32xf32>
    %12 = arith.mulf %11, %11 : vector<20x32xf32>
    %cst_9 = arith.constant dense<0.000000e+00> : vector<20xf32>
    %13 = vector.multi_reduction <add>, %12, %cst_9 [1] : vector<20x32xf32> to vector<20xf32>
    %14 = vector.shape_cast %13 : vector<20xf32> to vector<20x1xf32>
    %cst_10 = arith.constant 3.200000e+01 : f32
    %15 = vector.broadcast %cst_10 : f32 to vector<20x1xf32>
    %16 = arith.divf %14, %15 : vector<20x1xf32>
    %17 = vector.broadcast %9 : vector<20x1xf32> to vector<20x32xf32>
    %18 = arith.subf %1, %17 : vector<20x32xf32>
    %cst_11 = arith.constant 9.99999974E-6 : f32
    %19 = vector.broadcast %cst_11 : f32 to vector<20x1xf32>
    %20 = arith.addf %16, %19 : vector<20x1xf32>
    %21 = math.rsqrt %20 : vector<20x1xf32>
    %22 = vector.broadcast %21 : vector<20x1xf32> to vector<20x32xf32>
    %23 = arith.mulf %18, %22 : vector<20x32xf32>
    %24 = vector.broadcast %3 : vector<1x32xf32> to vector<20x32xf32>
    %25 = arith.mulf %23, %24 : vector<20x32xf32>
    %26 = vector.broadcast %5 : vector<1x32xf32> to vector<20x32xf32>
    %27 = arith.addf %25, %26 : vector<20x32xf32>
    %c0_12 = arith.constant 0 : index
    %c0_13 = arith.constant 0 : index
    %c0_14 = arith.constant 0 : index
    %28 = vector.load %arg4[%c0_12, %c0_13, %c0_14] : memref<2x32x384xf32, #tpu.memory_space<vmem>>, vector<1x32x384xf32>
    %29 = vector.shape_cast %28 : vector<1x32x384xf32> to vector<32x384xf32>
    %cst_15 = arith.constant dense<0.000000e+00> : vector<20x384xf32>
    %30 = tpu.matmul %27, %29, %cst_15 {dimension_numbers = #tpu.dot_dimension_numbers<[1], [0], [0], [1], [0, 0, 1, 1], [], []>} : vector<20x32xf32>, vector<32x384xf32>, vector<20x384xf32> -> vector<20x384xf32>
    %31 = vector.shape_cast %30 : vector<20x384xf32> to vector<2x10x384xf32>
    %32 = vector.extract_strided_slice %31 {offsets = [0, 0, 0], sizes = [2, 10, 128], strides = [1, 1, 1]} : vector<2x10x384xf32> to vector<2x10x128xf32>
    %cst_16 = arith.constant 2.500000e-01 : f32
    %33 = vector.broadcast %cst_16 : f32 to vector<2x10x128xf32>
    %34 = arith.mulf %32, %33 : vector<2x10x128xf32>
    %35 = vector.extract_strided_slice %31 {offsets = [0, 0, 128], sizes = [2, 10, 128], strides = [1, 1, 1]} : vector<2x10x384xf32> to vector<2x10x128xf32>
    %36 = vector.extract_strided_slice %31 {offsets = [0, 0, 256], sizes = [2, 10, 128], strides = [1, 1, 1]} : vector<2x10x384xf32> to vector<2x10x128xf32>
    %c0_17 = arith.constant 0 : index
    %c0_18 = arith.constant 0 : index
    %c0_19 = arith.constant 0 : index
    %37 = vector.load %arg5[%c0_17, %c0_18, %c0_19] : memref<2x128x32xf32, #tpu.memory_space<vmem>>, vector<1x128x32xf32>
    %38 = vector.shape_cast %37 : vector<1x128x32xf32> to vector<128x32xf32>
    %cst_20 = arith.constant 0.000000e+00 : f32
    %39 = vector.broadcast %cst_20 : f32 to vector<20x32xf32>
    %40 = vector.extract_strided_slice %34 {offsets = [0, 0, 0], sizes = [2, 10, 16], strides = [1, 1, 1]} : vector<2x10x128xf32> to vector<2x10x16xf32>
    %41 = vector.extract_strided_slice %35 {offsets = [0, 0, 0], sizes = [2, 10, 16], strides = [1, 1, 1]} : vector<2x10x128xf32> to vector<2x10x16xf32>
    "tpu.trace_start"() <{level = 10 : i32, message = "bid,bjd->bij"}> : () -> ()
    %cst_21 = arith.constant dense<0.000000e+00> : vector<2x10x10xf32>
    %42 = tpu.matmul %40, %41, %cst_21 {dimension_numbers = #tpu.dot_dimension_numbers<[2], [2], [1], [1], [0, 0, 0, 1, 1, 1], [0], [0]>} : vector<2x10x16xf32>, vector<2x10x16xf32>, vector<2x10x10xf32> -> vector<2x10x10xf32>
    "tpu.trace_stop"() : () -> ()
    %cst_22 = arith.constant dense<0xFF800000> : vector<2x10xf32>
    %43 = vector.multi_reduction <maximumf>, %42, %cst_22 [2] : vector<2x10x10xf32> to vector<2x10xf32>
    %44 = vector.shape_cast %43 : vector<2x10xf32> to vector<2x10x1xf32>
    %45 = vector.broadcast %44 : vector<2x10x1xf32> to vector<2x10x10xf32>
    %46 = arith.subf %42, %45 : vector<2x10x10xf32>
    %47 = math.exp %46 : vector<2x10x10xf32>
    %cst_23 = arith.constant dense<0.000000e+00> : vector<2x10xf32>
    %48 = vector.multi_reduction <add>, %47, %cst_23 [2] : vector<2x10x10xf32> to vector<2x10xf32>
    %49 = vector.shape_cast %48 : vector<2x10xf32> to vector<2x10x1xf32>
    %50 = tpu.reciprocal %49 {approx = true} : vector<2x10x1xf32> -> vector<2x10x1xf32>
    %51 = vector.broadcast %50 : vector<2x10x1xf32> to vector<2x10x10xf32>
    %52 = arith.mulf %47, %51 : vector<2x10x10xf32>
    %53 = vector.extract_strided_slice %36 {offsets = [0, 0, 0], sizes = [2, 10, 16], strides = [1, 1, 1]} : vector<2x10x128xf32> to vector<2x10x16xf32>
    "tpu.trace_start"() <{level = 10 : i32, message = "bij,bjd->bid"}> : () -> ()
    %cst_24 = arith.constant dense<0.000000e+00> : vector<2x10x16xf32>
    %54 = tpu.matmul %52, %53, %cst_24 {dimension_numbers = #tpu.dot_dimension_numbers<[2], [1], [1], [2], [0, 0, 0, 1, 1, 2], [0], [0]>} : vector<2x10x10xf32>, vector<2x10x16xf32>, vector<2x10x16xf32> -> vector<2x10x16xf32>
    "tpu.trace_stop"() : () -> ()
    %55 = vector.shape_cast %54 : vector<2x10x16xf32> to vector<20x16xf32>
    %56 = vector.extract_strided_slice %38 {offsets = [0, 0], sizes = [16, 32], strides = [1, 1]} : vector<128x32xf32> to vector<16x32xf32>
    %cst_25 = arith.constant dense<0.000000e+00> : vector<20x32xf32>
    %57 = tpu.matmul %55, %56, %cst_25 {dimension_numbers = #tpu.dot_dimension_numbers<[1], [0], [0], [1], [0, 0, 1, 1], [], []>} : vector<20x16xf32>, vector<16x32xf32>, vector<20x32xf32> -> vector<20x32xf32>
    %58 = arith.addf %39, %57 : vector<20x32xf32>
    %59 = vector.extract_strided_slice %34 {offsets = [0, 0, 16], sizes = [2, 10, 16], strides = [1, 1, 1]} : vector<2x10x128xf32> to vector<2x10x16xf32>
    %60 = vector.extract_strided_slice %35 {offsets = [0, 0, 16], sizes = [2, 10, 16], strides = [1, 1, 1]} : vector<2x10x128xf32> to vector<2x10x16xf32>
    "tpu.trace_start"() <{level = 10 : i32, message = "bid,bjd->bij"}> : () -> ()
    %cst_26 = arith.constant dense<0.000000e+00> : vector<2x10x10xf32>
    %61 = tpu.matmul %59, %60, %cst_26 {dimension_numbers = #tpu.dot_dimension_numbers<[2], [2], [1], [1], [0, 0, 0, 1, 1, 1], [0], [0]>} : vector<2x10x16xf32>, vector<2x10x16xf32>, vector<2x10x10xf32> -> vector<2x10x10xf32>
    "tpu.trace_stop"() : () -> ()
    %cst_27 = arith.constant dense<0xFF800000> : vector<2x10xf32>
    %62 = vector.multi_reduction <maximumf>, %61, %cst_27 [2] : vector<2x10x10xf32> to vector<2x10xf32>
    %63 = vector.shape_cast %62 : vector<2x10xf32> to vector<2x10x1xf32>
    %64 = vector.broadcast %63 : vector<2x10x1xf32> to vector<2x10x10xf32>
    %65 = arith.subf %61, %64 : vector<2x10x10xf32>
    %66 = math.exp %65 : vector<2x10x10xf32>
    %cst_28 = arith.constant dense<0.000000e+00> : vector<2x10xf32>
    %67 = vector.multi_reduction <add>, %66, %cst_28 [2] : vector<2x10x10xf32> to vector<2x10xf32>
    %68 = vector.shape_cast %67 : vector<2x10xf32> to vector<2x10x1xf32>
    %69 = tpu.reciprocal %68 {approx = true} : vector<2x10x1xf32> -> vector<2x10x1xf32>
    %70 = vector.broadcast %69 : vector<2x10x1xf32> to vector<2x10x10xf32>
    %71 = arith.mulf %66, %70 : vector<2x10x10xf32>
    %72 = vector.extract_strided_slice %36 {offsets = [0, 0, 16], sizes = [2, 10, 16], strides = [1, 1, 1]} : vector<2x10x128xf32> to vector<2x10x16xf32>
    "tpu.trace_start"() <{level = 10 : i32, message = "bij,bjd->bid"}> : () -> ()
    %cst_29 = arith.constant dense<0.000000e+00> : vector<2x10x16xf32>
    %73 = tpu.matmul %71, %72, %cst_29 {dimension_numbers = #tpu.dot_dimension_numbers<[2], [1], [1], [2], [0, 0, 0, 1, 1, 2], [0], [0]>} : vector<2x10x10xf32>, vector<2x10x16xf32>, vector<2x10x16xf32> -> vector<2x10x16xf32>
    "tpu.trace_stop"() : () -> ()
    %74 = vector.shape_cast %73 : vector<2x10x16xf32> to vector<20x16xf32>
    %75 = vector.extract_strided_slice %38 {offsets = [16, 0], sizes = [16, 32], strides = [1, 1]} : vector<128x32xf32> to vector<16x32xf32>
    %cst_30 = arith.constant dense<0.000000e+00> : vector<20x32xf32>
    %76 = tpu.matmul %74, %75, %cst_30 {dimension_numbers = #tpu.dot_dimension_numbers<[1], [0], [0], [1], [0, 0, 1, 1], [], []>} : vector<20x16xf32>, vector<16x32xf32>, vector<20x32xf32> -> vector<20x32xf32>
    %77 = arith.addf %58, %76 : vector<20x32xf32>
    %78 = vector.extract_strided_slice %34 {offsets = [0, 0, 32], sizes = [2, 10, 16], strides = [1, 1, 1]} : vector<2x10x128xf32> to vector<2x10x16xf32>
    %79 = vector.extract_strided_slice %35 {offsets = [0, 0, 32], sizes = [2, 10, 16], strides = [1, 1, 1]} : vector<2x10x128xf32> to vector<2x10x16xf32>
    "tpu.trace_start"() <{level = 10 : i32, message = "bid,bjd->bij"}> : () -> ()
    %cst_31 = arith.constant dense<0.000000e+00> : vector<2x10x10xf32>
    %80 = tpu.matmul %78, %79, %cst_31 {dimension_numbers = #tpu.dot_dimension_numbers<[2], [2], [1], [1], [0, 0, 0, 1, 1, 1], [0], [0]>} : vector<2x10x16xf32>, vector<2x10x16xf32>, vector<2x10x10xf32> -> vector<2x10x10xf32>
    "tpu.trace_stop"() : () -> ()
    %cst_32 = arith.constant dense<0xFF800000> : vector<2x10xf32>
    %81 = vector.multi_reduction <maximumf>, %80, %cst_32 [2] : vector<2x10x10xf32> to vector<2x10xf32>
    %82 = vector.shape_cast %81 : vector<2x10xf32> to vector<2x10x1xf32>
    %83 = vector.broadcast %82 : vector<2x10x1xf32> to vector<2x10x10xf32>
    %84 = arith.subf %80, %83 : vector<2x10x10xf32>
    %85 = math.exp %84 : vector<2x10x10xf32>
    %cst_33 = arith.constant dense<0.000000e+00> : vector<2x10xf32>
    %86 = vector.multi_reduction <add>, %85, %cst_33 [2] : vector<2x10x10xf32> to vector<2x10xf32>
    %87 = vector.shape_cast %86 : vector<2x10xf32> to vector<2x10x1xf32>
    %88 = tpu.reciprocal %87 {approx = true} : vector<2x10x1xf32> -> vector<2x10x1xf32>
    %89 = vector.broadcast %88 : vector<2x10x1xf32> to vector<2x10x10xf32>
    %90 = arith.mulf %85, %89 : vector<2x10x10xf32>
    %91 = vector.extract_strided_slice %36 {offsets = [0, 0, 32], sizes = [2, 10, 16], strides = [1, 1, 1]} : vector<2x10x128xf32> to vector<2x10x16xf32>
    "tpu.trace_start"() <{level = 10 : i32, message = "bij,bjd->bid"}> : () -> ()
    %cst_34 = arith.constant dense<0.000000e+00> : vector<2x10x16xf32>
    %92 = tpu.matmul %90, %91, %cst_34 {dimension_numbers = #tpu.dot_dimension_numbers<[2], [1], [1], [2], [0, 0, 0, 1, 1, 2], [0], [0]>} : vector<2x10x10xf32>, vector<2x10x16xf32>, vector<2x10x16xf32> -> vector<2x10x16xf32>
    "tpu.trace_stop"() : () -> ()
    %93 = vector.shape_cast %92 : vector<2x10x16xf32> to vector<20x16xf32>
    %94 = vector.extract_strided_slice %38 {offsets = [32, 0], sizes = [16, 32], strides = [1, 1]} : vector<128x32xf32> to vector<16x32xf32>
    %cst_35 = arith.constant dense<0.000000e+00> : vector<20x32xf32>
    %95 = tpu.matmul %93, %94, %cst_35 {dimension_numbers = #tpu.dot_dimension_numbers<[1], [0], [0], [1], [0, 0, 1, 1], [], []>} : vector<20x16xf32>, vector<16x32xf32>, vector<20x32xf32> -> vector<20x32xf32>
    %96 = arith.addf %77, %95 : vector<20x32xf32>
    %97 = vector.extract_strided_slice %34 {offsets = [0, 0, 48], sizes = [2, 10, 16], strides = [1, 1, 1]} : vector<2x10x128xf32> to vector<2x10x16xf32>
    %98 = vector.extract_strided_slice %35 {offsets = [0, 0, 48], sizes = [2, 10, 16], strides = [1, 1, 1]} : vector<2x10x128xf32> to vector<2x10x16xf32>
    "tpu.trace_start"() <{level = 10 : i32, message = "bid,bjd->bij"}> : () -> ()
    %cst_36 = arith.constant dense<0.000000e+00> : vector<2x10x10xf32>
    %99 = tpu.matmul %97, %98, %cst_36 {dimension_numbers = #tpu.dot_dimension_numbers<[2], [2], [1], [1], [0, 0, 0, 1, 1, 1], [0], [0]>} : vector<2x10x16xf32>, vector<2x10x16xf32>, vector<2x10x10xf32> -> vector<2x10x10xf32>
    "tpu.trace_stop"() : () -> ()
    %cst_37 = arith.constant dense<0xFF800000> : vector<2x10xf32>
    %100 = vector.multi_reduction <maximumf>, %99, %cst_37 [2] : vector<2x10x10xf32> to vector<2x10xf32>
    %101 = vector.shape_cast %100 : vector<2x10xf32> to vector<2x10x1xf32>
    %102 = vector.broadcast %101 : vector<2x10x1xf32> to vector<2x10x10xf32>
    %103 = arith.subf %99, %102 : vector<2x10x10xf32>
    %104 = math.exp %103 : vector<2x10x10xf32>
    %cst_38 = arith.constant dense<0.000000e+00> : vector<2x10xf32>
    %105 = vector.multi_reduction <add>, %104, %cst_38 [2] : vector<2x10x10xf32> to vector<2x10xf32>
    %106 = vector.shape_cast %105 : vector<2x10xf32> to vector<2x10x1xf32>
    %107 = tpu.reciprocal %106 {approx = true} : vector<2x10x1xf32> -> vector<2x10x1xf32>
    %108 = vector.broadcast %107 : vector<2x10x1xf32> to vector<2x10x10xf32>
    %109 = arith.mulf %104, %108 : vector<2x10x10xf32>
    %110 = vector.extract_strided_slice %36 {offsets = [0, 0, 48], sizes = [2, 10, 16], strides = [1, 1, 1]} : vector<2x10x128xf32> to vector<2x10x16xf32>
    "tpu.trace_start"() <{level = 10 : i32, message = "bij,bjd->bid"}> : () -> ()
    %cst_39 = arith.constant dense<0.000000e+00> : vector<2x10x16xf32>
    %111 = tpu.matmul %109, %110, %cst_39 {dimension_numbers = #tpu.dot_dimension_numbers<[2], [1], [1], [2], [0, 0, 0, 1, 1, 2], [0], [0]>} : vector<2x10x10xf32>, vector<2x10x16xf32>, vector<2x10x16xf32> -> vector<2x10x16xf32>
    "tpu.trace_stop"() : () -> ()
    %112 = vector.shape_cast %111 : vector<2x10x16xf32> to vector<20x16xf32>
    %113 = vector.extract_strided_slice %38 {offsets = [48, 0], sizes = [16, 32], strides = [1, 1]} : vector<128x32xf32> to vector<16x32xf32>
    %cst_40 = arith.constant dense<0.000000e+00> : vector<20x32xf32>
    %114 = tpu.matmul %112, %113, %cst_40 {dimension_numbers = #tpu.dot_dimension_numbers<[1], [0], [0], [1], [0, 0, 1, 1], [], []>} : vector<20x16xf32>, vector<16x32xf32>, vector<20x32xf32> -> vector<20x32xf32>
    %115 = arith.addf %96, %114 : vector<20x32xf32>
    %116 = vector.extract_strided_slice %34 {offsets = [0, 0, 64], sizes = [2, 10, 16], strides = [1, 1, 1]} : vector<2x10x128xf32> to vector<2x10x16xf32>
    %117 = vector.extract_strided_slice %35 {offsets = [0, 0, 64], sizes = [2, 10, 16], strides = [1, 1, 1]} : vector<2x10x128xf32> to vector<2x10x16xf32>
    "tpu.trace_start"() <{level = 10 : i32, message = "bid,bjd->bij"}> : () -> ()
    %cst_41 = arith.constant dense<0.000000e+00> : vector<2x10x10xf32>
    %118 = tpu.matmul %116, %117, %cst_41 {dimension_numbers = #tpu.dot_dimension_numbers<[2], [2], [1], [1], [0, 0, 0, 1, 1, 1], [0], [0]>} : vector<2x10x16xf32>, vector<2x10x16xf32>, vector<2x10x10xf32> -> vector<2x10x10xf32>
    "tpu.trace_stop"() : () -> ()
    %cst_42 = arith.constant dense<0xFF800000> : vector<2x10xf32>
    %119 = vector.multi_reduction <maximumf>, %118, %cst_42 [2] : vector<2x10x10xf32> to vector<2x10xf32>
    %120 = vector.shape_cast %119 : vector<2x10xf32> to vector<2x10x1xf32>
    %121 = vector.broadcast %120 : vector<2x10x1xf32> to vector<2x10x10xf32>
    %122 = arith.subf %118, %121 : vector<2x10x10xf32>
    %123 = math.exp %122 : vector<2x10x10xf32>
    %cst_43 = arith.constant dense<0.000000e+00> : vector<2x10xf32>
    %124 = vector.multi_reduction <add>, %123, %cst_43 [2] : vector<2x10x10xf32> to vector<2x10xf32>
    %125 = vector.shape_cast %124 : vector<2x10xf32> to vector<2x10x1xf32>
    %126 = tpu.reciprocal %125 {approx = true} : vector<2x10x1xf32> -> vector<2x10x1xf32>
    %127 = vector.broadcast %126 : vector<2x10x1xf32> to vector<2x10x10xf32>
    %128 = arith.mulf %123, %127 : vector<2x10x10xf32>
    %129 = vector.extract_strided_slice %36 {offsets = [0, 0, 64], sizes = [2, 10, 16], strides = [1, 1, 1]} : vector<2x10x128xf32> to vector<2x10x16xf32>
    "tpu.trace_start"() <{level = 10 : i32, message = "bij,bjd->bid"}> : () -> ()
    %cst_44 = arith.constant dense<0.000000e+00> : vector<2x10x16xf32>
    %130 = tpu.matmul %128, %129, %cst_44 {dimension_numbers = #tpu.dot_dimension_numbers<[2], [1], [1], [2], [0, 0, 0, 1, 1, 2], [0], [0]>} : vector<2x10x10xf32>, vector<2x10x16xf32>, vector<2x10x16xf32> -> vector<2x10x16xf32>
    "tpu.trace_stop"() : () -> ()
    %131 = vector.shape_cast %130 : vector<2x10x16xf32> to vector<20x16xf32>
    %132 = vector.extract_strided_slice %38 {offsets = [64, 0], sizes = [16, 32], strides = [1, 1]} : vector<128x32xf32> to vector<16x32xf32>
    %cst_45 = arith.constant dense<0.000000e+00> : vector<20x32xf32>
    %133 = tpu.matmul %131, %132, %cst_45 {dimension_numbers = #tpu.dot_dimension_numbers<[1], [0], [0], [1], [0, 0, 1, 1], [], []>} : vector<20x16xf32>, vector<16x32xf32>, vector<20x32xf32> -> vector<20x32xf32>
    %134 = arith.addf %115, %133 : vector<20x32xf32>
    %135 = vector.extract_strided_slice %34 {offsets = [0, 0, 80], sizes = [2, 10, 16], strides = [1, 1, 1]} : vector<2x10x128xf32> to vector<2x10x16xf32>
    %136 = vector.extract_strided_slice %35 {offsets = [0, 0, 80], sizes = [2, 10, 16], strides = [1, 1, 1]} : vector<2x10x128xf32> to vector<2x10x16xf32>
    "tpu.trace_start"() <{level = 10 : i32, message = "bid,bjd->bij"}> : () -> ()
    %cst_46 = arith.constant dense<0.000000e+00> : vector<2x10x10xf32>
    %137 = tpu.matmul %135, %136, %cst_46 {dimension_numbers = #tpu.dot_dimension_numbers<[2], [2], [1], [1], [0, 0, 0, 1, 1, 1], [0], [0]>} : vector<2x10x16xf32>, vector<2x10x16xf32>, vector<2x10x10xf32> -> vector<2x10x10xf32>
    "tpu.trace_stop"() : () -> ()
    %cst_47 = arith.constant dense<0xFF800000> : vector<2x10xf32>
    %138 = vector.multi_reduction <maximumf>, %137, %cst_47 [2] : vector<2x10x10xf32> to vector<2x10xf32>
    %139 = vector.shape_cast %138 : vector<2x10xf32> to vector<2x10x1xf32>
    %140 = vector.broadcast %139 : vector<2x10x1xf32> to vector<2x10x10xf32>
    %141 = arith.subf %137, %140 : vector<2x10x10xf32>
    %142 = math.exp %141 : vector<2x10x10xf32>
    %cst_48 = arith.constant dense<0.000000e+00> : vector<2x10xf32>
    %143 = vector.multi_reduction <add>, %142, %cst_48 [2] : vector<2x10x10xf32> to vector<2x10xf32>
    %144 = vector.shape_cast %143 : vector<2x10xf32> to vector<2x10x1xf32>
    %145 = tpu.reciprocal %144 {approx = true} : vector<2x10x1xf32> -> vector<2x10x1xf32>
    %146 = vector.broadcast %145 : vector<2x10x1xf32> to vector<2x10x10xf32>
    %147 = arith.mulf %142, %146 : vector<2x10x10xf32>
    %148 = vector.extract_strided_slice %36 {offsets = [0, 0, 80], sizes = [2, 10, 16], strides = [1, 1, 1]} : vector<2x10x128xf32> to vector<2x10x16xf32>
    "tpu.trace_start"() <{level = 10 : i32, message = "bij,bjd->bid"}> : () -> ()
    %cst_49 = arith.constant dense<0.000000e+00> : vector<2x10x16xf32>
    %149 = tpu.matmul %147, %148, %cst_49 {dimension_numbers = #tpu.dot_dimension_numbers<[2], [1], [1], [2], [0, 0, 0, 1, 1, 2], [0], [0]>} : vector<2x10x10xf32>, vector<2x10x16xf32>, vector<2x10x16xf32> -> vector<2x10x16xf32>
    "tpu.trace_stop"() : () -> ()
    %150 = vector.shape_cast %149 : vector<2x10x16xf32> to vector<20x16xf32>
    %151 = vector.extract_strided_slice %38 {offsets = [80, 0], sizes = [16, 32], strides = [1, 1]} : vector<128x32xf32> to vector<16x32xf32>
    %cst_50 = arith.constant dense<0.000000e+00> : vector<20x32xf32>
    %152 = tpu.matmul %150, %151, %cst_50 {dimension_numbers = #tpu.dot_dimension_numbers<[1], [0], [0], [1], [0, 0, 1, 1], [], []>} : vector<20x16xf32>, vector<16x32xf32>, vector<20x32xf32> -> vector<20x32xf32>
    %153 = arith.addf %134, %152 : vector<20x32xf32>
    %154 = vector.extract_strided_slice %34 {offsets = [0, 0, 96], sizes = [2, 10, 16], strides = [1, 1, 1]} : vector<2x10x128xf32> to vector<2x10x16xf32>
    %155 = vector.extract_strided_slice %35 {offsets = [0, 0, 96], sizes = [2, 10, 16], strides = [1, 1, 1]} : vector<2x10x128xf32> to vector<2x10x16xf32>
    "tpu.trace_start"() <{level = 10 : i32, message = "bid,bjd->bij"}> : () -> ()
    %cst_51 = arith.constant dense<0.000000e+00> : vector<2x10x10xf32>
    %156 = tpu.matmul %154, %155, %cst_51 {dimension_numbers = #tpu.dot_dimension_numbers<[2], [2], [1], [1], [0, 0, 0, 1, 1, 1], [0], [0]>} : vector<2x10x16xf32>, vector<2x10x16xf32>, vector<2x10x10xf32> -> vector<2x10x10xf32>
    "tpu.trace_stop"() : () -> ()
    %cst_52 = arith.constant dense<0xFF800000> : vector<2x10xf32>
    %157 = vector.multi_reduction <maximumf>, %156, %cst_52 [2] : vector<2x10x10xf32> to vector<2x10xf32>
    %158 = vector.shape_cast %157 : vector<2x10xf32> to vector<2x10x1xf32>
    %159 = vector.broadcast %158 : vector<2x10x1xf32> to vector<2x10x10xf32>
    %160 = arith.subf %156, %159 : vector<2x10x10xf32>
    %161 = math.exp %160 : vector<2x10x10xf32>
    %cst_53 = arith.constant dense<0.000000e+00> : vector<2x10xf32>
    %162 = vector.multi_reduction <add>, %161, %cst_53 [2] : vector<2x10x10xf32> to vector<2x10xf32>
    %163 = vector.shape_cast %162 : vector<2x10xf32> to vector<2x10x1xf32>
    %164 = tpu.reciprocal %163 {approx = true} : vector<2x10x1xf32> -> vector<2x10x1xf32>
    %165 = vector.broadcast %164 : vector<2x10x1xf32> to vector<2x10x10xf32>
    %166 = arith.mulf %161, %165 : vector<2x10x10xf32>
    %167 = vector.extract_strided_slice %36 {offsets = [0, 0, 96], sizes = [2, 10, 16], strides = [1, 1, 1]} : vector<2x10x128xf32> to vector<2x10x16xf32>
    "tpu.trace_start"() <{level = 10 : i32, message = "bij,bjd->bid"}> : () -> ()
    %cst_54 = arith.constant dense<0.000000e+00> : vector<2x10x16xf32>
    %168 = tpu.matmul %166, %167, %cst_54 {dimension_numbers = #tpu.dot_dimension_numbers<[2], [1], [1], [2], [0, 0, 0, 1, 1, 2], [0], [0]>} : vector<2x10x10xf32>, vector<2x10x16xf32>, vector<2x10x16xf32> -> vector<2x10x16xf32>
    "tpu.trace_stop"() : () -> ()
    %169 = vector.shape_cast %168 : vector<2x10x16xf32> to vector<20x16xf32>
    %170 = vector.extract_strided_slice %38 {offsets = [96, 0], sizes = [16, 32], strides = [1, 1]} : vector<128x32xf32> to vector<16x32xf32>
    %cst_55 = arith.constant dense<0.000000e+00> : vector<20x32xf32>
    %171 = tpu.matmul %169, %170, %cst_55 {dimension_numbers = #tpu.dot_dimension_numbers<[1], [0], [0], [1], [0, 0, 1, 1], [], []>} : vector<20x16xf32>, vector<16x32xf32>, vector<20x32xf32> -> vector<20x32xf32>
    %172 = arith.addf %153, %171 : vector<20x32xf32>
    %173 = vector.extract_strided_slice %34 {offsets = [0, 0, 112], sizes = [2, 10, 16], strides = [1, 1, 1]} : vector<2x10x128xf32> to vector<2x10x16xf32>
    %174 = vector.extract_strided_slice %35 {offsets = [0, 0, 112], sizes = [2, 10, 16], strides = [1, 1, 1]} : vector<2x10x128xf32> to vector<2x10x16xf32>
    "tpu.trace_start"() <{level = 10 : i32, message = "bid,bjd->bij"}> : () -> ()
    %cst_56 = arith.constant dense<0.000000e+00> : vector<2x10x10xf32>
    %175 = tpu.matmul %173, %174, %cst_56 {dimension_numbers = #tpu.dot_dimension_numbers<[2], [2], [1], [1], [0, 0, 0, 1, 1, 1], [0], [0]>} : vector<2x10x16xf32>, vector<2x10x16xf32>, vector<2x10x10xf32> -> vector<2x10x10xf32>
    "tpu.trace_stop"() : () -> ()
    %cst_57 = arith.constant dense<0xFF800000> : vector<2x10xf32>
    %176 = vector.multi_reduction <maximumf>, %175, %cst_57 [2] : vector<2x10x10xf32> to vector<2x10xf32>
    %177 = vector.shape_cast %176 : vector<2x10xf32> to vector<2x10x1xf32>
    %178 = vector.broadcast %177 : vector<2x10x1xf32> to vector<2x10x10xf32>
    %179 = arith.subf %175, %178 : vector<2x10x10xf32>
    %180 = math.exp %179 : vector<2x10x10xf32>
    %cst_58 = arith.constant dense<0.000000e+00> : vector<2x10xf32>
    %181 = vector.multi_reduction <add>, %180, %cst_58 [2] : vector<2x10x10xf32> to vector<2x10xf32>
    %182 = vector.shape_cast %181 : vector<2x10xf32> to vector<2x10x1xf32>
    %183 = tpu.reciprocal %182 {approx = true} : vector<2x10x1xf32> -> vector<2x10x1xf32>
    %184 = vector.broadcast %183 : vector<2x10x1xf32> to vector<2x10x10xf32>
    %185 = arith.mulf %180, %184 : vector<2x10x10xf32>
    %186 = vector.extract_strided_slice %36 {offsets = [0, 0, 112], sizes = [2, 10, 16], strides = [1, 1, 1]} : vector<2x10x128xf32> to vector<2x10x16xf32>
    "tpu.trace_start"() <{level = 10 : i32, message = "bij,bjd->bid"}> : () -> ()
    %cst_59 = arith.constant dense<0.000000e+00> : vector<2x10x16xf32>
    %187 = tpu.matmul %185, %186, %cst_59 {dimension_numbers = #tpu.dot_dimension_numbers<[2], [1], [1], [2], [0, 0, 0, 1, 1, 2], [0], [0]>} : vector<2x10x10xf32>, vector<2x10x16xf32>, vector<2x10x16xf32> -> vector<2x10x16xf32>
    "tpu.trace_stop"() : () -> ()
    %188 = vector.shape_cast %187 : vector<2x10x16xf32> to vector<20x16xf32>
    %189 = vector.extract_strided_slice %38 {offsets = [112, 0], sizes = [16, 32], strides = [1, 1]} : vector<128x32xf32> to vector<16x32xf32>
    %cst_60 = arith.constant dense<0.000000e+00> : vector<20x32xf32>
    %190 = tpu.matmul %188, %189, %cst_60 {dimension_numbers = #tpu.dot_dimension_numbers<[1], [0], [0], [1], [0, 0, 1, 1], [], []>} : vector<20x16xf32>, vector<16x32xf32>, vector<20x32xf32> -> vector<20x32xf32>
    %191 = arith.addf %172, %190 : vector<20x32xf32>
    %192 = arith.addf %1, %191 : vector<20x32xf32>
    %c0_61 = arith.constant 0 : index
    %c0_62 = arith.constant 0 : index
    %c0_63 = arith.constant 0 : index
    %193 = vector.load %arg6[%c0_61, %c0_62, %c0_63] : memref<2x1x32xf32, #tpu.memory_space<vmem>>, vector<1x1x32xf32>
    %194 = vector.shape_cast %193 : vector<1x1x32xf32> to vector<1x32xf32>
    %c0_64 = arith.constant 0 : index
    %c0_65 = arith.constant 0 : index
    %c0_66 = arith.constant 0 : index
    %195 = vector.load %arg7[%c0_64, %c0_65, %c0_66] : memref<2x1x32xf32, #tpu.memory_space<vmem>>, vector<1x1x32xf32>
    %196 = vector.shape_cast %195 : vector<1x1x32xf32> to vector<1x32xf32>
    %cst_67 = arith.constant dense<0.000000e+00> : vector<20xf32>
    %197 = vector.multi_reduction <add>, %192, %cst_67 [1] : vector<20x32xf32> to vector<20xf32>
    %198 = vector.shape_cast %197 : vector<20xf32> to vector<20x1xf32>
    %cst_68 = arith.constant 3.200000e+01 : f32
    %199 = vector.broadcast %cst_68 : f32 to vector<20x1xf32>
    %200 = arith.divf %198, %199 : vector<20x1xf32>
    %201 = vector.broadcast %200 : vector<20x1xf32> to vector<20x32xf32>
    %202 = arith.subf %192, %201 : vector<20x32xf32>
    %203 = arith.mulf %202, %202 : vector<20x32xf32>
    %cst_69 = arith.constant dense<0.000000e+00> : vector<20xf32>
    %204 = vector.multi_reduction <add>, %203, %cst_69 [1] : vector<20x32xf32> to vector<20xf32>
    %205 = vector.shape_cast %204 : vector<20xf32> to vector<20x1xf32>
    %cst_70 = arith.constant 3.200000e+01 : f32
    %206 = vector.broadcast %cst_70 : f32 to vector<20x1xf32>
    %207 = arith.divf %205, %206 : vector<20x1xf32>
    %208 = vector.broadcast %200 : vector<20x1xf32> to vector<20x32xf32>
    %209 = arith.subf %192, %208 : vector<20x32xf32>
    %cst_71 = arith.constant 9.99999974E-6 : f32
    %210 = vector.broadcast %cst_71 : f32 to vector<20x1xf32>
    %211 = arith.addf %207, %210 : vector<20x1xf32>
    %212 = math.rsqrt %211 : vector<20x1xf32>
    %213 = vector.broadcast %212 : vector<20x1xf32> to vector<20x32xf32>
    %214 = arith.mulf %209, %213 : vector<20x32xf32>
    %215 = vector.broadcast %194 : vector<1x32xf32> to vector<20x32xf32>
    %216 = arith.mulf %214, %215 : vector<20x32xf32>
    %217 = vector.broadcast %196 : vector<1x32xf32> to vector<20x32xf32>
    %218 = arith.addf %216, %217 : vector<20x32xf32>
    %c0_72 = arith.constant 0 : index
    %c0_73 = arith.constant 0 : index
    %c0_74 = arith.constant 0 : index
    %219 = vector.load %arg8[%c0_72, %c0_73, %c0_74] : memref<2x32x256xf32, #tpu.memory_space<vmem>>, vector<1x32x256xf32>
    %220 = vector.shape_cast %219 : vector<1x32x256xf32> to vector<32x256xf32>
    %cst_75 = arith.constant dense<0.000000e+00> : vector<20x256xf32>
    %221 = tpu.matmul %218, %220, %cst_75 {dimension_numbers = #tpu.dot_dimension_numbers<[1], [0], [0], [1], [0, 0, 1, 1], [], []>} : vector<20x32xf32>, vector<32x256xf32>, vector<20x256xf32> -> vector<20x256xf32>
    %c0_76 = arith.constant 0 : index
    %c0_77 = arith.constant 0 : index
    %c0_78 = arith.constant 0 : index
    %222 = vector.load %arg9[%c0_76, %c0_77, %c0_78] : memref<2x1x256xf32, #tpu.memory_space<vmem>>, vector<1x1x256xf32>
    %223 = vector.shape_cast %222 : vector<1x1x256xf32> to vector<1x256xf32>
    %224 = vector.broadcast %223 : vector<1x256xf32> to vector<20x256xf32>
    %225 = arith.addf %221, %224 : vector<20x256xf32>
    %226 = vector.extract_strided_slice %225 {offsets = [0, 0], sizes = [20, 128], strides = [1, 1]} : vector<20x256xf32> to vector<20x128xf32>
    %227 = vector.extract_strided_slice %225 {offsets = [0, 128], sizes = [20, 128], strides = [1, 1]} : vector<20x256xf32> to vector<20x128xf32>
    %cst_79 = arith.constant 5.000000e-01 : f32
    %228 = vector.broadcast %cst_79 : f32 to vector<20x128xf32>
    %229 = arith.mulf %228, %227 : vector<20x128xf32>
    %cst_80 = arith.constant 0.707106769 : f32
    %230 = vector.broadcast %cst_80 : f32 to vector<20x128xf32>
    %231 = arith.mulf %227, %230 : vector<20x128xf32>
    %cst_81 = arith.constant 0.000000e+00 : f32
    %232 = vector.broadcast %cst_81 : f32 to vector<20x128xf32>
    %233 = arith.cmpf oge, %231, %232 : vector<20x128xf32>
    %cst_82 = arith.constant 1.000000e+00 : f32
    %cst_83 = arith.constant -1.000000e+00 : f32
    %234 = vector.broadcast %cst_82 : f32 to vector<20x128xf32>
    %235 = vector.broadcast %cst_83 : f32 to vector<20x128xf32>
    %236 = arith.select %233, %234, %235 : vector<20x128xi1>, vector<20x128xf32>
    %237 = math.absf %231 : vector<20x128xf32>
    %cst_84 = arith.constant 0.327591091 : f32
    %238 = vector.broadcast %cst_84 : f32 to vector<20x128xf32>
    %239 = arith.mulf %238, %237 : vector<20x128xf32>
    %cst_85 = arith.constant 1.000000e+00 : f32
    %240 = vector.broadcast %cst_85 : f32 to vector<20x128xf32>
    %241 = arith.addf %240, %239 : vector<20x128xf32>
    %cst_86 = arith.constant 1.000000e+00 : f32
    %242 = vector.broadcast %cst_86 : f32 to vector<20x128xf32>
    %243 = arith.divf %242, %241 : vector<20x128xf32>
    %cst_87 = arith.constant 1.06140542 : f32
    %244 = vector.broadcast %cst_87 : f32 to vector<20x128xf32>
    %245 = arith.mulf %243, %244 : vector<20x128xf32>
    %cst_88 = arith.constant -1.45315206 : f32
    %246 = vector.broadcast %cst_88 : f32 to vector<20x128xf32>
    %247 = arith.addf %246, %245 : vector<20x128xf32>
    %248 = arith.mulf %243, %247 : vector<20x128xf32>
    %cst_89 = arith.constant 1.42141378 : f32
    %249 = vector.broadcast %cst_89 : f32 to vector<20x128xf32>
    %250 = arith.addf %249, %248 : vector<20x128xf32>
    %251 = arith.mulf %243, %250 : vector<20x128xf32>
    %cst_90 = arith.constant -0.284496725 : f32
    %252 = vector.broadcast %cst_90 : f32 to vector<20x128xf32>
    %253 = arith.addf %252, %251 : vector<20x128xf32>
    %254 = arith.mulf %243, %253 : vector<20x128xf32>
    %cst_91 = arith.constant 0.254829586 : f32
    %255 = vector.broadcast %cst_91 : f32 to vector<20x128xf32>
    %256 = arith.addf %255, %254 : vector<20x128xf32>
    %257 = arith.mulf %243, %256 : vector<20x128xf32>
    %cst_92 = arith.constant 0.000000e+00 : f32
    %258 = vector.broadcast %cst_92 : f32 to vector<20x128xf32>
    %259 = arith.subf %258, %237 : vector<20x128xf32>
    %260 = arith.mulf %259, %237 : vector<20x128xf32>
    %261 = math.exp %260 : vector<20x128xf32>
    %262 = arith.mulf %257, %261 : vector<20x128xf32>
    %cst_93 = arith.constant 1.000000e+00 : f32
    %263 = vector.broadcast %cst_93 : f32 to vector<20x128xf32>
    %264 = arith.subf %263, %262 : vector<20x128xf32>
    %265 = arith.mulf %236, %264 : vector<20x128xf32>
    %cst_94 = arith.constant 1.000000e+00 : f32
    %266 = vector.broadcast %cst_94 : f32 to vector<20x128xf32>
    %267 = arith.addf %266, %265 : vector<20x128xf32>
    %268 = arith.mulf %229, %267 : vector<20x128xf32>
    %269 = arith.mulf %226, %268 : vector<20x128xf32>
    %c0_95 = arith.constant 0 : index
    %c0_96 = arith.constant 0 : index
    %c0_97 = arith.constant 0 : index
    %270 = vector.load %arg10[%c0_95, %c0_96, %c0_97] : memref<2x128x32xf32, #tpu.memory_space<vmem>>, vector<1x128x32xf32>
    %271 = vector.shape_cast %270 : vector<1x128x32xf32> to vector<128x32xf32>
    %cst_98 = arith.constant dense<0.000000e+00> : vector<20x32xf32>
    %272 = tpu.matmul %269, %271, %cst_98 {dimension_numbers = #tpu.dot_dimension_numbers<[1], [0], [0], [1], [0, 0, 1, 1], [], []>} : vector<20x128xf32>, vector<128x32xf32>, vector<20x32xf32> -> vector<20x32xf32>
    %273 = arith.addf %192, %272 : vector<20x32xf32>
    %c0_99 = arith.constant 0 : index
    %c0_100 = arith.constant 0 : index
    %c0_101 = arith.constant 0 : index
    %274 = vector.load %arg11[%c0_99, %c0_100, %c0_101] : memref<2x1x32xf32, #tpu.memory_space<vmem>>, vector<1x1x32xf32>
    %275 = vector.shape_cast %274 : vector<1x1x32xf32> to vector<1x32xf32>
    %276 = vector.broadcast %275 : vector<1x32xf32> to vector<20x32xf32>
    %277 = arith.addf %273, %276 : vector<20x32xf32>
    %c1 = arith.constant 1 : index
    %c0_102 = arith.constant 0 : index
    %c0_103 = arith.constant 0 : index
    %278 = vector.load %arg2[%c1, %c0_102, %c0_103] : memref<2x1x32xf32, #tpu.memory_space<vmem>>, vector<1x1x32xf32>
    %279 = vector.shape_cast %278 : vector<1x1x32xf32> to vector<1x32xf32>
    %c1_104 = arith.constant 1 : index
    %c0_105 = arith.constant 0 : index
    %c0_106 = arith.constant 0 : index
    %280 = vector.load %arg3[%c1_104, %c0_105, %c0_106] : memref<2x1x32xf32, #tpu.memory_space<vmem>>, vector<1x1x32xf32>
    %281 = vector.shape_cast %280 : vector<1x1x32xf32> to vector<1x32xf32>
    %cst_107 = arith.constant dense<0.000000e+00> : vector<20xf32>
    %282 = vector.multi_reduction <add>, %277, %cst_107 [1] : vector<20x32xf32> to vector<20xf32>
    %283 = vector.shape_cast %282 : vector<20xf32> to vector<20x1xf32>
    %cst_108 = arith.constant 3.200000e+01 : f32
    %284 = vector.broadcast %cst_108 : f32 to vector<20x1xf32>
    %285 = arith.divf %283, %284 : vector<20x1xf32>
    %286 = vector.broadcast %285 : vector<20x1xf32> to vector<20x32xf32>
    %287 = arith.subf %277, %286 : vector<20x32xf32>
    %288 = arith.mulf %287, %287 : vector<20x32xf32>
    %cst_109 = arith.constant dense<0.000000e+00> : vector<20xf32>
    %289 = vector.multi_reduction <add>, %288, %cst_109 [1] : vector<20x32xf32> to vector<20xf32>
    %290 = vector.shape_cast %289 : vector<20xf32> to vector<20x1xf32>
    %cst_110 = arith.constant 3.200000e+01 : f32
    %291 = vector.broadcast %cst_110 : f32 to vector<20x1xf32>
    %292 = arith.divf %290, %291 : vector<20x1xf32>
    %293 = vector.broadcast %285 : vector<20x1xf32> to vector<20x32xf32>
    %294 = arith.subf %277, %293 : vector<20x32xf32>
    %cst_111 = arith.constant 9.99999974E-6 : f32
    %295 = vector.broadcast %cst_111 : f32 to vector<20x1xf32>
    %296 = arith.addf %292, %295 : vector<20x1xf32>
    %297 = math.rsqrt %296 : vector<20x1xf32>
    %298 = vector.broadcast %297 : vector<20x1xf32> to vector<20x32xf32>
    %299 = arith.mulf %294, %298 : vector<20x32xf32>
    %300 = vector.broadcast %279 : vector<1x32xf32> to vector<20x32xf32>
    %301 = arith.mulf %299, %300 : vector<20x32xf32>
    %302 = vector.broadcast %281 : vector<1x32xf32> to vector<20x32xf32>
    %303 = arith.addf %301, %302 : vector<20x32xf32>
    %c1_112 = arith.constant 1 : index
    %c0_113 = arith.constant 0 : index
    %c0_114 = arith.constant 0 : index
    %304 = vector.load %arg4[%c1_112, %c0_113, %c0_114] : memref<2x32x384xf32, #tpu.memory_space<vmem>>, vector<1x32x384xf32>
    %305 = vector.shape_cast %304 : vector<1x32x384xf32> to vector<32x384xf32>
    %cst_115 = arith.constant dense<0.000000e+00> : vector<20x384xf32>
    %306 = tpu.matmul %303, %305, %cst_115 {dimension_numbers = #tpu.dot_dimension_numbers<[1], [0], [0], [1], [0, 0, 1, 1], [], []>} : vector<20x32xf32>, vector<32x384xf32>, vector<20x384xf32> -> vector<20x384xf32>
    %307 = vector.shape_cast %306 : vector<20x384xf32> to vector<2x10x384xf32>
    %308 = vector.extract_strided_slice %307 {offsets = [0, 0, 0], sizes = [2, 10, 128], strides = [1, 1, 1]} : vector<2x10x384xf32> to vector<2x10x128xf32>
    %cst_116 = arith.constant 2.500000e-01 : f32
    %309 = vector.broadcast %cst_116 : f32 to vector<2x10x128xf32>
    %310 = arith.mulf %308, %309 : vector<2x10x128xf32>
    %311 = vector.extract_strided_slice %307 {offsets = [0, 0, 128], sizes = [2, 10, 128], strides = [1, 1, 1]} : vector<2x10x384xf32> to vector<2x10x128xf32>
    %312 = vector.extract_strided_slice %307 {offsets = [0, 0, 256], sizes = [2, 10, 128], strides = [1, 1, 1]} : vector<2x10x384xf32> to vector<2x10x128xf32>
    %c1_117 = arith.constant 1 : index
    %c0_118 = arith.constant 0 : index
    %c0_119 = arith.constant 0 : index
    %313 = vector.load %arg5[%c1_117, %c0_118, %c0_119] : memref<2x128x32xf32, #tpu.memory_space<vmem>>, vector<1x128x32xf32>
    %314 = vector.shape_cast %313 : vector<1x128x32xf32> to vector<128x32xf32>
    %cst_120 = arith.constant 0.000000e+00 : f32
    %315 = vector.broadcast %cst_120 : f32 to vector<20x32xf32>
    %316 = vector.extract_strided_slice %310 {offsets = [0, 0, 0], sizes = [2, 10, 16], strides = [1, 1, 1]} : vector<2x10x128xf32> to vector<2x10x16xf32>
    %317 = vector.extract_strided_slice %311 {offsets = [0, 0, 0], sizes = [2, 10, 16], strides = [1, 1, 1]} : vector<2x10x128xf32> to vector<2x10x16xf32>
    "tpu.trace_start"() <{level = 10 : i32, message = "bid,bjd->bij"}> : () -> ()
    %cst_121 = arith.constant dense<0.000000e+00> : vector<2x10x10xf32>
    %318 = tpu.matmul %316, %317, %cst_121 {dimension_numbers = #tpu.dot_dimension_numbers<[2], [2], [1], [1], [0, 0, 0, 1, 1, 1], [0], [0]>} : vector<2x10x16xf32>, vector<2x10x16xf32>, vector<2x10x10xf32> -> vector<2x10x10xf32>
    "tpu.trace_stop"() : () -> ()
    %cst_122 = arith.constant dense<0xFF800000> : vector<2x10xf32>
    %319 = vector.multi_reduction <maximumf>, %318, %cst_122 [2] : vector<2x10x10xf32> to vector<2x10xf32>
    %320 = vector.shape_cast %319 : vector<2x10xf32> to vector<2x10x1xf32>
    %321 = vector.broadcast %320 : vector<2x10x1xf32> to vector<2x10x10xf32>
    %322 = arith.subf %318, %321 : vector<2x10x10xf32>
    %323 = math.exp %322 : vector<2x10x10xf32>
    %cst_123 = arith.constant dense<0.000000e+00> : vector<2x10xf32>
    %324 = vector.multi_reduction <add>, %323, %cst_123 [2] : vector<2x10x10xf32> to vector<2x10xf32>
    %325 = vector.shape_cast %324 : vector<2x10xf32> to vector<2x10x1xf32>
    %326 = tpu.reciprocal %325 {approx = true} : vector<2x10x1xf32> -> vector<2x10x1xf32>
    %327 = vector.broadcast %326 : vector<2x10x1xf32> to vector<2x10x10xf32>
    %328 = arith.mulf %323, %327 : vector<2x10x10xf32>
    %329 = vector.extract_strided_slice %312 {offsets = [0, 0, 0], sizes = [2, 10, 16], strides = [1, 1, 1]} : vector<2x10x128xf32> to vector<2x10x16xf32>
    "tpu.trace_start"() <{level = 10 : i32, message = "bij,bjd->bid"}> : () -> ()
    %cst_124 = arith.constant dense<0.000000e+00> : vector<2x10x16xf32>
    %330 = tpu.matmul %328, %329, %cst_124 {dimension_numbers = #tpu.dot_dimension_numbers<[2], [1], [1], [2], [0, 0, 0, 1, 1, 2], [0], [0]>} : vector<2x10x10xf32>, vector<2x10x16xf32>, vector<2x10x16xf32> -> vector<2x10x16xf32>
    "tpu.trace_stop"() : () -> ()
    %331 = vector.shape_cast %330 : vector<2x10x16xf32> to vector<20x16xf32>
    %332 = vector.extract_strided_slice %314 {offsets = [0, 0], sizes = [16, 32], strides = [1, 1]} : vector<128x32xf32> to vector<16x32xf32>
    %cst_125 = arith.constant dense<0.000000e+00> : vector<20x32xf32>
    %333 = tpu.matmul %331, %332, %cst_125 {dimension_numbers = #tpu.dot_dimension_numbers<[1], [0], [0], [1], [0, 0, 1, 1], [], []>} : vector<20x16xf32>, vector<16x32xf32>, vector<20x32xf32> -> vector<20x32xf32>
    %334 = arith.addf %315, %333 : vector<20x32xf32>
    %335 = vector.extract_strided_slice %310 {offsets = [0, 0, 16], sizes = [2, 10, 16], strides = [1, 1, 1]} : vector<2x10x128xf32> to vector<2x10x16xf32>
    %336 = vector.extract_strided_slice %311 {offsets = [0, 0, 16], sizes = [2, 10, 16], strides = [1, 1, 1]} : vector<2x10x128xf32> to vector<2x10x16xf32>
    "tpu.trace_start"() <{level = 10 : i32, message = "bid,bjd->bij"}> : () -> ()
    %cst_126 = arith.constant dense<0.000000e+00> : vector<2x10x10xf32>
    %337 = tpu.matmul %335, %336, %cst_126 {dimension_numbers = #tpu.dot_dimension_numbers<[2], [2], [1], [1], [0, 0, 0, 1, 1, 1], [0], [0]>} : vector<2x10x16xf32>, vector<2x10x16xf32>, vector<2x10x10xf32> -> vector<2x10x10xf32>
    "tpu.trace_stop"() : () -> ()
    %cst_127 = arith.constant dense<0xFF800000> : vector<2x10xf32>
    %338 = vector.multi_reduction <maximumf>, %337, %cst_127 [2] : vector<2x10x10xf32> to vector<2x10xf32>
    %339 = vector.shape_cast %338 : vector<2x10xf32> to vector<2x10x1xf32>
    %340 = vector.broadcast %339 : vector<2x10x1xf32> to vector<2x10x10xf32>
    %341 = arith.subf %337, %340 : vector<2x10x10xf32>
    %342 = math.exp %341 : vector<2x10x10xf32>
    %cst_128 = arith.constant dense<0.000000e+00> : vector<2x10xf32>
    %343 = vector.multi_reduction <add>, %342, %cst_128 [2] : vector<2x10x10xf32> to vector<2x10xf32>
    %344 = vector.shape_cast %343 : vector<2x10xf32> to vector<2x10x1xf32>
    %345 = tpu.reciprocal %344 {approx = true} : vector<2x10x1xf32> -> vector<2x10x1xf32>
    %346 = vector.broadcast %345 : vector<2x10x1xf32> to vector<2x10x10xf32>
    %347 = arith.mulf %342, %346 : vector<2x10x10xf32>
    %348 = vector.extract_strided_slice %312 {offsets = [0, 0, 16], sizes = [2, 10, 16], strides = [1, 1, 1]} : vector<2x10x128xf32> to vector<2x10x16xf32>
    "tpu.trace_start"() <{level = 10 : i32, message = "bij,bjd->bid"}> : () -> ()
    %cst_129 = arith.constant dense<0.000000e+00> : vector<2x10x16xf32>
    %349 = tpu.matmul %347, %348, %cst_129 {dimension_numbers = #tpu.dot_dimension_numbers<[2], [1], [1], [2], [0, 0, 0, 1, 1, 2], [0], [0]>} : vector<2x10x10xf32>, vector<2x10x16xf32>, vector<2x10x16xf32> -> vector<2x10x16xf32>
    "tpu.trace_stop"() : () -> ()
    %350 = vector.shape_cast %349 : vector<2x10x16xf32> to vector<20x16xf32>
    %351 = vector.extract_strided_slice %314 {offsets = [16, 0], sizes = [16, 32], strides = [1, 1]} : vector<128x32xf32> to vector<16x32xf32>
    %cst_130 = arith.constant dense<0.000000e+00> : vector<20x32xf32>
    %352 = tpu.matmul %350, %351, %cst_130 {dimension_numbers = #tpu.dot_dimension_numbers<[1], [0], [0], [1], [0, 0, 1, 1], [], []>} : vector<20x16xf32>, vector<16x32xf32>, vector<20x32xf32> -> vector<20x32xf32>
    %353 = arith.addf %334, %352 : vector<20x32xf32>
    %354 = vector.extract_strided_slice %310 {offsets = [0, 0, 32], sizes = [2, 10, 16], strides = [1, 1, 1]} : vector<2x10x128xf32> to vector<2x10x16xf32>
    %355 = vector.extract_strided_slice %311 {offsets = [0, 0, 32], sizes = [2, 10, 16], strides = [1, 1, 1]} : vector<2x10x128xf32> to vector<2x10x16xf32>
    "tpu.trace_start"() <{level = 10 : i32, message = "bid,bjd->bij"}> : () -> ()
    %cst_131 = arith.constant dense<0.000000e+00> : vector<2x10x10xf32>
    %356 = tpu.matmul %354, %355, %cst_131 {dimension_numbers = #tpu.dot_dimension_numbers<[2], [2], [1], [1], [0, 0, 0, 1, 1, 1], [0], [0]>} : vector<2x10x16xf32>, vector<2x10x16xf32>, vector<2x10x10xf32> -> vector<2x10x10xf32>
    "tpu.trace_stop"() : () -> ()
    %cst_132 = arith.constant dense<0xFF800000> : vector<2x10xf32>
    %357 = vector.multi_reduction <maximumf>, %356, %cst_132 [2] : vector<2x10x10xf32> to vector<2x10xf32>
    %358 = vector.shape_cast %357 : vector<2x10xf32> to vector<2x10x1xf32>
    %359 = vector.broadcast %358 : vector<2x10x1xf32> to vector<2x10x10xf32>
    %360 = arith.subf %356, %359 : vector<2x10x10xf32>
    %361 = math.exp %360 : vector<2x10x10xf32>
    %cst_133 = arith.constant dense<0.000000e+00> : vector<2x10xf32>
    %362 = vector.multi_reduction <add>, %361, %cst_133 [2] : vector<2x10x10xf32> to vector<2x10xf32>
    %363 = vector.shape_cast %362 : vector<2x10xf32> to vector<2x10x1xf32>
    %364 = tpu.reciprocal %363 {approx = true} : vector<2x10x1xf32> -> vector<2x10x1xf32>
    %365 = vector.broadcast %364 : vector<2x10x1xf32> to vector<2x10x10xf32>
    %366 = arith.mulf %361, %365 : vector<2x10x10xf32>
    %367 = vector.extract_strided_slice %312 {offsets = [0, 0, 32], sizes = [2, 10, 16], strides = [1, 1, 1]} : vector<2x10x128xf32> to vector<2x10x16xf32>
    "tpu.trace_start"() <{level = 10 : i32, message = "bij,bjd->bid"}> : () -> ()
    %cst_134 = arith.constant dense<0.000000e+00> : vector<2x10x16xf32>
    %368 = tpu.matmul %366, %367, %cst_134 {dimension_numbers = #tpu.dot_dimension_numbers<[2], [1], [1], [2], [0, 0, 0, 1, 1, 2], [0], [0]>} : vector<2x10x10xf32>, vector<2x10x16xf32>, vector<2x10x16xf32> -> vector<2x10x16xf32>
    "tpu.trace_stop"() : () -> ()
    %369 = vector.shape_cast %368 : vector<2x10x16xf32> to vector<20x16xf32>
    %370 = vector.extract_strided_slice %314 {offsets = [32, 0], sizes = [16, 32], strides = [1, 1]} : vector<128x32xf32> to vector<16x32xf32>
    %cst_135 = arith.constant dense<0.000000e+00> : vector<20x32xf32>
    %371 = tpu.matmul %369, %370, %cst_135 {dimension_numbers = #tpu.dot_dimension_numbers<[1], [0], [0], [1], [0, 0, 1, 1], [], []>} : vector<20x16xf32>, vector<16x32xf32>, vector<20x32xf32> -> vector<20x32xf32>
    %372 = arith.addf %353, %371 : vector<20x32xf32>
    %373 = vector.extract_strided_slice %310 {offsets = [0, 0, 48], sizes = [2, 10, 16], strides = [1, 1, 1]} : vector<2x10x128xf32> to vector<2x10x16xf32>
    %374 = vector.extract_strided_slice %311 {offsets = [0, 0, 48], sizes = [2, 10, 16], strides = [1, 1, 1]} : vector<2x10x128xf32> to vector<2x10x16xf32>
    "tpu.trace_start"() <{level = 10 : i32, message = "bid,bjd->bij"}> : () -> ()
    %cst_136 = arith.constant dense<0.000000e+00> : vector<2x10x10xf32>
    %375 = tpu.matmul %373, %374, %cst_136 {dimension_numbers = #tpu.dot_dimension_numbers<[2], [2], [1], [1], [0, 0, 0, 1, 1, 1], [0], [0]>} : vector<2x10x16xf32>, vector<2x10x16xf32>, vector<2x10x10xf32> -> vector<2x10x10xf32>
    "tpu.trace_stop"() : () -> ()
    %cst_137 = arith.constant dense<0xFF800000> : vector<2x10xf32>
    %376 = vector.multi_reduction <maximumf>, %375, %cst_137 [2] : vector<2x10x10xf32> to vector<2x10xf32>
    %377 = vector.shape_cast %376 : vector<2x10xf32> to vector<2x10x1xf32>
    %378 = vector.broadcast %377 : vector<2x10x1xf32> to vector<2x10x10xf32>
    %379 = arith.subf %375, %378 : vector<2x10x10xf32>
    %380 = math.exp %379 : vector<2x10x10xf32>
    %cst_138 = arith.constant dense<0.000000e+00> : vector<2x10xf32>
    %381 = vector.multi_reduction <add>, %380, %cst_138 [2] : vector<2x10x10xf32> to vector<2x10xf32>
    %382 = vector.shape_cast %381 : vector<2x10xf32> to vector<2x10x1xf32>
    %383 = tpu.reciprocal %382 {approx = true} : vector<2x10x1xf32> -> vector<2x10x1xf32>
    %384 = vector.broadcast %383 : vector<2x10x1xf32> to vector<2x10x10xf32>
    %385 = arith.mulf %380, %384 : vector<2x10x10xf32>
    %386 = vector.extract_strided_slice %312 {offsets = [0, 0, 48], sizes = [2, 10, 16], strides = [1, 1, 1]} : vector<2x10x128xf32> to vector<2x10x16xf32>
    "tpu.trace_start"() <{level = 10 : i32, message = "bij,bjd->bid"}> : () -> ()
    %cst_139 = arith.constant dense<0.000000e+00> : vector<2x10x16xf32>
    %387 = tpu.matmul %385, %386, %cst_139 {dimension_numbers = #tpu.dot_dimension_numbers<[2], [1], [1], [2], [0, 0, 0, 1, 1, 2], [0], [0]>} : vector<2x10x10xf32>, vector<2x10x16xf32>, vector<2x10x16xf32> -> vector<2x10x16xf32>
    "tpu.trace_stop"() : () -> ()
    %388 = vector.shape_cast %387 : vector<2x10x16xf32> to vector<20x16xf32>
    %389 = vector.extract_strided_slice %314 {offsets = [48, 0], sizes = [16, 32], strides = [1, 1]} : vector<128x32xf32> to vector<16x32xf32>
    %cst_140 = arith.constant dense<0.000000e+00> : vector<20x32xf32>
    %390 = tpu.matmul %388, %389, %cst_140 {dimension_numbers = #tpu.dot_dimension_numbers<[1], [0], [0], [1], [0, 0, 1, 1], [], []>} : vector<20x16xf32>, vector<16x32xf32>, vector<20x32xf32> -> vector<20x32xf32>
    %391 = arith.addf %372, %390 : vector<20x32xf32>
    %392 = vector.extract_strided_slice %310 {offsets = [0, 0, 64], sizes = [2, 10, 16], strides = [1, 1, 1]} : vector<2x10x128xf32> to vector<2x10x16xf32>
    %393 = vector.extract_strided_slice %311 {offsets = [0, 0, 64], sizes = [2, 10, 16], strides = [1, 1, 1]} : vector<2x10x128xf32> to vector<2x10x16xf32>
    "tpu.trace_start"() <{level = 10 : i32, message = "bid,bjd->bij"}> : () -> ()
    %cst_141 = arith.constant dense<0.000000e+00> : vector<2x10x10xf32>
    %394 = tpu.matmul %392, %393, %cst_141 {dimension_numbers = #tpu.dot_dimension_numbers<[2], [2], [1], [1], [0, 0, 0, 1, 1, 1], [0], [0]>} : vector<2x10x16xf32>, vector<2x10x16xf32>, vector<2x10x10xf32> -> vector<2x10x10xf32>
    "tpu.trace_stop"() : () -> ()
    %cst_142 = arith.constant dense<0xFF800000> : vector<2x10xf32>
    %395 = vector.multi_reduction <maximumf>, %394, %cst_142 [2] : vector<2x10x10xf32> to vector<2x10xf32>
    %396 = vector.shape_cast %395 : vector<2x10xf32> to vector<2x10x1xf32>
    %397 = vector.broadcast %396 : vector<2x10x1xf32> to vector<2x10x10xf32>
    %398 = arith.subf %394, %397 : vector<2x10x10xf32>
    %399 = math.exp %398 : vector<2x10x10xf32>
    %cst_143 = arith.constant dense<0.000000e+00> : vector<2x10xf32>
    %400 = vector.multi_reduction <add>, %399, %cst_143 [2] : vector<2x10x10xf32> to vector<2x10xf32>
    %401 = vector.shape_cast %400 : vector<2x10xf32> to vector<2x10x1xf32>
    %402 = tpu.reciprocal %401 {approx = true} : vector<2x10x1xf32> -> vector<2x10x1xf32>
    %403 = vector.broadcast %402 : vector<2x10x1xf32> to vector<2x10x10xf32>
    %404 = arith.mulf %399, %403 : vector<2x10x10xf32>
    %405 = vector.extract_strided_slice %312 {offsets = [0, 0, 64], sizes = [2, 10, 16], strides = [1, 1, 1]} : vector<2x10x128xf32> to vector<2x10x16xf32>
    "tpu.trace_start"() <{level = 10 : i32, message = "bij,bjd->bid"}> : () -> ()
    %cst_144 = arith.constant dense<0.000000e+00> : vector<2x10x16xf32>
    %406 = tpu.matmul %404, %405, %cst_144 {dimension_numbers = #tpu.dot_dimension_numbers<[2], [1], [1], [2], [0, 0, 0, 1, 1, 2], [0], [0]>} : vector<2x10x10xf32>, vector<2x10x16xf32>, vector<2x10x16xf32> -> vector<2x10x16xf32>
    "tpu.trace_stop"() : () -> ()
    %407 = vector.shape_cast %406 : vector<2x10x16xf32> to vector<20x16xf32>
    %408 = vector.extract_strided_slice %314 {offsets = [64, 0], sizes = [16, 32], strides = [1, 1]} : vector<128x32xf32> to vector<16x32xf32>
    %cst_145 = arith.constant dense<0.000000e+00> : vector<20x32xf32>
    %409 = tpu.matmul %407, %408, %cst_145 {dimension_numbers = #tpu.dot_dimension_numbers<[1], [0], [0], [1], [0, 0, 1, 1], [], []>} : vector<20x16xf32>, vector<16x32xf32>, vector<20x32xf32> -> vector<20x32xf32>
    %410 = arith.addf %391, %409 : vector<20x32xf32>
    %411 = vector.extract_strided_slice %310 {offsets = [0, 0, 80], sizes = [2, 10, 16], strides = [1, 1, 1]} : vector<2x10x128xf32> to vector<2x10x16xf32>
    %412 = vector.extract_strided_slice %311 {offsets = [0, 0, 80], sizes = [2, 10, 16], strides = [1, 1, 1]} : vector<2x10x128xf32> to vector<2x10x16xf32>
    "tpu.trace_start"() <{level = 10 : i32, message = "bid,bjd->bij"}> : () -> ()
    %cst_146 = arith.constant dense<0.000000e+00> : vector<2x10x10xf32>
    %413 = tpu.matmul %411, %412, %cst_146 {dimension_numbers = #tpu.dot_dimension_numbers<[2], [2], [1], [1], [0, 0, 0, 1, 1, 1], [0], [0]>} : vector<2x10x16xf32>, vector<2x10x16xf32>, vector<2x10x10xf32> -> vector<2x10x10xf32>
    "tpu.trace_stop"() : () -> ()
    %cst_147 = arith.constant dense<0xFF800000> : vector<2x10xf32>
    %414 = vector.multi_reduction <maximumf>, %413, %cst_147 [2] : vector<2x10x10xf32> to vector<2x10xf32>
    %415 = vector.shape_cast %414 : vector<2x10xf32> to vector<2x10x1xf32>
    %416 = vector.broadcast %415 : vector<2x10x1xf32> to vector<2x10x10xf32>
    %417 = arith.subf %413, %416 : vector<2x10x10xf32>
    %418 = math.exp %417 : vector<2x10x10xf32>
    %cst_148 = arith.constant dense<0.000000e+00> : vector<2x10xf32>
    %419 = vector.multi_reduction <add>, %418, %cst_148 [2] : vector<2x10x10xf32> to vector<2x10xf32>
    %420 = vector.shape_cast %419 : vector<2x10xf32> to vector<2x10x1xf32>
    %421 = tpu.reciprocal %420 {approx = true} : vector<2x10x1xf32> -> vector<2x10x1xf32>
    %422 = vector.broadcast %421 : vector<2x10x1xf32> to vector<2x10x10xf32>
    %423 = arith.mulf %418, %422 : vector<2x10x10xf32>
    %424 = vector.extract_strided_slice %312 {offsets = [0, 0, 80], sizes = [2, 10, 16], strides = [1, 1, 1]} : vector<2x10x128xf32> to vector<2x10x16xf32>
    "tpu.trace_start"() <{level = 10 : i32, message = "bij,bjd->bid"}> : () -> ()
    %cst_149 = arith.constant dense<0.000000e+00> : vector<2x10x16xf32>
    %425 = tpu.matmul %423, %424, %cst_149 {dimension_numbers = #tpu.dot_dimension_numbers<[2], [1], [1], [2], [0, 0, 0, 1, 1, 2], [0], [0]>} : vector<2x10x10xf32>, vector<2x10x16xf32>, vector<2x10x16xf32> -> vector<2x10x16xf32>
    "tpu.trace_stop"() : () -> ()
    %426 = vector.shape_cast %425 : vector<2x10x16xf32> to vector<20x16xf32>
    %427 = vector.extract_strided_slice %314 {offsets = [80, 0], sizes = [16, 32], strides = [1, 1]} : vector<128x32xf32> to vector<16x32xf32>
    %cst_150 = arith.constant dense<0.000000e+00> : vector<20x32xf32>
    %428 = tpu.matmul %426, %427, %cst_150 {dimension_numbers = #tpu.dot_dimension_numbers<[1], [0], [0], [1], [0, 0, 1, 1], [], []>} : vector<20x16xf32>, vector<16x32xf32>, vector<20x32xf32> -> vector<20x32xf32>
    %429 = arith.addf %410, %428 : vector<20x32xf32>
    %430 = vector.extract_strided_slice %310 {offsets = [0, 0, 96], sizes = [2, 10, 16], strides = [1, 1, 1]} : vector<2x10x128xf32> to vector<2x10x16xf32>
    %431 = vector.extract_strided_slice %311 {offsets = [0, 0, 96], sizes = [2, 10, 16], strides = [1, 1, 1]} : vector<2x10x128xf32> to vector<2x10x16xf32>
    "tpu.trace_start"() <{level = 10 : i32, message = "bid,bjd->bij"}> : () -> ()
    %cst_151 = arith.constant dense<0.000000e+00> : vector<2x10x10xf32>
    %432 = tpu.matmul %430, %431, %cst_151 {dimension_numbers = #tpu.dot_dimension_numbers<[2], [2], [1], [1], [0, 0, 0, 1, 1, 1], [0], [0]>} : vector<2x10x16xf32>, vector<2x10x16xf32>, vector<2x10x10xf32> -> vector<2x10x10xf32>
    "tpu.trace_stop"() : () -> ()
    %cst_152 = arith.constant dense<0xFF800000> : vector<2x10xf32>
    %433 = vector.multi_reduction <maximumf>, %432, %cst_152 [2] : vector<2x10x10xf32> to vector<2x10xf32>
    %434 = vector.shape_cast %433 : vector<2x10xf32> to vector<2x10x1xf32>
    %435 = vector.broadcast %434 : vector<2x10x1xf32> to vector<2x10x10xf32>
    %436 = arith.subf %432, %435 : vector<2x10x10xf32>
    %437 = math.exp %436 : vector<2x10x10xf32>
    %cst_153 = arith.constant dense<0.000000e+00> : vector<2x10xf32>
    %438 = vector.multi_reduction <add>, %437, %cst_153 [2] : vector<2x10x10xf32> to vector<2x10xf32>
    %439 = vector.shape_cast %438 : vector<2x10xf32> to vector<2x10x1xf32>
    %440 = tpu.reciprocal %439 {approx = true} : vector<2x10x1xf32> -> vector<2x10x1xf32>
    %441 = vector.broadcast %440 : vector<2x10x1xf32> to vector<2x10x10xf32>
    %442 = arith.mulf %437, %441 : vector<2x10x10xf32>
    %443 = vector.extract_strided_slice %312 {offsets = [0, 0, 96], sizes = [2, 10, 16], strides = [1, 1, 1]} : vector<2x10x128xf32> to vector<2x10x16xf32>
    "tpu.trace_start"() <{level = 10 : i32, message = "bij,bjd->bid"}> : () -> ()
    %cst_154 = arith.constant dense<0.000000e+00> : vector<2x10x16xf32>
    %444 = tpu.matmul %442, %443, %cst_154 {dimension_numbers = #tpu.dot_dimension_numbers<[2], [1], [1], [2], [0, 0, 0, 1, 1, 2], [0], [0]>} : vector<2x10x10xf32>, vector<2x10x16xf32>, vector<2x10x16xf32> -> vector<2x10x16xf32>
    "tpu.trace_stop"() : () -> ()
    %445 = vector.shape_cast %444 : vector<2x10x16xf32> to vector<20x16xf32>
    %446 = vector.extract_strided_slice %314 {offsets = [96, 0], sizes = [16, 32], strides = [1, 1]} : vector<128x32xf32> to vector<16x32xf32>
    %cst_155 = arith.constant dense<0.000000e+00> : vector<20x32xf32>
    %447 = tpu.matmul %445, %446, %cst_155 {dimension_numbers = #tpu.dot_dimension_numbers<[1], [0], [0], [1], [0, 0, 1, 1], [], []>} : vector<20x16xf32>, vector<16x32xf32>, vector<20x32xf32> -> vector<20x32xf32>
    %448 = arith.addf %429, %447 : vector<20x32xf32>
    %449 = vector.extract_strided_slice %310 {offsets = [0, 0, 112], sizes = [2, 10, 16], strides = [1, 1, 1]} : vector<2x10x128xf32> to vector<2x10x16xf32>
    %450 = vector.extract_strided_slice %311 {offsets = [0, 0, 112], sizes = [2, 10, 16], strides = [1, 1, 1]} : vector<2x10x128xf32> to vector<2x10x16xf32>
    "tpu.trace_start"() <{level = 10 : i32, message = "bid,bjd->bij"}> : () -> ()
    %cst_156 = arith.constant dense<0.000000e+00> : vector<2x10x10xf32>
    %451 = tpu.matmul %449, %450, %cst_156 {dimension_numbers = #tpu.dot_dimension_numbers<[2], [2], [1], [1], [0, 0, 0, 1, 1, 1], [0], [0]>} : vector<2x10x16xf32>, vector<2x10x16xf32>, vector<2x10x10xf32> -> vector<2x10x10xf32>
    "tpu.trace_stop"() : () -> ()
    %cst_157 = arith.constant dense<0xFF800000> : vector<2x10xf32>
    %452 = vector.multi_reduction <maximumf>, %451, %cst_157 [2] : vector<2x10x10xf32> to vector<2x10xf32>
    %453 = vector.shape_cast %452 : vector<2x10xf32> to vector<2x10x1xf32>
    %454 = vector.broadcast %453 : vector<2x10x1xf32> to vector<2x10x10xf32>
    %455 = arith.subf %451, %454 : vector<2x10x10xf32>
    %456 = math.exp %455 : vector<2x10x10xf32>
    %cst_158 = arith.constant dense<0.000000e+00> : vector<2x10xf32>
    %457 = vector.multi_reduction <add>, %456, %cst_158 [2] : vector<2x10x10xf32> to vector<2x10xf32>
    %458 = vector.shape_cast %457 : vector<2x10xf32> to vector<2x10x1xf32>
    %459 = tpu.reciprocal %458 {approx = true} : vector<2x10x1xf32> -> vector<2x10x1xf32>
    %460 = vector.broadcast %459 : vector<2x10x1xf32> to vector<2x10x10xf32>
    %461 = arith.mulf %456, %460 : vector<2x10x10xf32>
    %462 = vector.extract_strided_slice %312 {offsets = [0, 0, 112], sizes = [2, 10, 16], strides = [1, 1, 1]} : vector<2x10x128xf32> to vector<2x10x16xf32>
    "tpu.trace_start"() <{level = 10 : i32, message = "bij,bjd->bid"}> : () -> ()
    %cst_159 = arith.constant dense<0.000000e+00> : vector<2x10x16xf32>
    %463 = tpu.matmul %461, %462, %cst_159 {dimension_numbers = #tpu.dot_dimension_numbers<[2], [1], [1], [2], [0, 0, 0, 1, 1, 2], [0], [0]>} : vector<2x10x10xf32>, vector<2x10x16xf32>, vector<2x10x16xf32> -> vector<2x10x16xf32>
    "tpu.trace_stop"() : () -> ()
    %464 = vector.shape_cast %463 : vector<2x10x16xf32> to vector<20x16xf32>
    %465 = vector.extract_strided_slice %314 {offsets = [112, 0], sizes = [16, 32], strides = [1, 1]} : vector<128x32xf32> to vector<16x32xf32>
    %cst_160 = arith.constant dense<0.000000e+00> : vector<20x32xf32>
    %466 = tpu.matmul %464, %465, %cst_160 {dimension_numbers = #tpu.dot_dimension_numbers<[1], [0], [0], [1], [0, 0, 1, 1], [], []>} : vector<20x16xf32>, vector<16x32xf32>, vector<20x32xf32> -> vector<20x32xf32>
    %467 = arith.addf %448, %466 : vector<20x32xf32>
    %468 = arith.addf %277, %467 : vector<20x32xf32>
    %c1_161 = arith.constant 1 : index
    %c0_162 = arith.constant 0 : index
    %c0_163 = arith.constant 0 : index
    %469 = vector.load %arg6[%c1_161, %c0_162, %c0_163] : memref<2x1x32xf32, #tpu.memory_space<vmem>>, vector<1x1x32xf32>
    %470 = vector.shape_cast %469 : vector<1x1x32xf32> to vector<1x32xf32>
    %c1_164 = arith.constant 1 : index
    %c0_165 = arith.constant 0 : index
    %c0_166 = arith.constant 0 : index
    %471 = vector.load %arg7[%c1_164, %c0_165, %c0_166] : memref<2x1x32xf32, #tpu.memory_space<vmem>>, vector<1x1x32xf32>
    %472 = vector.shape_cast %471 : vector<1x1x32xf32> to vector<1x32xf32>
    %cst_167 = arith.constant dense<0.000000e+00> : vector<20xf32>
    %473 = vector.multi_reduction <add>, %468, %cst_167 [1] : vector<20x32xf32> to vector<20xf32>
    %474 = vector.shape_cast %473 : vector<20xf32> to vector<20x1xf32>
    %cst_168 = arith.constant 3.200000e+01 : f32
    %475 = vector.broadcast %cst_168 : f32 to vector<20x1xf32>
    %476 = arith.divf %474, %475 : vector<20x1xf32>
    %477 = vector.broadcast %476 : vector<20x1xf32> to vector<20x32xf32>
    %478 = arith.subf %468, %477 : vector<20x32xf32>
    %479 = arith.mulf %478, %478 : vector<20x32xf32>
    %cst_169 = arith.constant dense<0.000000e+00> : vector<20xf32>
    %480 = vector.multi_reduction <add>, %479, %cst_169 [1] : vector<20x32xf32> to vector<20xf32>
    %481 = vector.shape_cast %480 : vector<20xf32> to vector<20x1xf32>
    %cst_170 = arith.constant 3.200000e+01 : f32
    %482 = vector.broadcast %cst_170 : f32 to vector<20x1xf32>
    %483 = arith.divf %481, %482 : vector<20x1xf32>
    %484 = vector.broadcast %476 : vector<20x1xf32> to vector<20x32xf32>
    %485 = arith.subf %468, %484 : vector<20x32xf32>
    %cst_171 = arith.constant 9.99999974E-6 : f32
    %486 = vector.broadcast %cst_171 : f32 to vector<20x1xf32>
    %487 = arith.addf %483, %486 : vector<20x1xf32>
    %488 = math.rsqrt %487 : vector<20x1xf32>
    %489 = vector.broadcast %488 : vector<20x1xf32> to vector<20x32xf32>
    %490 = arith.mulf %485, %489 : vector<20x32xf32>
    %491 = vector.broadcast %470 : vector<1x32xf32> to vector<20x32xf32>
    %492 = arith.mulf %490, %491 : vector<20x32xf32>
    %493 = vector.broadcast %472 : vector<1x32xf32> to vector<20x32xf32>
    %494 = arith.addf %492, %493 : vector<20x32xf32>
    %c1_172 = arith.constant 1 : index
    %c0_173 = arith.constant 0 : index
    %c0_174 = arith.constant 0 : index
    %495 = vector.load %arg8[%c1_172, %c0_173, %c0_174] : memref<2x32x256xf32, #tpu.memory_space<vmem>>, vector<1x32x256xf32>
    %496 = vector.shape_cast %495 : vector<1x32x256xf32> to vector<32x256xf32>
    %cst_175 = arith.constant dense<0.000000e+00> : vector<20x256xf32>
    %497 = tpu.matmul %494, %496, %cst_175 {dimension_numbers = #tpu.dot_dimension_numbers<[1], [0], [0], [1], [0, 0, 1, 1], [], []>} : vector<20x32xf32>, vector<32x256xf32>, vector<20x256xf32> -> vector<20x256xf32>
    %c1_176 = arith.constant 1 : index
    %c0_177 = arith.constant 0 : index
    %c0_178 = arith.constant 0 : index
    %498 = vector.load %arg9[%c1_176, %c0_177, %c0_178] : memref<2x1x256xf32, #tpu.memory_space<vmem>>, vector<1x1x256xf32>
    %499 = vector.shape_cast %498 : vector<1x1x256xf32> to vector<1x256xf32>
    %500 = vector.broadcast %499 : vector<1x256xf32> to vector<20x256xf32>
    %501 = arith.addf %497, %500 : vector<20x256xf32>
    %502 = vector.extract_strided_slice %501 {offsets = [0, 0], sizes = [20, 128], strides = [1, 1]} : vector<20x256xf32> to vector<20x128xf32>
    %503 = vector.extract_strided_slice %501 {offsets = [0, 128], sizes = [20, 128], strides = [1, 1]} : vector<20x256xf32> to vector<20x128xf32>
    %cst_179 = arith.constant 5.000000e-01 : f32
    %504 = vector.broadcast %cst_179 : f32 to vector<20x128xf32>
    %505 = arith.mulf %504, %503 : vector<20x128xf32>
    %cst_180 = arith.constant 0.707106769 : f32
    %506 = vector.broadcast %cst_180 : f32 to vector<20x128xf32>
    %507 = arith.mulf %503, %506 : vector<20x128xf32>
    %cst_181 = arith.constant 0.000000e+00 : f32
    %508 = vector.broadcast %cst_181 : f32 to vector<20x128xf32>
    %509 = arith.cmpf oge, %507, %508 : vector<20x128xf32>
    %cst_182 = arith.constant 1.000000e+00 : f32
    %cst_183 = arith.constant -1.000000e+00 : f32
    %510 = vector.broadcast %cst_182 : f32 to vector<20x128xf32>
    %511 = vector.broadcast %cst_183 : f32 to vector<20x128xf32>
    %512 = arith.select %509, %510, %511 : vector<20x128xi1>, vector<20x128xf32>
    %513 = math.absf %507 : vector<20x128xf32>
    %cst_184 = arith.constant 0.327591091 : f32
    %514 = vector.broadcast %cst_184 : f32 to vector<20x128xf32>
    %515 = arith.mulf %514, %513 : vector<20x128xf32>
    %cst_185 = arith.constant 1.000000e+00 : f32
    %516 = vector.broadcast %cst_185 : f32 to vector<20x128xf32>
    %517 = arith.addf %516, %515 : vector<20x128xf32>
    %cst_186 = arith.constant 1.000000e+00 : f32
    %518 = vector.broadcast %cst_186 : f32 to vector<20x128xf32>
    %519 = arith.divf %518, %517 : vector<20x128xf32>
    %cst_187 = arith.constant 1.06140542 : f32
    %520 = vector.broadcast %cst_187 : f32 to vector<20x128xf32>
    %521 = arith.mulf %519, %520 : vector<20x128xf32>
    %cst_188 = arith.constant -1.45315206 : f32
    %522 = vector.broadcast %cst_188 : f32 to vector<20x128xf32>
    %523 = arith.addf %522, %521 : vector<20x128xf32>
    %524 = arith.mulf %519, %523 : vector<20x128xf32>
    %cst_189 = arith.constant 1.42141378 : f32
    %525 = vector.broadcast %cst_189 : f32 to vector<20x128xf32>
    %526 = arith.addf %525, %524 : vector<20x128xf32>
    %527 = arith.mulf %519, %526 : vector<20x128xf32>
    %cst_190 = arith.constant -0.284496725 : f32
    %528 = vector.broadcast %cst_190 : f32 to vector<20x128xf32>
    %529 = arith.addf %528, %527 : vector<20x128xf32>
    %530 = arith.mulf %519, %529 : vector<20x128xf32>
    %cst_191 = arith.constant 0.254829586 : f32
    %531 = vector.broadcast %cst_191 : f32 to vector<20x128xf32>
    %532 = arith.addf %531, %530 : vector<20x128xf32>
    %533 = arith.mulf %519, %532 : vector<20x128xf32>
    %cst_192 = arith.constant 0.000000e+00 : f32
    %534 = vector.broadcast %cst_192 : f32 to vector<20x128xf32>
    %535 = arith.subf %534, %513 : vector<20x128xf32>
    %536 = arith.mulf %535, %513 : vector<20x128xf32>
    %537 = math.exp %536 : vector<20x128xf32>
    %538 = arith.mulf %533, %537 : vector<20x128xf32>
    %cst_193 = arith.constant 1.000000e+00 : f32
    %539 = vector.broadcast %cst_193 : f32 to vector<20x128xf32>
    %540 = arith.subf %539, %538 : vector<20x128xf32>
    %541 = arith.mulf %512, %540 : vector<20x128xf32>
    %cst_194 = arith.constant 1.000000e+00 : f32
    %542 = vector.broadcast %cst_194 : f32 to vector<20x128xf32>
    %543 = arith.addf %542, %541 : vector<20x128xf32>
    %544 = arith.mulf %505, %543 : vector<20x128xf32>
    %545 = arith.mulf %502, %544 : vector<20x128xf32>
    %c1_195 = arith.constant 1 : index
    %c0_196 = arith.constant 0 : index
    %c0_197 = arith.constant 0 : index
    %546 = vector.load %arg10[%c1_195, %c0_196, %c0_197] : memref<2x128x32xf32, #tpu.memory_space<vmem>>, vector<1x128x32xf32>
    %547 = vector.shape_cast %546 : vector<1x128x32xf32> to vector<128x32xf32>
    %cst_198 = arith.constant dense<0.000000e+00> : vector<20x32xf32>
    %548 = tpu.matmul %545, %547, %cst_198 {dimension_numbers = #tpu.dot_dimension_numbers<[1], [0], [0], [1], [0, 0, 1, 1], [], []>} : vector<20x128xf32>, vector<128x32xf32>, vector<20x32xf32> -> vector<20x32xf32>
    %549 = arith.addf %468, %548 : vector<20x32xf32>
    %c1_199 = arith.constant 1 : index
    %c0_200 = arith.constant 0 : index
    %c0_201 = arith.constant 0 : index
    %550 = vector.load %arg11[%c1_199, %c0_200, %c0_201] : memref<2x1x32xf32, #tpu.memory_space<vmem>>, vector<1x1x32xf32>
    %551 = vector.shape_cast %550 : vector<1x1x32xf32> to vector<1x32xf32>
    %552 = vector.broadcast %551 : vector<1x32xf32> to vector<20x32xf32>
    %553 = arith.addf %549, %552 : vector<20x32xf32>
    %554 = vector.shape_cast %553 : vector<20x32xf32> to vector<2x10x32xf32>
    %c0_202 = arith.constant 0 : index
    %c0_203 = arith.constant 0 : index
    %c0_204 = arith.constant 0 : index
    %555 = vector.load %arg12[%c0_202, %c0_203, %c0_204] : memref<2x10x32xf32, #tpu.memory_space<vmem>>, vector<2x10x32xf32>
    tpu.vector_store %arg12[%c0_202, %c0_203, %c0_204], %554 {strides = array<i32>} : memref<2x10x32xf32, #tpu.memory_space<vmem>>, vector<2x10x32xf32>,
    return
  }
  func.func @transform_0(%arg0: i32) -> (i32, i32, i32) {
    %c0_i32 = arith.constant 0 : i32
    %c0_i32_0 = arith.constant 0 : i32
    %c0_i32_1 = arith.constant 0 : i32
    return %arg0, %c0_i32, %c0_i32_0 : i32, i32, i32
  }
  func.func @transform_1(%arg0: i32) -> (i32, i32, i32) {
    %c0_i32 = arith.constant 0 : i32
    %c0_i32_0 = arith.constant 0 : i32
    %c0_i32_1 = arith.constant 0 : i32
    %c0_i32_2 = arith.constant 0 : i32
    return %c0_i32, %c0_i32_0, %c0_i32_1 : i32, i32, i32
  }
  func.func @transform_2(%arg0: i32) -> (i32, i32, i32) {
    %c0_i32 = arith.constant 0 : i32
    %c0_i32_0 = arith.constant 0 : i32
    %c0_i32_1 = arith.constant 0 : i32
    %c0_i32_2 = arith.constant 0 : i32
    return %c0_i32, %c0_i32_0, %c0_i32_1 : i32, i32, i32
  }
  func.func @transform_3(%arg0: i32) -> (i32, i32, i32) {
    %c0_i32 = arith.constant 0 : i32
    %c0_i32_0 = arith.constant 0 : i32
    %c0_i32_1 = arith.constant 0 : i32
    %c0_i32_2 = arith.constant 0 : i32
    return %c0_i32, %c0_i32_0, %c0_i32_1 : i32, i32, i32
  }
  func.func @transform_4(%arg0: i32) -> (i32, i32, i32) {
    %c0_i32 = arith.constant 0 : i32
    %c0_i32_0 = arith.constant 0 : i32
    %c0_i32_1 = arith.constant 0 : i32
    %c0_i32_2 = arith.constant 0 : i32
    return %c0_i32, %c0_i32_0, %c0_i32_1 : i32, i32, i32
  }
  func.func @transform_5(%arg0: i32) -> (i32, i32, i32) {
    %c0_i32 = arith.constant 0 : i32
    %c0_i32_0 = arith.constant 0 : i32
    %c0_i32_1 = arith.constant 0 : i32
    %c0_i32_2 = arith.constant 0 : i32
    return %c0_i32, %c0_i32_0, %c0_i32_1 : i32, i32, i32
  }
  func.func @transform_6(%arg0: i32) -> (i32, i32, i32) {
    %c0_i32 = arith.constant 0 : i32
    %c0_i32_0 = arith.constant 0 : i32
    %c0_i32_1 = arith.constant 0 : i32
    %c0_i32_2 = arith.constant 0 : i32
    return %c0_i32, %c0_i32_0, %c0_i32_1 : i32, i32, i32
  }
  func.func @transform_7(%arg0: i32) -> (i32, i32, i32) {
    %c0_i32 = arith.constant 0 : i32
    %c0_i32_0 = arith.constant 0 : i32
    %c0_i32_1 = arith.constant 0 : i32
    %c0_i32_2 = arith.constant 0 : i32
    return %c0_i32, %c0_i32_0, %c0_i32_1 : i32, i32, i32
  }
  func.func @transform_8(%arg0: i32) -> (i32, i32, i32) {
    %c0_i32 = arith.constant 0 : i32
    %c0_i32_0 = arith.constant 0 : i32
    %c0_i32_1 = arith.constant 0 : i32
    %c0_i32_2 = arith.constant 0 : i32
    return %c0_i32, %c0_i32_0, %c0_i32_1 : i32, i32, i32
  }
  func.func @transform_9(%arg0: i32) -> (i32, i32, i32) {
    %c0_i32 = arith.constant 0 : i32
    %c0_i32_0 = arith.constant 0 : i32
    %c0_i32_1 = arith.constant 0 : i32
    %c0_i32_2 = arith.constant 0 : i32
    return %c0_i32, %c0_i32_0, %c0_i32_1 : i32, i32, i32
  }
  func.func @transform_10(%arg0: i32) -> (i32, i32, i32) {
    %c0_i32 = arith.constant 0 : i32
    %c0_i32_0 = arith.constant 0 : i32
    %c0_i32_1 = arith.constant 0 : i32
    %c0_i32_2 = arith.constant 0 : i32
    return %c0_i32, %c0_i32_0, %c0_i32_1 : i32, i32, i32
  }
  func.func @transform_11(%arg0: i32) -> (i32, i32, i32) {
    %c0_i32 = arith.constant 0 : i32
    %c0_i32_0 = arith.constant 0 : i32
    %c0_i32_1 = arith.constant 0 : i32
    return %arg0, %c0_i32, %c0_i32_0 : i32, i32, i32
  }
}

</mosaic_0001>

<bundles_post_ra>
// kernel: tpu_custom_call.1
= control target key start
LH: loop header
LB: loop body
LE: loop exit
PB: predicated region body
PF: predicated region fallthrough
CT: control target
= control target key end

     0   :  { %s21783_s0 = inlined_call_operand.hbm [shape: f32[4,10,32], index: 0, kind: input, shape index: {}]   ;;  %s21784_s1 = inlined_call_operand.hbm [shape: f32[2,1,32], index: 1, kind: input, shape index: {}]   ;;  %s21785_s2 = inlined_call_operand.hbm [shape: f32[2,1,32], index: 2, kind: input, shape index: {}]   ;;  %s21786_s3 = inlined_call_operand.hbm [shape: f32[2,32,384], index: 3, kind: input, shape index: {}]   ;;  %s21787_s4 = inlined_call_operand.hbm [shape: f32[2,128,32], index: 4, kind: input, shape index: {}]   ;;  %s21788_s5 = inlined_call_operand.hbm [shape: f32[2,1,32], index: 5, kind: input, shape index: {}]   ;;  %s21789_s6 = inlined_call_operand.hbm [shape: f32[2,1,32], index: 6, kind: input, shape index: {}]   ;;  %s21790_s7 = inlined_call_operand.hbm [shape: f32[2,32,256], index: 7, kind: input, shape index: {}]   ;;  %s21791_s8 = inlined_call_operand.hbm [shape: f32[2,1,256], index: 8, kind: input, shape index: {}]   ;;  %s21792_s9 = inlined_call_operand.hbm [shape: f32[2,128,32], index: 9, kind: input, shape index: {}]   ;;  %s21793_s10 = inlined_call_operand.hbm [shape: f32[2,1,32], index: 10, kind: input, shape index: {}]   ;;  %s21794_s11 = inlined_call_operand.hbm [shape: f32[4,10,32], index: 11, kind: output, shape index: {}]  }
   0x1   :  { %21821 = sst [smem:[#allocation31_spill]] %s21783_s0 }
   0x2   :  { %21822 = sst [smem:[#allocation32_spill]] %s21784_s1 }
   0x3   :  { %21823 = sst [smem:[#allocation33_spill]] %s21785_s2 }
   0x4   :  { %21824 = sst [smem:[#allocation34_spill]] %s21786_s3 }
   0x5   :  { %21825 = sst [smem:[#allocation35_spill]] %s21787_s4 }
   0x6   :  { %21826 = sst [smem:[#allocation36_spill]] %s21794_s11 }
   0x7   :  { %16 = vsyncpa [#allocation3], 0 }
   0x8   :  { %18 = vsyncpa [#allocation3 + $0x1], 0 }
   0x9   :  { %19 = vsyncpa [#allocation6], 0 }
   0xa   :  { %20 = vsyncpa [#allocation9], 0 }
   0xb   :  { %21 = vsyncpa [#allocation12], 0 }
   0xc   :  { %22 = vsyncpa [#allocation15], 0 }
   0xd   :  { %23 = vsyncpa [#allocation18], 0 }
   0xe   :  { %24 = vsyncpa [#allocation4], 0 }
   0xf   :  { %26 = vsyncpa [#allocation4 + $0x1], 0  ;;  %s18681_s17 = smov 0   ;;  %s18683_s18 = smov 0  }
  0x10   :  { %s18685_s19 = smov 0   ;;  %s18687_s20 = smov 0  }
  0x11 LB: > { %s18581_s21 = smov [#allocation5]   ;;  %s18702_s23 = sadd.s32 4294967295, %s18579_s20   ;;  %s18579_s20 = sphi %s18687_s20, %s21877_s20   ;;  %s18575_s19 = sphi %s18685_s19, %s21876_s19   ;;  %s18571_s18 = sphi %s18683_s18, %s21875_s18   ;;  %s18567_s17 = sphi %s18681_s17, %s21874_s17  }
  0x12   : > { %s311_s22 = sshll.u32 %s18581_s21, 4  ;;  %p15591_p0 = scmp.ge.s32.totalorder %s18579_s20, 1  ;;  %s18707_s22 = int_to_ptr.vmem [resolvable:$true] %s311_s22 }
  0x13   : > { %p21800_p1 = scmp.eq.s32.totalorder %s18702_s23, 0  ;;  %p299_p2 = scmp.lt.s32.totalorder %s18579_s20, 3 }
  0x14   : > { %s18582_s25 = smov [#allocation8]   ;;  %s18583_s28 = smov [#allocation11]  }
  0x15   : > { %p18709_p3 = pnand %p15591_p0, %p299_p2  ;;  %s337_s26 = sshll.u32 %s18582_s25, 4  ;;  %s18722_s26 = int_to_ptr.vmem [resolvable:$true] %s337_s26 }
  0x16   : > { %s18724_s29 = sshll.u32 %s18583_s28, 4  ;;  %s21830_s1 = sld [smem:[#allocation32_spill]]  ;;  %s364_s29 = int_to_ptr.vmem [resolvable:$true] %s18724_s29 }
  0x17   : > { %s21827_s24 = scalar_select %p18709_p3, 1, 0 }
  0x18   : > { %p17744_p5 = pneg %p18709_p3 }
  0x19   : > { %21828 = sst [smem:[#allocation28_spill]] %s21827_s24 }
  0x1a   : > { %p18718_p6 = pnand %p17744_p5, %p21800_p1 }
  0x1c   : > { %s18183_s13 = scalar_lea.hbm %s21830_s1, 32  ;;  %p18734_p8 = pneg %p18718_p6 }
  0x1d   : > { %p18184_p7 = scmp.ne.s32.totalorder %s21830_s1, %s18183_s13  ;;  %p18190_p11 = scmp.lt.u32.totalorder %s18183_s13, %s21830_s1 }
  0x1f   : > { %p18186_p9 = pnand %p18734_p8, %p18184_p7 }
  0x21   : > { %p18187_p10 = pneg %p18186_p9 }
  0x23   : > { %p18192_p12 = pnand %p18190_p11, %p18187_p10 }
  0x25   : > { %18195 = shalt.err (!%p18192_p12)
}
  0x26   : > { %s18196_s28 = scalar_lea.vmem %s18707_s22, 32  ;;  %p18204_p5 = scmp.lt.s32.totalorder %s18707_s22, %s18707_s22 }
  0x27   : > { %p18197_p13 = scmp.ne.s32.totalorder %s18707_s22, %s18196_s28  ;;  %p18205_p4 = scmp.lt.s32.totalorder %s18196_s28, %s18196_s28 }
  0x29   : > { %p18199_p0 = pnand %p18197_p13, %p18734_p8  ;;  %p18206_p7 = por %p18205_p4, %p18204_p5 }
  0x2b   : > { %p18200_p2 = pneg %p18199_p0 }
  0x2d   : > { %p18207_p9 = pnand %p18206_p7, %p18200_p2 }
  0x2f   : > { %18210 = shalt.err (!%p18207_p9)
}
  0x30   : > { %s21798_s30 = smov 16   ;;  %s21802_s12 = smov 1  }
  0x31   : > { %17747 = dma.hbm_to_vmem [thread:$0]  (!%p18718_p6), %s21830_s1, 32, %s18707_s22, [#allocation6], %s21798_s30, %s21798_s30, %s21802_s12  }
  0x32   : > { %s21832_s3 = sld [smem:[#allocation34_spill]] }
  0x38   : > { %s18211_s25 = scalar_lea.hbm %s21832_s3, 3072 }
  0x39   : > { %p18212_p4 = scmp.ne.s32.totalorder %s21832_s3, %s18211_s25  ;;  %p18218_p12 = scmp.lt.u32.totalorder %s18211_s25, %s21832_s3 }
  0x3b   : > { %p18214_p10 = pnand %p18212_p4, %p18734_p8 }
  0x3d   : > { %p18215_p11 = pneg %p18214_p10 }
  0x3f   : > { %p18220_p13 = pnand %p18218_p12, %p18215_p11 }
  0x41   : > { %18223 = shalt.err (!%p18220_p13)
}
  0x42   : > { %s18224_s22 = scalar_lea.vmem %s18722_s26, 3072  ;;  %p18232_p7 = scmp.lt.s32.totalorder %s18722_s26, %s18722_s26 }
  0x43   : > { %p18225_p0 = scmp.ne.s32.totalorder %s18722_s26, %s18224_s22  ;;  %p18233_p9 = scmp.lt.s32.totalorder %s18224_s22, %s18224_s22 }
  0x45   : > { %p18227_p2 = pnand %p18225_p0, %p18734_p8  ;;  %p18234_p4 = por %p18233_p9, %p18232_p7 }
  0x47   : > { %p18228_p5 = pneg %p18227_p2 }
  0x49   : > { %p18235_p10 = pnand %p18234_p4, %p18228_p5 }
  0x4b   : > { %18238 = shalt.err (!%p18235_p10)
}
  0x4c   : > { %s18586_s11 = smov 384   ;;  %s18587_s0 = smov 24  }
  0x4d   : > { %17753 = dma.hbm_to_vmem [thread:$0]  (!%p18718_p6), %s21832_s3, 3072, %s18722_s26, [#allocation9], %s18586_s11, %s18586_s11, %s18587_s0  }
  0x4e   : > { %s18239_s21 = scalar_lea.hbm %s21788_s5, 32 }
  0x4f   : > { %p18240_p11 = scmp.ne.s32.totalorder %s21788_s5, %s18239_s21  ;;  %p18246_p0 = scmp.lt.u32.totalorder %s18239_s21, %s21788_s5 }
  0x51   : > { %p18242_p12 = pnand %p18240_p11, %p18734_p8 }
  0x53   : > { %p18243_p13 = pneg %p18242_p12 }
  0x55   : > { %p18248_p2 = pnand %p18246_p0, %p18243_p13 }
  0x57   : > { %18251 = shalt.err (!%p18248_p2)
}
  0x58   : > { %s18252_s24 = scalar_lea.vmem %s364_s29, 32  ;;  %p18260_p4 = scmp.lt.s32.totalorder %s364_s29, %s364_s29 }
  0x59   : > { %p18253_p5 = scmp.ne.s32.totalorder %s364_s29, %s18252_s24  ;;  %p18261_p10 = scmp.lt.s32.totalorder %s18252_s24, %s18252_s24 }
  0x5b   : > { %p18255_p7 = pnand %p18253_p5, %p18734_p8  ;;  %p18262_p1 = por %p18261_p10, %p18260_p4 }
  0x5d   : > { %p18256_p9 = pneg %p18255_p7 }
  0x5f   : > { %p18263_p3 = pnand %p18262_p1, %p18256_p9 }
  0x61   : > { %18266 = shalt.err (!%p18263_p3)
}
  0x62   : > { %s21833_s26 = smov 16   ;;  %s18588_s0 = smov [#allocation14]  }
  0x63   : > { %17759 = dma.hbm_to_vmem [thread:$0]  (!%p18718_p6), %s21788_s5, 32, %s364_s29, [#allocation12], %s21833_s26, %s21833_s26, %s21802_s12  }
  0x64   : > { %s389_s13 = sshll.u32 %s18588_s0, 4  ;;  %s18267_s21 = scalar_lea.hbm %s21790_s7, 2048  ;;  %s390_s13 = int_to_ptr.vmem [resolvable:$true] %s389_s13 }
  0x65   : > { %p18268_p1 = scmp.ne.s32.totalorder %s21790_s7, %s18267_s21  ;;  %p18274_p12 = scmp.lt.u32.totalorder %s18267_s21, %s21790_s7 }
  0x67   : > { %p18270_p3 = pnand %p18268_p1, %p18734_p8 }
  0x69   : > { %p18271_p11 = pneg %p18270_p3 }
  0x6b   : > { %p18276_p13 = pnand %p18274_p12, %p18271_p11 }
  0x6d   : > { %18279 = shalt.err (!%p18276_p13)
}
  0x6e   : > { %s18280_s29 = scalar_lea.vmem %s390_s13, 2048  ;;  %p18288_p7 = scmp.lt.s32.totalorder %s390_s13, %s390_s13 }
  0x6f   : > { %p18281_p0 = scmp.ne.s32.totalorder %s390_s13, %s18280_s29  ;;  %p18289_p9 = scmp.lt.s32.totalorder %s18280_s29, %s18280_s29 }
  0x71   : > { %p18283_p2 = pnand %p18281_p0, %p18734_p8  ;;  %p18290_p4 = por %p18289_p9, %p18288_p7 }
  0x73   : > { %p18284_p5 = pneg %p18283_p2 }
  0x75   : > { %p18291_p10 = pnand %p18290_p4, %p18284_p5 }
  0x77   : > { %18294 = shalt.err (!%p18291_p10)
}
  0x78   : > { %s18589_s30 = smov 256   ;;  %s18590_s14 = smov [#allocation17]  }
  0x79   : > { %17765 = dma.hbm_to_vmem [thread:$0]  (!%p18718_p6), %s21790_s7, 2048, %s390_s13, [#allocation15], %s18589_s30, %s18589_s30, %s21833_s26  }
  0x7a   : > { %s415_s15 = sshll.u32 %s18590_s14, 4  ;;  %s18591_s21 = smov [#allocation7]   ;;  %s416_s15 = int_to_ptr.vmem [resolvable:$true] %s415_s15 }
  0x7b   : > { %s324_s25 = sshll.u32 %s18591_s21, 4  ;;  %s18295_s24 = scalar_lea.hbm %s21792_s9, 4096  ;;  %s325_s25 = int_to_ptr.vmem [resolvable:$true] %s324_s25 }
  0x7c   : > { %p18296_p1 = scmp.ne.s32.totalorder %s21792_s9, %s18295_s24  ;;  %p18302_p12 = scmp.lt.u32.totalorder %s18295_s24, %s21792_s9 }
  0x7e   : > { %p18298_p3 = pnand %p18296_p1, %p18734_p8 }
  0x80   : > { %p18299_p11 = pneg %p18298_p3 }
  0x82   : > { %p18304_p13 = pnand %p18302_p12, %p18299_p11 }
  0x84   : > { %18307 = shalt.err (!%p18304_p13)
}
  0x85   : > { %s18308_s13 = scalar_lea.vmem %s416_s15, 4096  ;;  %p18316_p7 = scmp.lt.s32.totalorder %s416_s15, %s416_s15 }
  0x86   : > { %p18309_p0 = scmp.ne.s32.totalorder %s416_s15, %s18308_s13  ;;  %p18317_p9 = scmp.lt.s32.totalorder %s18308_s13, %s18308_s13 }
  0x88   : > { %p18311_p2 = pnand %p18309_p0, %p18734_p8  ;;  %p18318_p4 = por %p18317_p9, %p18316_p7 }
  0x8a   : > { %p18312_p5 = pneg %p18311_p2 }
  0x8c   : > { %p18319_p10 = pnand %p18318_p4, %p18312_p5 }
  0x8e   : > { %18322 = shalt.err (!%p18319_p10)
}
  0x8f   : > { %s21804_s12 = smov 128   ;;  %s21806_s30 = smov 8  }
  0x90   : > { %17771 = dma.hbm_to_vmem [thread:$0]  (!%p18718_p6), %s21792_s9, 4096, %s416_s15, [#allocation18], %s21804_s12, %s21804_s12, %s21806_s30  }
  0x91   : > { %s21834_s2 = sld [smem:[#allocation33_spill]] }
  0x97   : > { %s18323_s28 = scalar_lea.hbm %s21834_s2, 32 }
  0x98   : > { %p18324_p1 = scmp.ne.s32.totalorder %s21834_s2, %s18323_s28  ;;  %p18330_p12 = scmp.lt.u32.totalorder %s18323_s28, %s21834_s2 }
  0x9a   : > { %p18326_p3 = pnand %p18324_p1, %p18734_p8 }
  0x9c   : > { %p18327_p11 = pneg %p18326_p3 }
  0x9e   : > { %p18332_p13 = pnand %p18330_p12, %p18327_p11 }
  0xa0   : > { %18335 = shalt.err (!%p18332_p13)
}
  0xa1   : > { %s18336_s13 = scalar_lea.vmem %s325_s25, 32  ;;  %p18344_p7 = scmp.lt.s32.totalorder %s325_s25, %s325_s25 }
  0xa2   : > { %p18337_p0 = scmp.ne.s32.totalorder %s325_s25, %s18336_s13  ;;  %p18345_p9 = scmp.lt.s32.totalorder %s18336_s13, %s18336_s13 }
  0xa4   : > { %p18339_p2 = pnand %p18337_p0, %p18734_p8  ;;  %p18346_p4 = por %p18345_p9, %p18344_p7 }
  0xa6   : > { %p18340_p5 = pneg %p18339_p2 }
  0xa8   : > { %p18347_p10 = pnand %p18346_p4, %p18340_p5 }
  0xaa   : > { %18350 = shalt.err (!%p18347_p10)
}
  0xab   : > { %s21835_s15 = smov 1   ;;  %s18594_s14 = smov [#allocation10]  }
  0xac   : > { %17750 = dma.hbm_to_vmem [thread:$0]  (!%p18718_p6), %s21834_s2, 32, %s325_s25, [#allocation6], %s21833_s26, %s21833_s26, %s21835_s15  }
  0xad   : > { %s350_s21 = sshll.u32 %s18594_s14, 4  ;;  %s18595_s28 = smov [#allocation13]   ;;  %s351_s21 = int_to_ptr.vmem [resolvable:$true] %s350_s21 }
  0xae   : > { %s376_s22 = sshll.u32 %s18595_s28, 4  ;;  %s21836_s4 = sld [smem:[#allocation35_spill]]  ;;  %s377_s22 = int_to_ptr.vmem [resolvable:$true] %s376_s22 }
  0xb4   : > { %s18351_s11 = scalar_lea.hbm %s21836_s4, 4096 }
  0xb5   : > { %p18352_p1 = scmp.ne.s32.totalorder %s21836_s4, %s18351_s11  ;;  %p18358_p12 = scmp.lt.u32.totalorder %s18351_s11, %s21836_s4 }
  0xb7   : > { %p18354_p3 = pnand %p18352_p1, %p18734_p8 }
  0xb9   : > { %p18355_p11 = pneg %p18354_p3 }
  0xbb   : > { %p18360_p13 = pnand %p18358_p12, %p18355_p11 }
  0xbd   : > { %18363 = shalt.err (!%p18360_p13)
}
  0xbe   : > { %s18364_s25 = scalar_lea.vmem %s351_s21, 4096  ;;  %p18372_p7 = scmp.lt.s32.totalorder %s351_s21, %s351_s21 }
  0xbf   : > { %p18365_p0 = scmp.ne.s32.totalorder %s351_s21, %s18364_s25  ;;  %p18373_p9 = scmp.lt.s32.totalorder %s18364_s25, %s18364_s25 }
  0xc1   : > { %p18367_p2 = pnand %p18365_p0, %p18734_p8  ;;  %p18374_p4 = por %p18373_p9, %p18372_p7 }
  0xc3   : > { %p18368_p5 = pneg %p18367_p2 }
  0xc5   : > { %p18375_p10 = pnand %p18374_p4, %p18368_p5 }
  0xc7   : > { %18378 = shalt.err (!%p18375_p10)
}
  0xc8   : > { %s21837_s12 = smov 8   ;;  %s21838_s0 = smov 128  }
  0xc9   : > { %17756 = dma.hbm_to_vmem [thread:$0]  (!%p18718_p6), %s21836_s4, 4096, %s351_s21, [#allocation9], %s21838_s0, %s21838_s0, %s21837_s12  }
  0xca   : > { %s18379_s29 = scalar_lea.hbm %s21789_s6, 32 }
  0xcb   : > { %p18380_p1 = scmp.ne.s32.totalorder %s21789_s6, %s18379_s29  ;;  %p18386_p12 = scmp.lt.u32.totalorder %s18379_s29, %s21789_s6 }
  0xcd   : > { %p18382_p3 = pnand %p18380_p1, %p18734_p8 }
  0xcf   : > { %p18383_p11 = pneg %p18382_p3 }
  0xd1   : > { %p18388_p13 = pnand %p18386_p12, %p18383_p11 }
  0xd3   : > { %18391 = shalt.err (!%p18388_p13)
}
  0xd4   : > { %s18392_s30 = scalar_lea.vmem %s377_s22, 32  ;;  %p18400_p7 = scmp.lt.s32.totalorder %s377_s22, %s377_s22 }
  0xd5   : > { %p18393_p0 = scmp.ne.s32.totalorder %s377_s22, %s18392_s30  ;;  %p18401_p9 = scmp.lt.s32.totalorder %s18392_s30, %s18392_s30 }
  0xd7   : > { %p18395_p2 = pnand %p18393_p0, %p18734_p8  ;;  %p18402_p4 = por %p18401_p9, %p18400_p7 }
  0xd9   : > { %p18396_p5 = pneg %p18395_p2 }
  0xdb   : > { %p18403_p10 = pnand %p18402_p4, %p18396_p5 }
  0xdd   : > { %18406 = shalt.err (!%p18403_p10)
}
  0xde   : > { %17762 = dma.hbm_to_vmem [thread:$0]  (!%p18718_p6), %s21789_s6, 32, %s377_s22, [#allocation12], %s21833_s26, %s21833_s26, %s21835_s15  }
  0xdf   : > { %s18596_s28 = smov [#allocation16]   ;;  %s18407_s13 = scalar_lea.hbm %s21791_s8, 64 }
  0xe0   : > { %s402_s24 = sshll.u32 %s18596_s28, 4  ;;  %p18408_p1 = scmp.ne.s32.totalorder %s21791_s8, %s18407_s13  ;;  %s403_s24 = int_to_ptr.vmem [resolvable:$true] %s402_s24 }
  0xe1   : > { %p18414_p12 = scmp.lt.u32.totalorder %s18407_s13, %s21791_s8 }
  0xe2   : > { %p18410_p3 = pnand %p18408_p1, %p18734_p8 }
  0xe4   : > { %p18411_p11 = pneg %p18410_p3 }
  0xe6   : > { %p18416_p13 = pnand %p18414_p12, %p18411_p11 }
  0xe8   : > { %18419 = shalt.err (!%p18416_p13)
}
  0xe9   : > { %s18420_s22 = scalar_lea.vmem %s403_s24, 64  ;;  %p18428_p7 = scmp.lt.s32.totalorder %s403_s24, %s403_s24 }
  0xea   : > { %p18421_p0 = scmp.ne.s32.totalorder %s403_s24, %s18420_s22  ;;  %p18429_p9 = scmp.lt.s32.totalorder %s18420_s22, %s18420_s22 }
  0xec   : > { %p18423_p2 = pnand %p18421_p0, %p18734_p8  ;;  %p18430_p4 = por %p18429_p9, %p18428_p7 }
  0xee   : > { %p18424_p5 = pneg %p18423_p2 }
  0xf0   : > { %p18431_p10 = pnand %p18430_p4, %p18424_p5 }
  0xf2   : > { %18434 = shalt.err (!%p18431_p10)
}
  0xf3   : > { %s18597_s21 = smov 32   ;;  %s18598_s14 = smov 2  }
  0xf4   : > { %17768 = dma.hbm_to_vmem [thread:$0]  (!%p18718_p6), %s21791_s8, 64, %s403_s24, [#allocation15], %s18597_s21, %s18597_s21, %s18598_s14  }
  0xf5   : > { %s18599_s29 = smov [#allocation19]   ;;  %s18435_s25 = scalar_lea.hbm %s21793_s10, 32 }
  0xf6   : > { %s428_s11 = sshll.u32 %s18599_s29, 4  ;;  %p18436_p1 = scmp.ne.s32.totalorder %s21793_s10, %s18435_s25  ;;  %s429_s11 = int_to_ptr.vmem [resolvable:$true] %s428_s11 }
  0xf7   : > { %p18442_p12 = scmp.lt.u32.totalorder %s18435_s25, %s21793_s10 }
  0xf8   : > { %p18438_p3 = pnand %p18436_p1, %p18734_p8 }
  0xfa   : > { %p18439_p11 = pneg %p18438_p3 }
  0xfc   : > { %p18444_p13 = pnand %p18442_p12, %p18439_p11 }
  0xfe   : > { %18447 = shalt.err (!%p18444_p13)
}
  0xff   : > { %s18448_s24 = scalar_lea.vmem %s429_s11, 32  ;;  %p18456_p7 = scmp.lt.s32.totalorder %s429_s11, %s429_s11 }
 0x100   : > { %p18449_p0 = scmp.ne.s32.totalorder %s429_s11, %s18448_s24  ;;  %p18457_p9 = scmp.lt.s32.totalorder %s18448_s24, %s18448_s24 }
 0x102   : > { %p18451_p2 = pnand %p18449_p0, %p18734_p8  ;;  %p18458_p4 = por %p18457_p9, %p18456_p7 }
 0x104   : > { %p18452_p5 = pneg %p18451_p2 }
 0x106   : > { %p18459_p10 = pnand %p18458_p4, %p18452_p5 }
 0x108   : > { %18462 = shalt.err (!%p18459_p10)
}
 0x109   : > { %17774 = dma.hbm_to_vmem [thread:$0]  (!%p18718_p6), %s21793_s10, 32, %s429_s11, [#allocation18], %s21833_s26, %s21833_s26, %s21835_s15  }
 0x10a   : > { %s15590_s27 = sadd.s32 4294967294, %s18579_s20   ;;  %s18947_s16 = sadd.s32 1, %s18579_s20  }
 0x10b   : > { %s39_s21 = sadd.s32 1, %s18575_s19  ;;  %s36_s14 = ssub.s32 %s18579_s20, %s18947_s16 }
 0x10c   : > { %p46_p8 = scmp.ne.s32.totalorder %s18575_s19, %s18571_s18  ;;  %p37_p1 = scmp.eq.s32.totalorder %s36_s14, 0 }
 0x10d   : > { %p47_p3 = scmp.eq.s32.totalorder %s18579_s20, 0  ;;  %p52_p11 = scmp.ne.s32.totalorder %s18571_s18, %s18567_s17 }
 0x10e   : > { %p286_p12 = scmp.eq.s32.totalorder %s18702_s23, 1  ;;  %p21839_p0 = scmp.eq.s32.totalorder %s18702_s23, 0 }
 0x10f   : > { %s18959_s2 = scalar_select %p37_p1, %s18575_s19, %s39_s21  }
 0x110   : > { %p48_p13 = por %p47_p3, %p46_p8  ;;  %p18963_p2 = por %p21839_p0, %p52_p11 }
 0x111   : > { %p18967_p6 = por %p286_p12, %p46_p8  ;;  %p292_p5 = scmp.eq.s32.totalorder %s15590_s27, 1 }
 0x112   : > { %p17793_p7 = scmp.lt.s32.totalorder %s18579_s20, 2  ;;  %s442_s15 = sand.u32 1, %s18575_s19  }
 0x113   : > { %s21841_s26 = scalar_select %p18967_p6, 1, 0 }
 0x114   : > { %p18973_p9 = por %p292_p5, %p52_p11  ;;  %s15603_s11 = sshll.u32 %s442_s15, 5 }
 0x115   : > { %s15929_s13 = sshll.u32 %s18579_s20, 9  ;;  %s21843_s30 = sld [smem:[#allocation31_spill]] }
 0x116   : > { %s21842_s29 = scalar_select %p18973_p9, 1, 0 }
 0x117   : > { %s446_s24 = scalar_lea.vmem [#allocation2], %s15603_s11  ;;  %p18983_p4 = pnand %p17793_p7, %p48_p13 }
 0x118   : > { %s454_s3 = sshll.u32 %s446_s24, 4  ;;  %s18989_s27 = scalar_lea.sflag [#allocation3], %s442_s15  ;;  %s18987_s3 = int_to_ptr.vmem [resolvable:$true] %s454_s3 }
 0x119   : > { %p18465_p8 = pneg %p18983_p4 }
 0x11b   : > { %s18981_s22 = scalar_lea.hbm %s21843_s30, %s15929_s13  ;;  %s18468_s13 = scalar_lea.hbm %s21843_s30, 1024 }
 0x11c   : > { %s18463_s21 = scalar_lea.hbm %s18981_s22, 512  ;;  %p18469_p11 = scmp.lt.u32.totalorder %s18981_s22, %s21843_s30 }
 0x11d   : > { %p18464_p10 = scmp.ne.s32.totalorder %s18981_s22, %s18463_s21  ;;  %p18470_p12 = scmp.lt.u32.totalorder %s18468_s13, %s18463_s21 }
 0x11e   : > { %p18472_p0 = scmp.lt.u32.totalorder %s18463_s21, %s18981_s22 }
 0x11f   : > { %p18466_p1 = pnand %p18465_p8, %p18464_p10  ;;  %p18471_p13 = por %p18470_p12, %p18469_p11 }
 0x121   : > { %p18467_p3 = pneg %p18466_p1  ;;  %p18473_p5 = por %p18472_p0, %p18471_p13 }
 0x123   : > { %p18474_p7 = pnand %p18473_p5, %p18467_p3 }
 0x125   : > { %18477 = shalt.err (!%p18474_p7)
}
 0x126   : > { %s18478_s15 = scalar_lea.vmem %s18987_s3, 512  ;;  %s18600_s24 = smov [#allocation2]  }
 0x127   : > { %p18479_p10 = scmp.ne.s32.totalorder %s18987_s3, %s18478_s15  ;;  %s18483_s14 = sshll.u32 %s18600_s24, 4  ;;  %s18484_s14 = int_to_ptr.vmem [resolvable:$false] %s18483_s14 }
 0x128   : > { %s18485_s11 = scalar_lea.vmem %s18484_s14, 1024  ;;  %p18486_p6 = scmp.lt.s32.totalorder %s18987_s3, %s18484_s14 }
 0x129   : > { %p18481_p1 = pnand %p18479_p10, %p18465_p8  ;;  %p18487_p11 = scmp.lt.s32.totalorder %s18485_s11, %s18478_s15 }
 0x12b   : > { %p18482_p9 = pneg %p18481_p1  ;;  %p18488_p12 = por %p18487_p11, %p18486_p6 }
 0x12d   : > { %p18489_p13 = pnand %p18488_p12, %p18482_p9 }
 0x12f   : > { %18492 = shalt.err (!%p18489_p13)
}
 0x130   : > { %17778 = dma.hbm_to_vmem [thread:$0]  (!%p18983_p4), %s18981_s22, 512, %s18987_s3, %s18989_s27, %s21838_s0, %s21838_s0, %s21837_s12  }
 0x131   : > { %s21845_s21 = sld [smem:[#allocation28_spill]] }
 0x137   : > { %p21846_p8 = scmp.ne.s32.totalorder %s21845_s21, 0 }
 0x139   : > { %466 = sbr.rel (%p21846_p8) target bundleno = 14932 (0x3a54), region = 64 }
 0x140   : > { %s19023_s13 = sand.u32 1, %s18571_s18  }
 0x141   : > { %s15608_s1 = sshll.u32 %s19023_s13, 5  ;;  %s469_s25 = scalar_lea.sflag [#allocation3], %s19023_s13 }
 0x142   : > { %s19029_s4 = scalar_lea.vmem [#allocation2], %s15608_s1 }
 0x143   : > { %18538 = dma.done.wait (%p18963_p2), %s469_s25, 512  }
 0x144   : > { %18540 = vsyncadd (%p18963_p2), %s469_s25, 4294966784  ;;  %p21847_p6 = scmp.eq.s32.totalorder %s18702_s23, 0 }
 0x146   : > { %18542 = dma.done.wait (%p21847_p6), [#allocation6], 64   ;;  %p21848_p9 = pmov %p21847_p6 }
 0x147   : > { %p21849_p4 = pmov %p21847_p6 }
 0x148   : > { %18544 = vsyncadd (%p21848_p9), [#allocation6], 4294967232 }
 0x149   : > { %18546 = dma.done.wait (%p21849_p4), [#allocation9], 7168   ;;  %p21850_p3 = pmov %p21849_p4 }
 0x14b   : > { %18548 = vsyncadd (%p21850_p3), [#allocation9], 4294960128  ;;  %p21851_p0 = pmov %p21850_p3 }
 0x14d   : > { %18550 = dma.done.wait (%p21851_p0), [#allocation12], 64   ;;  %p21852_p5 = pmov %p21851_p0 }
 0x14e   : > { %p21853_p2 = pmov %p21851_p0 }
 0x14f   : > { %18552 = vsyncadd (%p21852_p5), [#allocation12], 4294967232 }
 0x150   : > { %18554 = dma.done.wait (%p21853_p2), [#allocation15], 2112   ;;  %p21854_p7 = pmov %p21851_p0 }
 0x151   : > { %p21855_p10 = pmov %p21851_p0 }
 0x152   : > { %18556 = vsyncadd (%p21854_p7), [#allocation15], 4294965184 }
 0x153   : > { %18558 = dma.done.wait (%p21855_p10), [#allocation18], 4128   ;;  %p21856_p1 = pmov %p21851_p0 }
 0x154   : > { %v565_v0 = vlaneseq  ;;  %v18601_v1 = vmov 1983009808   ;;  %v553_v6 = vld [vmem:[%s19029_s4] sm:$0xff]  ;;  %v555_v7 = vld [vmem:[%s19029_s4 + $0x10] sm:$0xff]  ;;  %vm673_vm0 = vcmask 257024   ;;  %vm666_vm1 = vcmask 261120  }
 0x155   : > { %18560 = vsyncadd (%p21856_p1), [#allocation18], 4294963168  ;;  %v563_v2 = vunpack.c.l.s4 %v18601_v1  ;;  %v561_v8 = vcombine.high %v553_v6, %v553_v6  ;;  %v19066_v10 = vld.sshfl [vmem:[%s19029_s4 + $0x8] sm:$0x3 pattern:$0x76325410]  ;;  %v585_v11 = vcombine.high %v555_v7, %v555_v7 }
 0x156   : > { %v19055_v3 = vshrl.u32 %v565_v0, 7  ;;  %v15621_v18 = vld.sshfl [vmem:[%s19029_s4 + $0x18] sm:$0x3 pattern:$0x76325410]  ;;  %vm18608_vm2 = vmmov 0  }
 0x157   : > { %v564_v4 = vunpack.c.0.s8 %v563_v2  ;;  %v18602_v35 = vmov 269488144   ;;  %v18603_v37 = vmov 842150450   ;;  %v18604_v39 = vmov 1414812756  }
 0x158   : > { %21857 = vst [vmem:[#allocation29_spill] sm:$0xff] %v19055_v3  ;;  %v685_v36 = vunpack.c.l.s4 %v18602_v35  ;;  %v692_v38 = vunpack.c.l.s4 %v18603_v37  ;;  %v699_v40 = vunpack.c.l.s4 %v18604_v39  ;;  %v18605_v41 = vmov 1987475062   ;;  %s18610_s12 = smov 112   ;;  %s18611_s0 = smov 96  }
 0x159   : > { %v19058_v5 = vsub.s32 %v564_v4, %v19055_v3  ;;  %v706_v42 = vunpack.c.l.s4 %v18605_v41  ;;  %vm1445_vm3 = vcmask 130048   ;;  %vm1752_vm5 = vcmask 1041408   ;;  %s18612_s28 = smov 80   ;;  %s18613_s22 = smov 64  }
 0x15a   : > { %v686_v43 = vunpack.c.0.s8 %v685_v36  ;;  %v693_v44 = vunpack.c.0.s8 %v692_v38  ;;  %v700_v45 = vunpack.c.0.s8 %v699_v40  ;;  %vm19291_vm4 = vmpackc.low %vm1445_vm3, %vm1445_vm3  ;;  %vm18609_vm6 = vmmov 1   ;;  %s18614_s3 = smov 48   ;;  %s18615_s27 = smov 32  }
 0x15b   : > { %v19063_v9 = vrot.slane %v553_v6, %v19058_v5  ;;  %v19069_v12 = vrot.slane %v555_v7, %v19058_v5  ;;  %v19072_v13 = vrot.slane %v561_v8, %v19058_v5  ;;  %v19079_v15 = vrot.slane %v585_v11, %v19058_v5  ;;  %vm19314_vm7 = vmpackc.low %vm1752_vm5, %vm18609_vm6  ;;  %s18616_s15 = smov 16   ;;  %s21709_s24 = scalar_lea.vmem [#allocation20], %s15608_s1 }
 0x15c   : > { %v707_v46 = vunpack.c.0.s8 %v706_v42  ;;  %v19112_v47 = vsub.s32 %v686_v43, %v19055_v3  ;;  %v19115_v49 = vsub.s32 %v693_v44, %v19055_v3  ;;  %v19118_v50 = vsub.s32 %v700_v45, %v19055_v3  ;;  %s15931_s14 = sshll.u32 %s18702_s23, 9  ;;  %s15422_s11 = sshll.u32 %s21709_s24, 4  ;;  %s21735_s11 = int_to_ptr.vmem [resolvable:$true] %s15422_s11 }
 0x15d   : > { %v19076_v14 = vcombine.high %v19063_v9, %v19063_v9  ;;  %v19083_v16 = vcombine.high %v19069_v12, %v19069_v12  ;;  %v638_v17 = vcombine.low %v19066_v10, %v19069_v12  ;;  %v19090_v19 = vcombine.high %v19072_v13, %v19072_v13  ;;  %s21870_s25 = sld [smem:[#allocation36_spill]]  ;;  %s15408_s23 = scalar_lea.sflag [#allocation4], %s19023_s13 }
 0x15e   : > { %v19098_v22 = vcombine.high %v19079_v15, %v19079_v15  ;;  %v19121_v51 = vsub.s32 %v707_v46, %v19055_v3  ;;  %vm1674_vm8 = vcmask 74752   ;;  %vm1670_vm9 = vcmask 80896   ;;  %p21871_p12 = scmp.ne.s32.totalorder %s21841_s26, 0 }
 0x15f   : > { %v621_v20 = vcombine.low %v19063_v9, %v19076_v14  ;;  %v639_v21 = vcombine.low %v19083_v16, %v19079_v15  ;;  %v646_v23 = vrot.slane %v638_v17, %v19058_v5  ;;  %v622_v24 = vcombine.low %v19072_v13, %v19090_v19 }
 0x160   : > { %v655_v27 = vcombine.low %v19098_v22, %v15621_v18  ;;  %21858 = vst [vmem:[#allocation30_spill] sm:$0xff] %v19121_v51 }
 0x161   : > { %v629_v25 = vrot.slane %v621_v20, %v19058_v5  ;;  %v653_v26 = vrot.slane %v639_v21, %v19058_v5  ;;  %v636_v28 = vrot.slane %v622_v24, %v19058_v5 }
 0x162   : > { %v662_v29 = vrot.slane %v655_v27, %v19058_v5 }
 0x163   : > { %v637_v30 = vcombine.low %v629_v25, %v636_v28  ;;  %v654_v31 = vcombine.low %v646_v23, %v653_v26 }
 0x164   : > { %v674_v32 = vsel %vm673_vm0, %v662_v29, 0.0 }
 0x165   : > { %675 = vadd.xlane.f32.xlu1 %v674_v32  ;;  %v667_v33 = vsel %vm666_vm1, %v637_v30, 0.0  ;;  %v670_v34 = vsel %vm666_vm1, %v654_v31, 0.0 }
 0x166   : > { %668 = vadd.xlane.f32.xlu0 %v667_v33 }
 0x16a   : > { %671 = vadd.xlane.f32.xlu0 %v670_v34 }
 0x1f2   : > { %v676_v48 = vpop.xlane.xlu1 %675 }
 0x1f3   : > { %v680_v52 = vmul.f32 0.03125, %v676_v48  ;;  %v669_v53 = vpop.xlane.xlu0 %668 }
 0x1f4   : > { %v678_v54 = vmul.f32 0.03125, %v669_v53  ;;  %v1026_v53 = vld [vmem:[#allocation8 + $0x20] sm:$0xff] }
 0x1f5   : > { %v746_v55 = vrot.slane %v680_v52, %v19112_v47  ;;  %v753_v56 = vrot.slane %v680_v52, %v19115_v49  ;;  %v1023_v52 = vld [vmem:[#allocation8 + $0x8] sm:$0xff] }
 0x1f6   : > { %v690_v57 = vrot.slane %v678_v54, %v19112_v47  ;;  %v697_v58 = vrot.slane %v678_v54, %v19115_v49  ;;  %v704_v59 = vrot.slane %v678_v54, %v19118_v50  ;;  %v711_v60 = vrot.slane %v678_v54, %v19121_v51  ;;  %v1022_v54 = vld [vmem:[#allocation8] sm:$0xff] }
 0x1f7   : > { %v672_v61 = vpop.xlane.xlu0 %671  ;;  %v19130_v62 = vsub.f32 %v19098_v22, %v746_v55  ;;  %v19132_v63 = vsub.f32 %v15621_v18, %v753_v56  ;;  %v17092_v55 = vpack.c.bf16 %v1026_v53, %v1023_v52  ;;  %v1025_v56 = vld [vmem:[#allocation8 + $0x18] sm:$0xff] }
 0x1f8   : > { %v679_v0 = vmul.f32 0.03125, %v672_v61  ;;  %v19135_v1 = vsub.f32 %v19063_v9, %v690_v57  ;;  %v19138_v2 = vsub.f32 %v19076_v14, %v697_v58  ;;  %v19141_v4 = vsub.f32 %v19072_v13, %v704_v59  ;;  %v1029_v57 = vld [vmem:[#allocation8 + $0x38] sm:$0xff]  ;;  %v1032_v58 = vld [vmem:[#allocation8 + $0x50] sm:$0xff] }
 0x1f9   : > { %v19144_v6 = vsub.f32 %v19090_v19, %v711_v60  ;;  %v782_v7 = vmul.f32 %v19130_v62, %v19130_v62  ;;  %v783_v8 = vmul.f32 %v19132_v63, %v19132_v63  ;;  %v21815_v59 = vmov 0.0   ;;  %17093 = vmatprep.subr.bf16.mxu0 %v17092_v55 }
 0x1fa   : > { %v718_v11 = vrot.slane %v679_v0, %v19112_v47  ;;  %v725_v17 = vrot.slane %v679_v0, %v19115_v49  ;;  %v732_v18 = vrot.slane %v679_v0, %v19118_v50  ;;  %v739_v20 = vrot.slane %v679_v0, %v19121_v51  ;;  %1156 = vmatprep.mubr.f32.mxu0 %v21815_v59  ;;  %v1028_v0 = vld [vmem:[#allocation8 + $0x30] sm:$0xff] }
 0x1fb   : > { %v774_v21 = vmul.f32 %v19135_v1, %v19135_v1  ;;  %v775_v23 = vmul.f32 %v19138_v2, %v19138_v2  ;;  %v776_v24 = vmul.f32 %v19141_v4, %v19141_v4  ;;  %v777_v25 = vmul.f32 %v19144_v6, %v19144_v6 }
 0x1fc   : > { %v19163_v26 = vsub.f32 %v19066_v10, %v718_v11  ;;  %v19166_v27 = vsub.f32 %v19069_v12, %v725_v17  ;;  %v19169_v28 = vsub.f32 %v19083_v16, %v732_v18  ;;  %v828_v31 = vcombine.low %v782_v7, %v783_v8  ;;  %v1031_v7 = vld [vmem:[#allocation8 + $0x48] sm:$0xff] }
 0x1fd   : > { %v794_v29 = vcombine.low %v774_v21, %v775_v23  ;;  %v795_v30 = vcombine.low %v776_v24, %v777_v25  ;;  %v19172_v32 = vsub.f32 %v19079_v15, %v739_v20  ;;  %v17094_v60 = vpack.c.bf16 %v1025_v56, %v1022_v54 }
 0x1fe   : > { %v778_v33 = vmul.f32 %v19163_v26, %v19163_v26  ;;  %v779_v34 = vmul.f32 %v19166_v27, %v19166_v27  ;;  %v780_v10 = vmul.f32 %v19169_v28, %v19169_v28  ;;  %v835_v40 = vrot.slane %v828_v31, %v19058_v5 }
 0x1ff   : > { %v802_v35 = vrot.slane %v794_v29, %v19058_v5  ;;  %v809_v36 = vrot.slane %v795_v30, %v19058_v5  ;;  %v781_v37 = vmul.f32 %v19172_v32, %v19172_v32  ;;  %v17096_v61 = vpack.c.bf16 %v1032_v58, %v1029_v57  ;;  %17095 = vmatpush1.bf16.msra.mxu0 %v17094_v60  ;;  %v15622_v29 = vld [vmem:[#allocation5] ss:$0 sm:$0xff] }
 0x200   : > { %v811_v38 = vcombine.low %v778_v33, %v779_v34  ;;  %v845_v45 = vsel %vm673_vm0, %v835_v40, 0.0  ;;  %v17098_v8 = vpack.c.bf16 %v1031_v7, %v1028_v0  ;;  %v21809_v11 = vmov 0.0|0.0   ;;  %v15623_v33 = vld [vmem:[#allocation7] ss:$0 sm:$0xff] }
 0x201   : > { %v810_v39 = vcombine.low %v802_v35, %v809_v36  ;;  %v812_v41 = vcombine.low %v780_v10, %v781_v37  ;;  %17097 = vmatprep.subr.bf16.mxu0 %v17096_v61  ;;  %v955_v34 = vcombine.high %v15622_v29, %v15622_v29  ;;  %v962_v10 = vrot.slane %v15622_v29, %v19058_v5 }
 0x202   : > { %v819_v42 = vrot.slane %v811_v38, %v19058_v5  ;;  %v991_v35 = vcombine.high %v15623_v33, %v15623_v33  ;;  %v998_v37 = vrot.slane %v15623_v33, %v19058_v5 }
 0x203   : > { %v839_v43 = vsel %vm666_vm1, %v810_v39, 0.0  ;;  %v826_v44 = vrot.slane %v812_v41, %v19058_v5  ;;  %17099 = vmatpush1.bf16.msra.mxu0 %v17098_v8  ;;  %v969_v36 = vrot.slane %v955_v34, %v19058_v5  ;;  %v970_v39 = vcombine.high %v962_v10, %v962_v10 }
 0x204   : > { %840 = vadd.xlane.f32.xlu1 %v839_v43  ;;  %17100 = vmatprep.subr.bf16.mxu0 %v21809_v11  ;;  %v1005_v40 = vrot.slane %v991_v35, %v19058_v5 }
 0x205   : > { %v827_v46 = vcombine.low %v819_v42, %v826_v44 }
 0x206   : > { %v1007_v56 = vcombine.high %v1005_v40, %v1005_v40 }
 0x207   : > { %v842_v48 = vsel %vm666_vm1, %v827_v46, 0.0  ;;  %v1006_v46 = vcombine.high %v998_v37, %v998_v37 }
 0x208   : > { %846 = vadd.xlane.f32.xlu1 %v845_v45  ;;  %843 = vadd.xlane.f32.xlu0 %v842_v48  ;;  %v971_v45 = vcombine.high %v969_v36, %v969_v36 }
 0x291   : > { %v841_v17 = vpop.xlane.xlu1 %840 }
 0x292   : > { %v848_v18 = vmul.f32 0.03125, %v841_v17 }
 0x294   : > { %v851_v20 = vadd.f32 1e-05, %v848_v18 }
 0x295   : > { %v847_v21 = vpop.xlane.xlu1 %846  ;;  %v844_v23 = vpop.xlane.xlu0 %843 }
 0x296   : > { %17877 = vrsqrt.f32 %v851_v20  ;;  %v850_v24 = vmul.f32 0.03125, %v847_v21  ;;  %v849_v25 = vmul.f32 0.03125, %v844_v23 }
 0x298   : > { %v853_v30 = vadd.f32 1e-05, %v850_v24  ;;  %v852_v31 = vadd.f32 1e-05, %v849_v25 }
 0x29a   : > { %17879 = vrsqrt.f32 %v853_v30 }
 0x29b   : > { %17881 = vrsqrt.f32 %v852_v31 }
 0x2a0   : > { %v17878_v38 = vpop.eup %17877 }
 0x2a1   : > { %v866_v41 = vrot.slane %v17878_v38, %v19112_v47  ;;  %v873_v42 = vrot.slane %v17878_v38, %v19115_v49  ;;  %v880_v43 = vrot.slane %v17878_v38, %v19118_v50  ;;  %v887_v44 = vrot.slane %v17878_v38, %v19121_v51  ;;  %v1024_v38 = vld [vmem:[#allocation8 + $0x10] sm:$0xff] }
 0x2a3   : > { %v940_v48 = vmul.f32 %v866_v41, %v19135_v1  ;;  %v941_v52 = vmul.f32 %v873_v42, %v19138_v2  ;;  %v942_v53 = vmul.f32 %v880_v43, %v19141_v4  ;;  %v943_v54 = vmul.f32 %v887_v44, %v19144_v6  ;;  %v1027_v41 = vld [vmem:[#allocation8 + $0x28] sm:$0xff] }
 0x2a4   : > { %v17880_v55 = vpop.eup %17879 }
 0x2a5   : > { %v17882_v57 = vpop.eup %17881  ;;  %v922_v58 = vrot.slane %v17880_v55, %v19112_v47  ;;  %v929_v60 = vrot.slane %v17880_v55, %v19115_v49  ;;  %v976_v61 = vmul.f32 %v962_v10, %v940_v48  ;;  %v977_v0 = vmul.f32 %v970_v39, %v941_v52 }
 0x2a6   : > { %v978_v7 = vmul.f32 %v969_v36, %v942_v53  ;;  %v979_v8 = vmul.f32 %v971_v45, %v943_v54  ;;  %v894_v17 = vrot.slane %v17882_v57, %v19112_v47  ;;  %v901_v1 = vrot.slane %v17882_v57, %v19115_v49 }
 0x2a7   : > { %v1012_v2 = vadd.f32 %v998_v37, %v976_v61  ;;  %v1013_v18 = vadd.f32 %v1006_v46, %v977_v0  ;;  %v908_v4 = vrot.slane %v17882_v57, %v19118_v50  ;;  %v915_v6 = vrot.slane %v17882_v57, %v19121_v51 }
 0x2a8   : > { %v1014_v20 = vadd.f32 %v1005_v40, %v978_v7  ;;  %v1015_v21 = vadd.f32 %v1007_v56, %v979_v8  ;;  %v944_v23 = vmul.f32 %v894_v17, %v19163_v26  ;;  %v945_v24 = vmul.f32 %v901_v1, %v19166_v27  ;;  %v1030_v7 = vld [vmem:[#allocation8 + $0x40] sm:$0xff] }
 0x2a9   : > { %v1044_v25 = vcombine.low %v1012_v2, %v1013_v18  ;;  %v946_v29 = vmul.f32 %v908_v4, %v19169_v28  ;;  %v947_v30 = vmul.f32 %v915_v6, %v19172_v32  ;;  %v948_v31 = vmul.f32 %v922_v58, %v19130_v62 }
 0x2aa   : > { %v1045_v33 = vcombine.low %v1014_v20, %v1015_v21  ;;  %v980_v34 = vmul.f32 %v962_v10, %v944_v23  ;;  %v981_v35 = vmul.f32 %v970_v39, %v945_v24  ;;  %v949_v42 = vmul.f32 %v929_v60, %v19132_v63  ;;  %v1033_v63 = vld [vmem:[#allocation8 + $0x58] sm:$0xff] }
 0x2ab   : > { %v1052_v43 = vrot.slane %v1044_v25, %v19058_v5  ;;  %v982_v44 = vmul.f32 %v969_v36, %v946_v29  ;;  %v983_v26 = vmul.f32 %v971_v45, %v947_v30  ;;  %v984_v48 = vmul.f32 %v962_v10, %v948_v31 }
 0x2ac   : > { %v1059_v27 = vrot.slane %v1045_v33, %v19058_v5  ;;  %v1016_v52 = vadd.f32 %v998_v37, %v980_v34  ;;  %v1017_v28 = vadd.f32 %v1006_v46, %v981_v35  ;;  %v985_v53 = vmul.f32 %v970_v39, %v949_v42 }
 0x2ad   : > { %v1018_v32 = vadd.f32 %v1005_v40, %v982_v44  ;;  %v1019_v54 = vadd.f32 %v1007_v56, %v983_v26  ;;  %v17101_v62 = vpack.c.bf16 %v1027_v41, %v1024_v38  ;;  %v1020_v61 = vadd.f32 %v998_v37, %v984_v48 }
 0x2ae   : > { %v1060_v55 = vcombine.low %v1052_v43, %v1059_v27  ;;  %v1061_v57 = vcombine.low %v1016_v52, %v1017_v28  ;;  %v1021_v0 = vadd.f32 %v1006_v46, %v985_v53  ;;  %v17104_v39 = vpack.c.bf16 %v1033_v63, %v1030_v7 }
 0x2af   : > { %v1062_v58 = vcombine.low %v1018_v32, %v1019_v54 }
 0x2b0   : > { %15624 = vmatmul.mubr.msk.f32.vlgmr.msra.gmra.mrb[0].mxu0 %vm666_vm1, %v1060_v55  ;;  %v1069_v36 = vrot.slane %v1061_v57, %v19058_v5  ;;  %v1078_v45 = vcombine.low %v1020_v61, %v1021_v0 }
 0x2b1   : > { %1162 = vmatprep.mubr.f32.mxu0 %v21815_v59  ;;  %v1076_v10 = vrot.slane %v1062_v58, %v19058_v5  ;;  %17102 = vmatpush3.bf16.msra.mxu0 %v17101_v62 }
 0x2b2   : > { %17103 = vmatprep.subr.bf16.mxu0 %v21809_v11  ;;  %v1085_v37 = vrot.slane %v1078_v45, %v19058_v5 }
 0x2b3   : > { %v1077_v40 = vcombine.low %v1069_v36, %v1076_v10 }
 0x2b5   : > { %15625 = vmatmul.mubr.msk.f32.gmra.mrb[2].mxu0 %vm666_vm1, %v1077_v40 }
 0x2b6   : > { %1168 = vmatprep.mubr.f32.mxu0 %v21815_v59  ;;  %17105 = vmatpush3.bf16.msra.mxu0 %v17104_v39 }
 0x2b9   : > { %15626 = vmatmul.mubr.msk.f32.gmra.mrb[4].mxu0 %vm666_vm1, %v1085_v37 }
 0x2ba   : > { %16328 = vmatprep.mubr.msk.f32.mxu0 %vm18608_vm2, %v21815_v59 }
 0x2bd   : > { %16329 = vmatmul.mubr.msk.f32.vlgmr.msra.gmra.mrb[6].mxu0 %vm666_vm1, %v1060_v55 }
 0x2be   : > { %16331 = vmatprep.mubr.msk.f32.mxu0 %vm18608_vm2, %v21815_v59 }
 0x2c1   : > { %16332 = vmatmul.mubr.msk.f32.gmra.mrb[8].mxu0 %vm666_vm1, %v1077_v40 }
 0x2c2   : > { %16334 = vmatprep.mubr.msk.f32.mxu0 %vm18608_vm2, %v21815_v59 }
 0x2c5   : > { %16335 = vmatmul.mubr.msk.f32.gmra.mrb[10].mxu0 %vm666_vm1, %v1085_v37 }
 0x383   : > { %v1158_v46 = vpop.f32.mrb[0].mxu0 }
 0x384   : > { %v1160_v56 = vpop.f32.mrb[1].mxu0 }
 0x385   : > { %v1264_v60 = vcombine.low %v1158_v46, %v1160_v56  ;;  %v1265_v8 = vcombine.high %v1158_v46, %v1160_v56 }
 0x387   : > { %v1273_v23 = vrot.slane %v1264_v60, %v19058_v5  ;;  %v1280_v30 = vrot.slane %v1265_v8, %v19058_v5 }
 0x388   : > { %v1164_v17 = vpop.f32.mrb[2].mxu0 }
 0x389   : > { %v1166_v1 = vpop.f32.mrb[3].mxu0 }
 0x38a   : > { %v1299_v2 = vcombine.low %v1164_v17, %v1166_v1  ;;  %v1300_v18 = vcombine.high %v1164_v17, %v1166_v1 }
 0x38c   : > { %v1170_v4 = vpop.f32.mrb[4].mxu0  ;;  %v1308_v35 = vrot.slane %v1299_v2, %v19058_v5  ;;  %v1315_v38 = vrot.slane %v1300_v18, %v19058_v5 }
 0x38d   : > { %v1172_v6 = vpop.f32.mrb[5].mxu0 }
 0x38e   : > { %v1334_v20 = vcombine.low %v1170_v4, %v1172_v6 }
 0x390   : > { %v1241_v21 = vpop.f32.mrb[6].mxu0  ;;  %v1341_v41 = vrot.slane %v1334_v20, %v19058_v5 }
 0x391   : > { %v1266_v24 = vcombine.high %v1241_v21, %v1241_v21  ;;  %v1287_v25 = vrot.slane %v1241_v21, %v19058_v5  ;;  %v16330_v29 = vpop.f32.mrb[7].mxu0 }
 0x393   : > { %v1294_v31 = vrot.slane %v1266_v24, %v19058_v5  ;;  %v19240_v33 = vcombine.low %v1273_v23, %v1287_v25  ;;  %v19242_v34 = vcombine.high %v1273_v23, %v1287_v25 }
 0x394   : > { %v1246_v42 = vpop.f32.mrb[8].mxu0 }
 0x395   : > { %v19247_v43 = vcombine.low %v1280_v30, %v1294_v31  ;;  %v19249_v44 = vcombine.high %v1280_v30, %v1294_v31  ;;  %v1301_v26 = vcombine.high %v1246_v42, %v1246_v42  ;;  %v1322_v48 = vrot.slane %v1246_v42, %v19058_v5  ;;  %v16333_v27 = vpop.f32.mrb[9].mxu0 }
 0x396   : > { %v1361_v52 = vmul.f32 0.25, %v19240_v33  ;;  %v1362_v28 = vmul.f32 0.25, %v19242_v34  ;;  %v1387_v53 = vrot.slane %v19240_v33, 2  ;;  %v1388_v32 = vrot.slane %v19242_v34, 2 }
 0x397   : > { %v1329_v54 = vrot.slane %v1301_v26, %v19058_v5  ;;  %v19257_v62 = vcombine.low %v1308_v35, %v1322_v48  ;;  %v19259_v55 = vcombine.high %v1308_v35, %v1322_v48  ;;  %v1363_v57 = vmul.f32 0.25, %v19247_v43 }
 0x398   : > { %v1251_v58 = vpop.f32.mrb[10].mxu0  ;;  %v1364_v61 = vmul.f32 0.25, %v19249_v44  ;;  %v1397_v0 = vcombine.low %v1361_v52, %v1362_v28  ;;  %v1389_v7 = vrot.slane %v19247_v43, 2  ;;  %v1390_v63 = vrot.slane %v19249_v44, 2 }
 0x399   : > { %v19265_v36 = vcombine.low %v1315_v38, %v1329_v54  ;;  %v19267_v10 = vcombine.high %v1315_v38, %v1329_v54  ;;  %v1348_v39 = vrot.slane %v1251_v58, %v19058_v5  ;;  %v16336_v40 = vpop.f32.mrb[11].mxu0  ;;  %v1391_v45 = vrot.slane %v19257_v62, 2 }
 0x39a   : > { %v1398_v37 = vcombine.low %v1363_v57, %v1364_v61  ;;  %v1405_v46 = vrot.slane %v1397_v0, %v19058_v5  ;;  %v1421_v56 = vcombine.low %v1387_v53, %v1388_v32  ;;  %v1422_v60 = vcombine.low %v1389_v7, %v1390_v63 }
 0x39b   : > { %v19272_v8 = vcombine.low %v1341_v41, %v1348_v39  ;;  %v19274_v17 = vcombine.high %v1341_v41, %v1348_v39  ;;  %v1444_v1 = vrot.slane %v1391_v45, %v19058_v5  ;;  %v1716_v2 = vrot.slane %v19240_v33, 4 }
 0x39c   : > { %v1412_v18 = vrot.slane %v1398_v37, %v19058_v5  ;;  %v1429_v4 = vrot.slane %v1421_v56, %v19058_v5  ;;  %v1436_v6 = vrot.slane %v1422_v60, %v19058_v5  ;;  %v1717_v20 = vrot.slane %v19242_v34, 4 }
 0x39d   : > { %v1718_v21 = vrot.slane %v19247_v43, 4  ;;  %v1719_v23 = vrot.slane %v19249_v44, 4  ;;  %v1720_v24 = vrot.slane %v19257_v62, 4  ;;  %v1366_v25 = vmul.f32 0.25, %v19259_v55 }
 0x39e   : > { %v19286_v29 = vcombine.low %v1405_v46, %v1412_v18  ;;  %v1437_v30 = vcombine.low %v1429_v4, %v1436_v6  ;;  %v1721_v31 = vcombine.low %v1716_v2, %v1717_v20  ;;  %v1367_v35 = vmul.f32 0.25, %v19265_v36 }
 0x39f   : > { %v1722_v41 = vcombine.low %v1718_v21, %v1719_v23  ;;  %v1368_v42 = vmul.f32 0.25, %v19267_v10  ;;  %v1369_v26 = vmul.f32 0.25, %v19272_v8  ;;  %v1529_v32 = vrot.slane %v19259_v55, 2 }
 0x3a0   : > { %16341 = vmatprep.mubr.msk.f32.mxu0 %vm1445_vm3, %v19286_v29  ;;  %v17106_v48 = vpack.c.bf16 %v1444_v1, %v1437_v30  ;;  %v1729_v27 = vrot.slane %v1721_v31, %v19058_v5  ;;  %v1539_v52 = vcombine.low %v1366_v25, %v1367_v35  ;;  %v1530_v54 = vrot.slane %v19265_v36, 2 }
 0x3a1   : > { %v1736_v28 = vrot.slane %v1722_v41, %v19058_v5  ;;  %v1540_v53 = vcombine.low %v1368_v42, %v1369_v26  ;;  %v1744_v57 = vrot.slane %v1720_v24, %v19058_v5  ;;  %v1531_v61 = vrot.slane %v19267_v10, 2 }
 0x3a2   : > { %17108 = vmatprep.subr.msk.bf16.mxu0 %vm19291_vm4, %v17106_v48  ;;  %v1547_v58 = vrot.slane %v1539_v52, %v19058_v5  ;;  %v1532_v0 = vrot.slane %v19272_v8, 2  ;;  %v1533_v39 = vrot.slane %v19274_v17, 2  ;;  %v1563_v40 = vcombine.low %v1529_v32, %v1530_v54 }
 0x3a3   : > { %17111 = vmatpush3.bf16.xpose.msk.msra.mxu0 %vm19291_vm4, %v17106_v48  ;;  %v1737_v7 = vcombine.low %v1729_v27, %v1736_v28  ;;  %v1554_v63 = vrot.slane %v1540_v53, %v19058_v5  ;;  %v1365_v46 = vmul.f32 0.25, %v19257_v62  ;;  %v1830_v56 = vrot.slane %v19259_v55, 4 }
 0x3a4   : > { %v1564_v37 = vcombine.low %v1531_v61, %v1532_v0  ;;  %v1831_v60 = vrot.slane %v19265_v36, 4  ;;  %v1571_v18 = vrot.slane %v1563_v40, %v19058_v5  ;;  %v1832_v6 = vrot.slane %v19267_v10, 4 }
 0x3a5   : > { %v17118_v1 = vpack.c.bf16 %v1744_v57, %v1737_v7  ;;  %v19321_v2 = vcombine.low %v1547_v58, %v1554_v63  ;;  %v1833_v20 = vrot.slane %v19272_v8, 4  ;;  %v1586_v23 = vrot.slane %v1533_v39, %v19058_v5 }
 0x3a6   : > { %v1578_v4 = vrot.slane %v1564_v37, %v19058_v5  ;;  %v1835_v21 = vcombine.low %v1830_v56, %v1831_v60  ;;  %v19333_v25 = vrot.slane %v1365_v46, %v19058_v5  ;;  %v1834_v30 = vrot.slane %v19274_v17, 4 }
 0x3a7   : > { %17120 = vmatprep.subr.msk.bf16.mxu0 %vm19314_vm7, %v17118_v1  ;;  %16348 = vmatprep.mubr.msk.f32.mxu1 %vm1445_vm3, %v19321_v2  ;;  %v1836_v31 = vcombine.low %v1832_v6, %v1833_v20  ;;  %v1370_v52 = vmul.f32 0.25, %v19274_v17 }
 0x3a8   : > { %v1579_v24 = vcombine.low %v1571_v18, %v1578_v4  ;;  %v1843_v41 = vrot.slane %v1835_v21, %v19058_v5  ;;  %v1858_v48 = vrot.slane %v1834_v30, %v19058_v5 }
 0x3a9   : > { %v1850_v42 = vrot.slane %v1836_v31, %v19058_v5  ;;  %v19351_v28 = vrot.slane %v1370_v52, %v19058_v5 }
 0x3aa   : > { %v17112_v35 = vpack.c.bf16 %v1586_v23, %v1579_v24  ;;  %16342 = vmatmul.mubr.msk.f32.vlgmr.msra.gmra.mrb[12].mxu0 %vm1445_vm3, %v19333_v25 }
 0x3ab   : > { %17123 = vmatpush3.bf16.msk.msra.mxu0 %vm19314_vm7, %v17118_v1  ;;  %v1851_v26 = vcombine.low %v1843_v41, %v1850_v42 }
 0x3ac   : > { %17114 = vmatprep.subr.msk.bf16.mxu1 %vm19291_vm4, %v17112_v35 }
 0x3ad   : > { %17117 = vmatpush3.bf16.xpose.msk.msra.mxu1 %vm19291_vm4, %v17112_v35  ;;  %v17124_v27 = vpack.c.bf16 %v1858_v48, %v1851_v26 }
 0x3af   : > { %17126 = vmatprep.subr.msk.bf16.mxu1 %vm19314_vm7, %v17124_v27 }
 0x3b4   : > { %16349 = vmatmul.mubr.msk.f32.vlgmr.msra.gmra.mrb[0].mxu1 %vm1445_vm3, %v19351_v28 }
 0x3b5   : > { %17129 = vmatpush3.bf16.msk.msra.mxu1 %vm19314_vm7, %v17124_v27 }
 0x47d   : > { %v19357_v53 = vpop.f32.mrb[12].mxu0 }
 0x47e   : > { %v19359_v32 = vpop.f32.mrb[13].mxu0  ;;  %v1675_v4 = vsel %vm1674_vm8, %v19357_v53, -inf }
 0x47f   : > { %v1671_v18 = vsel %vm1670_vm9, %v19359_v32, -inf }
 0x487   : > { %v16350_v54 = vpop.f32.mrb[0].mxu1 }
 0x488   : > { %v1661_v57 = vpop.f32.mrb[1].mxu1  ;;  %v1681_v58 = vsel %vm1674_vm8, %v16350_v54, -inf }
 0x489   : > { %1682 = vmax.xlane.f32.xlu1 %v1681_v58  ;;  %v1678_v61 = vsel %vm1670_vm9, %v1661_v57, -inf }
 0x48a   : > { %1679 = vmax.xlane.f32.xlu0 %v1678_v61 }
 0x49a   : > { %2123 = vrot.lane.b32.xlu1 %v19265_v36, %s18610_s12 }
 0x49e   : > { %2125 = vrot.lane.b32.xlu1 %v19267_v10, %s18610_s12 }
 0x4a0   : > { %2121 = vrot.lane.b32.xlu0 %v19259_v55, %s18610_s12 }
 0x4a2   : > { %2127 = vrot.lane.b32.xlu1 %v19272_v8, %s18610_s12 }
 0x516   : > { %v1683_v0 = vpop.xlane.xlu1 %1682 }
 0x517   : > { %v1687_v7 = vsub.f32 %v16350_v54, %v1683_v0  ;;  %v1680_v63 = vpop.xlane.xlu0 %1679 }
 0x518   : > { %v1686_v39 = vsub.f32 %v1661_v57, %v1680_v63 }
 0x519   : > { %v1694_v40 = vmul.f32 1.442695, %v1687_v7 }
 0x51a   : > { %v1692_v37 = vmul.f32 1.442695, %v1686_v39  ;;  %v2124_v6 = vpop.permute.xlu1 %2123 }
 0x51b   : > { %17883 = vpow2.f32 %v1694_v40  ;;  %v2122_v23 = vpop.permute.xlu0 %2121  ;;  %v2132_v30 = vrot.slane %v2124_v6, 2  ;;  %v2405_v52 = vrot.slane %v2124_v6, 4 }
 0x51c   : > { %17885 = vpow2.f32 %v1692_v37  ;;  %v2131_v31 = vrot.slane %v2122_v23, 2  ;;  %v2404_v54 = vrot.slane %v2122_v23, 4 }
 0x51e   : > { %v2126_v20 = vpop.permute.xlu1 %2125  ;;  %v2140_v48 = vcombine.low %v2131_v31, %v2132_v30  ;;  %v2409_v39 = vcombine.low %v2404_v54, %v2405_v52 }
 0x51f   : > { %v2133_v35 = vrot.slane %v2126_v20, 2  ;;  %v2406_v57 = vrot.slane %v2126_v20, 4 }
 0x520   : > { %v2148_v0 = vrot.slane %v2140_v48, %v19058_v5  ;;  %v2417_v6 = vrot.slane %v2409_v39, %v19058_v5 }
 0x522   : > { %v2128_v21 = vpop.permute.xlu1 %2127 }
 0x523   : > { %v2134_v24 = vrot.slane %v2128_v21, 2  ;;  %v2407_v27 = vrot.slane %v2128_v21, 4 }
 0x525   : > { %v17884_v46 = vpop.eup %17883  ;;  %v2141_v41 = vcombine.low %v2133_v35, %v2134_v24  ;;  %v2410_v7 = vcombine.low %v2406_v57, %v2407_v27 }
 0x526   : > { %v17886_v56 = vpop.eup %17885  ;;  %v1705_v60 = vsel %vm1674_vm8, %v17884_v46, 0.0 }
 0x527   : > { %1706 = vadd.xlane.f32.xlu1 %v1705_v60  ;;  %v1702_v1 = vsel %vm1670_vm9, %v17886_v56, 0.0  ;;  %v2155_v58 = vrot.slane %v2141_v41, %v19058_v5 }
 0x528   : > { %1703 = vadd.xlane.f32.xlu0 %v1702_v1  ;;  %v2424_v1 = vrot.slane %v2410_v7, %v19058_v5 }
 0x529   : > { %v2156_v60 = vcombine.low %v2148_v0, %v2155_v58 }
 0x52a   : > { %v2425_v30 = vcombine.low %v2417_v6, %v2424_v1 }
 0x538   : > { %2136 = vrot.lane.b32.xlu1 %v19321_v2, %s18610_s12 }
 0x53e   : > { %2129 = vrot.lane.b32.xlu0 %v19274_v17, %s18610_s12 }
 0x542   : > { %2138 = vrot.lane.b32.xlu0 %v19351_v28, %s18610_s12 }
 0x55c   : > { %1672 = vmax.xlane.f32.xlu1 %v1671_v18 }
 0x561   : > { %1676 = vmax.xlane.f32.xlu0 %v1675_v4 }
 0x5b4   : > { %v1707_v42 = vpop.xlane.xlu1 %1706 }
 0x5b5   : > { %17887 = vrcp.f32 %v1707_v42  ;;  %v1704_v26 = vpop.xlane.xlu0 %1703 }
 0x5b6   : > { %17889 = vrcp.f32 %v1704_v26 }
 0x5b8   : > { %v2137_v31 = vpop.permute.xlu1 %2136 }
 0x5b9   : > { %v2130_v61 = vpop.permute.xlu0 %2129 }
 0x5ba   : > { %v2135_v63 = vrot.slane %v2130_v61, 2  ;;  %v2408_v37 = vrot.slane %v2130_v61, 4 }
 0x5bc   : > { %v2163_v40 = vrot.slane %v2135_v63, %v19058_v5  ;;  %v2432_v20 = vrot.slane %v2408_v37, %v19058_v5 }
 0x5bd   : > { %v2139_v41 = vpop.permute.xlu0 %2138 }
 0x5be   : > { %v17136_v18 = vpack.c.bf16 %v2163_v40, %v2156_v60  ;;  %v17148_v35 = vpack.c.bf16 %v2432_v20, %v2425_v30 }
 0x5bf   : > { %v17888_v4 = vpop.eup %17887 }
 0x5c0   : > { %v17890_v21 = vpop.eup %17889  ;;  %17138 = vmatprep.subr.msk.bf16.mxu1 %vm19291_vm4, %v17136_v18  ;;  %v1715_v24 = vmul.f32 %v17888_v4, %v17884_v46 }
 0x5c1   : > { %v1714_v23 = vmul.f32 %v17890_v21, %v17886_v56 }
 0x5c3   : > { %16362 = vmatprep.mubr.msk.f32.mxu1 %vm1670_vm9, %v1714_v23 }
 0x5c4   : > { %16363 = vmatmul.mubr.msk.f32.vlgmr.msra.gmra.mrb[2].mxu1 %vm1670_vm9, %v1715_v24 }
 0x5c5   : > { %17141 = vmatpush3.bf16.xpose.msk.msra.mxu1 %vm19291_vm4, %v17136_v18  ;;  %16376 = vmatprep.mubr.msk.f32.mxu1 %vm1445_vm3, %v2137_v31 }
 0x5c6   : > { %17150 = vmatprep.subr.msk.bf16.mxu1 %vm19314_vm7, %v17148_v35 }
 0x5cc   : > { %16377 = vmatmul.mubr.msk.f32.vlgmr.msra.gmra.mrb[4].mxu1 %vm1445_vm3, %v2139_v41 }
 0x5cd   : > { %17153 = vmatpush3.bf16.msk.msra.mxu1 %vm19314_vm7, %v17148_v35 }
 0x5e9   : > { %v1673_v46 = vpop.xlane.xlu1 %1672 }
 0x5ea   : > { %v1684_v56 = vsub.f32 %v19359_v32, %v1673_v46 }
 0x5ec   : > { %v1688_v42 = vmul.f32 1.442695, %v1684_v56 }
 0x5ee   : > { %17891 = vpow2.f32 %v1688_v42  ;;  %v1677_v27 = vpop.xlane.xlu0 %1676 }
 0x5ef   : > { %v1685_v57 = vsub.f32 %v19357_v53, %v1677_v27 }
 0x5f1   : > { %v1690_v61 = vmul.f32 1.442695, %v1685_v57 }
 0x5f8   : > { %v17892_v26 = vpop.eup %17891 }
 0x5f9   : > { %v1696_v48 = vsel %vm1670_vm9, %v17892_v26, 0.0 }
 0x5fa   : > { %1697 = vadd.xlane.f32.xlu1 %v1696_v48 }
 0x60b   : > { %1995 = vrot.lane.b32.xlu1 %v19240_v33, %s18610_s12 }
 0x60f   : > { %1999 = vrot.lane.b32.xlu1 %v19247_v43, %s18610_s12 }
 0x613   : > { %2001 = vrot.lane.b32.xlu1 %v19249_v44, %s18610_s12 }
 0x617   : > { %2003 = vrot.lane.b32.xlu1 %v19257_v62, %s18610_s12 }
 0x61b   : > { %2012 = vrot.lane.b32.xlu1 %v19333_v25, %s18610_s12 }
 0x61f   : > { %2827 = vrot.lane.b32.xlu1 %v19242_v34, %s18611_s0 }
 0x623   : > { %2831 = vrot.lane.b32.xlu1 %v19249_v44, %s18611_s0 }
 0x627   : > { %2951 = vrot.lane.b32.xlu1 %v19259_v55, %s18611_s0 }
 0x62b   : > { %2955 = vrot.lane.b32.xlu1 %v19267_v10, %s18611_s0 }
 0x687   : > { %v1698_v32 = vpop.xlane.xlu1 %1697 }
 0x688   : > { %17893 = vrcp.f32 %v1698_v32 }
 0x689   : > { %17895 = vpow2.f32 %v1690_v61 }
 0x68b   : > { %v1996_v6 = vpop.permute.xlu1 %1995 }
 0x68c   : > { %v2291_v61 = vrot.slane %v1996_v6, 4 }
 0x68f   : > { %v2000_v20 = vpop.permute.xlu1 %1999 }
 0x690   : > { %v2007_v32 = vrot.slane %v2000_v20, 2 }
 0x692   : > { %v17894_v52 = vpop.eup %17893 }
 0x693   : > { %v1712_v54 = vmul.f32 %v17894_v52, %v17892_v26  ;;  %v17896_v4 = vpop.eup %17895  ;;  %v2002_v23 = vpop.permute.xlu1 %2001  ;;  %v2293_v52 = vrot.slane %v2000_v20, 4 }
 0x694   : > { %v1699_v21 = vsel %vm1674_vm8, %v17896_v4, 0.0  ;;  %v2008_v42 = vrot.slane %v2002_v23, 2  ;;  %v2294_v48 = vrot.slane %v2002_v23, 4 }
 0x695   : > { %16355 = vmatprep.mubr.msk.f32.mxu0 %vm1670_vm9, %v1712_v54  ;;  %v2005_v54 = vrot.slane %v1996_v6, 2 }
 0x696   : > { %v2015_v57 = vcombine.low %v2007_v32, %v2008_v42 }
 0x697   : > { %v16364_v58 = vpop.f32.mrb[2].mxu1  ;;  %v2004_v35 = vpop.permute.xlu1 %2003 }
 0x698   : > { %v19423_v0 = vpop.f32.mrb[3].mxu1  ;;  %v1994_v39 = vrot.slane %v16364_v58, %v19058_v5 }
 0x699   : > { %v1971_v7 = vcombine.high %v19423_v0, %v19423_v0 }
 0x69b   : > { %v19428_v63 = vrot.slane %v1971_v7, %v19058_v5  ;;  %v2013_v27 = vpop.permute.xlu1 %2012  ;;  %v2297_v7 = vcombine.low %v2293_v52, %v2294_v48 }
 0x69d   : > { %v1987_v40 = vcombine.high %v19428_v63, %v19428_v63 }
 0x69f   : > { %v19433_v37 = vcombine.low %v1987_v40, %v1994_v39  ;;  %v16378_v53 = vpop.f32.mrb[4].mxu1  ;;  %v19453_v23 = vpop.permute.xlu1 %2827 }
 0x6a0   : > { %v2238_v60 = vpop.f32.mrb[5].mxu1  ;;  %v2256_v18 = vsel %vm1674_vm8, %v16378_v53, -inf }
 0x6a1   : > { %v2253_v1 = vsel %vm1670_vm9, %v2238_v60, -inf }
 0x6a2   : > { %2254 = vmax.xlane.f32.xlu0 %v2253_v1  ;;  %v2009_v1 = vrot.slane %v2004_v35, 2 }
 0x6a6   : > { %2257 = vmax.xlane.f32.xlu0 %v2256_v18 }
 0x6aa   : > { %1700 = vadd.xlane.f32.xlu0 %v1699_v21  ;;  %v2029_v21 = vrot.slane %v2015_v57, %v19058_v5 }
 0x6c0   : > { %1997 = vrot.lane.b32.xlu0 %v19242_v34, %s18610_s12 }
 0x6c4   : > { %2010 = vrot.lane.b32.xlu0 %v19286_v29, %s18610_s12 }
 0x6c8   : > { %2825 = vrot.lane.b32.xlu0 %v19240_v33, %s18611_s0 }
 0x6cc   : > { %2829 = vrot.lane.b32.xlu0 %v19247_v43, %s18611_s0 }
 0x6d0   : > { %2833 = vrot.lane.b32.xlu0 %v19257_v62, %s18611_s0 }
 0x6d4   : > { %2953 = vrot.lane.b32.xlu0 %v19265_v36, %s18611_s0 }
 0x72f   : > { %v2255_v24 = vpop.xlane.xlu0 %2254 }
 0x730   : > { %v2261_v30 = vsub.f32 %v2238_v60, %v2255_v24 }
 0x732   : > { %v2267_v31 = vmul.f32 1.442695, %v2261_v30  ;;  %v2311_v30 = vrot.slane %v2297_v7, %v19058_v5  ;;  %v2836_v7 = vrot.slane %v19453_v23, 2 }
 0x733   : > { %v2258_v41 = vpop.xlane.xlu0 %2257 }
 0x734   : > { %17897 = vpow2.f32 %v2267_v31  ;;  %v2262_v46 = vsub.f32 %v16378_v53, %v2258_v41  ;;  %v2295_v31 = vrot.slane %v2004_v35, 4 }
 0x736   : > { %v2269_v56 = vmul.f32 1.442695, %v2262_v46 }
 0x737   : > { %v1701_v26 = vpop.xlane.xlu0 %1700 }
 0x738   : > { %17899 = vpow2.f32 %v2269_v56  ;;  %v2037_v56 = vrot.slane %v2009_v1, %v19058_v5 }
 0x739   : > { %17901 = vrcp.f32 %v1701_v26 }
 0x73b   : > { %v1998_v58 = vpop.permute.xlu0 %1997 }
 0x73c   : > { %v2006_v39 = vrot.slane %v1998_v58, 2  ;;  %v2292_v40 = vrot.slane %v1998_v58, 4 }
 0x73e   : > { %v19450_v60 = vpop.eup %17897  ;;  %v2014_v53 = vcombine.low %v2005_v54, %v2006_v39  ;;  %v2296_v18 = vcombine.low %v2291_v61, %v2292_v40  ;;  %v2319_v54 = vrot.slane %v2295_v31, %v19058_v5  ;;  %v2832_v61 = vpop.permute.xlu1 %2831 }
 0x73f   : > { %v2011_v24 = vpop.permute.xlu0 %2010  ;;  %v2277_v20 = vsel %vm1670_vm9, %v19450_v60, 0.0  ;;  %v2838_v1 = vrot.slane %v2832_v61, 2 }
 0x740   : > { %v2022_v6 = vrot.slane %v2014_v53, %v19058_v5  ;;  %v2304_v41 = vrot.slane %v2296_v18, %v19058_v5  ;;  %2278 = vadd.xlane.f32.xlu0 %v2277_v20 }
 0x742   : > { %v19460_v46 = vpop.eup %17899  ;;  %v2030_v42 = vcombine.low %v2022_v6, %v2029_v21  ;;  %v2312_v26 = vcombine.low %v2304_v41, %v2311_v30 }
 0x743   : > { %v17902_v48 = vpop.eup %17901  ;;  %v19463_v32 = vpop.permute.xlu0 %2825  ;;  %v2280_v52 = vsel %vm1674_vm8, %v19460_v46, 0.0 }
 0x744   : > { %v2835_v35 = vrot.slane %v19463_v32, 2  ;;  %2281 = vadd.xlane.f32.xlu1 %v2280_v52  ;;  %v1713_v57 = vmul.f32 %v17902_v48, %v17896_v4  ;;  %v17130_v58 = vpack.c.bf16 %v2037_v56, %v2030_v42  ;;  %v17142_v39 = vpack.c.bf16 %v2319_v54, %v2312_v26 }
 0x746   : > { %16356 = vmatmul.mubr.msk.f32.vlgmr.msra.gmra.mrb[14].mxu0 %vm1670_vm9, %v1713_v57  ;;  %17132 = vmatprep.subr.msk.bf16.mxu0 %vm19291_vm4, %v17130_v58  ;;  %v2844_v53 = vcombine.low %v2835_v35, %v2836_v7 }
 0x747   : > { %16369 = vmatprep.mubr.msk.f32.mxu0 %vm1445_vm3, %v2011_v24  ;;  %v2830_v40 = vpop.permute.xlu0 %2829  ;;  %17135 = vmatpush3.bf16.xpose.msk.msra.mxu0 %vm19291_vm4, %v17130_v58 }
 0x748   : > { %v2837_v18 = vrot.slane %v2830_v40, 2  ;;  %17144 = vmatprep.subr.msk.bf16.mxu0 %vm19314_vm7, %v17142_v39  ;;  %v2852_v20 = vrot.slane %v2844_v53, %v19058_v5  ;;  %v3123_v53 = vrot.slane %v2830_v40, 4 }
 0x74a   : > { %v2845_v4 = vcombine.low %v2837_v18, %v2838_v1 }
 0x74b   : > { %v2834_v21 = vpop.permute.xlu0 %2833 }
 0x74c   : > { %v2859_v30 = vrot.slane %v2845_v4, %v19058_v5  ;;  %v2839_v31 = vrot.slane %v2834_v21, 2 }
 0x74e   : > { %v2867_v6 = vrot.slane %v2839_v31, %v19058_v5  ;;  %16370 = vmatmul.mubr.msk.f32.vlgmr.msra.gmra.mrb[16].mxu0 %vm1445_vm3, %v2013_v27  ;;  %v2860_v24 = vcombine.low %v2852_v20, %v2859_v30  ;;  %v2952_v27 = vpop.permute.xlu1 %2951  ;;  %v3124_v30 = vrot.slane %v2832_v61, 4  ;;  %v3121_v31 = vrot.slane %v19463_v32, 4 }
 0x74f   : > { %17147 = vmatpush3.bf16.msk.msra.mxu0 %vm19314_vm7, %v17142_v39  ;;  %v2954_v56 = vpop.permute.xlu0 %2953  ;;  %v2961_v58 = vrot.slane %v2952_v27, 2 }
 0x750   : > { %v17160_v41 = vpack.c.bf16 %v2867_v6, %v2860_v24  ;;  %17154 = vmatprep.subr.bf16.mxu0 %v21809_v11  ;;  %v2962_v48 = vrot.slane %v2954_v56, 2  ;;  %v3127_v11 = vcombine.low %v3123_v53, %v3124_v30  ;;  %v3235_v53 = vrot.slane %v2954_v56, 4 }
 0x752   : > { %17162 = vmatprep.subr.msk.bf16.mxu1 %vm19291_vm4, %v17160_v41  ;;  %v2956_v42 = vpop.permute.xlu1 %2955  ;;  %v2970_v39 = vcombine.low %v2961_v58, %v2962_v48  ;;  %v3141_v61 = vrot.slane %v3127_v11, %v19058_v5  ;;  %v3125_v58 = vrot.slane %v2834_v21, 4 }
 0x753   : > { %v2963_v35 = vrot.slane %v2956_v42, 2 }
 0x754   : > { %v2978_v6 = vrot.slane %v2970_v39, %v19058_v5  ;;  %v3149_v11 = vrot.slane %v3125_v58, %v19058_v5 }
 0x755   : > { %2959 = vrot.lane.b32.xlu1 %v19274_v17, %s18611_s0 }
 0x756   : > { %2957 = vrot.lane.b32.xlu0 %v19272_v8, %s18611_s0 }
 0x759   : > { %2842 = vrot.lane.b32.xlu1 %v19333_v25, %s18611_s0 }
 0x75a   : > { %2840 = vrot.lane.b32.xlu0 %v19286_v29, %s18611_s0 }
 0x75d   : > { %2968 = vrot.lane.b32.xlu1 %v19351_v28, %s18611_s0 }
 0x75e   : > { %2966 = vrot.lane.b32.xlu0 %v19321_v2, %s18611_s0 }
 0x7cd   : > { %v2279_v26 = vpop.xlane.xlu0 %2278 }
 0x7ce   : > { %17903 = vrcp.f32 %v2279_v26  ;;  %v3122_v26 = vrot.slane %v19453_v23, 4  ;;  %v3236_v23 = vrot.slane %v2956_v42, 4 }
 0x7d1   : > { %v2958_v52 = vpop.permute.xlu0 %2957  ;;  %v2282_v54 = vpop.xlane.xlu1 %2281 }
 0x7d2   : > { %v2964_v57 = vrot.slane %v2958_v52, 2  ;;  %17905 = vrcp.f32 %v2282_v54  ;;  %v3237_v32 = vrot.slane %v2958_v52, 4 }
 0x7d4   : > { %v2971_v7 = vcombine.low %v2963_v35, %v2964_v57  ;;  %v3126_v35 = vcombine.low %v3121_v31, %v3122_v26  ;;  %v3240_v21 = vcombine.low %v3236_v23, %v3237_v32 }
 0x7d5   : > { %v2960_v1 = vpop.permute.xlu1 %2959 }
 0x7d6   : > { %v2985_v18 = vrot.slane %v2971_v7, %v19058_v5  ;;  %v2965_v4 = vrot.slane %v2960_v1, 2  ;;  %v2841_v7 = vpop.permute.xlu0 %2840  ;;  %v3134_v39 = vrot.slane %v3126_v35, %v19058_v5  ;;  %v3238_v30 = vrot.slane %v2960_v1, 4 }
 0x7d8   : > { %v17904_v20 = vpop.eup %17903  ;;  %v2993_v54 = vrot.slane %v2965_v4, %v19058_v5  ;;  %v2986_v48 = vcombine.low %v2978_v6, %v2985_v18  ;;  %v3142_v52 = vcombine.low %v3134_v39, %v3141_v61  ;;  %v3262_v56 = vrot.slane %v3238_v30, %v19058_v5 }
 0x7d9   : > { %v2289_v24 = vmul.f32 %v17904_v20, %v19450_v60  ;;  %v2843_v4 = vpop.permute.xlu1 %2842  ;;  %v3254_v20 = vrot.slane %v3240_v21, %v19058_v5 }
 0x7da   : > { %v17166_v60 = vpack.c.bf16 %v2993_v54, %v2986_v48  ;;  %v17172_v42 = vpack.c.bf16 %v3149_v11, %v3142_v52 }
 0x7db   : > { %16390 = vmatprep.mubr.msk.f32.mxu1 %vm1670_vm9, %v2289_v24  ;;  %v1978_v24 = vrot.slane %v19423_v0, %v19058_v5 }
 0x7dc   : > { %v17906_v40 = vpop.eup %17905 }
 0x7dd   : > { %v2290_v57 = vmul.f32 %v17906_v40, %v19460_v46  ;;  %v3234_v46 = vrot.slane %v2952_v27, 4  ;;  %v2969_v6 = vpop.permute.xlu1 %2968  ;;  %v1986_v26 = vcombine.high %v1978_v24, %v1978_v24 }
 0x7df   : > { %16391 = vmatmul.mubr.msk.f32.vlgmr.msra.gmra.mrb[6].mxu1 %vm1670_vm9, %v2290_v57  ;;  %v3239_v18 = vcombine.low %v3234_v46, %v3235_v53  ;;  %v2715_v48 = vcombine.low %v1986_v26, %v19428_v63 }
 0x7e0   : > { %17165 = vmatpush3.bf16.xpose.msk.msra.mxu1 %vm19291_vm4, %v17160_v41  ;;  %16423 = vmatprep.mubr.msk.f32.mxu1 %vm1445_vm3, %v2841_v7  ;;  %v2967_v41 = vpop.permute.xlu0 %2966 }
 0x7e1   : > { %17168 = vmatprep.subr.msk.bf16.mxu1 %vm19291_vm4, %v17166_v60  ;;  %v3247_v27 = vrot.slane %v3239_v18, %v19058_v5  ;;  %v2729_v61 = vrot.slane %v2715_v48, %v19058_v5 }
 0x7e3   : > { %v3255_v31 = vcombine.low %v3247_v27, %v3254_v20 }
 0x7e5   : > { %v19526_v1 = vpack.c.bf16 %v3262_v56, %v3255_v31 }
 0x7e7   : > { %16424 = vmatmul.mubr.msk.f32.vlgmr.msra.gmra.mrb[8].mxu1 %vm1445_vm3, %v2843_v4 }
 0x7e8   : > { %17171 = vmatpush3.bf16.xpose.msk.msra.mxu1 %vm19291_vm4, %v17166_v60  ;;  %16430 = vmatprep.mubr.msk.f32.mxu1 %vm1445_vm3, %v2967_v41 }
 0x7e9   : > { %17174 = vmatprep.subr.msk.bf16.mxu1 %vm19314_vm7, %v17172_v42 }
 0x7ef   : > { %16431 = vmatmul.mubr.msk.f32.vlgmr.msra.gmra.mrb[10].mxu1 %vm1445_vm3, %v2969_v6 }
 0x7f0   : > { %17177 = vmatpush3.bf16.msk.msra.mxu1 %vm19314_vm7, %v17172_v42 }
 0x7f1   : > { %17180 = vmatprep.subr.msk.bf16.mxu1 %vm19314_vm7, %v19526_v1 }
 0x819   : > { %v16357_v54 = vpop.f32.mrb[14].mxu0 }
 0x81a   : > { %v1970_v40 = vrot.slane %v16357_v54, %v19058_v5  ;;  %v19537_v35 = vpop.f32.mrb[15].mxu0 }
 0x81c   : > { %v2714_v57 = vcombine.low %v1970_v40, %v1978_v24 }
 0x81e   : > { %v2722_v58 = vrot.slane %v2714_v57, %v19058_v5 }
 0x820   : > { %v19541_v32 = vcombine.low %v2722_v58, %v2729_v61 }
 0x821   : > { %v16371_v7 = vpop.f32.mrb[16].mxu0 }
 0x822   : > { %v2112_v60 = vpop.f32.mrb[17].mxu0  ;;  %v2250_v23 = vsel %vm1674_vm8, %v16371_v7, -inf }
 0x823   : > { %2251 = vmax.xlane.f32.xlu1 %v2250_v23  ;;  %v2247_v0 = vsel %vm1670_vm9, %v2112_v60, -inf }
 0x824   : > { %2248 = vmax.xlane.f32.xlu0 %v2247_v0 }
 0x8b0   : > { %v2252_v63 = vpop.xlane.xlu1 %2251 }
 0x8b1   : > { %v2249_v39 = vpop.xlane.xlu0 %2248  ;;  %v2260_v53 = vsub.f32 %v16371_v7, %v2252_v63 }
 0x8b2   : > { %v16392_v46 = vpop.f32.mrb[6].mxu1  ;;  %v2259_v11 = vsub.f32 %v2112_v60, %v2249_v39 }
 0x8b3   : > { %v19545_v21 = vpop.f32.mrb[7].mxu1  ;;  %v2265_v18 = vmul.f32 1.442695, %v2260_v53  ;;  %v2568_v30 = vrot.slane %v16392_v46, %v19058_v5 }
 0x8b4   : > { %v2545_v52 = vcombine.high %v19545_v21, %v19545_v21  ;;  %v2263_v20 = vmul.f32 1.442695, %v2259_v11 }
 0x8b5   : > { %17907 = vpow2.f32 %v2265_v18 }
 0x8b6   : > { %v19550_v4 = vrot.slane %v2545_v52, %v19058_v5  ;;  %17909 = vpow2.f32 %v2263_v20 }
 0x8b8   : > { %v2561_v41 = vcombine.high %v19550_v4, %v19550_v4 }
 0x8ba   : > { %v19555_v42 = vcombine.low %v2561_v41, %v2568_v30  ;;  %v16425_v27 = vpop.f32.mrb[8].mxu1 }
 0x8bb   : > { %v2942_v56 = vpop.f32.mrb[9].mxu1  ;;  %v3080_v6 = vsel %vm1674_vm8, %v16425_v27, -inf }
 0x8bc   : > { %v3077_v31 = vsel %vm1670_vm9, %v2942_v56, -inf }
 0x8bd   : > { %3078 = vmax.xlane.f32.xlu0 %v3077_v31 }
 0x8bf   : > { %v17908_v48 = vpop.eup %17907 }
 0x8c0   : > { %v17910_v57 = vpop.eup %17909  ;;  %v2274_v61 = vsel %vm1674_vm8, %v17908_v48, 0.0 }
 0x8c1   : > { %3081 = vmax.xlane.f32.xlu0 %v3080_v6  ;;  %v2271_v58 = vsel %vm1670_vm9, %v17910_v57, 0.0 }
 0x8c2   : > { %v16432_v24 = vpop.f32.mrb[10].mxu1 }
 0x8c3   : > { %v3068_v26 = vpop.f32.mrb[11].mxu1  ;;  %v3086_v54 = vsel %vm1674_vm8, %v16432_v24, -inf }
 0x8c4   : > { %3087 = vmax.xlane.f32.xlu1 %v3086_v54  ;;  %v3083_v40 = vsel %vm1670_vm9, %v3068_v26, -inf }
 0x8c5   : > { %3084 = vmax.xlane.f32.xlu0 %v3083_v40 }
 0x8c8   : > { %2275 = vadd.xlane.f32.xlu1 %v2274_v61 }
 0x8c9   : > { %2272 = vadd.xlane.f32.xlu0 %v2271_v58 }
 0x94a   : > { %v3079_v7 = vpop.xlane.xlu0 %3078 }
 0x94b   : > { %v3089_v60 = vsub.f32 %v2942_v56, %v3079_v7 }
 0x94d   : > { %v3093_v23 = vmul.f32 1.442695, %v3089_v60 }
 0x94e   : > { %v3082_v0 = vpop.xlane.xlu0 %3081 }
 0x94f   : > { %17911 = vpow2.f32 %v3093_v23  ;;  %v3090_v63 = vsub.f32 %v16425_v27, %v3082_v0  ;;  %v21863_v0 = vmov 0.0|0.0  }
 0x951   : > { %v3095_v39 = vmul.f32 1.442695, %v3090_v63  ;;  %v3088_v53 = vpop.xlane.xlu1 %3087 }
 0x952   : > { %v3092_v46 = vsub.f32 %v16432_v24, %v3088_v53  ;;  %v3085_v11 = vpop.xlane.xlu0 %3084 }
 0x953   : > { %17913 = vpow2.f32 %v3095_v39  ;;  %v3091_v52 = vsub.f32 %v3068_v26, %v3085_v11 }
 0x954   : > { %v3099_v18 = vmul.f32 1.442695, %v3092_v46 }
 0x955   : > { %v3097_v20 = vmul.f32 1.442695, %v3091_v52  ;;  %v2276_v30 = vpop.xlane.xlu1 %2275 }
 0x956   : > { %17915 = vpow2.f32 %v3099_v18  ;;  %v2273_v41 = vpop.xlane.xlu0 %2272 }
 0x957   : > { %17917 = vpow2.f32 %v3097_v20 }
 0x958   : > { %17919 = vrcp.f32 %v2276_v30 }
 0x959   : > { %v17912_v31 = vpop.eup %17911  ;;  %17921 = vrcp.f32 %v2273_v41 }
 0x95a   : > { %v3101_v56 = vsel %vm1670_vm9, %v17912_v31, 0.0 }
 0x95b   : > { %3102 = vadd.xlane.f32.xlu0 %v3101_v56 }
 0x95d   : > { %v17914_v6 = vpop.eup %17913 }
 0x95e   : > { %v3104_v27 = vsel %vm1674_vm8, %v17914_v6, 0.0 }
 0x95f   : > { %3105 = vadd.xlane.f32.xlu1 %v3104_v27 }
 0x960   : > { %v19565_v24 = vpop.eup %17915 }
 0x961   : > { %v17918_v54 = vpop.eup %17917  ;;  %v3110_v26 = vsel %vm1674_vm8, %v19565_v24, 0.0 }
 0x962   : > { %v17920_v40 = vpop.eup %17919  ;;  %v3107_v61 = vsel %vm1670_vm9, %v17918_v54, 0.0 }
 0x963   : > { %v17922_v58 = vpop.eup %17921  ;;  %3108 = vadd.xlane.f32.xlu0 %v3107_v61  ;;  %3111 = vadd.xlane.f32.xlu1 %v3110_v26  ;;  %v2288_v60 = vmul.f32 %v17920_v40, %v17908_v48  ;;  %v1373_v48 = vld [vmem:[#allocation10 + $0x10] sm:$0xff] }
 0x964   : > { %v2287_v7 = vmul.f32 %v17922_v58, %v17910_v57  ;;  %v1374_v57 = vld [vmem:[#allocation10 + $0x18] sm:$0xff] }
 0x965   : > { %v17155_v23 = vpack.c.bf16 %v1374_v57, %v1373_v48 }
 0x966   : > { %16383 = vmatprep.mubr.msk.f32.mxu0 %vm1670_vm9, %v2287_v7 }
 0x967   : > { %16384 = vmatmul.mubr.msk.f32.vlgmr.msra.gmra.mrb[18].mxu0 %vm1670_vm9, %v2288_v60 }
 0x968   : > { %16397 = vmatprep.mubr.msk.f32.mxu0 %vm18608_vm2, %v21815_v59  ;;  %17156 = vmatpush3.bf16.msra.mxu0 %v17155_v23 }
 0x969   : > { %17157 = vmatprep.subr.bf16.mxu0 %v21863_v0 }
 0x974   : > { %3532 = vrot.lane.b32.xlu1 %v19242_v34, %s18612_s28 }
 0x978   : > { %3534 = vrot.lane.b32.xlu1 %v19247_v43, %s18612_s28 }
 0x979   : > { %3530 = vrot.lane.b32.xlu0 %v19240_v33, %s18612_s28 }
 0x97c   : > { %3536 = vrot.lane.b32.xlu1 %v19249_v44, %s18612_s28 }
 0x97d   : > { %3538 = vrot.lane.b32.xlu0 %v19257_v62, %s18612_s28 }
 0x980   : > { %3656 = vrot.lane.b32.xlu1 %v19259_v55, %s18612_s28 }
 0x981   : > { %3658 = vrot.lane.b32.xlu0 %v19265_v36, %s18612_s28 }
 0x984   : > { %3660 = vrot.lane.b32.xlu1 %v19267_v10, %s18612_s28 }
 0x985   : > { %3662 = vrot.lane.b32.xlu0 %v19272_v8, %s18612_s28 }
 0x988   : > { %3664 = vrot.lane.b32.xlu1 %v19274_v17, %s18612_s28 }
 0x989   : > { %3545 = vrot.lane.b32.xlu0 %v19286_v29, %s18612_s28 }
 0x98c   : > { %3547 = vrot.lane.b32.xlu1 %v19333_v25, %s18612_s28 }
 0x98d   : > { %3671 = vrot.lane.b32.xlu0 %v19321_v2, %s18612_s28 }
 0x990   : > { %3673 = vrot.lane.b32.xlu1 %v19351_v28, %s18612_s28 }
 0x9e8   : > { %v3103_v63 = vpop.xlane.xlu0 %3102 }
 0x9e9   : > { %17923 = vrcp.f32 %v3103_v63 }
 0x9ec   : > { %v3106_v39 = vpop.xlane.xlu1 %3105 }
 0x9ed   : > { %17925 = vrcp.f32 %v3106_v39 }
 0x9f0   : > { %v3109_v53 = vpop.xlane.xlu0 %3108  ;;  %v3112_v46 = vpop.xlane.xlu1 %3111 }
 0x9f1   : > { %17927 = vrcp.f32 %v3109_v53 }
 0x9f2   : > { %17929 = vrcp.f32 %v3112_v46 }
 0x9f3   : > { %v17924_v11 = vpop.eup %17923 }
 0x9f4   : > { %v3531_v52 = vpop.permute.xlu0 %3530  ;;  %v3533_v18 = vpop.permute.xlu1 %3532  ;;  %v3117_v20 = vmul.f32 %v17924_v11, %v17912_v31 }
 0x9f5   : > { %v3540_v41 = vrot.slane %v3531_v52, 2  ;;  %v3826_v56 = vrot.slane %v3531_v52, 4  ;;  %v3541_v27 = vrot.slane %v3533_v18, 2  ;;  %v3827_v26 = vrot.slane %v3533_v18, 4 }
 0x9f6   : > { %16437 = vmatprep.mubr.msk.f32.mxu1 %vm1670_vm9, %v3117_v20 }
 0x9f7   : > { %v17926_v30 = vpop.eup %17925  ;;  %v3549_v48 = vcombine.low %v3540_v41, %v3541_v27  ;;  %v3831_v31 = vcombine.low %v3826_v56, %v3827_v26 }
 0x9f8   : > { %v3539_v40 = vpop.permute.xlu0 %3538  ;;  %v3535_v61 = vpop.permute.xlu1 %3534  ;;  %v3118_v58 = vmul.f32 %v17926_v30, %v17914_v6 }
 0x9f9   : > { %v3542_v39 = vrot.slane %v3535_v61, 2  ;;  %v3828_v53 = vrot.slane %v3535_v61, 4  ;;  %v3544_v52 = vrot.slane %v3539_v40, 2  ;;  %v3830_v30 = vrot.slane %v3539_v40, 4 }
 0x9fa   : > { %16438 = vmatmul.mubr.msk.f32.vlgmr.msra.gmra.mrb[12].mxu1 %vm1670_vm9, %v3118_v58  ;;  %v3839_v56 = vrot.slane %v3831_v31, %v19058_v5 }
 0x9fb   : > { %v17928_v7 = vpop.eup %17927  ;;  %17183 = vmatpush3.bf16.msk.msra.mxu1 %vm19314_vm7, %v19526_v1  ;;  %v3572_v61 = vrot.slane %v3544_v52, %v19058_v5 }
 0x9fc   : > { %v17930_v60 = vpop.eup %17929  ;;  %v19608_v57 = vpop.permute.xlu0 %3658  ;;  %v3119_v63 = vmul.f32 %v17928_v7, %v17918_v54  ;;  %v3557_v54 = vrot.slane %v3549_v48, %v19058_v5 }
 0x9fd   : > { %v3537_v23 = vpop.permute.xlu1 %3536  ;;  %v3120_v6 = vmul.f32 %v17930_v60, %v19565_v24  ;;  %v3940_v40 = vrot.slane %v19608_v57, 4  ;;  %v3854_v60 = vrot.slane %v3830_v30, %v19058_v5 }
 0x9fe   : > { %v3543_v46 = vrot.slane %v3537_v23, 2  ;;  %v3829_v11 = vrot.slane %v3537_v23, 4  ;;  %16444 = vmatprep.mubr.msk.f32.mxu1 %vm1670_vm9, %v3119_v63 }
 0x9ff   : > { %16445 = vmatmul.mubr.msk.f32.vlgmr.msra.gmra.mrb[14].mxu1 %vm1670_vm9, %v3120_v6 }
 0xa00   : > { %v3550_v18 = vcombine.low %v3542_v39, %v3543_v46  ;;  %v3832_v20 = vcombine.low %v3828_v53, %v3829_v11  ;;  %v19613_v1 = vpop.permute.xlu0 %3662 }
 0xa01   : > { %v19615_v41 = vpop.permute.xlu1 %3656  ;;  %v3942_v48 = vrot.slane %v19613_v1, 4 }
 0xa02   : > { %v3564_v27 = vrot.slane %v3550_v18, %v19058_v5  ;;  %v3846_v26 = vrot.slane %v3832_v20, %v19058_v5  ;;  %v3939_v24 = vrot.slane %v19615_v41, 4 }
 0xa04   : > { %v3565_v58 = vcombine.low %v3557_v54, %v3564_v27  ;;  %v3847_v7 = vcombine.low %v3839_v56, %v3846_v26  ;;  %v3546_v23 = vpop.permute.xlu0 %3545  ;;  %v3944_v39 = vcombine.low %v3939_v24, %v3940_v40  ;;  %v2552_v26 = vrot.slane %v19545_v21, %v19058_v5 }
 0xa05   : > { %v3661_v63 = vpop.permute.xlu1 %3660  ;;  %16464 = vmatprep.mubr.msk.f32.mxu1 %vm1445_vm3, %v3546_v23 }
 0xa06   : > { %v3941_v31 = vrot.slane %v3661_v63, 4  ;;  %v17187_v53 = vpack.c.bf16 %v3572_v61, %v3565_v58  ;;  %v17199_v11 = vpack.c.bf16 %v3854_v60, %v3847_v7  ;;  %v3952_v52 = vrot.slane %v3944_v39, %v19058_v5 }
 0xa07   : > { %v2560_v24 = vcombine.high %v2552_v26, %v2552_v26  ;;  %v1947_v39 = vcombine.high %v19537_v35, %v19537_v35 }
 0xa08   : > { %v3945_v46 = vcombine.low %v3941_v31, %v3942_v48  ;;  %17189 = vmatprep.subr.msk.bf16.mxu1 %vm19291_vm4, %v17187_v53 }
 0xa09   : > { %17192 = vmatpush3.bf16.xpose.msk.msra.mxu1 %vm19291_vm4, %v17187_v53  ;;  %v19631_v6 = vpop.permute.xlu1 %3664  ;;  %v2587_v40 = vcombine.low %v2560_v24, %v19550_v4 }
 0xa0a   : > { %v3959_v18 = vrot.slane %v3945_v46, %v19058_v5  ;;  %v3943_v20 = vrot.slane %v19631_v6, 4  ;;  %17201 = vmatprep.subr.msk.bf16.mxu1 %vm19314_vm7, %v17199_v11 }
 0xa0b   : > { %v2601_v46 = vrot.slane %v2587_v40, %v19058_v5 }
 0xa0c   : > { %v3967_v30 = vrot.slane %v3943_v20, %v19058_v5  ;;  %v3960_v54 = vcombine.low %v3952_v52, %v3959_v18  ;;  %v1961_v18 = vrot.slane %v1947_v39, %v19058_v5  ;;  %v3667_v39 = vrot.slane %v19608_v57, 2 }
 0xa0d   : > { %v3548_v56 = vpop.permute.xlu1 %3547 }
 0xa0e   : > { %v19640_v27 = vpack.c.bf16 %v3967_v30, %v3960_v54  ;;  %v1371_v30 = vld [vmem:[#allocation10] sm:$0xff]  ;;  %v1372_v54 = vld [vmem:[#allocation10 + $0x8] sm:$0xff]  ;;  %v1963_v40 = vcombine.high %v1961_v18, %v1961_v18 }
 0xa10   : > { %16465 = vmatmul.mubr.msk.f32.vlgmr.msra.gmra.mrb[16].mxu1 %vm1445_vm3, %v3548_v56  ;;  %v1954_v56 = vrot.slane %v19537_v35, %v19058_v5  ;;  %v2698_v35 = vcombine.low %v1961_v18, %v1963_v40 }
 0xa11   : > { %17204 = vmatpush3.bf16.msk.msra.mxu1 %vm19314_vm7, %v17199_v11 }
 0xa12   : > { %17207 = vmatprep.subr.msk.bf16.mxu1 %vm19314_vm7, %v19640_v27  ;;  %v2712_v57 = vrot.slane %v2698_v35, %v19058_v5 }
 0xa3a   : > { %v16385_v61 = vpop.f32.mrb[18].mxu0 }
 0xa3b   : > { %v2544_v58 = vrot.slane %v16385_v61, %v19058_v5  ;;  %v2395_v7 = vpop.f32.mrb[19].mxu0 }
 0xa3c   : > { %v2521_v60 = vcombine.high %v2395_v7, %v2395_v7  ;;  %v2528_v23 = vrot.slane %v2395_v7, %v19058_v5  ;;  %v3669_v7 = vrot.slane %v19613_v1, 2 }
 0xa3d   : > { %v2586_v48 = vcombine.low %v2544_v58, %v2552_v26  ;;  %v3668_v26 = vrot.slane %v3661_v63, 2  ;;  %v17158_v58 = vpack.c.bf16 %v1372_v54, %v1371_v30 }
 0xa3e   : > { %v2535_v31 = vrot.slane %v2521_v60, %v19058_v5  ;;  %v2536_v53 = vcombine.high %v2528_v23, %v2528_v23  ;;  %v3666_v60 = vrot.slane %v19615_v41, 2  ;;  %v3670_v41 = vrot.slane %v19631_v6, 2 }
 0xa3f   : > { %v2594_v21 = vrot.slane %v2586_v48, %v19058_v5  ;;  %v1962_v48 = vcombine.high %v1954_v56, %v1954_v56 }
 0xa40   : > { %v2537_v11 = vcombine.high %v2535_v31, %v2535_v31  ;;  %v2569_v52 = vcombine.low %v2528_v23, %v2536_v53  ;;  %v3675_v63 = vcombine.low %v3666_v60, %v3667_v39 }
 0xa41   : > { %v2602_v4 = vcombine.low %v2594_v21, %v2601_v46  ;;  %v2697_v53 = vcombine.low %v1954_v56, %v1962_v48  ;;  %v2610_v21 = vrot.slane %v19555_v42, %v19058_v5  ;;  %v2738_v42 = vrot.slane %v19433_v37, %v19058_v5 }
 0xa42   : > { %v2570_v20 = vcombine.low %v2535_v31, %v2537_v11  ;;  %v2577_v24 = vrot.slane %v2569_v52, %v19058_v5  ;;  %v3676_v31 = vcombine.low %v3668_v26, %v3669_v7  ;;  %v3683_v46 = vrot.slane %v3675_v63, %v19058_v5  ;;  %v1375_v11 = vld [vmem:[#allocation10 + $0x20] sm:$0xff]  ;;  %v1376_v52 = vld [vmem:[#allocation10 + $0x28] sm:$0xff] }
 0xa43   : > { %v2705_v18 = vrot.slane %v2697_v53, %v19058_v5 }
 0xa44   : > { %v2584_v61 = vrot.slane %v2570_v20, %v19058_v5  ;;  %v3690_v1 = vrot.slane %v3676_v31, %v19058_v5  ;;  %v3698_v20 = vrot.slane %v3670_v41, %v19058_v5 }
 0xa45   : > { %v2713_v30 = vcombine.low %v2705_v18, %v2712_v57 }
 0xa46   : > { %v2585_v23 = vcombine.low %v2577_v24, %v2584_v61  ;;  %v3691_v6 = vcombine.low %v3683_v46, %v3690_v1 }
 0xa48   : > { %16398 = vmatmul.mubr.msk.f32.vlgmr.msra.gmra.mrb[20].mxu0 %vm1445_vm3, %v2585_v23  ;;  %v17193_v54 = vpack.c.bf16 %v3698_v20, %v3691_v6 }
 0xa49   : > { %16400 = vmatprep.mubr.msk.f32.mxu0 %vm18608_vm2, %v21815_v59  ;;  %17159 = vmatpush3.bf16.msra.mxu0 %v17158_v58 }
 0xa4a   : > { %17184 = vmatprep.subr.bf16.mxu0 %v21863_v0 }
 0xa4c   : > { %16401 = vmatmul.mubr.msk.f32.gmra.mrb[22].mxu0 %vm1445_vm3, %v2602_v4  ;;  %v17185_v4 = vpack.c.bf16 %v1376_v52, %v1375_v11 }
 0xa4d   : > { %16403 = vmatprep.mubr.msk.f32.mxu0 %vm18608_vm2, %v21815_v59 }
 0xa50   : > { %16404 = vmatmul.mubr.msk.f32.gmra.mrb[24].mxu0 %vm1445_vm3, %v2610_v21 }
 0xa51   : > { %16410 = vmatprep.mubr.msk.f32.mxu0 %vm18608_vm2, %v21815_v59 }
 0xa54   : > { %16411 = vmatmul.mubr.msk.f32.vlgmr.msra.gmra.mrb[20].mxu0 %vm1445_vm3, %v2713_v30 }
 0xa55   : > { %17186 = vmatpush3.bf16.msra.mxu0 %v17185_v4  ;;  %16413 = vmatprep.mubr.msk.f32.mxu0 %vm18608_vm2, %v21815_v59 }
 0xa56   : > { %17195 = vmatprep.subr.msk.bf16.mxu0 %vm19291_vm4, %v17193_v54 }
 0xa58   : > { %16414 = vmatmul.mubr.msk.f32.gmra.mrb[22].mxu0 %vm1445_vm3, %v19541_v32 }
 0xa59   : > { %16416 = vmatprep.mubr.msk.f32.mxu0 %vm18608_vm2, %v21815_v59 }
 0xa5c   : > { %16417 = vmatmul.mubr.msk.f32.gmra.mrb[24].mxu0 %vm1445_vm3, %v2738_v42  ;;  %v3672_v42 = vpop.permute.xlu0 %3671 }
 0xa5d   : > { %16451 = vmatprep.mubr.msk.f32.mxu0 %vm18608_vm2, %v21815_v59 }
 0xacd   : > { %v16439_v56 = vpop.f32.mrb[12].mxu1 }
 0xace   : > { %v3225_v26 = vpop.f32.mrb[13].mxu1  ;;  %v3374_v48 = vrot.slane %v16439_v56, %v19058_v5 }
 0xacf   : > { %v3351_v24 = vcombine.high %v3225_v26, %v3225_v26  ;;  %v3358_v61 = vrot.slane %v3225_v26, %v19058_v5 }
 0xad1   : > { %v3365_v58 = vrot.slane %v3351_v24, %v19058_v5  ;;  %v3366_v40 = vcombine.high %v3358_v61, %v3358_v61  ;;  %v3674_v24 = vpop.permute.xlu1 %3673 }
 0xad2   : > { %v16446_v60 = vpop.f32.mrb[14].mxu1 }
 0xad3   : > { %v3367_v32 = vcombine.high %v3365_v58, %v3365_v58  ;;  %v3399_v7 = vcombine.low %v3358_v61, %v3366_v40  ;;  %v3338_v23 = vpop.f32.mrb[15].mxu1  ;;  %v3398_v46 = vrot.slane %v16446_v60, %v19058_v5 }
 0xad4   : > { %v3375_v39 = vcombine.high %v3338_v23, %v3338_v23  ;;  %v3382_v31 = vrot.slane %v3338_v23, %v19058_v5 }
 0xad5   : > { %v3400_v37 = vcombine.low %v3365_v58, %v3367_v32  ;;  %v3407_v35 = vrot.slane %v3399_v7, %v19058_v5 }
 0xad6   : > { %v3389_v53 = vrot.slane %v3375_v39, %v19058_v5  ;;  %v3390_v1 = vcombine.high %v3382_v31, %v3382_v31  ;;  %v3416_v41 = vcombine.low %v3374_v48, %v3382_v31 }
 0xad7   : > { %v3414_v63 = vrot.slane %v3400_v37, %v19058_v5 }
 0xad8   : > { %v3391_v21 = vcombine.high %v3389_v53, %v3389_v53  ;;  %v3417_v11 = vcombine.low %v3390_v1, %v3389_v53  ;;  %v3424_v52 = vrot.slane %v3416_v41, %v19058_v5 }
 0xad9   : > { %v3415_v57 = vcombine.low %v3407_v35, %v3414_v63 }
 0xada   : > { %v3431_v18 = vrot.slane %v3417_v11, %v19058_v5  ;;  %v3433_v20 = vcombine.low %v3391_v21, %v3398_v46 }
 0xadb   : > { %16452 = vmatmul.mubr.msk.f32.vlgmr.msra.gmra.mrb[20].mxu0 %vm1445_vm3, %v3415_v57 }
 0xadc   : > { %17198 = vmatpush3.bf16.xpose.msk.msra.mxu0 %vm19291_vm4, %v17193_v54  ;;  %16454 = vmatprep.mubr.msk.f32.mxu0 %vm18608_vm2, %v21815_v59  ;;  %v3432_v6 = vcombine.low %v3424_v52, %v3431_v18  ;;  %v3440_v4 = vrot.slane %v3433_v20, %v19058_v5 }
 0xadd   : > { %17211 = vmatprep.subr.bf16.mxu0 %v21863_v0 }
 0xadf   : > { %16455 = vmatmul.mubr.msk.f32.gmra.mrb[22].mxu0 %vm1445_vm3, %v3432_v6 }
 0xae0   : > { %16457 = vmatprep.mubr.msk.f32.mxu0 %vm18608_vm2, %v21815_v59 }
 0xae3   : > { %v16466_v30 = vpop.f32.mrb[16].mxu1  ;;  %16458 = vmatmul.mubr.msk.f32.gmra.mrb[24].mxu0 %vm1445_vm3, %v3440_v4 }
 0xae4   : > { %v3647_v56 = vpop.f32.mrb[17].mxu1  ;;  %v3785_v54 = vsel %vm1674_vm8, %v16466_v30, -inf  ;;  %16471 = vmatprep.mubr.msk.f32.mxu0 %vm1445_vm3, %v3672_v42 }
 0xae5   : > { %3786 = vmax.xlane.f32.xlu1 %v3785_v54  ;;  %v3782_v26 = vsel %vm1670_vm9, %v3647_v56, -inf }
 0xae6   : > { %3783 = vmax.xlane.f32.xlu0 %v3782_v26 }
 0xae7   : > { %16472 = vmatmul.mubr.msk.f32.vlgmr.msra.gmra.mrb[26].mxu0 %vm1445_vm3, %v3674_v24  ;;  %v1378_v24 = vld [vmem:[#allocation10 + $0x38] sm:$0xff] }
 0xae8   : > { %16492 = vmatprep.mubr.msk.f32.mxu0 %vm18608_vm2, %v21815_v59 }
 0xb72   : > { %v3787_v61 = vpop.xlane.xlu1 %3786 }
 0xb73   : > { %v3795_v58 = vsub.f32 %v16466_v30, %v3787_v61  ;;  %v3784_v60 = vpop.xlane.xlu0 %3783 }
 0xb74   : > { %v3794_v23 = vsub.f32 %v3647_v56, %v3784_v60 }
 0xb75   : > { %v3800_v40 = vmul.f32 1.442695, %v3795_v58 }
 0xb76   : > { %v3798_v48 = vmul.f32 1.442695, %v3794_v23 }
 0xb77   : > { %17931 = vpow2.f32 %v3800_v40 }
 0xb78   : > { %17933 = vpow2.f32 %v3798_v48 }
 0xb81   : > { %v17932_v32 = vpop.eup %17931 }
 0xb82   : > { %v3809_v7 = vsel %vm1674_vm8, %v17932_v32, 0.0  ;;  %v17934_v63 = vpop.eup %17933 }
 0xb83   : > { %3810 = vadd.xlane.f32.xlu1 %v3809_v7  ;;  %v3806_v53 = vsel %vm1670_vm9, %v17934_v63, 0.0 }
 0xbba   : > { %v16473_v37 = vpop.f32.mrb[26].mxu0 }
 0xbbb   : > { %v3773_v39 = vpop.f32.mrb[27].mxu0  ;;  %v3791_v35 = vsel %vm1674_vm8, %v16473_v37, -inf }
 0xbbc   : > { %v3788_v31 = vsel %vm1670_vm9, %v3773_v39, -inf }
 0xbbd   : > { %3789 = vmax.xlane.f32.xlu0 %v3788_v31 }
 0xbc1   : > { %3792 = vmax.xlane.f32.xlu0 %v3791_v35 }
 0xbc5   : > { %3807 = vadd.xlane.f32.xlu0 %v3806_v53 }
 0xc10   : > { %v3811_v21 = vpop.xlane.xlu1 %3810 }
 0xc4a   : > { %v3790_v1 = vpop.xlane.xlu0 %3789 }
 0xc4b   : > { %v3796_v41 = vsub.f32 %v3773_v39, %v3790_v1 }
 0xc4d   : > { %v3802_v57 = vmul.f32 1.442695, %v3796_v41 }
 0xc4e   : > { %v3793_v46 = vpop.xlane.xlu0 %3792 }
 0xc4f   : > { %17935 = vpow2.f32 %v3802_v57  ;;  %v3797_v11 = vsub.f32 %v16473_v37, %v3793_v46 }
 0xc50   : > { %17937 = vrcp.f32 %v3811_v21 }
 0xc51   : > { %v3804_v52 = vmul.f32 1.442695, %v3797_v11 }
 0xc52   : > { %v3808_v18 = vpop.xlane.xlu0 %3807 }
 0xc53   : > { %17939 = vpow2.f32 %v3804_v52 }
 0xc54   : > { %17941 = vrcp.f32 %v3808_v18 }
 0xc59   : > { %v17936_v20 = vpop.eup %17935 }
 0xc5a   : > { %v3812_v6 = vsel %vm1670_vm9, %v17936_v20, 0.0  ;;  %v17938_v4 = vpop.eup %17937 }
 0xc5b   : > { %3813 = vadd.xlane.f32.xlu0 %v3812_v6  ;;  %v3823_v26 = vmul.f32 %v17938_v4, %v17932_v32 }
 0xc5d   : > { %v17940_v30 = vpop.eup %17939 }
 0xc5e   : > { %v17942_v42 = vpop.eup %17941  ;;  %v3815_v56 = vsel %vm1674_vm8, %v17940_v30, 0.0 }
 0xc5f   : > { %3816 = vadd.xlane.f32.xlu1 %v3815_v56  ;;  %v3822_v54 = vmul.f32 %v17942_v42, %v17934_v63 }
 0xc61   : > { %16478 = vmatprep.mubr.msk.f32.mxu1 %vm1670_vm9, %v3822_v54 }
 0xc62   : > { %16479 = vmatmul.mubr.msk.f32.vlgmr.msra.gmra.mrb[18].mxu1 %vm1670_vm9, %v3823_v26 }
 0xc63   : > { %17210 = vmatpush3.bf16.msk.msra.mxu1 %vm19314_vm7, %v19640_v27  ;;  %v1377_v27 = vld [vmem:[#allocation10 + $0x30] sm:$0xff] }
 0xc64   : > { %v17212_v61 = vpack.c.bf16 %v1378_v24, %v1377_v27 }
 0xc66   : > { %17213 = vmatpush3.bf16.msra.mxu0 %v17212_v61 }
 0xc70   : > { %4237 = vrot.lane.b32.xlu1 %v19242_v34, %s18613_s22 }
 0xc71   : > { %4235 = vrot.lane.b32.xlu0 %v19240_v33, %s18613_s22 }
 0xc74   : > { %4239 = vrot.lane.b32.xlu1 %v19247_v43, %s18613_s22 }
 0xc75   : > { %4243 = vrot.lane.b32.xlu0 %v19257_v62, %s18613_s22 }
 0xc78   : > { %4241 = vrot.lane.b32.xlu1 %v19249_v44, %s18613_s22 }
 0xc79   : > { %4363 = vrot.lane.b32.xlu0 %v19265_v36, %s18613_s22 }
 0xc7c   : > { %4361 = vrot.lane.b32.xlu1 %v19259_v55, %s18613_s22 }
 0xc7d   : > { %4367 = vrot.lane.b32.xlu0 %v19272_v8, %s18613_s22 }
 0xc80   : > { %4365 = vrot.lane.b32.xlu1 %v19267_v10, %s18613_s22 }
 0xc81   : > { %4250 = vrot.lane.b32.xlu0 %v19286_v29, %s18613_s22 }
 0xc84   : > { %4369 = vrot.lane.b32.xlu1 %v19274_v17, %s18613_s22 }
 0xc85   : > { %4376 = vrot.lane.b32.xlu0 %v19321_v2, %s18613_s22 }
 0xc88   : > { %4252 = vrot.lane.b32.xlu1 %v19333_v25, %s18613_s22 }
 0xc8c   : > { %4378 = vrot.lane.b32.xlu1 %v19351_v28, %s18613_s22 }
 0xce8   : > { %v3814_v58 = vpop.xlane.xlu0 %3813 }
 0xce9   : > { %17943 = vrcp.f32 %v3814_v58 }
 0xcec   : > { %v4236_v40 = vpop.permute.xlu0 %4235  ;;  %v3817_v32 = vpop.xlane.xlu1 %3816 }
 0xced   : > { %17945 = vrcp.f32 %v3817_v32  ;;  %v4245_v35 = vrot.slane %v4236_v40, 2  ;;  %v4531_v1 = vrot.slane %v4236_v40, 4 }
 0xcf0   : > { %v4244_v7 = vpop.permute.xlu0 %4243  ;;  %v4238_v60 = vpop.permute.xlu1 %4237 }
 0xcf1   : > { %v4246_v48 = vrot.slane %v4238_v60, 2  ;;  %v4532_v63 = vrot.slane %v4238_v60, 4 }
 0xcf3   : > { %v17944_v23 = vpop.eup %17943  ;;  %v4254_v41 = vcombine.low %v4245_v35, %v4246_v48  ;;  %v4536_v4 = vcombine.low %v4531_v1, %v4532_v63 }
 0xcf4   : > { %v4364_v37 = vpop.permute.xlu0 %4363  ;;  %v4240_v39 = vpop.permute.xlu1 %4239  ;;  %v3824_v31 = vmul.f32 %v17944_v23, %v17936_v20  ;;  %v4249_v20 = vrot.slane %v4244_v7, 2 }
 0xcf5   : > { %v4247_v11 = vrot.slane %v4240_v39, 2  ;;  %v4533_v52 = vrot.slane %v4240_v39, 4  ;;  %v4262_v27 = vrot.slane %v4254_v41, %v19058_v5  ;;  %v4544_v40 = vrot.slane %v4536_v4, %v19058_v5 }
 0xcf6   : > { %16485 = vmatprep.mubr.msk.f32.mxu1 %vm1670_vm9, %v3824_v31  ;;  %v4372_v32 = vrot.slane %v4364_v37, 2  ;;  %v4277_v48 = vrot.slane %v4249_v20, %v19058_v5  ;;  %v4645_v39 = vrot.slane %v4364_v37, 4 }
 0xcf7   : > { %v17946_v53 = vpop.eup %17945 }
 0xcf8   : > { %v4368_v57 = vpop.permute.xlu0 %4367  ;;  %v4242_v46 = vpop.permute.xlu1 %4241  ;;  %v3825_v21 = vmul.f32 %v17946_v53, %v17940_v30  ;;  %v4535_v30 = vrot.slane %v4244_v7, 4 }
 0xcf9   : > { %v4248_v18 = vrot.slane %v4242_v46, 2  ;;  %v4534_v6 = vrot.slane %v4242_v46, 4  ;;  %v4374_v53 = vrot.slane %v4368_v57, 2  ;;  %v4647_v1 = vrot.slane %v4368_v57, 4 }
 0xcfa   : > { %16486 = vmatmul.mubr.msk.f32.vlgmr.msra.gmra.mrb[20].mxu1 %vm1670_vm9, %v3825_v21  ;;  %v4559_v21 = vrot.slane %v4535_v30, %v19058_v5 }
 0xcfb   : > { %v4255_v42 = vcombine.low %v4247_v11, %v4248_v18  ;;  %v4537_v56 = vcombine.low %v4533_v52, %v4534_v6 }
 0xcfc   : > { %v4251_v54 = vpop.permute.xlu0 %4250  ;;  %v4362_v26 = vpop.permute.xlu1 %4361 }
 0xcfd   : > { %v4269_v24 = vrot.slane %v4255_v42, %v19058_v5  ;;  %v4551_v61 = vrot.slane %v4537_v56, %v19058_v5  ;;  %v4371_v58 = vrot.slane %v4362_v26, 2  ;;  %16505 = vmatprep.mubr.msk.f32.mxu1 %vm1445_vm3, %v4251_v54  ;;  %v4644_v60 = vrot.slane %v4362_v26, 4 }
 0xcff   : > { %v4270_v23 = vcombine.low %v4262_v27, %v4269_v24  ;;  %v4380_v31 = vcombine.low %v4371_v58, %v4372_v32  ;;  %v4552_v63 = vcombine.low %v4544_v40, %v4551_v61  ;;  %v4649_v11 = vcombine.low %v4644_v60, %v4645_v39 }
 0xd00   : > { %v4366_v35 = vpop.permute.xlu1 %4365 }
 0xd01   : > { %v4373_v41 = vrot.slane %v4366_v35, 2  ;;  %v4646_v46 = vrot.slane %v4366_v35, 4  ;;  %v17214_v52 = vpack.c.bf16 %v4277_v48, %v4270_v23  ;;  %v4388_v6 = vrot.slane %v4380_v31, %v19058_v5 }
 0xd02   : > { %v17226_v37 = vpack.c.bf16 %v4559_v21, %v4552_v63  ;;  %v4657_v54 = vrot.slane %v4649_v11, %v19058_v5 }
 0xd03   : > { %v4381_v7 = vcombine.low %v4373_v41, %v4374_v53  ;;  %v4650_v18 = vcombine.low %v4646_v46, %v4647_v1  ;;  %17216 = vmatprep.subr.msk.bf16.mxu1 %vm19291_vm4, %v17214_v52 }
 0xd04   : > { %v4370_v4 = vpop.permute.xlu1 %4369  ;;  %17219 = vmatpush3.bf16.xpose.msk.msra.mxu1 %vm19291_vm4, %v17214_v52 }
 0xd05   : > { %v4395_v42 = vrot.slane %v4381_v7, %v19058_v5  ;;  %v4664_v56 = vrot.slane %v4650_v18, %v19058_v5  ;;  %v4375_v57 = vrot.slane %v4370_v4, 2  ;;  %v4648_v20 = vrot.slane %v4370_v4, 4  ;;  %17228 = vmatprep.subr.msk.bf16.mxu1 %vm19314_vm7, %v17226_v37 }
 0xd07   : > { %v4403_v26 = vrot.slane %v4375_v57, %v19058_v5  ;;  %v4396_v27 = vcombine.low %v4388_v6, %v4395_v42  ;;  %v4672_v24 = vrot.slane %v4648_v20, %v19058_v5  ;;  %v4665_v61 = vcombine.low %v4657_v54, %v4664_v56 }
 0xd08   : > { %v4253_v30 = vpop.permute.xlu1 %4252 }
 0xd09   : > { %v17220_v58 = vpack.c.bf16 %v4403_v26, %v4396_v27  ;;  %v19787_v40 = vpack.c.bf16 %v4672_v24, %v4665_v61  ;;  %v4377_v61 = vpop.permute.xlu0 %4376 }
 0xd0b   : > { %17222 = vmatprep.subr.msk.bf16.mxu0 %vm19291_vm4, %v17220_v58  ;;  %16506 = vmatmul.mubr.msk.f32.vlgmr.msra.gmra.mrb[22].mxu1 %vm1445_vm3, %v4253_v30 }
 0xd0c   : > { %17231 = vmatpush3.bf16.msk.msra.mxu1 %vm19314_vm7, %v17226_v37  ;;  %v4379_v30 = vpop.permute.xlu1 %4378 }
 0xd0d   : > { %17234 = vmatprep.subr.msk.bf16.mxu1 %vm19314_vm7, %v19787_v40 }
 0xd35   : > { %v16480_v32 = vpop.f32.mrb[18].mxu1 }
 0xd36   : > { %v3930_v60 = vpop.f32.mrb[19].mxu1  ;;  %v4079_v52 = vrot.slane %v16480_v32, %v19058_v5 }
 0xd37   : > { %v4056_v23 = vcombine.high %v3930_v60, %v3930_v60  ;;  %v4063_v48 = vrot.slane %v3930_v60, %v19058_v5 }
 0xd39   : > { %v4070_v39 = vrot.slane %v4056_v23, %v19058_v5  ;;  %v4071_v31 = vcombine.high %v4063_v48, %v4063_v48 }
 0xd3b   : > { %v4072_v35 = vcombine.high %v4070_v39, %v4070_v39  ;;  %v4104_v63 = vcombine.low %v4063_v48, %v4071_v31 }
 0xd3d   : > { %v4105_v53 = vcombine.low %v4070_v39, %v4072_v35  ;;  %v4112_v1 = vrot.slane %v4104_v63, %v19058_v5 }
 0xd3f   : > { %v4119_v41 = vrot.slane %v4105_v53, %v19058_v5 }
 0xd41   : > { %v4120_v46 = vcombine.low %v4112_v1, %v4119_v41 }
 0xd43   : > { %16493 = vmatmul.mubr.msk.f32.vlgmr.msra.gmra.mrb[20].mxu0 %vm1445_vm3, %v4120_v46 }
 0xd44   : > { %17225 = vmatpush3.bf16.xpose.msk.msra.mxu0 %vm19291_vm4, %v17220_v58  ;;  %16495 = vmatprep.mubr.msk.f32.mxu0 %vm18608_vm2, %v21815_v59 }
 0xd45   : > { %17238 = vmatprep.subr.bf16.mxu0 %v21863_v0 }
 0xdcd   : > { %v16487_v21 = vpop.f32.mrb[20].mxu1 }
 0xdce   : > { %v4043_v11 = vpop.f32.mrb[21].mxu1  ;;  %v4103_v42 = vrot.slane %v16487_v21, %v19058_v5 }
 0xdcf   : > { %v4080_v7 = vcombine.high %v4043_v11, %v4043_v11  ;;  %v4087_v18 = vrot.slane %v4043_v11, %v19058_v5 }
 0xdd1   : > { %v4094_v6 = vrot.slane %v4080_v7, %v19058_v5  ;;  %v4095_v4 = vcombine.high %v4087_v18, %v4087_v18  ;;  %v4121_v37 = vcombine.low %v4079_v52, %v4087_v18 }
 0xdd3   : > { %v4096_v56 = vcombine.high %v4094_v6, %v4094_v6  ;;  %v4122_v57 = vcombine.low %v4095_v4, %v4094_v6  ;;  %v4129_v20 = vrot.slane %v4121_v37, %v19058_v5 }
 0xdd5   : > { %v4136_v54 = vrot.slane %v4122_v57, %v19058_v5  ;;  %v4138_v26 = vcombine.low %v4096_v56, %v4103_v42 }
 0xdd7   : > { %v4137_v27 = vcombine.low %v4129_v20, %v4136_v54  ;;  %v4145_v24 = vrot.slane %v4138_v26, %v19058_v5 }
 0xdd9   : > { %16496 = vmatmul.mubr.msk.f32.gmra.mrb[22].mxu0 %vm1445_vm3, %v4137_v27 }
 0xdda   : > { %16498 = vmatprep.mubr.msk.f32.mxu0 %vm18608_vm2, %v21815_v59 }
 0xddd   : > { %16499 = vmatmul.mubr.msk.f32.gmra.mrb[24].mxu0 %vm1445_vm3, %v4145_v24 }
 0xdde   : > { %16512 = vmatprep.mubr.msk.f32.mxu0 %vm1445_vm3, %v4377_v61  ;;  %v16507_v58 = vpop.f32.mrb[22].mxu1 }
 0xddf   : > { %v4352_v32 = vpop.f32.mrb[23].mxu1  ;;  %v4490_v60 = vsel %vm1674_vm8, %v16507_v58, -inf }
 0xde0   : > { %4491 = vmax.xlane.f32.xlu1 %v4490_v60  ;;  %v4487_v23 = vsel %vm1670_vm9, %v4352_v32, -inf }
 0xde1   : > { %16513 = vmatmul.mubr.msk.f32.vlgmr.msra.gmra.mrb[28].mxu0 %vm1445_vm3, %v4379_v30  ;;  %4488 = vmax.xlane.f32.xlu0 %v4487_v23  ;;  %v1380_v23 = vld [vmem:[#allocation10 + $0x48] sm:$0xff] }
 0xde2   : > { %16533 = vmatprep.mubr.msk.f32.mxu0 %vm18608_vm2, %v21815_v59 }
 0xe6d   : > { %v4492_v48 = vpop.xlane.xlu1 %4491 }
 0xe6e   : > { %v4500_v39 = vsub.f32 %v16507_v58, %v4492_v48  ;;  %v4489_v53 = vpop.xlane.xlu0 %4488 }
 0xe6f   : > { %v4499_v1 = vsub.f32 %v4352_v32, %v4489_v53 }
 0xe70   : > { %v4505_v31 = vmul.f32 1.442695, %v4500_v39 }
 0xe71   : > { %v4503_v41 = vmul.f32 1.442695, %v4499_v1 }
 0xe72   : > { %17947 = vpow2.f32 %v4505_v31 }
 0xe73   : > { %17949 = vpow2.f32 %v4503_v41 }
 0xe7c   : > { %v17948_v35 = vpop.eup %17947 }
 0xe7d   : > { %v4514_v63 = vsel %vm1674_vm8, %v17948_v35, 0.0  ;;  %v17950_v7 = vpop.eup %17949 }
 0xe7e   : > { %4515 = vadd.xlane.f32.xlu1 %v4514_v63  ;;  %v4511_v18 = vsel %vm1670_vm9, %v17950_v7, 0.0 }
 0xeb4   : > { %v16514_v46 = vpop.f32.mrb[28].mxu0 }
 0xeb5   : > { %v4478_v21 = vpop.f32.mrb[29].mxu0  ;;  %v4496_v52 = vsel %vm1674_vm8, %v16514_v46, -inf }
 0xeb6   : > { %v4493_v11 = vsel %vm1670_vm9, %v4478_v21, -inf }
 0xeb7   : > { %4494 = vmax.xlane.f32.xlu0 %v4493_v11 }
 0xebb   : > { %4497 = vmax.xlane.f32.xlu0 %v4496_v52 }
 0xebf   : > { %4512 = vadd.xlane.f32.xlu0 %v4511_v18 }
 0xf0b   : > { %v4516_v56 = vpop.xlane.xlu1 %4515 }
 0xf44   : > { %v4495_v6 = vpop.xlane.xlu0 %4494 }
 0xf45   : > { %v4501_v4 = vsub.f32 %v4478_v21, %v4495_v6 }
 0xf47   : > { %v4507_v37 = vmul.f32 1.442695, %v4501_v4 }
 0xf48   : > { %v4498_v42 = vpop.xlane.xlu0 %4497 }
 0xf49   : > { %17951 = vpow2.f32 %v4507_v37  ;;  %v4502_v57 = vsub.f32 %v16514_v46, %v4498_v42 }
 0xf4a   : > { %17953 = vrcp.f32 %v4516_v56 }
 0xf4b   : > { %v4509_v20 = vmul.f32 1.442695, %v4502_v57 }
 0xf4c   : > { %v4513_v54 = vpop.xlane.xlu0 %4512 }
 0xf4d   : > { %17955 = vpow2.f32 %v4509_v20 }
 0xf4e   : > { %17957 = vrcp.f32 %v4513_v54 }
 0xf53   : > { %v17952_v26 = vpop.eup %17951 }
 0xf54   : > { %v4517_v27 = vsel %vm1670_vm9, %v17952_v26, 0.0  ;;  %v17954_v24 = vpop.eup %17953 }
 0xf55   : > { %4518 = vadd.xlane.f32.xlu0 %v4517_v27  ;;  %v4528_v60 = vmul.f32 %v17954_v24, %v17948_v35 }
 0xf57   : > { %v17956_v61 = vpop.eup %17955 }
 0xf58   : > { %v17958_v58 = vpop.eup %17957  ;;  %v4520_v30 = vsel %vm1674_vm8, %v17956_v61, 0.0 }
 0xf59   : > { %4521 = vadd.xlane.f32.xlu1 %v4520_v30  ;;  %v4527_v32 = vmul.f32 %v17958_v58, %v17950_v7 }
 0xf5b   : > { %16519 = vmatprep.mubr.msk.f32.mxu1 %vm1670_vm9, %v4527_v32 }
 0xf5c   : > { %16520 = vmatmul.mubr.msk.f32.vlgmr.msra.gmra.mrb[24].mxu1 %vm1670_vm9, %v4528_v60 }
 0xf5d   : > { %17237 = vmatpush3.bf16.msk.msra.mxu1 %vm19314_vm7, %v19787_v40  ;;  %v1379_v40 = vld [vmem:[#allocation10 + $0x40] sm:$0xff] }
 0xf5e   : > { %v17239_v48 = vpack.c.bf16 %v1380_v23, %v1379_v40 }
 0xf60   : > { %17240 = vmatpush3.bf16.msra.mxu0 %v17239_v48 }
 0xf6a   : > { %4942 = vrot.lane.b32.xlu1 %v19242_v34, %s18614_s3 }
 0xf6b   : > { %4940 = vrot.lane.b32.xlu0 %v19240_v33, %s18614_s3 }
 0xf6e   : > { %4944 = vrot.lane.b32.xlu1 %v19247_v43, %s18614_s3 }
 0xf6f   : > { %4948 = vrot.lane.b32.xlu0 %v19257_v62, %s18614_s3 }
 0xf72   : > { %4946 = vrot.lane.b32.xlu1 %v19249_v44, %s18614_s3 }
 0xf73   : > { %5068 = vrot.lane.b32.xlu0 %v19265_v36, %s18614_s3 }
 0xf76   : > { %5066 = vrot.lane.b32.xlu1 %v19259_v55, %s18614_s3 }
 0xf77   : > { %5072 = vrot.lane.b32.xlu0 %v19272_v8, %s18614_s3 }
 0xf7a   : > { %5070 = vrot.lane.b32.xlu1 %v19267_v10, %s18614_s3 }
 0xf7b   : > { %4955 = vrot.lane.b32.xlu0 %v19286_v29, %s18614_s3 }
 0xf7e   : > { %5074 = vrot.lane.b32.xlu1 %v19274_v17, %s18614_s3 }
 0xf7f   : > { %5081 = vrot.lane.b32.xlu0 %v19321_v2, %s18614_s3 }
 0xf82   : > { %4957 = vrot.lane.b32.xlu1 %v19333_v25, %s18614_s3 }
 0xf86   : > { %5083 = vrot.lane.b32.xlu1 %v19351_v28, %s18614_s3 }
 0xfe2   : > { %v4519_v39 = vpop.xlane.xlu0 %4518 }
 0xfe3   : > { %17959 = vrcp.f32 %v4519_v39 }
 0xfe6   : > { %v4941_v31 = vpop.permute.xlu0 %4940  ;;  %v4522_v35 = vpop.xlane.xlu1 %4521 }
 0xfe7   : > { %17961 = vrcp.f32 %v4522_v35  ;;  %v4950_v52 = vrot.slane %v4941_v31, 2  ;;  %v5236_v6 = vrot.slane %v4941_v31, 4 }
 0xfea   : > { %v4949_v63 = vpop.permute.xlu0 %4948  ;;  %v4943_v53 = vpop.permute.xlu1 %4942 }
 0xfeb   : > { %v4951_v41 = vrot.slane %v4943_v53, 2  ;;  %v5237_v7 = vrot.slane %v4943_v53, 4 }
 0xfed   : > { %v17960_v1 = vpop.eup %17959  ;;  %v4959_v4 = vcombine.low %v4950_v52, %v4951_v41  ;;  %v5241_v24 = vcombine.low %v5236_v6, %v5237_v7 }
 0xfee   : > { %v5069_v46 = vpop.permute.xlu0 %5068  ;;  %v4945_v21 = vpop.permute.xlu1 %4944  ;;  %v4529_v11 = vmul.f32 %v17960_v1, %v17952_v26  ;;  %v4954_v26 = vrot.slane %v4949_v63, 2 }
 0xfef   : > { %v4952_v57 = vrot.slane %v4945_v21, 2  ;;  %v5238_v20 = vrot.slane %v4945_v21, 4  ;;  %v4967_v40 = vrot.slane %v4959_v4, %v19058_v5  ;;  %v5249_v31 = vrot.slane %v5241_v24, %v19058_v5 }
 0xff0   : > { %16526 = vmatprep.mubr.msk.f32.mxu1 %vm1670_vm9, %v4529_v11  ;;  %v5077_v35 = vrot.slane %v5069_v46, 2  ;;  %v4982_v41 = vrot.slane %v4954_v26, %v19058_v5  ;;  %v5350_v21 = vrot.slane %v5069_v46, 4 }
 0xff1   : > { %v17962_v18 = vpop.eup %17961 }
 0xff2   : > { %v5073_v37 = vpop.permute.xlu0 %5072  ;;  %v4947_v42 = vpop.permute.xlu1 %4946  ;;  %v4530_v56 = vmul.f32 %v17962_v18, %v17956_v61  ;;  %v5240_v61 = vrot.slane %v4949_v63, 4 }
 0xff3   : > { %v4953_v54 = vrot.slane %v4947_v42, 2  ;;  %v5239_v27 = vrot.slane %v4947_v42, 4  ;;  %v5079_v18 = vrot.slane %v5073_v37, 2  ;;  %v5352_v6 = vrot.slane %v5073_v37, 4 }
 0xff4   : > { %16527 = vmatmul.mubr.msk.f32.vlgmr.msra.gmra.mrb[26].mxu1 %vm1670_vm9, %v4530_v56  ;;  %v5264_v56 = vrot.slane %v5240_v61, %v19058_v5 }
 0xff5   : > { %v4960_v58 = vcombine.low %v4952_v57, %v4953_v54  ;;  %v5242_v30 = vcombine.low %v5238_v20, %v5239_v27 }
 0xff6   : > { %v4956_v32 = vpop.permute.xlu0 %4955  ;;  %v5067_v60 = vpop.permute.xlu1 %5066 }
 0xff7   : > { %v4974_v23 = vrot.slane %v4960_v58, %v19058_v5  ;;  %v5256_v48 = vrot.slane %v5242_v30, %v19058_v5  ;;  %v5076_v39 = vrot.slane %v5067_v60, 2  ;;  %16546 = vmatprep.mubr.msk.f32.mxu1 %vm1445_vm3, %v4956_v32  ;;  %v5349_v53 = vrot.slane %v5067_v60, 4 }
 0xff9   : > { %v4975_v1 = vcombine.low %v4967_v40, %v4974_v23  ;;  %v5085_v11 = vcombine.low %v5076_v39, %v5077_v35  ;;  %v5257_v7 = vcombine.low %v5249_v31, %v5256_v48  ;;  %v5354_v57 = vcombine.low %v5349_v53, %v5350_v21 }
 0xffa   : > { %v5071_v52 = vpop.permute.xlu1 %5070 }
 0xffb   : > { %v5078_v4 = vrot.slane %v5071_v52, 2  ;;  %v5351_v42 = vrot.slane %v5071_v52, 4  ;;  %v17241_v20 = vpack.c.bf16 %v4982_v41, %v4975_v1  ;;  %v5093_v27 = vrot.slane %v5085_v11, %v19058_v5 }
 0xffc   : > { %v17253_v46 = vpack.c.bf16 %v5264_v56, %v5257_v7  ;;  %v5362_v32 = vrot.slane %v5354_v57, %v19058_v5 }
 0xffd   : > { %v5086_v63 = vcombine.low %v5078_v4, %v5079_v18  ;;  %v5355_v54 = vcombine.low %v5351_v42, %v5352_v6  ;;  %17243 = vmatprep.subr.msk.bf16.mxu1 %vm19291_vm4, %v17241_v20 }
 0xffe   : > { %v5075_v24 = vpop.permute.xlu1 %5074  ;;  %17246 = vmatpush3.bf16.xpose.msk.msra.mxu1 %vm19291_vm4, %v17241_v20 }
 0xfff   : > { %v5100_v58 = vrot.slane %v5086_v63, %v19058_v5  ;;  %v5369_v30 = vrot.slane %v5355_v54, %v19058_v5  ;;  %v5080_v37 = vrot.slane %v5075_v24, 2  ;;  %v5353_v26 = vrot.slane %v5075_v24, 4  ;;  %17255 = vmatprep.subr.msk.bf16.mxu1 %vm19314_vm7, %v17253_v46 }
0x1001   : > { %v5108_v60 = vrot.slane %v5080_v37, %v19058_v5  ;;  %v5101_v40 = vcombine.low %v5093_v27, %v5100_v58  ;;  %v5377_v23 = vrot.slane %v5353_v26, %v19058_v5  ;;  %v5370_v48 = vcombine.low %v5362_v32, %v5369_v30 }
0x1002   : > { %v4958_v61 = vpop.permute.xlu1 %4957 }
0x1003   : > { %v17247_v39 = vpack.c.bf16 %v5108_v60, %v5101_v40  ;;  %v19884_v31 = vpack.c.bf16 %v5377_v23, %v5370_v48  ;;  %v5082_v48 = vpop.permute.xlu0 %5081 }
0x1005   : > { %17249 = vmatprep.subr.msk.bf16.mxu0 %vm19291_vm4, %v17247_v39  ;;  %16547 = vmatmul.mubr.msk.f32.vlgmr.msra.gmra.mrb[28].mxu1 %vm1445_vm3, %v4958_v61 }
0x1006   : > { %17258 = vmatpush3.bf16.msk.msra.mxu1 %vm19314_vm7, %v17253_v46  ;;  %v5084_v61 = vpop.permute.xlu1 %5083 }
0x1007   : > { %17261 = vmatprep.subr.msk.bf16.mxu1 %vm19314_vm7, %v19884_v31 }
0x102f   : > { %v16521_v35 = vpop.f32.mrb[24].mxu1 }
0x1030   : > { %v4635_v53 = vpop.f32.mrb[25].mxu1  ;;  %v4784_v20 = vrot.slane %v16521_v35, %v19058_v5 }
0x1031   : > { %v4761_v1 = vcombine.high %v4635_v53, %v4635_v53  ;;  %v4768_v41 = vrot.slane %v4635_v53, %v19058_v5 }
0x1033   : > { %v4775_v21 = vrot.slane %v4761_v1, %v19058_v5  ;;  %v4776_v11 = vcombine.high %v4768_v41, %v4768_v41 }
0x1035   : > { %v4777_v52 = vcombine.high %v4775_v21, %v4775_v21  ;;  %v4809_v7 = vcombine.low %v4768_v41, %v4776_v11 }
0x1037   : > { %v4810_v18 = vcombine.low %v4775_v21, %v4777_v52  ;;  %v4817_v6 = vrot.slane %v4809_v7, %v19058_v5 }
0x1039   : > { %v4824_v4 = vrot.slane %v4810_v18, %v19058_v5 }
0x103b   : > { %v4825_v42 = vcombine.low %v4817_v6, %v4824_v4 }
0x103d   : > { %16534 = vmatmul.mubr.msk.f32.vlgmr.msra.gmra.mrb[20].mxu0 %vm1445_vm3, %v4825_v42 }
0x103e   : > { %17252 = vmatpush3.bf16.xpose.msk.msra.mxu0 %vm19291_vm4, %v17247_v39  ;;  %16536 = vmatprep.mubr.msk.f32.mxu0 %vm18608_vm2, %v21815_v59 }
0x103f   : > { %17265 = vmatprep.subr.bf16.mxu0 %v21863_v0 }
0x10c7   : > { %v16528_v56 = vpop.f32.mrb[26].mxu1 }
0x10c8   : > { %v4748_v57 = vpop.f32.mrb[27].mxu1  ;;  %v4808_v58 = vrot.slane %v16528_v56, %v19058_v5 }
0x10c9   : > { %v4785_v63 = vcombine.high %v4748_v57, %v4748_v57  ;;  %v4792_v54 = vrot.slane %v4748_v57, %v19058_v5 }
0x10cb   : > { %v4799_v27 = vrot.slane %v4785_v63, %v19058_v5  ;;  %v4800_v24 = vcombine.high %v4792_v54, %v4792_v54  ;;  %v4826_v46 = vcombine.low %v4784_v20, %v4792_v54 }
0x10cd   : > { %v4801_v30 = vcombine.high %v4799_v27, %v4799_v27  ;;  %v4827_v37 = vcombine.low %v4800_v24, %v4799_v27  ;;  %v4834_v26 = vrot.slane %v4826_v46, %v19058_v5 }
0x10cf   : > { %v4841_v32 = vrot.slane %v4827_v37, %v19058_v5  ;;  %v4843_v60 = vcombine.low %v4801_v30, %v4808_v58 }
0x10d1   : > { %v4842_v40 = vcombine.low %v4834_v26, %v4841_v32  ;;  %v4850_v23 = vrot.slane %v4843_v60, %v19058_v5 }
0x10d3   : > { %16537 = vmatmul.mubr.msk.f32.gmra.mrb[22].mxu0 %vm1445_vm3, %v4842_v40 }
0x10d4   : > { %16539 = vmatprep.mubr.msk.f32.mxu0 %vm18608_vm2, %v21815_v59 }
0x10d7   : > { %16540 = vmatmul.mubr.msk.f32.gmra.mrb[24].mxu0 %vm1445_vm3, %v4850_v23 }
0x10d8   : > { %16553 = vmatprep.mubr.msk.f32.mxu0 %vm1445_vm3, %v5082_v48  ;;  %v16548_v39 = vpop.f32.mrb[28].mxu1 }
0x10d9   : > { %v5057_v35 = vpop.f32.mrb[29].mxu1  ;;  %v5195_v53 = vsel %vm1674_vm8, %v16548_v39, -inf }
0x10da   : > { %5196 = vmax.xlane.f32.xlu1 %v5195_v53  ;;  %v5192_v1 = vsel %vm1670_vm9, %v5057_v35, -inf }
0x10db   : > { %16554 = vmatmul.mubr.msk.f32.vlgmr.msra.gmra.mrb[30].mxu0 %vm1445_vm3, %v5084_v61  ;;  %5193 = vmax.xlane.f32.xlu0 %v5192_v1  ;;  %v1382_v1 = vld [vmem:[#allocation10 + $0x58] sm:$0xff] }
0x10dc   : > { %16574 = vmatprep.mubr.msk.f32.mxu0 %vm18608_vm2, %v21815_v59 }
0x1167   : > { %v5197_v41 = vpop.xlane.xlu1 %5196 }
0x1168   : > { %v5205_v21 = vsub.f32 %v16548_v39, %v5197_v41  ;;  %v5194_v18 = vpop.xlane.xlu0 %5193 }
0x1169   : > { %v5204_v6 = vsub.f32 %v5057_v35, %v5194_v18 }
0x116a   : > { %v5210_v11 = vmul.f32 1.442695, %v5205_v21 }
0x116b   : > { %v5208_v4 = vmul.f32 1.442695, %v5204_v6 }
0x116c   : > { %17963 = vpow2.f32 %v5210_v11 }
0x116d   : > { %17965 = vpow2.f32 %v5208_v4 }
0x1176   : > { %v17964_v52 = vpop.eup %17963 }
0x1177   : > { %v5219_v7 = vsel %vm1674_vm8, %v17964_v52, 0.0  ;;  %v17966_v63 = vpop.eup %17965 }
0x1178   : > { %5220 = vadd.xlane.f32.xlu1 %v5219_v7  ;;  %v5216_v54 = vsel %vm1670_vm9, %v17966_v63, 0.0 }
0x11ae   : > { %v16555_v42 = vpop.f32.mrb[30].mxu0 }
0x11af   : > { %v5183_v56 = vpop.f32.mrb[31].mxu0  ;;  %v5201_v20 = vsel %vm1674_vm8, %v16555_v42, -inf }
0x11b0   : > { %v5198_v57 = vsel %vm1670_vm9, %v5183_v56, -inf }
0x11b1   : > { %5199 = vmax.xlane.f32.xlu0 %v5198_v57 }
0x11b5   : > { %5202 = vmax.xlane.f32.xlu0 %v5201_v20 }
0x11b9   : > { %5217 = vadd.xlane.f32.xlu0 %v5216_v54 }
0x1205   : > { %v5221_v30 = vpop.xlane.xlu1 %5220 }
0x123e   : > { %v5200_v27 = vpop.xlane.xlu0 %5199 }
0x123f   : > { %v5206_v24 = vsub.f32 %v5183_v56, %v5200_v27 }
0x1241   : > { %v5212_v46 = vmul.f32 1.442695, %v5206_v24 }
0x1242   : > { %v5203_v58 = vpop.xlane.xlu0 %5202 }
0x1243   : > { %17967 = vpow2.f32 %v5212_v46  ;;  %v5207_v37 = vsub.f32 %v16555_v42, %v5203_v58 }
0x1244   : > { %17969 = vrcp.f32 %v5221_v30 }
0x1245   : > { %v5214_v26 = vmul.f32 1.442695, %v5207_v37 }
0x1246   : > { %v5218_v32 = vpop.xlane.xlu0 %5217 }
0x1247   : > { %17971 = vpow2.f32 %v5214_v26 }
0x1248   : > { %17973 = vrcp.f32 %v5218_v32 }
0x124d   : > { %v17968_v60 = vpop.eup %17967 }
0x124e   : > { %v5222_v40 = vsel %vm1670_vm9, %v17968_v60, 0.0  ;;  %v17970_v23 = vpop.eup %17969 }
0x124f   : > { %5223 = vadd.xlane.f32.xlu0 %v5222_v40  ;;  %v5233_v53 = vmul.f32 %v17970_v23, %v17964_v52 }
0x1251   : > { %v17972_v48 = vpop.eup %17971 }
0x1252   : > { %v17974_v39 = vpop.eup %17973  ;;  %v5225_v61 = vsel %vm1674_vm8, %v17972_v48, 0.0 }
0x1253   : > { %5226 = vadd.xlane.f32.xlu1 %v5225_v61  ;;  %v5232_v35 = vmul.f32 %v17974_v39, %v17966_v63 }
0x1255   : > { %16560 = vmatprep.mubr.msk.f32.mxu1 %vm1670_vm9, %v5232_v35 }
0x1256   : > { %16561 = vmatmul.mubr.msk.f32.vlgmr.msra.gmra.mrb[30].mxu1 %vm1670_vm9, %v5233_v53 }
0x1257   : > { %17264 = vmatpush3.bf16.msk.msra.mxu1 %vm19314_vm7, %v19884_v31  ;;  %v1381_v31 = vld [vmem:[#allocation10 + $0x50] sm:$0xff] }
0x1258   : > { %v17266_v41 = vpack.c.bf16 %v1382_v1, %v1381_v31 }
0x125a   : > { %17267 = vmatpush3.bf16.msra.mxu0 %v17266_v41 }
0x1264   : > { %5647 = vrot.lane.b32.xlu1 %v19242_v34, %s18615_s27 }
0x1265   : > { %5645 = vrot.lane.b32.xlu0 %v19240_v33, %s18615_s27 }
0x1268   : > { %5649 = vrot.lane.b32.xlu1 %v19247_v43, %s18615_s27 }
0x1269   : > { %5653 = vrot.lane.b32.xlu0 %v19257_v62, %s18615_s27 }
0x126c   : > { %5651 = vrot.lane.b32.xlu1 %v19249_v44, %s18615_s27 }
0x126d   : > { %5773 = vrot.lane.b32.xlu0 %v19265_v36, %s18615_s27 }
0x1270   : > { %5771 = vrot.lane.b32.xlu1 %v19259_v55, %s18615_s27 }
0x1271   : > { %5777 = vrot.lane.b32.xlu0 %v19272_v8, %s18615_s27 }
0x1274   : > { %5775 = vrot.lane.b32.xlu1 %v19267_v10, %s18615_s27 }
0x1275   : > { %5660 = vrot.lane.b32.xlu0 %v19286_v29, %s18615_s27 }
0x1278   : > { %5779 = vrot.lane.b32.xlu1 %v19274_v17, %s18615_s27 }
0x1279   : > { %5786 = vrot.lane.b32.xlu0 %v19321_v2, %s18615_s27 }
0x127c   : > { %5662 = vrot.lane.b32.xlu1 %v19333_v25, %s18615_s27 }
0x1280   : > { %5788 = vrot.lane.b32.xlu1 %v19351_v28, %s18615_s27 }
0x12dc   : > { %v5224_v21 = vpop.xlane.xlu0 %5223 }
0x12dd   : > { %17975 = vrcp.f32 %v5224_v21 }
0x12e0   : > { %v5646_v11 = vpop.permute.xlu0 %5645  ;;  %v5227_v52 = vpop.xlane.xlu1 %5226 }
0x12e1   : > { %17977 = vrcp.f32 %v5227_v52  ;;  %v5655_v20 = vrot.slane %v5646_v11, 2  ;;  %v5941_v27 = vrot.slane %v5646_v11, 4 }
0x12e4   : > { %v5654_v7 = vpop.permute.xlu0 %5653  ;;  %v5648_v18 = vpop.permute.xlu1 %5647 }
0x12e5   : > { %v5656_v4 = vrot.slane %v5648_v18, 2  ;;  %v5942_v63 = vrot.slane %v5648_v18, 4 }
0x12e7   : > { %v17976_v6 = vpop.eup %17975  ;;  %v5664_v24 = vcombine.low %v5655_v20, %v5656_v4  ;;  %v5946_v23 = vcombine.low %v5941_v27, %v5942_v63 }
0x12e8   : > { %v5774_v42 = vpop.permute.xlu0 %5773  ;;  %v5650_v56 = vpop.permute.xlu1 %5649  ;;  %v5234_v57 = vmul.f32 %v17976_v6, %v17968_v60  ;;  %v5659_v60 = vrot.slane %v5654_v7, 2 }
0x12e9   : > { %v5657_v37 = vrot.slane %v5650_v56, 2  ;;  %v5943_v26 = vrot.slane %v5650_v56, 4  ;;  %v5672_v31 = vrot.slane %v5664_v24, %v19058_v5  ;;  %v5954_v11 = vrot.slane %v5946_v23, %v19058_v5 }
0x12ea   : > { %16567 = vmatprep.mubr.msk.f32.mxu1 %vm1670_vm9, %v5234_v57  ;;  %v5782_v52 = vrot.slane %v5774_v42, 2  ;;  %v5687_v4 = vrot.slane %v5659_v60, %v19058_v5  ;;  %v6055_v56 = vrot.slane %v5774_v42, 4 }
0x12eb   : > { %v17978_v54 = vpop.eup %17977 }
0x12ec   : > { %v5778_v46 = vpop.permute.xlu0 %5777  ;;  %v5652_v58 = vpop.permute.xlu1 %5651  ;;  %v5235_v30 = vmul.f32 %v17978_v54, %v17972_v48  ;;  %v5945_v48 = vrot.slane %v5654_v7, 4 }
0x12ed   : > { %v5658_v32 = vrot.slane %v5652_v58, 2  ;;  %v5944_v40 = vrot.slane %v5652_v58, 4  ;;  %v5784_v54 = vrot.slane %v5778_v46, 2  ;;  %v6057_v27 = vrot.slane %v5778_v46, 4 }
0x12ee   : > { %16568 = vmatmul.mubr.msk.f32.vlgmr.msra.gmra.mrb[32].mxu1 %vm1670_vm9, %v5235_v30  ;;  %v5969_v30 = vrot.slane %v5945_v48, %v19058_v5 }
0x12ef   : > { %v5665_v39 = vcombine.low %v5657_v37, %v5658_v32  ;;  %v5947_v61 = vcombine.low %v5943_v26, %v5944_v40 }
0x12f0   : > { %v5661_v35 = vpop.permute.xlu0 %5660  ;;  %v5772_v53 = vpop.permute.xlu1 %5771 }
0x12f1   : > { %v5679_v1 = vrot.slane %v5665_v39, %v19058_v5  ;;  %v5961_v41 = vrot.slane %v5947_v61, %v19058_v5  ;;  %v5781_v21 = vrot.slane %v5772_v53, 2  ;;  %16587 = vmatprep.mubr.msk.f32.mxu1 %vm1445_vm3, %v5661_v35  ;;  %v6054_v18 = vrot.slane %v5772_v53, 4 }
0x12f3   : > { %v5680_v6 = vcombine.low %v5672_v31, %v5679_v1  ;;  %v5790_v57 = vcombine.low %v5781_v21, %v5782_v52  ;;  %v5962_v63 = vcombine.low %v5954_v11, %v5961_v41  ;;  %v6059_v37 = vcombine.low %v6054_v18, %v6055_v56 }
0x12f4   : > { %v5776_v20 = vpop.permute.xlu1 %5775 }
0x12f5   : > { %v5783_v24 = vrot.slane %v5776_v20, 2  ;;  %v6056_v58 = vrot.slane %v5776_v20, 4  ;;  %v17268_v26 = vpack.c.bf16 %v5687_v4, %v5680_v6  ;;  %v5798_v40 = vrot.slane %v5790_v57, %v19058_v5 }
0x12f6   : > { %v17280_v42 = vpack.c.bf16 %v5969_v30, %v5962_v63  ;;  %v6067_v35 = vrot.slane %v6059_v37, %v19058_v5 }
0x12f7   : > { %v5791_v7 = vcombine.low %v5783_v24, %v5784_v54  ;;  %v6060_v32 = vcombine.low %v6056_v58, %v6057_v27  ;;  %17270 = vmatprep.subr.msk.bf16.mxu1 %vm19291_vm4, %v17268_v26 }
0x12f8   : > { %v5780_v23 = vpop.permute.xlu1 %5779  ;;  %17273 = vmatpush3.bf16.xpose.msk.msra.mxu1 %vm19291_vm4, %v17268_v26 }
0x12f9   : > { %v5805_v39 = vrot.slane %v5791_v7, %v19058_v5  ;;  %v6074_v61 = vrot.slane %v6060_v32, %v19058_v5  ;;  %v5785_v46 = vrot.slane %v5780_v23, 2  ;;  %v6058_v60 = vrot.slane %v5780_v23, 4  ;;  %17282 = vmatprep.subr.msk.bf16.mxu1 %vm19314_vm7, %v17280_v42 }
0x12fb   : > { %v5813_v53 = vrot.slane %v5785_v46, %v19058_v5  ;;  %v5806_v31 = vcombine.low %v5798_v40, %v5805_v39  ;;  %v6082_v1 = vrot.slane %v6058_v60, %v19058_v5  ;;  %v6075_v41 = vcombine.low %v6067_v35, %v6074_v61 }
0x12fc   : > { %v5663_v48 = vpop.permute.xlu1 %5662 }
0x12fd   : > { %v17274_v21 = vpack.c.bf16 %v5813_v53, %v5806_v31  ;;  %v19981_v11 = vpack.c.bf16 %v6082_v1, %v6075_v41  ;;  %v5787_v41 = vpop.permute.xlu0 %5786 }
0x12ff   : > { %17276 = vmatprep.subr.msk.bf16.mxu0 %vm19291_vm4, %v17274_v21  ;;  %16588 = vmatmul.mubr.msk.f32.vlgmr.msra.gmra.mrb[34].mxu1 %vm1445_vm3, %v5663_v48 }
0x1300   : > { %17285 = vmatpush3.bf16.msk.msra.mxu1 %vm19314_vm7, %v17280_v42  ;;  %v5789_v48 = vpop.permute.xlu1 %5788 }
0x1301   : > { %17288 = vmatprep.subr.msk.bf16.mxu1 %vm19314_vm7, %v19981_v11 }
0x1329   : > { %v16562_v52 = vpop.f32.mrb[30].mxu1 }
0x132a   : > { %v5340_v18 = vpop.f32.mrb[31].mxu1  ;;  %v5489_v26 = vrot.slane %v16562_v52, %v19058_v5 }
0x132b   : > { %v5466_v6 = vcombine.high %v5340_v18, %v5340_v18  ;;  %v5473_v4 = vrot.slane %v5340_v18, %v19058_v5 }
0x132d   : > { %v5480_v56 = vrot.slane %v5466_v6, %v19058_v5  ;;  %v5481_v57 = vcombine.high %v5473_v4, %v5473_v4 }
0x132f   : > { %v5482_v20 = vcombine.high %v5480_v56, %v5480_v56  ;;  %v5514_v63 = vcombine.low %v5473_v4, %v5481_v57 }
0x1331   : > { %v5515_v54 = vcombine.low %v5480_v56, %v5482_v20  ;;  %v5522_v27 = vrot.slane %v5514_v63, %v19058_v5 }
0x1333   : > { %v5529_v24 = vrot.slane %v5515_v54, %v19058_v5 }
0x1335   : > { %v5530_v58 = vcombine.low %v5522_v27, %v5529_v24 }
0x1337   : > { %16575 = vmatmul.mubr.msk.f32.vlgmr.msra.gmra.mrb[20].mxu0 %vm1445_vm3, %v5530_v58 }
0x1338   : > { %17279 = vmatpush3.bf16.xpose.msk.msra.mxu0 %vm19291_vm4, %v17274_v21  ;;  %16577 = vmatprep.mubr.msk.f32.mxu0 %vm18608_vm2, %v21815_v59 }
0x1339   : > { %17292 = vmatprep.subr.bf16.mxu0 %v21863_v0 }
0x13c1   : > { %v16569_v30 = vpop.f32.mrb[32].mxu1 }
0x13c2   : > { %v5453_v37 = vpop.f32.mrb[33].mxu1  ;;  %v5513_v39 = vrot.slane %v16569_v30, %v19058_v5 }
0x13c3   : > { %v5490_v7 = vcombine.high %v5453_v37, %v5453_v37  ;;  %v5497_v32 = vrot.slane %v5453_v37, %v19058_v5 }
0x13c5   : > { %v5504_v40 = vrot.slane %v5490_v7, %v19058_v5  ;;  %v5505_v23 = vcombine.high %v5497_v32, %v5497_v32  ;;  %v5531_v42 = vcombine.low %v5489_v26, %v5497_v32 }
0x13c7   : > { %v5506_v61 = vcombine.high %v5504_v40, %v5504_v40  ;;  %v5532_v46 = vcombine.low %v5505_v23, %v5504_v40  ;;  %v5539_v60 = vrot.slane %v5531_v42, %v19058_v5 }
0x13c9   : > { %v5546_v35 = vrot.slane %v5532_v46, %v19058_v5  ;;  %v5548_v53 = vcombine.low %v5506_v61, %v5513_v39 }
0x13cb   : > { %v5547_v31 = vcombine.low %v5539_v60, %v5546_v35  ;;  %v5555_v1 = vrot.slane %v5548_v53, %v19058_v5 }
0x13cd   : > { %16578 = vmatmul.mubr.msk.f32.gmra.mrb[22].mxu0 %vm1445_vm3, %v5547_v31 }
0x13ce   : > { %16580 = vmatprep.mubr.msk.f32.mxu0 %vm18608_vm2, %v21815_v59 }
0x13d1   : > { %16581 = vmatmul.mubr.msk.f32.gmra.mrb[24].mxu0 %vm1445_vm3, %v5555_v1 }
0x13d2   : > { %16594 = vmatprep.mubr.msk.f32.mxu0 %vm1445_vm3, %v5787_v41  ;;  %v16589_v21 = vpop.f32.mrb[34].mxu1 }
0x13d3   : > { %v5762_v52 = vpop.f32.mrb[35].mxu1  ;;  %v5900_v18 = vsel %vm1674_vm8, %v16589_v21, -inf }
0x13d4   : > { %5901 = vmax.xlane.f32.xlu1 %v5900_v18  ;;  %v5897_v6 = vsel %vm1670_vm9, %v5762_v52, -inf }
0x13d5   : > { %16595 = vmatmul.mubr.msk.f32.vlgmr.msra.gmra.mrb[32].mxu0 %vm1445_vm3, %v5789_v48  ;;  %5898 = vmax.xlane.f32.xlu0 %v5897_v6 }
0x13d6   : > { %16615 = vmatprep.mubr.msk.f32.mxu0 %vm18608_vm2, %v21815_v59 }
0x1461   : > { %v5902_v4 = vpop.xlane.xlu1 %5901 }
0x1462   : > { %v5910_v56 = vsub.f32 %v16589_v21, %v5902_v4  ;;  %v5899_v54 = vpop.xlane.xlu0 %5898 }
0x1463   : > { %v5909_v27 = vsub.f32 %v5762_v52, %v5899_v54 }
0x1464   : > { %v5915_v57 = vmul.f32 1.442695, %v5910_v56 }
0x1465   : > { %v5913_v24 = vmul.f32 1.442695, %v5909_v27 }
0x1466   : > { %17979 = vpow2.f32 %v5915_v57 }
0x1467   : > { %17981 = vpow2.f32 %v5913_v24 }
0x1470   : > { %v17980_v20 = vpop.eup %17979 }
0x1471   : > { %v5924_v63 = vsel %vm1674_vm8, %v17980_v20, 0.0  ;;  %v17982_v7 = vpop.eup %17981 }
0x1472   : > { %5925 = vadd.xlane.f32.xlu1 %v5924_v63  ;;  %v5921_v32 = vsel %vm1670_vm9, %v17982_v7, 0.0 }
0x14a8   : > { %v16596_v58 = vpop.f32.mrb[32].mxu0 }
0x14a9   : > { %v5888_v30 = vpop.f32.mrb[33].mxu0  ;;  %v5906_v26 = vsel %vm1674_vm8, %v16596_v58, -inf }
0x14aa   : > { %v5903_v37 = vsel %vm1670_vm9, %v5888_v30, -inf }
0x14ab   : > { %5904 = vmax.xlane.f32.xlu0 %v5903_v37 }
0x14af   : > { %5907 = vmax.xlane.f32.xlu0 %v5906_v26 }
0x14b3   : > { %5922 = vadd.xlane.f32.xlu0 %v5921_v32 }
0x14ff   : > { %v5926_v61 = vpop.xlane.xlu1 %5925 }
0x1538   : > { %v5905_v40 = vpop.xlane.xlu0 %5904 }
0x1539   : > { %v5911_v23 = vsub.f32 %v5888_v30, %v5905_v40 }
0x153b   : > { %v5917_v42 = vmul.f32 1.442695, %v5911_v23 }
0x153c   : > { %v5908_v39 = vpop.xlane.xlu0 %5907 }
0x153d   : > { %17983 = vpow2.f32 %v5917_v42  ;;  %v5912_v46 = vsub.f32 %v16596_v58, %v5908_v39 }
0x153e   : > { %17985 = vrcp.f32 %v5926_v61 }
0x153f   : > { %v5919_v60 = vmul.f32 1.442695, %v5912_v46 }
0x1540   : > { %v5923_v35 = vpop.xlane.xlu0 %5922 }
0x1541   : > { %17987 = vpow2.f32 %v5919_v60 }
0x1542   : > { %17989 = vrcp.f32 %v5923_v35 }
0x1547   : > { %v17984_v53 = vpop.eup %17983 }
0x1548   : > { %v5927_v31 = vsel %vm1670_vm9, %v17984_v53, 0.0  ;;  %v17986_v1 = vpop.eup %17985 }
0x1549   : > { %5928 = vadd.xlane.f32.xlu0 %v5927_v31  ;;  %v5938_v18 = vmul.f32 %v17986_v1, %v17980_v20 }
0x154b   : > { %v17988_v41 = vpop.eup %17987 }
0x154c   : > { %v17990_v21 = vpop.eup %17989  ;;  %v5930_v48 = vsel %vm1674_vm8, %v17988_v41, 0.0 }
0x154d   : > { %5931 = vadd.xlane.f32.xlu1 %v5930_v48  ;;  %v5937_v52 = vmul.f32 %v17990_v21, %v17982_v7 }
0x154f   : > { %16601 = vmatprep.mubr.msk.f32.mxu1 %vm1670_vm9, %v5937_v52 }
0x1550   : > { %16602 = vmatmul.mubr.msk.f32.vlgmr.msra.gmra.mrb[36].mxu1 %vm1670_vm9, %v5938_v18 }
0x1551   : > { %17291 = vmatpush3.bf16.msk.msra.mxu1 %vm19314_vm7, %v19981_v11 }
0x155e   : > { %6352 = vrot.lane.b32.xlu1 %v19242_v34, %s18616_s15  ;;  %v1384_v34 = vld [vmem:[#allocation10 + $0x68] sm:$0xff] }
0x155f   : > { %6350 = vrot.lane.b32.xlu0 %v19240_v33, %s18616_s15  ;;  %v1383_v33 = vld [vmem:[#allocation10 + $0x60] sm:$0xff] }
0x1562   : > { %6354 = vrot.lane.b32.xlu1 %v19247_v43, %s18616_s15  ;;  %v17293_v43 = vpack.c.bf16 %v1384_v34, %v1383_v33 }
0x1563   : > { %6358 = vrot.lane.b32.xlu0 %v19257_v62, %s18616_s15 }
0x1564   : > { %17294 = vmatpush3.bf16.msra.mxu0 %v17293_v43 }
0x1566   : > { %6356 = vrot.lane.b32.xlu1 %v19249_v44, %s18616_s15 }
0x1567   : > { %6478 = vrot.lane.b32.xlu0 %v19265_v36, %s18616_s15 }
0x156a   : > { %6476 = vrot.lane.b32.xlu1 %v19259_v55, %s18616_s15 }
0x156b   : > { %6482 = vrot.lane.b32.xlu0 %v19272_v8, %s18616_s15 }
0x156e   : > { %6480 = vrot.lane.b32.xlu1 %v19267_v10, %s18616_s15 }
0x156f   : > { %6365 = vrot.lane.b32.xlu0 %v19286_v29, %s18616_s15 }
0x1572   : > { %6484 = vrot.lane.b32.xlu1 %v19274_v17, %s18616_s15 }
0x1573   : > { %6491 = vrot.lane.b32.xlu0 %v19321_v2, %s18616_s15 }
0x1576   : > { %6367 = vrot.lane.b32.xlu1 %v19333_v25, %s18616_s15 }
0x157a   : > { %6493 = vrot.lane.b32.xlu1 %v19351_v28, %s18616_s15 }
0x15d6   : > { %v5929_v44 = vpop.xlane.xlu0 %5928 }
0x15d7   : > { %17991 = vrcp.f32 %v5929_v44 }
0x15da   : > { %v6351_v62 = vpop.permute.xlu0 %6350  ;;  %v5932_v55 = vpop.xlane.xlu1 %5931 }
0x15db   : > { %17993 = vrcp.f32 %v5932_v55  ;;  %v6360_v25 = vrot.slane %v6351_v62, 2  ;;  %v6646_v56 = vrot.slane %v6351_v62, 4 }
0x15de   : > { %v6359_v36 = vpop.permute.xlu0 %6358  ;;  %v6353_v10 = vpop.permute.xlu1 %6352 }
0x15df   : > { %v6361_v17 = vrot.slane %v6353_v10, 2  ;;  %v6647_v6 = vrot.slane %v6353_v10, 4  ;;  %v6364_v7 = vrot.slane %v6359_v36, 2  ;;  %v6650_v46 = vrot.slane %v6359_v36, 4 }
0x15e1   : > { %v17992_v8 = vpop.eup %17991  ;;  %v6369_v57 = vcombine.low %v6360_v25, %v6361_v17  ;;  %v6651_v30 = vcombine.low %v6646_v56, %v6647_v6  ;;  %v6392_v1 = vrot.slane %v6364_v7, %v19058_v5  ;;  %v6674_v44 = vrot.slane %v6650_v46, %v19058_v5 }
0x15e2   : > { %v6479_v29 = vpop.permute.xlu0 %6478  ;;  %v6355_v2 = vpop.permute.xlu1 %6354  ;;  %v5939_v11 = vmul.f32 %v17992_v8, %v17984_v53 }
0x15e3   : > { %v6362_v54 = vrot.slane %v6355_v2, 2  ;;  %v6648_v27 = vrot.slane %v6355_v2, 4  ;;  %v6377_v23 = vrot.slane %v6369_v57, %v19058_v5  ;;  %v6659_v60 = vrot.slane %v6651_v30, %v19058_v5 }
0x15e4   : > { %16608 = vmatprep.mubr.msk.f32.mxu1 %vm1670_vm9, %v5939_v11  ;;  %v6487_v35 = vrot.slane %v6479_v29, 2 }
0x15e5   : > { %v17994_v4 = vpop.eup %17993 }
0x15e6   : > { %v6483_v28 = vpop.permute.xlu0 %6482  ;;  %v6357_v20 = vpop.permute.xlu1 %6356  ;;  %v5940_v63 = vmul.f32 %v17994_v4, %v17988_v41  ;;  %v6760_v41 = vrot.slane %v6479_v29, 4 }
0x15e7   : > { %v6363_v24 = vrot.slane %v6357_v20, 2  ;;  %v6649_v58 = vrot.slane %v6357_v20, 4  ;;  %v6489_v18 = vrot.slane %v6483_v28, 2  ;;  %v6762_v33 = vrot.slane %v6483_v28, 4 }
0x15e8   : > { %16609 = vmatmul.mubr.msk.f32.vlgmr.msra.gmra.mrb[38].mxu1 %vm1670_vm9, %v5940_v63 }
0x15e9   : > { %v6370_v37 = vcombine.low %v6362_v54, %v6363_v24  ;;  %v6652_v26 = vcombine.low %v6648_v27, %v6649_v58 }
0x15ea   : > { %v6366_v32 = vpop.permute.xlu0 %6365  ;;  %v6477_v40 = vpop.permute.xlu1 %6476 }
0x15eb   : > { %v6384_v42 = vrot.slane %v6370_v37, %v19058_v5  ;;  %v6666_v39 = vrot.slane %v6652_v26, %v19058_v5  ;;  %v6486_v61 = vrot.slane %v6477_v40, 2  ;;  %16628 = vmatprep.mubr.msk.f32.mxu1 %vm1445_vm3, %v6366_v32  ;;  %v6759_v53 = vrot.slane %v6477_v40, 4 }
0x15ed   : > { %v6385_v31 = vcombine.low %v6377_v23, %v6384_v42  ;;  %v6495_v21 = vcombine.low %v6486_v61, %v6487_v35  ;;  %v6667_v52 = vcombine.low %v6659_v60, %v6666_v39  ;;  %v6764_v62 = vcombine.low %v6759_v53, %v6760_v41 }
0x15ee   : > { %v6481_v48 = vpop.permute.xlu1 %6480 }
0x15ef   : > { %v6488_v34 = vrot.slane %v6481_v48, 2  ;;  %v6761_v43 = vrot.slane %v6481_v48, 4  ;;  %v17295_v55 = vpack.c.bf16 %v6392_v1, %v6385_v31  ;;  %v6503_v8 = vrot.slane %v6495_v21, %v19058_v5 }
0x15f0   : > { %v17307_v29 = vpack.c.bf16 %v6674_v44, %v6667_v52  ;;  %v6772_v4 = vrot.slane %v6764_v62, %v19058_v5 }
0x15f1   : > { %v6496_v36 = vcombine.low %v6488_v34, %v6489_v18  ;;  %v6765_v10 = vcombine.low %v6761_v43, %v6762_v33  ;;  %17297 = vmatprep.subr.msk.bf16.mxu1 %vm19291_vm4, %v17295_v55 }
0x15f2   : > { %v6485_v17 = vpop.permute.xlu1 %6484  ;;  %17300 = vmatpush3.bf16.xpose.msk.msra.mxu1 %vm19291_vm4, %v17295_v55  ;;  %v6492_v55 = vpop.permute.xlu0 %6491 }
0x15f3   : > { %v6510_v2 = vrot.slane %v6496_v36, %v19058_v5  ;;  %v6779_v11 = vrot.slane %v6765_v10, %v19058_v5  ;;  %v6490_v25 = vrot.slane %v6485_v17, 2  ;;  %v6763_v6 = vrot.slane %v6485_v17, 4  ;;  %17309 = vmatprep.subr.msk.bf16.mxu1 %vm19314_vm7, %v17307_v29 }
0x15f5   : > { %v6518_v56 = vrot.slane %v6490_v25, %v19058_v5  ;;  %v6511_v57 = vcombine.low %v6503_v8, %v6510_v2  ;;  %v6787_v28 = vrot.slane %v6763_v6, %v19058_v5  ;;  %v6780_v20 = vcombine.low %v6772_v4, %v6779_v11 }
0x15f6   : > { %v6368_v54 = vpop.permute.xlu1 %6367 }
0x15f7   : > { %v17301_v63 = vpack.c.bf16 %v6518_v56, %v6511_v57  ;;  %v20078_v27 = vpack.c.bf16 %v6787_v28, %v6780_v20 }
0x15f9   : > { %17303 = vmatprep.subr.msk.bf16.mxu0 %vm19291_vm4, %v17301_v63  ;;  %16629 = vmatmul.mubr.msk.f32.vlgmr.msra.gmra.mrb[40].mxu1 %vm1445_vm3, %v6368_v54 }
0x15fa   : > { %17312 = vmatpush3.bf16.msk.msra.mxu1 %vm19314_vm7, %v17307_v29  ;;  %v6494_v10 = vpop.permute.xlu1 %6493 }
0x15fb   : > { %17315 = vmatprep.subr.msk.bf16.mxu1 %vm19314_vm7, %v20078_v27 }
0x1623   : > { %v16603_v24 = vpop.f32.mrb[36].mxu1 }
0x1624   : > { %v6045_v58 = vpop.f32.mrb[37].mxu1  ;;  %v6194_v35 = vrot.slane %v16603_v24, %v19058_v5 }
0x1625   : > { %v6171_v30 = vcombine.high %v6045_v58, %v6045_v58  ;;  %v6178_v37 = vrot.slane %v6045_v58, %v19058_v5 }
0x1627   : > { %v6185_v26 = vrot.slane %v6171_v30, %v19058_v5  ;;  %v6186_v7 = vcombine.high %v6178_v37, %v6178_v37 }
0x1629   : > { %v6187_v32 = vcombine.high %v6185_v26, %v6185_v26  ;;  %v6219_v40 = vcombine.low %v6178_v37, %v6186_v7 }
0x162b   : > { %v6220_v23 = vcombine.low %v6185_v26, %v6187_v32  ;;  %v6227_v42 = vrot.slane %v6219_v40, %v19058_v5 }
0x162d   : > { %v6234_v39 = vrot.slane %v6220_v23, %v19058_v5 }
0x162f   : > { %v6235_v61 = vcombine.low %v6227_v42, %v6234_v39 }
0x1631   : > { %16616 = vmatmul.mubr.msk.f32.vlgmr.msra.gmra.mrb[20].mxu0 %vm1445_vm3, %v6235_v61 }
0x1632   : > { %17306 = vmatpush3.bf16.xpose.msk.msra.mxu0 %vm19291_vm4, %v17301_v63  ;;  %16618 = vmatprep.mubr.msk.f32.mxu0 %vm18608_vm2, %v21815_v59 }
0x1633   : > { %17319 = vmatprep.subr.bf16.mxu0 %v21863_v0 }
0x16bb   : > { %v16610_v46 = vpop.f32.mrb[38].mxu1 }
0x16bc   : > { %v6158_v60 = vpop.f32.mrb[39].mxu1  ;;  %v6218_v48 = vrot.slane %v16610_v46, %v19058_v5 }
0x16bd   : > { %v6195_v53 = vcombine.high %v6158_v60, %v6158_v60  ;;  %v6202_v31 = vrot.slane %v6158_v60, %v19058_v5 }
0x16bf   : > { %v6209_v1 = vrot.slane %v6195_v53, %v19058_v5  ;;  %v6210_v41 = vcombine.high %v6202_v31, %v6202_v31  ;;  %v6236_v21 = vcombine.low %v6194_v35, %v6202_v31 }
0x16c1   : > { %v6211_v52 = vcombine.high %v6209_v1, %v6209_v1  ;;  %v6237_v18 = vcombine.low %v6210_v41, %v6209_v1  ;;  %v6244_v33 = vrot.slane %v6236_v21, %v19058_v5  ;;  %v1385_v21 = vld [vmem:[#allocation10 + $0x70] sm:$0xff] }
0x16c3   : > { %v6251_v34 = vrot.slane %v6237_v18, %v19058_v5  ;;  %v6253_v43 = vcombine.low %v6211_v52, %v6218_v48  ;;  %v1386_v48 = vld [vmem:[#allocation10 + $0x78] sm:$0xff] }
0x16c4   : > { %v17320_v52 = vpack.c.bf16 %v1386_v48, %v1385_v21 }
0x16c5   : > { %v6252_v44 = vcombine.low %v6244_v33, %v6251_v34  ;;  %v6260_v62 = vrot.slane %v6253_v43, %v19058_v5 }
0x16c7   : > { %16619 = vmatmul.mubr.msk.f32.gmra.mrb[22].mxu0 %vm1445_vm3, %v6252_v44 }
0x16c8   : > { %16621 = vmatprep.mubr.msk.f32.mxu0 %vm18608_vm2, %v21815_v59 }
0x16cb   : > { %16622 = vmatmul.mubr.msk.f32.gmra.mrb[24].mxu0 %vm1445_vm3, %v6260_v62 }
0x16cc   : > { %16635 = vmatprep.mubr.msk.f32.mxu0 %vm1445_vm3, %v6492_v55  ;;  %v16630_v36 = vpop.f32.mrb[40].mxu1 }
0x16cd   : > { %v6467_v8 = vpop.f32.mrb[41].mxu1  ;;  %v6605_v17 = vsel %vm1674_vm8, %v16630_v36, -inf }
0x16ce   : > { %6606 = vmax.xlane.f32.xlu1 %v6605_v17  ;;  %v6602_v29 = vsel %vm1670_vm9, %v6467_v8, -inf }
0x16cf   : > { %16636 = vmatmul.mubr.msk.f32.vlgmr.msra.gmra.mrb[34].mxu0 %vm1445_vm3, %v6494_v10  ;;  %6603 = vmax.xlane.f32.xlu0 %v6602_v29 }
0x16d0   : > { %16656 = vmatprep.mubr.msk.f32.mxu0 %vm18608_vm2, %v21815_v59  ;;  %17321 = vmatpush3.bf16.msra.mxu0 %v17320_v52 }
0x16d1   : > { %17330 = vmatprep.subr.bf16.mxu0 %v21863_v0 }
0x175b   : > { %v6607_v2 = vpop.xlane.xlu1 %6606 }
0x175c   : > { %v6615_v11 = vsub.f32 %v16630_v36, %v6607_v2  ;;  %v6604_v56 = vpop.xlane.xlu0 %6603 }
0x175d   : > { %v6614_v57 = vsub.f32 %v6467_v8, %v6604_v56 }
0x175e   : > { %v6620_v25 = vmul.f32 1.442695, %v6615_v11 }
0x175f   : > { %v6618_v28 = vmul.f32 1.442695, %v6614_v57 }
0x1760   : > { %17995 = vpow2.f32 %v6620_v25 }
0x1761   : > { %17997 = vpow2.f32 %v6618_v28 }
0x176a   : > { %v17996_v6 = vpop.eup %17995 }
0x176b   : > { %v6629_v4 = vsel %vm1674_vm8, %v17996_v6, 0.0  ;;  %v17998_v58 = vpop.eup %17997 }
0x176c   : > { %6630 = vadd.xlane.f32.xlu1 %v6629_v4  ;;  %v6626_v30 = vsel %vm1670_vm9, %v17998_v58, 0.0 }
0x17a2   : > { %v16637_v20 = vpop.f32.mrb[34].mxu0 }
0x17a3   : > { %v6593_v63 = vpop.f32.mrb[35].mxu0  ;;  %v6611_v24 = vsel %vm1674_vm8, %v16637_v20, -inf }
0x17a4   : > { %v6608_v54 = vsel %vm1670_vm9, %v6593_v63, -inf }
0x17a5   : > { %6609 = vmax.xlane.f32.xlu0 %v6608_v54 }
0x17a9   : > { %6612 = vmax.xlane.f32.xlu0 %v6611_v24 }
0x17ad   : > { %6627 = vadd.xlane.f32.xlu0 %v6626_v30 }
0x17f9   : > { %v6631_v40 = vpop.xlane.xlu1 %6630 }
0x1832   : > { %v6610_v37 = vpop.xlane.xlu0 %6609 }
0x1833   : > { %v6616_v26 = vsub.f32 %v6593_v63, %v6610_v37 }
0x1835   : > { %v6622_v7 = vmul.f32 1.442695, %v6616_v26 }
0x1836   : > { %v6613_v32 = vpop.xlane.xlu0 %6612 }
0x1837   : > { %17999 = vpow2.f32 %v6622_v7  ;;  %v6617_v23 = vsub.f32 %v16637_v20, %v6613_v32 }
0x1838   : > { %18001 = vrcp.f32 %v6631_v40 }
0x1839   : > { %v6624_v42 = vmul.f32 1.442695, %v6617_v23 }
0x183a   : > { %v6628_v39 = vpop.xlane.xlu0 %6627 }
0x183b   : > { %18003 = vpow2.f32 %v6624_v42 }
0x183c   : > { %18005 = vrcp.f32 %v6628_v39 }
0x1841   : > { %v18000_v61 = vpop.eup %17999 }
0x1842   : > { %v6632_v46 = vsel %vm1670_vm9, %v18000_v61, 0.0  ;;  %v18002_v60 = vpop.eup %18001 }
0x1843   : > { %6633 = vadd.xlane.f32.xlu0 %v6632_v46  ;;  %v6643_v41 = vmul.f32 %v18002_v60, %v17996_v6 }
0x1845   : > { %v18004_v35 = vpop.eup %18003 }
0x1846   : > { %v18006_v53 = vpop.eup %18005  ;;  %v6635_v31 = vsel %vm1674_vm8, %v18004_v35, 0.0 }
0x1847   : > { %6636 = vadd.xlane.f32.xlu1 %v6635_v31  ;;  %v6642_v1 = vmul.f32 %v18006_v53, %v17998_v58 }
0x1849   : > { %16642 = vmatprep.mubr.msk.f32.mxu1 %vm1670_vm9, %v6642_v1 }
0x184a   : > { %16643 = vmatmul.mubr.msk.f32.vlgmr.msra.gmra.mrb[42].mxu1 %vm1670_vm9, %v6643_v41 }
0x184b   : > { %17318 = vmatpush3.bf16.msk.msra.mxu1 %vm19314_vm7, %v20078_v27 }
0x18d0   : > { %v6634_v18 = vpop.xlane.xlu0 %6633 }
0x18d1   : > { %18007 = vrcp.f32 %v6634_v18 }
0x18d4   : > { %v6637_v33 = vpop.xlane.xlu1 %6636 }
0x18d5   : > { %18009 = vrcp.f32 %v6637_v33 }
0x18db   : > { %v18008_v34 = vpop.eup %18007 }
0x18dc   : > { %v6644_v43 = vmul.f32 %v18008_v34, %v18000_v61 }
0x18de   : > { %16649 = vmatprep.mubr.msk.f32.mxu1 %vm1670_vm9, %v6644_v43 }
0x18df   : > { %v18010_v44 = vpop.eup %18009 }
0x18e0   : > { %v6645_v62 = vmul.f32 %v18010_v44, %v18004_v35 }
0x18e2   : > { %16650 = vmatmul.mubr.msk.f32.vlgmr.msra.gmra.mrb[44].mxu1 %vm1670_vm9, %v6645_v62 }
0x18e3   : > { %7672 = vmatprep.mubr.f32.mxu1 %v21815_v59 }
0x191d   : > { %v16644_v27 = vpop.f32.mrb[42].mxu1 }
0x191e   : > { %v6750_v55 = vpop.f32.mrb[43].mxu1  ;;  %v6899_v28 = vrot.slane %v16644_v27, %v19058_v5 }
0x191f   : > { %v6876_v36 = vcombine.high %v6750_v55, %v6750_v55  ;;  %v6883_v10 = vrot.slane %v6750_v55, %v19058_v5 }
0x1921   : > { %v6890_v8 = vrot.slane %v6876_v36, %v19058_v5  ;;  %v6891_v17 = vcombine.high %v6883_v10, %v6883_v10 }
0x1923   : > { %v6892_v29 = vcombine.high %v6890_v8, %v6890_v8  ;;  %v6924_v2 = vcombine.low %v6883_v10, %v6891_v17  ;;  %v18181_v10 = vld.sshfl [vmem:[%s19029_s4 + $0x8] sm:$0x3 pattern:$0x76325410] }
0x1925   : > { %v6925_v11 = vcombine.low %v6890_v8, %v6892_v29  ;;  %v6932_v25 = vrot.slane %v6924_v2, %v19058_v5 }
0x1927   : > { %v6939_v6 = vrot.slane %v6925_v11, %v19058_v5 }
0x1929   : > { %v6940_v4 = vcombine.low %v6932_v25, %v6939_v6 }
0x192b   : > { %16657 = vmatmul.mubr.msk.f32.vlgmr.msra.gmra.mrb[20].mxu0 %vm1445_vm3, %v6940_v4 }
0x192c   : > { %16659 = vmatprep.mubr.msk.f32.mxu0 %vm18608_vm2, %v21815_v59 }
0x19b5   : > { %v16651_v56 = vpop.f32.mrb[44].mxu1 }
0x19b6   : > { %v6863_v57 = vpop.f32.mrb[45].mxu1  ;;  %v6923_v30 = vrot.slane %v16651_v56, %v19058_v5 }
0x19b7   : > { %v6900_v20 = vcombine.high %v6863_v57, %v6863_v57  ;;  %v6907_v63 = vrot.slane %v6863_v57, %v19058_v5 }
0x19b9   : > { %v6914_v54 = vrot.slane %v6900_v20, %v19058_v5  ;;  %v6915_v24 = vcombine.high %v6907_v63, %v6907_v63  ;;  %v6941_v58 = vcombine.low %v6899_v28, %v6907_v63 }
0x19bb   : > { %v6916_v37 = vcombine.high %v6914_v54, %v6914_v54  ;;  %v6942_v26 = vcombine.low %v6915_v24, %v6914_v54  ;;  %v6949_v7 = vrot.slane %v6941_v58, %v19058_v5 }
0x19bd   : > { %v6956_v32 = vrot.slane %v6942_v26, %v19058_v5  ;;  %v6958_v40 = vcombine.low %v6916_v37, %v6923_v30 }
0x19bf   : > { %v6957_v23 = vcombine.low %v6949_v7, %v6956_v32  ;;  %v6965_v42 = vrot.slane %v6958_v40, %v19058_v5 }
0x19c1   : > { %16660 = vmatmul.mubr.msk.f32.gmra.mrb[22].mxu0 %vm1445_vm3, %v6957_v23 }
0x19c2   : > { %16662 = vmatprep.mubr.msk.f32.mxu0 %vm18608_vm2, %v21815_v59 }
0x19c5   : > { %16663 = vmatmul.mubr.msk.f32.gmra.mrb[24].mxu0 %vm1445_vm3, %v6965_v42 }
0x19c6   : > { %16697 = vmatprep.mubr.msk.f32.mxu0 %vm18608_vm2, %v21815_v59 }
0x19fe   : > { %v7038_v39 = vpop.f32.mrb[20].mxu0 }
0x19ff   : > { %v7058_v61 = vcombine.high %v7038_v39, %v7038_v39  ;;  %v7065_v46 = vrot.slane %v7038_v39, %v19058_v5  ;;  %v16658_v60 = vpop.f32.mrb[21].mxu0 }
0x1a01   : > { %v7072_v35 = vrot.slane %v7058_v61, %v19058_v5  ;;  %v7073_v53 = vcombine.high %v7065_v46, %v7065_v46  ;;  %v20150_v1 = vadd.f32 %v7065_v46, %v19063_v9 }
0x1a03   : > { %v7074_v31 = vcombine.high %v7072_v35, %v7072_v35  ;;  %v20153_v41 = vadd.f32 %v7073_v53, %v19076_v14  ;;  %v20156_v21 = vadd.f32 %v7072_v35, %v19072_v13 }
0x1a05   : > { %v20159_v48 = vadd.f32 %v7074_v31, %v19090_v19  ;;  %v7132_v52 = vcombine.low %v20150_v1, %v20153_v41 }
0x1a07   : > { %v7133_v18 = vcombine.low %v20156_v21, %v20159_v48  ;;  %v7140_v33 = vrot.slane %v7132_v52, %v19058_v5 }
0x1a09   : > { %v7147_v9 = vrot.slane %v7133_v18, %v19058_v5 }
0x1a0b   : > { %v7148_v34 = vcombine.low %v7140_v33, %v7147_v9 }
0x1a0d   : > { %v7177_v14 = vsel %vm666_vm1, %v7148_v34, 0.0  ;;  %v7531_v34 = vld [vmem:[#allocation14 + $0x8] sm:$0xff] }
0x1a0e   : > { %7178 = vadd.xlane.f32.xlu0 %v7177_v14  ;;  %v7533_v14 = vld [vmem:[#allocation14 + $0x18] sm:$0xff] }
0x1a94   : > { %v7043_v13 = vpop.f32.mrb[22].mxu0 }
0x1a95   : > { %v7075_v43 = vcombine.high %v7043_v13, %v7043_v13  ;;  %v7082_v19 = vrot.slane %v7043_v13, %v19058_v5  ;;  %v16661_v44 = vpop.f32.mrb[23].mxu0  ;;  %v7530_v13 = vld [vmem:[#allocation14] sm:$0xff] }
0x1a96   : > { %v7535_v44 = vld [vmem:[#allocation14 + $0x28] sm:$0xff] }
0x1a97   : > { %v7089_v62 = vrot.slane %v7075_v43, %v19058_v5  ;;  %v7090_v27 = vcombine.high %v7082_v19, %v7082_v19  ;;  %v20171_v8 = vadd.f32 %v18181_v10, %v7082_v19  ;;  %v17322_v43 = vpack.c.bf16 %v7533_v14, %v7531_v34  ;;  %v7532_v19 = vld [vmem:[#allocation14 + $0x10] sm:$0xff] }
0x1a98   : > { %v7048_v55 = vpop.f32.mrb[24].mxu0  ;;  %v7536_v10 = vld [vmem:[#allocation14 + $0x30] sm:$0xff] }
0x1a99   : > { %v7091_v36 = vcombine.high %v7089_v62, %v7089_v62  ;;  %v20174_v17 = vadd.f32 %v7090_v27, %v19069_v12  ;;  %v7098_v29 = vrot.slane %v7048_v55, %v19058_v5  ;;  %v16664_v2 = vpop.f32.mrb[25].mxu0  ;;  %v20178_v11 = vadd.f32 %v7089_v62, %v19083_v16  ;;  %v18182_v12 = vld.sshfl [vmem:[%s19029_s4 + $0x18] sm:$0x3 pattern:$0x76325410]  ;;  %v7537_v62 = vld [vmem:[#allocation14 + $0x38] sm:$0xff]  ;;  %17323 = vmatprep.subr.bf16.mxu1 %v17322_v43  ;;  %s21733_s4 = scalar_lea.hbm %s21870_s25, %s15931_s14 }
0x1a9a   : > { %v17324_v27 = vpack.c.bf16 %v7532_v19, %v7530_v13  ;;  %v17326_v55 = vpack.c.bf16 %v7537_v62, %v7535_v44  ;;  %v15766_v13 = vld [vmem:[#allocation11] ss:$0 sm:$0xff]  ;;  %v15767_v44 = vld [vmem:[#allocation13] ss:$0 sm:$0xff] }
0x1a9b   : > { %v20181_v25 = vadd.f32 %v7091_v36, %v19079_v15  ;;  %v7099_v6 = vcombine.high %v7098_v29, %v7098_v29  ;;  %v7179_v4 = vpop.xlane.xlu0 %7178  ;;  %v7149_v56 = vcombine.low %v20171_v8, %v20174_v17  ;;  %v20186_v28 = vadd.f32 %v7098_v29, %v19098_v22  ;;  %v7534_v36 = vld [vmem:[#allocation14 + $0x20] sm:$0xff] }
0x1a9c   : > { %v7186_v57 = vmul.f32 0.03125, %v7179_v4  ;;  %17325 = vmatpush1.bf16.msra.mxu1 %v17324_v27  ;;  %v17328_v29 = vpack.c.bf16 %v7536_v10, %v7534_v36  ;;  %v7463_v27 = vcombine.high %v15766_v13, %v15766_v13  ;;  %v7499_v36 = vcombine.high %v15767_v44, %v15767_v44 }
0x1a9d   : > { %v20189_v20 = vadd.f32 %v18182_v12, %v7099_v6  ;;  %v7150_v63 = vcombine.low %v20178_v11, %v20181_v25  ;;  %v7157_v58 = vrot.slane %v7149_v56, %v19058_v5  ;;  %17327 = vmatprep.subr.bf16.mxu1 %v17326_v55  ;;  %v20269_v10 = vrot.slane %v15766_v13, %v19058_v5  ;;  %v7775_v13 = vld [vmem:[#allocation17] sm:$0xff] }
0x1a9e   : > { %v7198_v16 = vrot.slane %v7186_v57, %v19112_v47  ;;  %v7205_v15 = vrot.slane %v7186_v57, %v19115_v49  ;;  %v7212_v54 = vrot.slane %v7186_v57, %v19118_v50  ;;  %v7219_v24 = vrot.slane %v7186_v57, %v19121_v51 }
0x1a9f   : > { %v7164_v30 = vrot.slane %v7150_v63, %v19058_v5  ;;  %v7166_v22 = vcombine.low %v20186_v28, %v20189_v20 }
0x1aa0   : > { %v20202_v37 = vsub.f32 %v20150_v1, %v7198_v16  ;;  %v20205_v26 = vsub.f32 %v20153_v41, %v7205_v15  ;;  %v20208_v7 = vsub.f32 %v20156_v21, %v7212_v54  ;;  %v20211_v32 = vsub.f32 %v20159_v48, %v7219_v24  ;;  %17329 = vmatpush1.bf16.msra.mxu1 %v17328_v29 }
0x1aa1   : > { %v7165_v40 = vcombine.low %v7157_v58, %v7164_v30  ;;  %v7173_v23 = vrot.slane %v7166_v22, %v19058_v5  ;;  %v20272_v29 = vrot.slane %v7463_v27, %v19058_v5 }
0x1aa2   : > { %v7282_v42 = vmul.f32 %v20202_v37, %v20202_v37  ;;  %v7283_v39 = vmul.f32 %v20205_v26, %v20205_v26  ;;  %v7284_v61 = vmul.f32 %v20208_v7, %v20208_v7  ;;  %v7285_v46 = vmul.f32 %v20211_v32, %v20211_v32 }
0x1aa3   : > { %v7180_v60 = vsel %vm666_vm1, %v7165_v40, 0.0  ;;  %v7183_v35 = vsel %vm673_vm0, %v7173_v23, 0.0 }
0x1aa4   : > { %7181 = vadd.xlane.f32.xlu1 %v7180_v60  ;;  %7184 = vadd.xlane.f32.xlu0 %v7183_v35  ;;  %v7302_v53 = vcombine.low %v7282_v42, %v7283_v39  ;;  %v7303_v31 = vcombine.low %v7284_v61, %v7285_v46 }
0x1aa6   : > { %v7310_v52 = vrot.slane %v7302_v53, %v19058_v5  ;;  %v7317_v18 = vrot.slane %v7303_v31, %v19058_v5 }
0x1aa8   : > { %v7318_v33 = vcombine.low %v7310_v52, %v7317_v18 }
0x1aaa   : > { %v7347_v9 = vsel %vm666_vm1, %v7318_v33, 0.0 }
0x1aab   : > { %7348 = vadd.xlane.f32.xlu1 %v7347_v9 }
0x1b31   : > { %v7182_v2 = vpop.xlane.xlu1 %7181  ;;  %v7185_v6 = vpop.xlane.xlu0 %7184 }
0x1b32   : > { %v7187_v4 = vmul.f32 0.03125, %v7182_v2  ;;  %v7188_v56 = vmul.f32 0.03125, %v7185_v6  ;;  %v20275_v2 = vrot.slane %v15767_v44, %v19058_v5  ;;  %v20278_v6 = vrot.slane %v7499_v36, %v19058_v5  ;;  %v7777_v44 = vld [vmem:[#allocation17 + $0x10] sm:$0xff]  ;;  %v7780_v36 = vld [vmem:[#allocation17 + $0x28] sm:$0xff] }
0x1b34   : > { %v7226_v57 = vrot.slane %v7187_v4, %v19112_v47  ;;  %v7233_v12 = vrot.slane %v7187_v4, %v19115_v49  ;;  %v7240_v63 = vrot.slane %v7187_v4, %v19118_v50  ;;  %v7247_v16 = vrot.slane %v7187_v4, %v19121_v51 }
0x1b35   : > { %v7254_v15 = vrot.slane %v7188_v56, %v19112_v47  ;;  %v7261_v54 = vrot.slane %v7188_v56, %v19115_v49  ;;  %v20282_v56 = vcombine.high %v20269_v10, %v20269_v10 }
0x1b36   : > { %v20234_v24 = vsub.f32 %v20171_v8, %v7226_v57  ;;  %v20237_v58 = vsub.f32 %v20174_v17, %v7233_v12  ;;  %v20240_v30 = vsub.f32 %v20178_v11, %v7240_v63  ;;  %v20243_v22 = vsub.f32 %v20181_v25, %v7247_v16 }
0x1b37   : > { %v20246_v40 = vsub.f32 %v20186_v28, %v7254_v15  ;;  %v20249_v23 = vsub.f32 %v20189_v20, %v7261_v54  ;;  %v20286_v57 = vcombine.high %v20272_v29, %v20272_v29  ;;  %v20294_v54 = vcombine.high %v20275_v2, %v20275_v2 }
0x1b38   : > { %v7349_v42 = vpop.xlane.xlu1 %7348  ;;  %v7286_v39 = vmul.f32 %v20234_v24, %v20234_v24  ;;  %v7287_v61 = vmul.f32 %v20237_v58, %v20237_v58  ;;  %v7288_v46 = vmul.f32 %v20240_v30, %v20240_v30  ;;  %v7289_v60 = vmul.f32 %v20243_v22, %v20243_v22 }
0x1b39   : > { %v7356_v35 = vmul.f32 0.03125, %v7349_v42  ;;  %v7290_v53 = vmul.f32 %v20246_v40, %v20246_v40  ;;  %v7291_v31 = vmul.f32 %v20249_v23, %v20249_v23  ;;  %v20298_v42 = vcombine.high %v20278_v6, %v20278_v6 }
0x1b3a   : > { %v7319_v52 = vcombine.low %v7286_v39, %v7287_v61  ;;  %v7320_v18 = vcombine.low %v7288_v46, %v7289_v60 }
0x1b3b   : > { %v7359_v33 = vadd.f32 1e-05, %v7356_v35  ;;  %v7336_v9 = vcombine.low %v7290_v53, %v7291_v31 }
0x1b3c   : > { %v7327_v34 = vrot.slane %v7319_v52, %v19058_v5  ;;  %v7334_v14 = vrot.slane %v7320_v18, %v19058_v5 }
0x1b3d   : > { %18011 = vrsqrt.f32 %v7359_v33  ;;  %v7343_v43 = vrot.slane %v7336_v9, %v19058_v5 }
0x1b3e   : > { %v7335_v19 = vcombine.low %v7327_v34, %v7334_v14 }
0x1b3f   : > { %v7353_v62 = vsel %vm673_vm0, %v7343_v43, 0.0  ;;  %v7776_v43 = vld [vmem:[#allocation17 + $0x8] sm:$0xff] }
0x1b40   : > { %7354 = vadd.xlane.f32.xlu1 %v7353_v62  ;;  %v7350_v55 = vsel %vm666_vm1, %v7335_v19, 0.0  ;;  %v17331_v19 = vpack.c.bf16 %v7776_v43, %v7775_v13  ;;  %v7778_v62 = vld [vmem:[#allocation17 + $0x18] sm:$0xff] }
0x1b41   : > { %7351 = vadd.xlane.f32.xlu0 %v7350_v55  ;;  %v17334_v27 = vpack.c.bf16 %v7778_v62, %v7777_v44  ;;  %v7779_v55 = vld [vmem:[#allocation17 + $0x20] sm:$0xff] }
0x1b42   : > { %17332 = vmatpush3.bf16.msra.mxu0 %v17331_v19 }
0x1b43   : > { %17333 = vmatprep.subr.bf16.mxu0 %v21863_v0 }
0x1b46   : > { %17335 = vmatpush3.bf16.msra.mxu0 %v17334_v27 }
0x1b47   : > { %v18012_v4 = vpop.eup %18011  ;;  %17336 = vmatprep.subr.bf16.mxu0 %v21863_v0 }
0x1b48   : > { %v7374_v12 = vrot.slane %v18012_v4, %v19112_v47  ;;  %v7381_v63 = vrot.slane %v18012_v4, %v19115_v49  ;;  %v7388_v16 = vrot.slane %v18012_v4, %v19118_v50  ;;  %v7395_v15 = vrot.slane %v18012_v4, %v19121_v51 }
0x1b49   : > { %v17337_v4 = vpack.c.bf16 %v7780_v36, %v7779_v55 }
0x1b4a   : > { %v7448_v39 = vmul.f32 %v7374_v12, %v20202_v37  ;;  %v7449_v61 = vmul.f32 %v7381_v63, %v20205_v26  ;;  %v7450_v46 = vmul.f32 %v7388_v16, %v20208_v7  ;;  %v7451_v60 = vmul.f32 %v7395_v15, %v20211_v32  ;;  %v7781_v12 = vld [vmem:[#allocation17 + $0x30] sm:$0xff]  ;;  %v7782_v63 = vld [vmem:[#allocation17 + $0x38] sm:$0xff] }
0x1b4b   : > { %17338 = vmatpush3.bf16.msra.mxu0 %v17337_v4  ;;  %v17340_v16 = vpack.c.bf16 %v7782_v63, %v7781_v12 }
0x1b4c   : > { %v7484_v35 = vmul.f32 %v20269_v10, %v7448_v39  ;;  %v7485_v53 = vmul.f32 %v20282_v56, %v7449_v61  ;;  %v7486_v31 = vmul.f32 %v20272_v29, %v7450_v46  ;;  %v7487_v52 = vmul.f32 %v20286_v57, %v7451_v60  ;;  %17339 = vmatprep.subr.bf16.mxu0 %v21863_v0  ;;  %v7783_v46 = vld [vmem:[#allocation17 + $0x40] sm:$0xff]  ;;  %v7784_v60 = vld [vmem:[#allocation17 + $0x48] sm:$0xff] }
0x1b4e   : > { %v7520_v18 = vadd.f32 %v20275_v2, %v7484_v35  ;;  %v7521_v33 = vadd.f32 %v20294_v54, %v7485_v53  ;;  %v7522_v37 = vadd.f32 %v20278_v6, %v7486_v31  ;;  %v7523_v26 = vadd.f32 %v20298_v42, %v7487_v52 }
0x1b4f   : > { %17341 = vmatpush3.bf16.msra.mxu0 %v17340_v16  ;;  %v17343_v53 = vpack.c.bf16 %v7784_v60, %v7783_v46 }
0x1b50   : > { %v7560_v9 = vcombine.low %v7520_v18, %v7521_v33  ;;  %v7561_v7 = vcombine.low %v7522_v37, %v7523_v26  ;;  %17342 = vmatprep.subr.bf16.mxu0 %v21863_v0  ;;  %v7785_v18 = vld [vmem:[#allocation17 + $0x50] sm:$0xff]  ;;  %v7786_v33 = vld [vmem:[#allocation17 + $0x58] sm:$0xff]  ;;  %v7787_v26 = vld [vmem:[#allocation17 + $0x60] sm:$0xff] }
0x1b51   : > { %v17346_v37 = vpack.c.bf16 %v7786_v33, %v7785_v18 }
0x1b52   : > { %v7568_v32 = vrot.slane %v7560_v9, %v19058_v5  ;;  %v7575_v34 = vrot.slane %v7561_v7, %v19058_v5  ;;  %v7788_v9 = vld [vmem:[#allocation17 + $0x68] sm:$0xff] }
0x1b53   : > { %17344 = vmatpush3.bf16.msra.mxu0 %v17343_v53  ;;  %v17349_v7 = vpack.c.bf16 %v7788_v9, %v7787_v26 }
0x1b54   : > { %v7576_v14 = vcombine.low %v7568_v32, %v7575_v34  ;;  %17345 = vmatprep.subr.bf16.mxu0 %v21863_v0  ;;  %v7789_v32 = vld [vmem:[#allocation17 + $0x70] sm:$0xff]  ;;  %v7790_v34 = vld [vmem:[#allocation17 + $0x78] sm:$0xff] }
0x1b56   : > { %15768 = vmatmul.mubr.msk.f32.vlgmr.msra.gmra.mrb[46].mxu1 %vm666_vm1, %v7576_v14  ;;  %v17352_v14 = vpack.c.bf16 %v7790_v34, %v7789_v32 }
0x1b57   : > { %7678 = vmatprep.mubr.f32.mxu1 %v21815_v59  ;;  %17347 = vmatpush3.bf16.msra.mxu0 %v17346_v37 }
0x1b58   : > { %17348 = vmatprep.subr.bf16.mxu0 %v21863_v0 }
0x1b5b   : > { %17350 = vmatpush3.bf16.msra.mxu0 %v17349_v7 }
0x1b5c   : > { %17351 = vmatprep.subr.bf16.mxu0 %v21863_v0 }
0x1b5f   : > { %17353 = vmatpush3.bf16.msra.mxu0 %v17352_v14 }
0x1bcd   : > { %v7355_v15 = vpop.xlane.xlu1 %7354 }
0x1bce   : > { %v7358_v39 = vmul.f32 0.03125, %v7355_v15  ;;  %v7352_v61 = vpop.xlane.xlu0 %7351 }
0x1bcf   : > { %v7357_v35 = vmul.f32 0.03125, %v7352_v61 }
0x1bd0   : > { %v7361_v31 = vadd.f32 1e-05, %v7358_v39 }
0x1bd1   : > { %v7360_v52 = vadd.f32 1e-05, %v7357_v35 }
0x1bd2   : > { %18013 = vrsqrt.f32 %v7361_v31 }
0x1bd3   : > { %18015 = vrsqrt.f32 %v7360_v52 }
0x1bdc   : > { %v18014_v13 = vpop.eup %18013 }
0x1bdd   : > { %v18016_v43 = vpop.eup %18015  ;;  %v7430_v19 = vrot.slane %v18014_v13, %v19112_v47  ;;  %v7437_v44 = vrot.slane %v18014_v13, %v19115_v49 }
0x1bde   : > { %v7402_v62 = vrot.slane %v18016_v43, %v19112_v47  ;;  %v7409_v27 = vrot.slane %v18016_v43, %v19115_v49  ;;  %v7416_v55 = vrot.slane %v18016_v43, %v19118_v50  ;;  %v7423_v36 = vrot.slane %v18016_v43, %v19121_v51 }
0x1bdf   : > { %v7456_v4 = vmul.f32 %v7430_v19, %v20246_v40  ;;  %v7457_v12 = vmul.f32 %v7437_v44, %v20249_v23 }
0x1be0   : > { %v7452_v63 = vmul.f32 %v7402_v62, %v20234_v24  ;;  %v7453_v16 = vmul.f32 %v7409_v27, %v20237_v58  ;;  %v7454_v15 = vmul.f32 %v7416_v55, %v20240_v30  ;;  %v7455_v39 = vmul.f32 %v7423_v36, %v20243_v22 }
0x1be1   : > { %v7492_v61 = vmul.f32 %v20269_v10, %v7456_v4  ;;  %v7493_v46 = vmul.f32 %v20282_v56, %v7457_v12 }
0x1be2   : > { %v7488_v60 = vmul.f32 %v20269_v10, %v7452_v63  ;;  %v7489_v35 = vmul.f32 %v20282_v56, %v7453_v16  ;;  %v7490_v40 = vmul.f32 %v20272_v29, %v7454_v15  ;;  %v7491_v23 = vmul.f32 %v20286_v57, %v7455_v39 }
0x1be3   : > { %v7528_v52 = vadd.f32 %v20275_v2, %v7492_v61  ;;  %v7529_v10 = vadd.f32 %v20294_v54, %v7493_v46  ;;  %v21811_v39 = vsub.s32 0, %v19055_v3 }
0x1be4   : > { %v7524_v24 = vadd.f32 %v20275_v2, %v7488_v60  ;;  %v7525_v58 = vadd.f32 %v20294_v54, %v7489_v35  ;;  %v7526_v30 = vadd.f32 %v20278_v6, %v7490_v40  ;;  %v7527_v22 = vadd.f32 %v20298_v42, %v7491_v23  ;;  %v7538_v42 = vld [vmem:[#allocation16] sm:$0x3] }
0x1be5   : > { %v7594_v57 = vcombine.low %v7528_v52, %v7529_v10  ;;  %v21814_v2 = vsub.s32 1, %v19055_v3  ;;  %v21812_v60 = vmov -1.0   ;;  %v20361_v40 = vrot.slane %v7538_v42, %v21811_v39 }
0x1be6   : > { %v7577_v53 = vcombine.low %v7524_v24, %v7525_v58  ;;  %v7578_v31 = vcombine.low %v7526_v30, %v7527_v22 }
0x1be7   : > { %v7601_v6 = vrot.slane %v7594_v57, %v19058_v5  ;;  %v7547_v54 = vrot.slane %v7538_v42, %v21814_v2 }
0x1be8   : > { %v7585_v56 = vrot.slane %v7577_v53, %v19058_v5  ;;  %v7592_v29 = vrot.slane %v7578_v31, %v19058_v5 }
0x1bea   : > { %v7593_v18 = vcombine.low %v7585_v56, %v7592_v29 }
0x1bec   : > { %15769 = vmatmul.mubr.msk.f32.gmra.mrb[48].mxu1 %vm666_vm1, %v7593_v18 }
0x1bed   : > { %7684 = vmatprep.mubr.f32.mxu1 %v21815_v59 }
0x1bf0   : > { %15770 = vmatmul.mubr.msk.f32.gmra.mrb[50].mxu1 %vm666_vm1, %v7601_v6 }
0x1bf1   : > { %8520 = vmatprep.mubr.f32.mxu1 %v21815_v59 }
0x1c29   : > { %v7674_v33 = vpop.f32.mrb[46].mxu1 }
0x1c2a   : > { %v7676_v37 = vpop.f32.mrb[47].mxu1  ;;  %v7675_v30 = vadd.f32 %v7674_v33, %v20361_v40 }
0x1c2b   : > { %v7677_v26 = vadd.f32 %v7676_v37, %v7547_v54 }
0x1c2d   : > { %v7694_v9 = vmul.f32 0.70710677, %v7677_v26  ;;  %v7691_v24 = vmul.f32 0.5, %v7677_v26 }
0x1c2f   : > { %v7703_v7 = vand.u32 2147483647, %v7694_v9  ;;  %vm7697_vm10 = vcmp.ge.f32.partialorder %v7694_v9, 0.0 }
0x1c30   : > { %v7700_v35 = vsel %vm7697_vm10, 1.0, %v21812_v60 }
0x1c31   : > { %v7706_v32 = vmul.f32 0.3275911, %v7703_v7  ;;  %v7745_v14 = vsub.f32 0.0, %v7703_v7 }
0x1c33   : > { %v7709_v34 = vadd.f32 1.0, %v7706_v32  ;;  %v7748_v43 = vmul.f32 %v7745_v14, %v7703_v7 }
0x1c35   : > { %18017 = vrcp.f32 %v7709_v34  ;;  %v7751_v62 = vmul.f32 1.442695, %v7748_v43 }
0x1c37   : > { %18019 = vpow2.f32 %v7751_v62 }
0x1c3f   : > { %v18018_v13 = vpop.eup %18017 }
0x1c40   : > { %v7718_v19 = vmul.f32 1.0614054, %v18018_v13 }
0x1c41   : > { %v18020_v15 = vpop.eup %18019 }
0x1c42   : > { %v7721_v44 = vadd.f32 -1.4531521, %v7718_v19 }
0x1c44   : > { %v7724_v27 = vmul.f32 %v18018_v13, %v7721_v44 }
0x1c46   : > { %v7727_v55 = vadd.f32 1.4214138, %v7724_v27 }
0x1c48   : > { %v7730_v36 = vmul.f32 %v18018_v13, %v7727_v55 }
0x1c4a   : > { %v7733_v4 = vadd.f32 -0.28449672, %v7730_v36 }
0x1c4c   : > { %v7736_v12 = vmul.f32 %v18018_v13, %v7733_v4 }
0x1c4e   : > { %v7739_v63 = vadd.f32 0.2548296, %v7736_v12 }
0x1c50   : > { %v7742_v16 = vmul.f32 %v18018_v13, %v7739_v63 }
0x1c52   : > { %v7757_v61 = vmul.f32 %v18020_v15, %v7742_v16 }
0x1c54   : > { %v7760_v46 = vsub.f32 1.0, %v7757_v61 }
0x1c56   : > { %v7763_v23 = vmul.f32 %v7760_v46, %v7700_v35 }
0x1c58   : > { %v7766_v58 = vadd.f32 1.0, %v7763_v23 }
0x1c5a   : > { %v7769_v22 = vmul.f32 %v7766_v58, %v7691_v24 }
0x1c5c   : > { %v7772_v53 = vmul.f32 %v7769_v22, %v7675_v30 }
0x1c5e   : > { %16698 = vmatmul.mubr.f32.vlgmr.msra.gmra.mrb[36].mxu0 %v7772_v53 }
0x1c5f   : > { %16700 = vmatprep.mubr.msk.f32.mxu0 %vm18608_vm2, %v21815_v59 }
0x1cbf   : > { %v7680_v31 = vpop.f32.mrb[48].mxu1 }
0x1cc0   : > { %v7682_v52 = vpop.f32.mrb[49].mxu1 }
0x1cc1   : > { %v7683_v10 = vadd.f32 %v7682_v52, %v7547_v54 }
0x1cc3   : > { %v7695_v56 = vmul.f32 0.70710677, %v7683_v10  ;;  %v7686_v29 = vpop.f32.mrb[50].mxu1 }
0x1cc4   : > { %v7688_v18 = vpop.f32.mrb[51].mxu1 }
0x1cc5   : > { %v7704_v57 = vand.u32 2147483647, %v7695_v56  ;;  %v7689_v6 = vadd.f32 %v7688_v18, %v7547_v54  ;;  %vm7698_vm11 = vcmp.ge.f32.partialorder %v7695_v56, 0.0 }
0x1cc7   : > { %v7707_v42 = vmul.f32 0.3275911, %v7704_v57  ;;  %v7696_v37 = vmul.f32 0.70710677, %v7689_v6  ;;  %v7746_v32 = vsub.f32 0.0, %v7704_v57  ;;  %v7693_v56 = vmul.f32 0.5, %v7689_v6 }
0x1cc9   : > { %v7710_v26 = vadd.f32 1.0, %v7707_v42  ;;  %v7705_v9 = vand.u32 2147483647, %v7696_v37  ;;  %v7749_v14 = vmul.f32 %v7746_v32, %v7704_v57  ;;  %vm7699_vm12 = vcmp.ge.f32.partialorder %v7696_v37, 0.0 }
0x1ccb   : > { %18021 = vrcp.f32 %v7710_v26  ;;  %v7708_v33 = vmul.f32 0.3275911, %v7705_v9  ;;  %v7747_v13 = vsub.f32 0.0, %v7705_v9  ;;  %v7753_v62 = vmul.f32 1.442695, %v7749_v14 }
0x1ccc   : > { %v7701_v26 = vsel %vm7698_vm11, 1.0, %v21812_v60 }
0x1ccd   : > { %v7711_v7 = vadd.f32 1.0, %v7708_v33  ;;  %v7750_v27 = vmul.f32 %v7747_v13, %v7705_v9  ;;  %v7702_v13 = vsel %vm7699_vm12, 1.0, %v21812_v60 }
0x1ccf   : > { %18023 = vrcp.f32 %v7711_v7  ;;  %v7755_v12 = vmul.f32 1.442695, %v7750_v27  ;;  %v7692_v7 = vmul.f32 0.5, %v7683_v10  ;;  %v15771_v10 = vld [vmem:[#allocation19] ss:$0 sm:$0xff] }
0x1cd0   : > { %18025 = vpow2.f32 %v7753_v62 }
0x1cd1   : > { %18027 = vpow2.f32 %v7755_v12 }
0x1cd5   : > { %v18022_v34 = vpop.eup %18021 }
0x1cd6   : > { %v7719_v43 = vmul.f32 1.0614054, %v18022_v34 }
0x1cd8   : > { %v7722_v19 = vadd.f32 -1.4531521, %v7719_v43 }
0x1cd9   : > { %v18024_v44 = vpop.eup %18023 }
0x1cda   : > { %v7725_v55 = vmul.f32 %v18022_v34, %v7722_v19  ;;  %v7720_v36 = vmul.f32 1.0614054, %v18024_v44  ;;  %v18026_v22 = vpop.eup %18025 }
0x1cdb   : > { %v18028_v42 = vpop.eup %18027 }
0x1cdc   : > { %v7728_v54 = vadd.f32 1.4214138, %v7725_v55  ;;  %v7723_v4 = vadd.f32 -1.4531521, %v7720_v36  ;;  %v7942_v36 = vcombine.high %v15771_v10, %v15771_v10 }
0x1cde   : > { %v7731_v63 = vmul.f32 %v18022_v34, %v7728_v54  ;;  %v7726_v16 = vmul.f32 %v18024_v44, %v7723_v4  ;;  %v7949_v54 = vrot.slane %v15771_v10, %v19058_v5  ;;  %v7956_v6 = vrot.slane %v7942_v36, %v19058_v5 }
0x1ce0   : > { %v7734_v15 = vadd.f32 -0.28449672, %v7731_v63  ;;  %v7729_v61 = vadd.f32 1.4214138, %v7726_v16 }
0x1ce2   : > { %v7737_v46 = vmul.f32 %v18022_v34, %v7734_v15  ;;  %v7732_v35 = vmul.f32 %v18024_v44, %v7729_v61  ;;  %v7957_v15 = vcombine.high %v7949_v54, %v7949_v54 }
0x1ce4   : > { %v7740_v23 = vadd.f32 0.2548296, %v7737_v46  ;;  %v7735_v24 = vadd.f32 -0.28449672, %v7732_v35 }
0x1ce6   : > { %v7743_v58 = vmul.f32 %v18022_v34, %v7740_v23  ;;  %v7738_v30 = vmul.f32 %v18024_v44, %v7735_v24  ;;  %v7681_v34 = vadd.f32 %v7680_v31, %v20361_v40  ;;  %v7958_v23 = vcombine.high %v7956_v6, %v7956_v6 }
0x1ce8   : > { %v7758_v53 = vmul.f32 %v18026_v22, %v7743_v58  ;;  %v7741_v52 = vadd.f32 0.2548296, %v7738_v30 }
0x1cea   : > { %v7761_v18 = vsub.f32 1.0, %v7758_v53  ;;  %v7744_v57 = vmul.f32 %v18024_v44, %v7741_v52  ;;  %v7687_v44 = vadd.f32 %v7686_v29, %v20361_v40 }
0x1cec   : > { %v7764_v9 = vmul.f32 %v7761_v18, %v7701_v26  ;;  %v7759_v33 = vmul.f32 %v18028_v42, %v7744_v57 }
0x1cee   : > { %v7767_v32 = vadd.f32 1.0, %v7764_v9  ;;  %v7762_v14 = vsub.f32 1.0, %v7759_v33 }
0x1cf0   : > { %v7770_v43 = vmul.f32 %v7767_v32, %v7692_v7  ;;  %v7765_v19 = vmul.f32 %v7762_v14, %v7702_v13 }
0x1cf2   : > { %v7768_v62 = vadd.f32 1.0, %v7765_v19  ;;  %v7773_v27 = vmul.f32 %v7770_v43, %v7681_v34 }
0x1cf4   : > { %v7771_v55 = vmul.f32 %v7768_v62, %v7693_v56  ;;  %16701 = vmatmul.mubr.f32.gmra.mrb[38].mxu0 %v7773_v27 }
0x1cf5   : > { %16703 = vmatprep.mubr.msk.f32.mxu0 %vm18608_vm2, %v21815_v59 }
0x1cf6   : > { %v7774_v37 = vmul.f32 %v7771_v55, %v7687_v44 }
0x1cf8   : > { %16704 = vmatmul.mubr.f32.gmra.mrb[40].mxu0 %v7774_v37 }
0x1d31   : > { %v7857_v4 = vpop.f32.mrb[36].mxu0 }
0x1d32   : > { %v7874_v31 = vcombine.high %v7857_v4, %v7857_v4  ;;  %v7881_v12 = vrot.slane %v7857_v4, %v19058_v5  ;;  %v16699_v63 = vpop.f32.mrb[37].mxu0 }
0x1d34   : > { %v7888_v40 = vrot.slane %v7874_v31, %v19058_v5  ;;  %v7889_v29 = vcombine.high %v7881_v12, %v7881_v12  ;;  %v7926_v16 = vadd.f32 %v7881_v12, %v20150_v1 }
0x1d36   : > { %v7890_v61 = vcombine.high %v7888_v40, %v7888_v40  ;;  %v7927_v46 = vadd.f32 %v7889_v29, %v20153_v41  ;;  %v7928_v35 = vadd.f32 %v7888_v40, %v20156_v21  ;;  %v20380_v58 = vadd.f32 %v7949_v54, %v7926_v16 }
0x1d38   : > { %v7929_v24 = vadd.f32 %v7890_v61, %v20159_v48  ;;  %v20382_v30 = vadd.f32 %v7957_v15, %v7927_v46  ;;  %v20384_v22 = vadd.f32 %v7956_v6, %v7928_v35 }
0x1d3a   : > { %v20386_v53 = vadd.f32 %v7958_v23, %v7929_v24  ;;  %v7987_v1 = vcombine.low %v20380_v58, %v20382_v30 }
0x1d3c   : > { %v7988_v52 = vcombine.low %v20384_v22, %v20386_v53  ;;  %v7995_v41 = vrot.slane %v7987_v1, %v19058_v5 }
0x1d3e   : > { %v8002_v21 = vrot.slane %v7988_v52, %v19058_v5 }
0x1d40   : > { %v8003_v18 = vcombine.low %v7995_v41, %v8002_v21 }
0x1d42   : > { %v8032_v48 = vsel %vm666_vm1, %v8003_v18, 0.0 }
0x1d43   : > { %8033 = vadd.xlane.f32.xlu0 %v8032_v48 }
0x1dc7   : > { %v7862_v57 = vpop.f32.mrb[38].mxu0 }
0x1dc8   : > { %v7891_v42 = vcombine.high %v7862_v57, %v7862_v57  ;;  %v7898_v26 = vrot.slane %v7862_v57, %v19058_v5  ;;  %v16702_v9 = vpop.f32.mrb[39].mxu0 }
0x1dca   : > { %v7905_v33 = vrot.slane %v7891_v42, %v19058_v5  ;;  %v7906_v7 = vcombine.high %v7898_v26, %v7898_v26  ;;  %v7930_v32 = vadd.f32 %v7898_v26, %v20171_v8 }
0x1dcb   : > { %v7867_v14 = vpop.f32.mrb[40].mxu0 }
0x1dcc   : > { %v7907_v13 = vcombine.high %v7905_v33, %v7905_v33  ;;  %v7931_v34 = vadd.f32 %v7906_v7, %v20174_v17  ;;  %v7932_v43 = vadd.f32 %v7905_v33, %v20178_v11  ;;  %v16705_v19 = vpop.f32.mrb[41].mxu0  ;;  %v7914_v56 = vrot.slane %v7867_v14, %v19058_v5  ;;  %v8387_v7 = vld [vmem:[#allocation8 + $0x68] sm:$0xff]  ;;  %v8386_v14 = vld [vmem:[#allocation8 + $0x60] sm:$0xff] }
0x1dcd   : > { %v20402_v27 = vadd.f32 %v7949_v54, %v7930_v32  ;;  %v8390_v32 = vld [vmem:[#allocation8 + $0x80] sm:$0xff]  ;;  %v8396_v19 = vld [vmem:[#allocation8 + $0xb0] sm:$0xff] }
0x1dce   : > { %v7933_v62 = vadd.f32 %v7907_v13, %v20181_v25  ;;  %v20404_v44 = vadd.f32 %v7957_v15, %v7931_v34  ;;  %v7915_v55 = vcombine.high %v7914_v56, %v7914_v56  ;;  %v7934_v37 = vadd.f32 %v7914_v56, %v20186_v28  ;;  %v8389_v34 = vld [vmem:[#allocation8 + $0x78] sm:$0xff] }
0x1dcf   : > { %v20407_v10 = vadd.f32 %v7956_v6, %v7932_v43  ;;  %v17354_v13 = vpack.c.bf16 %v8390_v32, %v8387_v7  ;;  %v8393_v43 = vld [vmem:[#allocation8 + $0x98] sm:$0xff]  ;;  %v17356_v56 = vpack.c.bf16 %v8389_v34, %v8386_v14 }
0x1dd0   : > { %v20409_v8 = vadd.f32 %v7958_v23, %v7933_v62  ;;  %v8034_v36 = vpop.xlane.xlu0 %8033  ;;  %v8004_v17 = vcombine.low %v20402_v27, %v20404_v44  ;;  %v7935_v11 = vadd.f32 %v7915_v55, %v20189_v20  ;;  %v20414_v31 = vadd.f32 %v7949_v54, %v7934_v37  ;;  %v8392_v55 = vld [vmem:[#allocation8 + $0x90] sm:$0xff]  ;;  %v8395_v37 = vld [vmem:[#allocation8 + $0xa8] sm:$0xff] }
0x1dd1   : > { %v8041_v4 = vmul.f32 0.03125, %v8034_v36  ;;  %v17358_v62 = vpack.c.bf16 %v8396_v19, %v8393_v43  ;;  %17355 = vmatprep.subr.bf16.mxu1 %v17354_v13  ;;  %v17360_v36 = vpack.c.bf16 %v8395_v37, %v8392_v55  ;;  %v15772_v19 = vld [vmem:[#allocation5 + $0x1] ss:$0 sm:$0xff]  ;;  %v15773_v55 = vld [vmem:[#allocation7 + $0x1] ss:$0 sm:$0xff] }
0x1dd2   : > { %v8005_v25 = vcombine.low %v20407_v10, %v20409_v8  ;;  %v20418_v12 = vadd.f32 %v7957_v15, %v7935_v11  ;;  %v8012_v29 = vrot.slane %v8004_v17, %v19058_v5  ;;  %17357 = vmatpush1.bf16.msra.mxu1 %v17356_v56 }
0x1dd3   : > { %v8053_v28 = vrot.slane %v8041_v4, %v19112_v47  ;;  %v8060_v6 = vrot.slane %v8041_v4, %v19115_v49  ;;  %v8067_v63 = vrot.slane %v8041_v4, %v19118_v50  ;;  %v8074_v40 = vrot.slane %v8041_v4, %v19121_v51  ;;  %17359 = vmatprep.subr.bf16.mxu1 %v17358_v62 }
0x1dd4   : > { %v8019_v20 = vrot.slane %v8005_v25, %v19058_v5  ;;  %v8021_v54 = vcombine.low %v20414_v31, %v20418_v12 }
0x1dd5   : > { %v20429_v16 = vsub.f32 %v20380_v58, %v8053_v28  ;;  %v20432_v15 = vsub.f32 %v20382_v30, %v8060_v6  ;;  %v20435_v61 = vsub.f32 %v20384_v22, %v8067_v63  ;;  %v20438_v35 = vsub.f32 %v20386_v53, %v8074_v40 }
0x1dd6   : > { %v8020_v46 = vcombine.low %v8012_v29, %v8019_v20  ;;  %v8028_v23 = vrot.slane %v8021_v54, %v19058_v5  ;;  %17361 = vmatpush1.bf16.msra.mxu1 %v17360_v36  ;;  %v8318_v36 = vcombine.high %v15772_v19, %v15772_v19 }
0x1dd7   : > { %v8137_v24 = vmul.f32 %v20429_v16, %v20429_v16  ;;  %v8138_v1 = vmul.f32 %v20432_v15, %v20432_v15  ;;  %v8139_v52 = vmul.f32 %v20435_v61, %v20435_v61  ;;  %v8140_v21 = vmul.f32 %v20438_v35, %v20438_v35  ;;  %17362 = vmatprep.subr.bf16.mxu1 %v21863_v0 }
0x1dd8   : > { %v8035_v41 = vsel %vm666_vm1, %v8020_v46, 0.0  ;;  %v8038_v18 = vsel %vm673_vm0, %v8028_v23, 0.0 }
0x1dd9   : > { %8036 = vadd.xlane.f32.xlu1 %v8035_v41  ;;  %v8157_v48 = vcombine.low %v8137_v24, %v8138_v1  ;;  %8039 = vadd.xlane.f32.xlu0 %v8038_v18  ;;  %v8158_v57 = vcombine.low %v8139_v52, %v8140_v21 }
0x1ddb   : > { %v8165_v42 = vrot.slane %v8157_v48, %v19058_v5  ;;  %v8172_v26 = vrot.slane %v8158_v57, %v19058_v5 }
0x1ddd   : > { %v8173_v9 = vcombine.low %v8165_v42, %v8172_v26 }
0x1ddf   : > { %v8202_v33 = vsel %vm666_vm1, %v8173_v9, 0.0 }
0x1de0   : > { %8203 = vadd.xlane.f32.xlu1 %v8202_v33 }
0x1e66   : > { %v8037_v17 = vpop.xlane.xlu1 %8036  ;;  %v8040_v4 = vpop.xlane.xlu0 %8039 }
0x1e67   : > { %v8042_v11 = vmul.f32 0.03125, %v8037_v17  ;;  %v8043_v25 = vmul.f32 0.03125, %v8040_v4  ;;  %v8354_v17 = vcombine.high %v15773_v55, %v15773_v55  ;;  %v20500_v4 = vrot.slane %v8318_v36, %v19058_v5  ;;  %v8394_v36 = vld [vmem:[#allocation8 + $0xa0] sm:$0xff] }
0x1e69   : > { %v8081_v28 = vrot.slane %v8042_v11, %v19112_v47  ;;  %v8088_v6 = vrot.slane %v8042_v11, %v19115_v49  ;;  %v8095_v63 = vrot.slane %v8042_v11, %v19118_v50  ;;  %v8102_v40 = vrot.slane %v8042_v11, %v19121_v51 }
0x1e6a   : > { %v8109_v29 = vrot.slane %v8043_v25, %v19112_v47  ;;  %v8116_v20 = vrot.slane %v8043_v25, %v19115_v49  ;;  %v20497_v11 = vrot.slane %v15772_v19, %v19058_v5  ;;  %v20503_v25 = vrot.slane %v15773_v55, %v19058_v5  ;;  %v8391_v55 = vld [vmem:[#allocation8 + $0x88] sm:$0xff] }
0x1e6b   : > { %v20462_v54 = vsub.f32 %v20402_v27, %v8081_v28  ;;  %v20465_v46 = vsub.f32 %v20404_v44, %v8088_v6  ;;  %v20468_v23 = vsub.f32 %v20407_v10, %v8095_v63  ;;  %v20471_v24 = vsub.f32 %v20409_v8, %v8102_v40 }
0x1e6c   : > { %v20474_v1 = vsub.f32 %v20414_v31, %v8109_v29  ;;  %v20477_v52 = vsub.f32 %v20418_v12, %v8116_v20  ;;  %v20506_v28 = vrot.slane %v8354_v17, %v19058_v5  ;;  %v8333_v63 = vcombine.high %v20497_v11, %v20497_v11  ;;  %v8397_v17 = vld [vmem:[#allocation8 + $0xb8] sm:$0xff] }
0x1e6d   : > { %v8141_v41 = vmul.f32 %v20462_v54, %v20462_v54  ;;  %v8142_v21 = vmul.f32 %v20465_v46, %v20465_v46  ;;  %v8143_v18 = vmul.f32 %v20468_v23, %v20468_v23  ;;  %v8144_v48 = vmul.f32 %v20471_v24, %v20471_v24  ;;  %v8204_v57 = vpop.xlane.xlu1 %8203 }
0x1e6e   : > { %v8145_v42 = vmul.f32 %v20474_v1, %v20474_v1  ;;  %v8146_v26 = vmul.f32 %v20477_v52, %v20477_v52  ;;  %v8211_v9 = vmul.f32 0.03125, %v8204_v57  ;;  %v8334_v40 = vcombine.high %v20500_v4, %v20500_v4 }
0x1e6f   : > { %v8174_v33 = vcombine.low %v8141_v41, %v8142_v21  ;;  %v8175_v7 = vcombine.low %v8143_v18, %v8144_v48  ;;  %v20518_v18 = vcombine.high %v20503_v25, %v20503_v25  ;;  %v8370_v48 = vcombine.high %v20506_v28, %v20506_v28 }
0x1e70   : > { %v8191_v32 = vcombine.low %v8145_v42, %v8146_v26  ;;  %v8214_v14 = vadd.f32 1e-05, %v8211_v9 }
0x1e71   : > { %v8182_v13 = vrot.slane %v8174_v33, %v19058_v5  ;;  %v8189_v34 = vrot.slane %v8175_v7, %v19058_v5 }
0x1e72   : > { %v8198_v43 = vrot.slane %v8191_v32, %v19058_v5  ;;  %18029 = vrsqrt.f32 %v8214_v14 }
0x1e73   : > { %v8190_v56 = vcombine.low %v8182_v13, %v8189_v34 }
0x1e74   : > { %v8208_v62 = vsel %vm673_vm0, %v8198_v43, 0.0 }
0x1e75   : > { %8209 = vadd.xlane.f32.xlu1 %v8208_v62  ;;  %v8205_v37 = vsel %vm666_vm1, %v8190_v56, 0.0  ;;  %v8388_v62 = vld [vmem:[#allocation8 + $0x70] sm:$0xff] }
0x1e76   : > { %8206 = vadd.xlane.f32.xlu0 %v8205_v37  ;;  %v17363_v37 = vpack.c.bf16 %v8391_v55, %v8388_v62 }
0x1e7c   : > { %v18030_v6 = vpop.eup %18029 }
0x1e7d   : > { %v8229_v29 = vrot.slane %v18030_v6, %v19112_v47  ;;  %v8236_v20 = vrot.slane %v18030_v6, %v19115_v49  ;;  %v8243_v41 = vrot.slane %v18030_v6, %v19118_v50  ;;  %v8250_v21 = vrot.slane %v18030_v6, %v19121_v51 }
0x1e7e   : > { %v17366_v6 = vpack.c.bf16 %v8397_v17, %v8394_v36 }
0x1e7f   : > { %v8303_v57 = vmul.f32 %v8229_v29, %v20429_v16  ;;  %v8304_v42 = vmul.f32 %v8236_v20, %v20432_v15  ;;  %v8305_v26 = vmul.f32 %v8243_v41, %v20435_v61  ;;  %v8306_v9 = vmul.f32 %v8250_v21, %v20438_v35 }
0x1e81   : > { %v8339_v33 = vmul.f32 %v20497_v11, %v8303_v57  ;;  %v8340_v7 = vmul.f32 %v8333_v63, %v8304_v42  ;;  %v8341_v32 = vmul.f32 %v20500_v4, %v8305_v26  ;;  %v8342_v14 = vmul.f32 %v8334_v40, %v8306_v9 }
0x1e83   : > { %v8375_v13 = vadd.f32 %v20503_v25, %v8339_v33  ;;  %v8376_v34 = vadd.f32 %v20518_v18, %v8340_v7  ;;  %v8377_v43 = vadd.f32 %v20506_v28, %v8341_v32  ;;  %v8378_v19 = vadd.f32 %v8370_v48, %v8342_v14 }
0x1e85   : > { %v8408_v16 = vcombine.low %v8375_v13, %v8376_v34  ;;  %v8409_v56 = vcombine.low %v8377_v43, %v8378_v19 }
0x1e87   : > { %v8416_v15 = vrot.slane %v8408_v16, %v19058_v5  ;;  %v8423_v61 = vrot.slane %v8409_v56, %v19058_v5 }
0x1e89   : > { %v8424_v35 = vcombine.low %v8416_v15, %v8423_v61 }
0x1e8b   : > { %15774 = vmatmul.mubr.msk.f32.vlgmr.msra.gmra.mrb[52].mxu1 %vm666_vm1, %v8424_v35 }
0x1e8c   : > { %8526 = vmatprep.mubr.f32.mxu1 %v21815_v59  ;;  %17364 = vmatpush3.bf16.msra.mxu1 %v17363_v37 }
0x1e8d   : > { %17365 = vmatprep.subr.bf16.mxu1 %v21863_v0 }
0x1e90   : > { %17367 = vmatpush3.bf16.msra.mxu1 %v17366_v6 }
0x1f02   : > { %v8210_v29 = vpop.xlane.xlu1 %8209 }
0x1f03   : > { %v8213_v20 = vmul.f32 0.03125, %v8210_v29  ;;  %v8207_v41 = vpop.xlane.xlu0 %8206 }
0x1f04   : > { %v8212_v21 = vmul.f32 0.03125, %v8207_v41 }
0x1f05   : > { %v8216_v57 = vadd.f32 1e-05, %v8213_v20 }
0x1f06   : > { %v8215_v42 = vadd.f32 1e-05, %v8212_v21 }
0x1f07   : > { %18031 = vrsqrt.f32 %v8216_v57 }
0x1f08   : > { %18033 = vrsqrt.f32 %v8215_v42 }
0x1f11   : > { %v18032_v26 = vpop.eup %18031 }
0x1f12   : > { %v18034_v9 = vpop.eup %18033  ;;  %v8285_v33 = vrot.slane %v18032_v26, %v19112_v47  ;;  %v8292_v7 = vrot.slane %v18032_v26, %v19115_v49 }
0x1f13   : > { %v8257_v32 = vrot.slane %v18034_v9, %v19112_v47  ;;  %v8264_v14 = vrot.slane %v18034_v9, %v19115_v49  ;;  %v8271_v13 = vrot.slane %v18034_v9, %v19118_v50  ;;  %v8278_v34 = vrot.slane %v18034_v9, %v19121_v51 }
0x1f14   : > { %v8311_v43 = vmul.f32 %v8285_v33, %v20474_v1  ;;  %v8312_v19 = vmul.f32 %v8292_v7, %v20477_v52 }
0x1f15   : > { %v8307_v16 = vmul.f32 %v8257_v32, %v20462_v54  ;;  %v8308_v56 = vmul.f32 %v8264_v14, %v20465_v46  ;;  %v8309_v15 = vmul.f32 %v8271_v13, %v20468_v23  ;;  %v8310_v61 = vmul.f32 %v8278_v34, %v20471_v24 }
0x1f16   : > { %v8347_v62 = vmul.f32 %v20497_v11, %v8311_v43  ;;  %v8348_v55 = vmul.f32 %v8333_v63, %v8312_v19 }
0x1f17   : > { %v8343_v37 = vmul.f32 %v20497_v11, %v8307_v16  ;;  %v8344_v36 = vmul.f32 %v8333_v63, %v8308_v56  ;;  %v8345_v17 = vmul.f32 %v20500_v4, %v8309_v15  ;;  %v8346_v6 = vmul.f32 %v8334_v40, %v8310_v61 }
0x1f18   : > { %v8383_v24 = vadd.f32 %v20503_v25, %v8347_v62  ;;  %v8384_v20 = vadd.f32 %v20518_v18, %v8348_v55 }
0x1f19   : > { %v8379_v1 = vadd.f32 %v20503_v25, %v8343_v37  ;;  %v8380_v52 = vadd.f32 %v20518_v18, %v8344_v36  ;;  %v8381_v54 = vadd.f32 %v20506_v28, %v8345_v17  ;;  %v8382_v46 = vadd.f32 %v8370_v48, %v8346_v6 }
0x1f1a   : > { %v8442_v4 = vcombine.low %v8383_v24, %v8384_v20 }
0x1f1b   : > { %v8425_v29 = vcombine.low %v8379_v1, %v8380_v52  ;;  %v8426_v23 = vcombine.low %v8381_v54, %v8382_v46 }
0x1f1c   : > { %v8449_v40 = vrot.slane %v8442_v4, %v19058_v5 }
0x1f1d   : > { %v8433_v41 = vrot.slane %v8425_v29, %v19058_v5  ;;  %v8440_v11 = vrot.slane %v8426_v23, %v19058_v5 }
0x1f1f   : > { %v8441_v63 = vcombine.low %v8433_v41, %v8440_v11 }
0x1f21   : > { %15775 = vmatmul.mubr.msk.f32.gmra.mrb[54].mxu1 %vm666_vm1, %v8441_v63 }
0x1f22   : > { %8532 = vmatprep.mubr.f32.mxu1 %v21815_v59 }
0x1f25   : > { %15776 = vmatmul.mubr.msk.f32.gmra.mrb[56].mxu1 %vm666_vm1, %v8449_v40 }
0x1f26   : > { %16714 = vmatprep.mubr.msk.f32.mxu1 %vm18608_vm2, %v21815_v59 }
0x1f29   : > { %16715 = vmatmul.mubr.msk.f32.vlgmr.msra.gmra.mrb[58].mxu1 %vm666_vm1, %v8424_v35 }
0x1f2a   : > { %16717 = vmatprep.mubr.msk.f32.mxu1 %vm18608_vm2, %v21815_v59 }
0x1f2d   : > { %16718 = vmatmul.mubr.msk.f32.gmra.mrb[60].mxu1 %vm666_vm1, %v8441_v63 }
0x1f2e   : > { %16720 = vmatprep.mubr.msk.f32.mxu1 %vm18608_vm2, %v21815_v59 }
0x1f31   : > { %16721 = vmatmul.mubr.msk.f32.gmra.mrb[62].mxu1 %vm666_vm1, %v8449_v40 }
0x1f5e   : > { %v8522_v25 = vpop.f32.mrb[52].mxu1 }
0x1f5f   : > { %v8524_v28 = vpop.f32.mrb[53].mxu1 }
0x1f60   : > { %v8628_v18 = vcombine.low %v8522_v25, %v8524_v28  ;;  %v8629_v48 = vcombine.high %v8522_v25, %v8524_v28 }
0x1f62   : > { %v8637_v32 = vrot.slane %v8628_v18, %v19058_v5  ;;  %v8644_v43 = vrot.slane %v8629_v48, %v19058_v5 }
0x1ff4   : > { %v8528_v21 = vpop.f32.mrb[54].mxu1 }
0x1ff5   : > { %v8530_v57 = vpop.f32.mrb[55].mxu1 }
0x1ff6   : > { %v8663_v42 = vcombine.low %v8528_v21, %v8530_v57  ;;  %v8664_v26 = vcombine.high %v8528_v21, %v8530_v57 }
0x1ff8   : > { %v8534_v9 = vpop.f32.mrb[56].mxu1  ;;  %v8672_v15 = vrot.slane %v8663_v42, %v19058_v5  ;;  %v8679_v61 = vrot.slane %v8664_v26, %v19058_v5 }
0x1ff9   : > { %v8536_v35 = vpop.f32.mrb[57].mxu1 }
0x1ffa   : > { %v8698_v33 = vcombine.low %v8534_v9, %v8536_v35 }
0x1ffc   : > { %v8605_v7 = vpop.f32.mrb[58].mxu1  ;;  %v8705_v62 = vrot.slane %v8698_v33, %v19058_v5 }
0x1ffd   : > { %v8630_v14 = vcombine.high %v8605_v7, %v8605_v7  ;;  %v8651_v13 = vrot.slane %v8605_v7, %v19058_v5  ;;  %v16716_v34 = vpop.f32.mrb[59].mxu1 }
0x1fff   : > { %v8658_v19 = vrot.slane %v8630_v14, %v19058_v5  ;;  %v20575_v16 = vcombine.low %v8637_v32, %v8651_v13  ;;  %v20577_v56 = vcombine.high %v8637_v32, %v8651_v13 }
0x2000   : > { %v8610_v55 = vpop.f32.mrb[60].mxu1 }
0x2001   : > { %v20582_v37 = vcombine.low %v8644_v43, %v8658_v19  ;;  %v20584_v36 = vcombine.high %v8644_v43, %v8658_v19  ;;  %v8665_v17 = vcombine.high %v8610_v55, %v8610_v55  ;;  %v8686_v6 = vrot.slane %v8610_v55, %v19058_v5  ;;  %v16719_v1 = vpop.f32.mrb[61].mxu1 }
0x2002   : > { %v8725_v52 = vmul.f32 0.25, %v20575_v16  ;;  %v8726_v54 = vmul.f32 0.25, %v20577_v56  ;;  %v8752_v46 = vrot.slane %v20575_v16, 2  ;;  %v8753_v29 = vrot.slane %v20577_v56, 2 }
0x2003   : > { %v8693_v23 = vrot.slane %v8665_v17, %v19058_v5  ;;  %v20592_v24 = vcombine.low %v8672_v15, %v8686_v6  ;;  %v20594_v20 = vcombine.high %v8672_v15, %v8686_v6  ;;  %v8727_v41 = vmul.f32 0.25, %v20582_v37 }
0x2004   : > { %v8615_v11 = vpop.f32.mrb[62].mxu1  ;;  %v8728_v63 = vmul.f32 0.25, %v20584_v36  ;;  %v8762_v4 = vcombine.low %v8725_v52, %v8726_v54  ;;  %v8754_v40 = vrot.slane %v20582_v37, 2  ;;  %v8755_v25 = vrot.slane %v20584_v36, 2 }
0x2005   : > { %v20600_v28 = vcombine.low %v8679_v61, %v8693_v23  ;;  %v20602_v18 = vcombine.high %v8679_v61, %v8693_v23  ;;  %v8712_v48 = vrot.slane %v8615_v11, %v19058_v5  ;;  %v16722_v21 = vpop.f32.mrb[63].mxu1  ;;  %v8756_v57 = vrot.slane %v20592_v24, 2 }
0x2006   : > { %v8763_v42 = vcombine.low %v8727_v41, %v8728_v63  ;;  %v8770_v26 = vrot.slane %v8762_v4, %v19058_v5  ;;  %v8786_v9 = vcombine.low %v8752_v46, %v8753_v29  ;;  %v8787_v35 = vcombine.low %v8754_v40, %v8755_v25 }
0x2007   : > { %v20607_v33 = vcombine.low %v8705_v62, %v8712_v48  ;;  %v20609_v7 = vcombine.high %v8705_v62, %v8712_v48  ;;  %v8809_v32 = vrot.slane %v8756_v57, %v19058_v5  ;;  %v9078_v14 = vrot.slane %v20575_v16, 4 }
0x2008   : > { %v8777_v13 = vrot.slane %v8763_v42, %v19058_v5  ;;  %v8794_v34 = vrot.slane %v8786_v9, %v19058_v5  ;;  %v8801_v43 = vrot.slane %v8787_v35, %v19058_v5  ;;  %v9079_v19 = vrot.slane %v20577_v56, 4 }
0x2009   : > { %v9080_v15 = vrot.slane %v20582_v37, 4  ;;  %v9081_v61 = vrot.slane %v20584_v36, 4  ;;  %v9082_v55 = vrot.slane %v20592_v24, 4  ;;  %v8730_v62 = vmul.f32 0.25, %v20594_v20 }
0x200a   : > { %v20621_v17 = vcombine.low %v8770_v26, %v8777_v13  ;;  %v8802_v6 = vcombine.low %v8794_v34, %v8801_v43  ;;  %v9083_v1 = vcombine.low %v9078_v14, %v9079_v19  ;;  %v8731_v52 = vmul.f32 0.25, %v20600_v28 }
0x200b   : > { %v9084_v54 = vcombine.low %v9080_v15, %v9081_v61  ;;  %v8732_v46 = vmul.f32 0.25, %v20602_v18  ;;  %v8733_v29 = vmul.f32 0.25, %v20607_v33  ;;  %v8893_v40 = vrot.slane %v20594_v20, 2 }
0x200c   : > { %16727 = vmatprep.mubr.msk.f32.mxu1 %vm1445_vm3, %v20621_v17  ;;  %v17368_v23 = vpack.c.bf16 %v8809_v32, %v8802_v6  ;;  %v9091_v41 = vrot.slane %v9083_v1, %v19058_v5  ;;  %v8903_v11 = vcombine.low %v8730_v62, %v8731_v52  ;;  %v8894_v25 = vrot.slane %v20600_v28, 2 }
0x200d   : > { %v9098_v63 = vrot.slane %v9084_v54, %v19058_v5  ;;  %v8904_v4 = vcombine.low %v8732_v46, %v8733_v29  ;;  %v9106_v48 = vrot.slane %v9082_v55, %v19058_v5  ;;  %v8895_v57 = vrot.slane %v20602_v18, 2 }
0x200e   : > { %17370 = vmatprep.subr.msk.bf16.mxu1 %vm19291_vm4, %v17368_v23  ;;  %v8911_v21 = vrot.slane %v8903_v11, %v19058_v5  ;;  %v8896_v42 = vrot.slane %v20607_v33, 2  ;;  %v8897_v35 = vrot.slane %v20609_v7, 2  ;;  %v8927_v32 = vcombine.low %v8893_v40, %v8894_v25 }
0x200f   : > { %17373 = vmatpush3.bf16.xpose.msk.msra.mxu1 %vm19291_vm4, %v17368_v23  ;;  %v9099_v26 = vcombine.low %v9091_v41, %v9098_v63  ;;  %v8918_v9 = vrot.slane %v8904_v4, %v19058_v5  ;;  %v8729_v13 = vmul.f32 0.25, %v20592_v24  ;;  %v9191_v34 = vrot.slane %v20594_v20, 4 }
0x2010   : > { %v8928_v14 = vcombine.low %v8895_v57, %v8896_v42  ;;  %v9192_v43 = vrot.slane %v20600_v28, 4  ;;  %v8935_v61 = vrot.slane %v8927_v32, %v19058_v5  ;;  %v9193_v62 = vrot.slane %v20602_v18, 4 }
0x2011   : > { %v17380_v19 = vpack.c.bf16 %v9106_v48, %v9099_v26  ;;  %v20645_v15 = vcombine.low %v8911_v21, %v8918_v9  ;;  %v9194_v6 = vrot.slane %v20607_v33, 4  ;;  %v8950_v52 = vrot.slane %v8897_v35, %v19058_v5 }
0x2012   : > { %v8942_v55 = vrot.slane %v8928_v14, %v19058_v5  ;;  %v9196_v1 = vcombine.low %v9191_v34, %v9192_v43  ;;  %v20657_v46 = vrot.slane %v8729_v13, %v19058_v5  ;;  %v9195_v29 = vrot.slane %v20609_v7, 4 }
0x2013   : > { %17382 = vmatprep.subr.msk.bf16.mxu1 %vm19314_vm7, %v17380_v19  ;;  %16734 = vmatprep.mubr.msk.f32.mxu0 %vm1445_vm3, %v20645_v15  ;;  %v9197_v23 = vcombine.low %v9193_v62, %v9194_v6  ;;  %v8734_v48 = vmul.f32 0.25, %v20609_v7 }
0x2014   : > { %v8943_v54 = vcombine.low %v8935_v61, %v8942_v55  ;;  %v9204_v11 = vrot.slane %v9196_v1, %v19058_v5  ;;  %v9219_v40 = vrot.slane %v9195_v29, %v19058_v5 }
0x2015   : > { %v9211_v63 = vrot.slane %v9197_v23, %v19058_v5  ;;  %v20675_v21 = vrot.slane %v8734_v48, %v19058_v5 }
0x2016   : > { %v17374_v41 = vpack.c.bf16 %v8950_v52, %v8943_v54  ;;  %16728 = vmatmul.mubr.msk.f32.vlgmr.msra.gmra.mrb[64].mxu1 %vm1445_vm3, %v20657_v46 }
0x2017   : > { %17385 = vmatpush3.bf16.msk.msra.mxu1 %vm19314_vm7, %v17380_v19  ;;  %v9212_v4 = vcombine.low %v9204_v11, %v9211_v63 }
0x2018   : > { %17376 = vmatprep.subr.msk.bf16.mxu0 %vm19291_vm4, %v17374_v41 }
0x2019   : > { %17379 = vmatpush3.bf16.xpose.msk.msra.mxu0 %vm19291_vm4, %v17374_v41  ;;  %v17386_v25 = vpack.c.bf16 %v9219_v40, %v9212_v4 }
0x201b   : > { %17388 = vmatprep.subr.msk.bf16.mxu0 %vm19314_vm7, %v17386_v25 }
0x2020   : > { %16735 = vmatmul.mubr.msk.f32.vlgmr.msra.gmra.mrb[42].mxu0 %vm1445_vm3, %v20675_v21 }
0x2021   : > { %17391 = vmatpush3.bf16.msk.msra.mxu0 %vm19314_vm7, %v17386_v25 }
0x20e9   : > { %v20681_v57 = vpop.f32.mrb[64].mxu1 }
0x20ea   : > { %v20683_v42 = vpop.f32.mrb[65].mxu1  ;;  %v9037_v54 = vsel %vm1674_vm8, %v20681_v57, -inf }
0x20eb   : > { %v9034_v52 = vsel %vm1670_vm9, %v20683_v42, -inf }
0x20f3   : > { %v16736_v26 = vpop.f32.mrb[42].mxu0 }
0x20f4   : > { %v9025_v9 = vpop.f32.mrb[43].mxu0  ;;  %v9043_v35 = vsel %vm1674_vm8, %v16736_v26, -inf }
0x20f5   : > { %9044 = vmax.xlane.f32.xlu1 %v9043_v35  ;;  %v9040_v32 = vsel %vm1670_vm9, %v9025_v9, -inf }
0x20f6   : > { %9041 = vmax.xlane.f32.xlu0 %v9040_v32 }
0x2106   : > { %9484 = vrot.lane.b32.xlu1 %v20600_v28, %s18610_s12 }
0x210a   : > { %9486 = vrot.lane.b32.xlu1 %v20602_v18, %s18610_s12 }
0x210c   : > { %9482 = vrot.lane.b32.xlu0 %v20594_v20, %s18610_s12 }
0x210e   : > { %9488 = vrot.lane.b32.xlu1 %v20607_v33, %s18610_s12 }
0x2182   : > { %v9045_v14 = vpop.xlane.xlu1 %9044 }
0x2183   : > { %v9049_v13 = vsub.f32 %v16736_v26, %v9045_v14  ;;  %v9042_v34 = vpop.xlane.xlu0 %9041 }
0x2184   : > { %v9048_v43 = vsub.f32 %v9025_v9, %v9042_v34 }
0x2185   : > { %v9056_v19 = vmul.f32 1.442695, %v9049_v13 }
0x2186   : > { %v9054_v61 = vmul.f32 1.442695, %v9048_v43  ;;  %v9485_v29 = vpop.permute.xlu1 %9484 }
0x2187   : > { %18035 = vpow2.f32 %v9056_v19  ;;  %v9483_v11 = vpop.permute.xlu0 %9482  ;;  %v9493_v4 = vrot.slane %v9485_v29, 2  ;;  %v9766_v14 = vrot.slane %v9485_v29, 4 }
0x2188   : > { %18037 = vpow2.f32 %v9054_v61  ;;  %v9492_v40 = vrot.slane %v9483_v11, 2  ;;  %v9765_v13 = vrot.slane %v9483_v11, 4 }
0x218a   : > { %v9487_v23 = vpop.permute.xlu1 %9486  ;;  %v9501_v35 = vcombine.low %v9492_v40, %v9493_v4 }
0x218b   : > { %v9494_v25 = vrot.slane %v9487_v23, 2  ;;  %v9767_v34 = vrot.slane %v9487_v23, 4 }
0x218c   : > { %v9509_v61 = vrot.slane %v9501_v35, %v19058_v5 }
0x218e   : > { %v9489_v41 = vpop.permute.xlu1 %9488 }
0x218f   : > { %v9495_v63 = vrot.slane %v9489_v41, 2  ;;  %v9768_v32 = vrot.slane %v9489_v41, 4 }
0x2191   : > { %v18036_v55 = vpop.eup %18035  ;;  %v9502_v48 = vcombine.low %v9494_v25, %v9495_v63 }
0x2192   : > { %v18038_v62 = vpop.eup %18037  ;;  %v9067_v6 = vsel %vm1674_vm8, %v18036_v55, 0.0 }
0x2193   : > { %9068 = vadd.xlane.f32.xlu1 %v9067_v6  ;;  %v9064_v1 = vsel %vm1670_vm9, %v18038_v62, 0.0  ;;  %v9516_v43 = vrot.slane %v9502_v48, %v19058_v5  ;;  %v9771_v6 = vcombine.low %v9767_v34, %v9768_v32 }
0x2194   : > { %9065 = vadd.xlane.f32.xlu0 %v9064_v1 }
0x2195   : > { %v9517_v25 = vcombine.low %v9509_v61, %v9516_v43 }
0x21a4   : > { %9497 = vrot.lane.b32.xlu1 %v20645_v15, %s18610_s12 }
0x21aa   : > { %9490 = vrot.lane.b32.xlu0 %v20609_v7, %s18610_s12 }
0x21ae   : > { %9499 = vrot.lane.b32.xlu0 %v20675_v21, %s18610_s12 }
0x21c8   : > { %9035 = vmax.xlane.f32.xlu1 %v9034_v52  ;;  %v9770_v52 = vcombine.low %v9765_v13, %v9766_v14 }
0x21ca   : > { %v9778_v29 = vrot.slane %v9770_v52, %v19058_v5 }
0x21cd   : > { %9038 = vmax.xlane.f32.xlu0 %v9037_v54 }
0x2220   : > { %v9069_v26 = vpop.xlane.xlu1 %9068 }
0x2221   : > { %18039 = vrcp.f32 %v9069_v26  ;;  %v9066_v9 = vpop.xlane.xlu0 %9065  ;;  %v9785_v26 = vrot.slane %v9771_v6, %v19058_v5 }
0x2222   : > { %18041 = vrcp.f32 %v9066_v9 }
0x2223   : > { %v9786_v9 = vcombine.low %v9778_v29, %v9785_v26 }
0x2224   : > { %v9498_v35 = vpop.permute.xlu1 %9497 }
0x2225   : > { %v9491_v19 = vpop.permute.xlu0 %9490 }
0x2226   : > { %v9496_v1 = vrot.slane %v9491_v19, 2  ;;  %v9769_v63 = vrot.slane %v9491_v19, 4 }
0x2228   : > { %v9524_v54 = vrot.slane %v9496_v1, %v19058_v5  ;;  %v9793_v23 = vrot.slane %v9769_v63, %v19058_v5 }
0x2229   : > { %v9500_v14 = vpop.permute.xlu0 %9499 }
0x222a   : > { %v17398_v4 = vpack.c.bf16 %v9524_v54, %v9517_v25  ;;  %v17410_v32 = vpack.c.bf16 %v9793_v23, %v9786_v9 }
0x222b   : > { %v18040_v41 = vpop.eup %18039 }
0x222c   : > { %v18042_v40 = vpop.eup %18041  ;;  %17400 = vmatprep.subr.msk.bf16.mxu0 %vm19291_vm4, %v17398_v4  ;;  %v9077_v48 = vmul.f32 %v18040_v41, %v18036_v55 }
0x222d   : > { %v9076_v11 = vmul.f32 %v18042_v40, %v18038_v62 }
0x222f   : > { %16748 = vmatprep.mubr.msk.f32.mxu0 %vm1670_vm9, %v9076_v11 }
0x2230   : > { %16749 = vmatmul.mubr.msk.f32.vlgmr.msra.gmra.mrb[44].mxu0 %vm1670_vm9, %v9077_v48 }
0x2231   : > { %17403 = vmatpush3.bf16.xpose.msk.msra.mxu0 %vm19291_vm4, %v17398_v4  ;;  %16762 = vmatprep.mubr.msk.f32.mxu0 %vm1445_vm3, %v9498_v35 }
0x2232   : > { %17412 = vmatprep.subr.msk.bf16.mxu0 %vm19314_vm7, %v17410_v32 }
0x2238   : > { %16763 = vmatmul.mubr.msk.f32.vlgmr.msra.gmra.mrb[46].mxu0 %vm1445_vm3, %v9500_v14 }
0x2239   : > { %17415 = vmatpush3.bf16.msk.msra.mxu0 %vm19314_vm7, %v17410_v32 }
0x2255   : > { %v9036_v55 = vpop.xlane.xlu1 %9035 }
0x2256   : > { %v9046_v62 = vsub.f32 %v20683_v42, %v9036_v55 }
0x2258   : > { %v9050_v13 = vmul.f32 1.442695, %v9046_v62 }
0x225a   : > { %18043 = vpow2.f32 %v9050_v13  ;;  %v9039_v19 = vpop.xlane.xlu0 %9038 }
0x225b   : > { %v9047_v1 = vsub.f32 %v20681_v57, %v9039_v19 }
0x225d   : > { %v9052_v54 = vmul.f32 1.442695, %v9047_v1 }
0x2264   : > { %v18044_v34 = vpop.eup %18043 }
0x2265   : > { %v9058_v43 = vsel %vm1670_vm9, %v18044_v34, 0.0 }
0x2266   : > { %9059 = vadd.xlane.f32.xlu1 %v9058_v43 }
0x2277   : > { %9356 = vrot.lane.b32.xlu1 %v20575_v16, %s18610_s12 }
0x227b   : > { %9360 = vrot.lane.b32.xlu1 %v20582_v37, %s18610_s12 }
0x227f   : > { %9362 = vrot.lane.b32.xlu1 %v20584_v36, %s18610_s12 }
0x2283   : > { %9364 = vrot.lane.b32.xlu1 %v20592_v24, %s18610_s12 }
0x2287   : > { %9373 = vrot.lane.b32.xlu1 %v20657_v46, %s18610_s12 }
0x228b   : > { %10188 = vrot.lane.b32.xlu1 %v20577_v56, %s18611_s0 }
0x228f   : > { %10192 = vrot.lane.b32.xlu1 %v20584_v36, %s18611_s0 }
0x2293   : > { %10312 = vrot.lane.b32.xlu1 %v20594_v20, %s18611_s0 }
0x2297   : > { %10316 = vrot.lane.b32.xlu1 %v20602_v18, %s18611_s0 }
0x22f3   : > { %v9060_v42 = vpop.xlane.xlu1 %9059 }
0x22f4   : > { %18045 = vrcp.f32 %v9060_v42 }
0x22f5   : > { %18047 = vpow2.f32 %v9052_v54 }
0x22f7   : > { %v9357_v35 = vpop.permute.xlu1 %9356 }
0x22fb   : > { %v9361_v32 = vpop.permute.xlu1 %9360 }
0x22fe   : > { %v18046_v61 = vpop.eup %18045 }
0x22ff   : > { %v9074_v6 = vmul.f32 %v18046_v61, %v18044_v34  ;;  %v18048_v48 = vpop.eup %18047  ;;  %v9363_v14 = vpop.permute.xlu1 %9362 }
0x2300   : > { %v9061_v9 = vsel %vm1674_vm8, %v18048_v48, 0.0  ;;  %v9369_v61 = vrot.slane %v9363_v14, 2  ;;  %v9655_v1 = vrot.slane %v9363_v14, 4 }
0x2301   : > { %16741 = vmatprep.mubr.msk.f32.mxu1 %vm1670_vm9, %v9074_v6 }
0x2303   : > { %v16750_v52 = vpop.f32.mrb[44].mxu0  ;;  %v9365_v34 = vpop.permute.xlu1 %9364 }
0x2304   : > { %v20747_v63 = vpop.f32.mrb[45].mxu0  ;;  %v9355_v4 = vrot.slane %v16750_v52, %v19058_v5  ;;  %v9368_v52 = vrot.slane %v9361_v32, 2 }
0x2305   : > { %v9332_v25 = vcombine.high %v20747_v63, %v20747_v63 }
0x2307   : > { %v20752_v26 = vrot.slane %v9332_v25, %v19058_v5  ;;  %v9374_v54 = vpop.permute.xlu1 %9373  ;;  %v9654_v25 = vrot.slane %v9361_v32, 4 }
0x2309   : > { %v9348_v41 = vcombine.high %v20752_v26, %v20752_v26 }
0x230b   : > { %v20757_v40 = vcombine.low %v9348_v41, %v9355_v4  ;;  %v16764_v57 = vpop.f32.mrb[46].mxu0  ;;  %v9366_v4 = vrot.slane %v9357_v35, 2  ;;  %v9376_v41 = vcombine.low %v9368_v52, %v9369_v61  ;;  %v20777_v14 = vpop.permute.xlu1 %10188 }
0x230c   : > { %v9599_v29 = vpop.f32.mrb[47].mxu0  ;;  %v9617_v11 = vsel %vm1674_vm8, %v16764_v57, -inf  ;;  %v10483_v3 = vrot.slane %v20777_v14, 4 }
0x230d   : > { %v9614_v23 = vsel %vm1670_vm9, %v9599_v29, -inf }
0x230e   : > { %9615 = vmax.xlane.f32.xlu0 %v9614_v23 }
0x2312   : > { %9618 = vmax.xlane.f32.xlu0 %v9617_v11  ;;  %v9652_v11 = vrot.slane %v9357_v35, 4 }
0x2316   : > { %9062 = vadd.xlane.f32.xlu0 %v9061_v9  ;;  %v9658_v9 = vcombine.low %v9654_v25, %v9655_v1 }
0x2318   : > { %v9672_v61 = vrot.slane %v9658_v9, %v19058_v5 }
0x232c   : > { %9358 = vrot.lane.b32.xlu0 %v20577_v56, %s18610_s12 }
0x2330   : > { %9371 = vrot.lane.b32.xlu0 %v20621_v17, %s18610_s12  ;;  %s18493_s12 = scalar_lea.vmem %s21735_s11, 512 }
0x2331   : > { %p18494_p11 = scmp.ne.s32.totalorder %s21735_s11, %s18493_s12 }
0x2333   : > { %p18495_p13 = pnand %p18494_p11, %p21871_p12 }
0x2334   : > { %10186 = vrot.lane.b32.xlu0 %v20575_v16, %s18611_s0 }
0x2335   : > { %p18496_p8 = pneg %p18495_p13 }
0x2338   : > { %10190 = vrot.lane.b32.xlu0 %v20582_v37, %s18611_s0 }
0x233c   : > { %10194 = vrot.lane.b32.xlu0 %v20592_v24, %s18611_s0 }
0x2340   : > { %10314 = vrot.lane.b32.xlu0 %v20600_v28, %s18611_s0 }
0x239b   : > { %v9616_v55 = vpop.xlane.xlu0 %9615 }
0x239c   : > { %v9622_v62 = vsub.f32 %v9599_v29, %v9616_v55 }
0x239e   : > { %v9628_v13 = vmul.f32 1.442695, %v9622_v62 }
0x239f   : > { %v9619_v43 = vpop.xlane.xlu0 %9618 }
0x23a0   : > { %18049 = vpow2.f32 %v9628_v13  ;;  %v9623_v42 = vsub.f32 %v16764_v57, %v9619_v43  ;;  %v9370_v13 = vrot.slane %v9365_v34, 2 }
0x23a2   : > { %v9630_v19 = vmul.f32 1.442695, %v9623_v42  ;;  %v9390_v42 = vrot.slane %v9376_v41, %v19058_v5  ;;  %v9398_v25 = vrot.slane %v9370_v13, %v19058_v5 }
0x23a3   : > { %v9063_v6 = vpop.xlane.xlu0 %9062 }
0x23a4   : > { %18051 = vpow2.f32 %v9630_v19 }
0x23a5   : > { %18053 = vrcp.f32 %v9063_v6  ;;  %v9656_v6 = vrot.slane %v9365_v34, 4 }
0x23a7   : > { %v9359_v23 = vpop.permute.xlu0 %9358  ;;  %v9680_v9 = vrot.slane %v9656_v6, %v19058_v5 }
0x23a8   : > { %v9367_v29 = vrot.slane %v9359_v23, 2  ;;  %v9653_v55 = vrot.slane %v9359_v23, 4 }
0x23aa   : > { %v20774_v62 = vpop.eup %18049  ;;  %v9375_v57 = vcombine.low %v9366_v4, %v9367_v29  ;;  %v9657_v43 = vcombine.low %v9652_v11, %v9653_v55 }
0x23ab   : > { %v9372_v19 = vpop.permute.xlu0 %9371  ;;  %v9638_v32 = vsel %vm1670_vm9, %v20774_v62, 0.0 }
0x23ac   : > { %v9383_v35 = vrot.slane %v9375_v57, %v19058_v5  ;;  %v9665_v1 = vrot.slane %v9657_v43, %v19058_v5  ;;  %9639 = vadd.xlane.f32.xlu0 %v9638_v32  ;;  %v10193_v43 = vpop.permute.xlu1 %10192  ;;  %v10197_v32 = vrot.slane %v20777_v14, 2 }
0x23ad   : > { %v10485_v60 = vrot.slane %v10193_v43, 4 }
0x23ae   : > { %v20784_v52 = vpop.eup %18051  ;;  %v9391_v4 = vcombine.low %v9383_v35, %v9390_v42  ;;  %v9673_v41 = vcombine.low %v9665_v1, %v9672_v61  ;;  %v10199_v61 = vrot.slane %v10193_v43, 2 }
0x23af   : > { %v18054_v23 = vpop.eup %18053  ;;  %v20787_v11 = vpop.permute.xlu0 %10186  ;;  %v9641_v29 = vsel %vm1674_vm8, %v20784_v52, 0.0 }
0x23b0   : > { %v10196_v34 = vrot.slane %v20787_v11, 2  ;;  %9642 = vadd.xlane.f32.xlu1 %v9641_v29  ;;  %v9075_v55 = vmul.f32 %v18054_v23, %v18048_v48  ;;  %v17392_v57 = vpack.c.bf16 %v9398_v25, %v9391_v4  ;;  %v17404_v13 = vpack.c.bf16 %v9680_v9, %v9673_v41 }
0x23b1   : > { %v10482_v2 = vrot.slane %v20787_v11, 4 }
0x23b2   : > { %16742 = vmatmul.mubr.msk.f32.vlgmr.msra.gmra.mrb[66].mxu1 %vm1670_vm9, %v9075_v55  ;;  %17394 = vmatprep.subr.msk.bf16.mxu1 %vm19291_vm4, %v17392_v57  ;;  %v10205_v6 = vcombine.low %v10196_v34, %v10197_v32 }
0x23b3   : > { %16755 = vmatprep.mubr.msk.f32.mxu1 %vm1445_vm3, %v9372_v19  ;;  %17397 = vmatpush3.bf16.xpose.msk.msra.mxu1 %vm19291_vm4, %v17392_v57  ;;  %v10191_v42 = vpop.permute.xlu0 %10190 }
0x23b4   : > { %v10198_v35 = vrot.slane %v10191_v42, 2  ;;  %17406 = vmatprep.subr.msk.bf16.mxu1 %vm19314_vm7, %v17404_v13  ;;  %v10213_v25 = vrot.slane %v10205_v6, %v19058_v5 }
0x23b6   : > { %v10206_v48 = vcombine.low %v10198_v35, %v10199_v61 }
0x23b7   : > { %v10195_v1 = vpop.permute.xlu0 %10194 }
0x23b8   : > { %v10220_v4 = vrot.slane %v10206_v48, %v19058_v5  ;;  %v10200_v23 = vrot.slane %v10195_v1, 2 }
0x23ba   : > { %v10228_v41 = vrot.slane %v10200_v23, %v19058_v5  ;;  %16756 = vmatmul.mubr.msk.f32.vlgmr.msra.gmra.mrb[68].mxu1 %vm1445_vm3, %v9374_v54  ;;  %v10221_v19 = vcombine.low %v10213_v25, %v10220_v4  ;;  %v10313_v54 = vpop.permute.xlu1 %10312  ;;  %v10484_v23 = vrot.slane %v10191_v42, 4 }
0x23bb   : > { %17409 = vmatpush3.bf16.msk.msra.mxu1 %vm19314_vm7, %v17404_v13  ;;  %v10315_v9 = vpop.permute.xlu0 %10314  ;;  %v10322_v35 = vrot.slane %v10313_v54, 2 }
0x23bc   : > { %v17422_v29 = vpack.c.bf16 %v10228_v41, %v10221_v19  ;;  %17416 = vmatprep.subr.bf16.mxu1 %v21863_v0  ;;  %v10323_v57 = vrot.slane %v10315_v9, 2 }
0x23be   : > { %17424 = vmatprep.subr.msk.bf16.mxu0 %vm19291_vm4, %v17422_v29  ;;  %v10317_v34 = vpop.permute.xlu1 %10316  ;;  %v10331_v25 = vcombine.low %v10322_v35, %v10323_v57  ;;  %v10486_v35 = vrot.slane %v10195_v1, 4 }
0x23bf   : > { %v10324_v61 = vrot.slane %v10317_v34, 2 }
0x23c1   : > { %10320 = vrot.lane.b32.xlu1 %v20609_v7, %s18611_s0 }
0x23c2   : > { %10318 = vrot.lane.b32.xlu0 %v20607_v33, %s18611_s0 }
0x23c5   : > { %10203 = vrot.lane.b32.xlu1 %v20657_v46, %s18611_s0 }
0x23c6   : > { %10201 = vrot.lane.b32.xlu0 %v20621_v17, %s18611_s0 }
0x23c9   : > { %10329 = vrot.lane.b32.xlu1 %v20675_v21, %s18611_s0 }
0x23ca   : > { %10327 = vrot.lane.b32.xlu0 %v20645_v15, %s18611_s0  ;;  %s18618_s0 = smov [#allocation20]  }
0x2439   : > { %v9640_v55 = vpop.xlane.xlu0 %9639 }
0x243a   : > { %18055 = vrcp.f32 %v9640_v55  ;;  %v10339_v55 = vrot.slane %v10331_v25, %v19058_v5 }
0x243d   : > { %v9643_v32 = vpop.xlane.xlu1 %9642  ;;  %v10319_v13 = vpop.permute.xlu0 %10318 }
0x243e   : > { %18057 = vrcp.f32 %v9643_v32  ;;  %v10325_v6 = vrot.slane %v10319_v13, 2  ;;  %v10488_v32 = vcombine.low %v10484_v23, %v10485_v60  ;;  %v10598_v11 = vrot.slane %v10319_v13, 4 }
0x243f   : > { %v10597_v60 = vrot.slane %v10317_v34, 4 }
0x2440   : > { %v10332_v48 = vcombine.low %v10324_v61, %v10325_v6  ;;  %v10487_v61 = vcombine.low %v10482_v2, %v10483_v3  ;;  %v10502_v43 = vrot.slane %v10488_v32, %v19058_v5  ;;  %v10595_v3 = vrot.slane %v10313_v54, 4 }
0x2441   : > { %v10321_v4 = vpop.permute.xlu1 %10320  ;;  %v10510_v2 = vrot.slane %v10486_v35, %v19058_v5  ;;  %v10601_v14 = vcombine.low %v10597_v60, %v10598_v11 }
0x2442   : > { %v10346_v41 = vrot.slane %v10332_v48, %v19058_v5  ;;  %v10326_v19 = vrot.slane %v10321_v4, 2  ;;  %v10202_v48 = vpop.permute.xlu0 %10201  ;;  %v10599_v25 = vrot.slane %v10321_v4, 4 }
0x2444   : > { %v18056_v39 = vpop.eup %18055  ;;  %v10354_v51 = vrot.slane %v10326_v19, %v19058_v5  ;;  %v10347_v57 = vcombine.low %v10339_v55, %v10346_v41  ;;  %v9339_v19 = vrot.slane %v20747_v63, %v19058_v5 }
0x2445   : > { %v9650_v59 = vmul.f32 %v18056_v39, %v20774_v62  ;;  %v10596_v62 = vrot.slane %v10315_v9, 4  ;;  %v10204_v13 = vpop.permute.xlu1 %10203  ;;  %v10623_v9 = vrot.slane %v10599_v25, %v19058_v5 }
0x2446   : > { %v17428_v39 = vpack.c.bf16 %v10354_v51, %v10347_v57  ;;  %v10615_v51 = vrot.slane %v10601_v14, %v19058_v5  ;;  %v9347_v55 = vcombine.high %v9339_v19, %v9339_v19 }
0x2447   : > { %16776 = vmatprep.mubr.msk.f32.mxu0 %vm1670_vm9, %v9650_v59  ;;  %v10495_v59 = vrot.slane %v10487_v61, %v19058_v5  ;;  %v10600_v1 = vcombine.low %v10595_v3, %v10596_v62 }
0x2448   : > { %v18058_v42 = vpop.eup %18057  ;;  %v10076_v57 = vcombine.low %v9347_v55, %v20752_v26 }
0x2449   : > { %v9651_v6 = vmul.f32 %v18058_v42, %v20784_v52  ;;  %v10503_v52 = vcombine.low %v10495_v59, %v10502_v43  ;;  %v10608_v54 = vrot.slane %v10600_v1, %v19058_v5  ;;  %v10330_v41 = vpop.permute.xlu1 %10329 }
0x244a   : > { %v10090_v43 = vrot.slane %v10076_v57, %v19058_v5 }
0x244b   : > { %16777 = vmatmul.mubr.msk.f32.vlgmr.msra.gmra.mrb[48].mxu0 %vm1670_vm9, %v9651_v6  ;;  %v17434_v34 = vpack.c.bf16 %v10510_v2, %v10503_v52  ;;  %v10616_v23 = vcombine.low %v10608_v54, %v10615_v51 }
0x244c   : > { %17427 = vmatpush3.bf16.xpose.msk.msra.mxu0 %vm19291_vm4, %v17422_v29  ;;  %16809 = vmatprep.mubr.msk.f32.mxu0 %vm1445_vm3, %v10202_v48  ;;  %v10328_v29 = vpop.permute.xlu0 %10327 }
0x244d   : > { %17430 = vmatprep.subr.msk.bf16.mxu0 %vm19291_vm4, %v17428_v39  ;;  %v20850_v4 = vpack.c.bf16 %v10623_v9, %v10616_v23 }
0x2453   : > { %16810 = vmatmul.mubr.msk.f32.vlgmr.msra.gmra.mrb[50].mxu0 %vm1445_vm3, %v10204_v13 }
0x2454   : > { %17433 = vmatpush3.bf16.xpose.msk.msra.mxu0 %vm19291_vm4, %v17428_v39  ;;  %16816 = vmatprep.mubr.msk.f32.mxu0 %vm1445_vm3, %v10328_v29 }
0x2455   : > { %17436 = vmatprep.subr.msk.bf16.mxu0 %vm19314_vm7, %v17434_v34 }
0x245b   : > { %16817 = vmatmul.mubr.msk.f32.vlgmr.msra.gmra.mrb[52].mxu0 %vm1445_vm3, %v10330_v41 }
0x245c   : > { %17439 = vmatpush3.bf16.msk.msra.mxu0 %vm19314_vm7, %v17434_v34 }
0x245d   : > { %17442 = vmatprep.subr.msk.bf16.mxu0 %vm19314_vm7, %v20850_v4 }
0x2485   : > { %v16743_v32 = vpop.f32.mrb[66].mxu1 }
0x2486   : > { %v9331_v42 = vrot.slane %v16743_v32, %v19058_v5  ;;  %v20861_v61 = vpop.f32.mrb[67].mxu1 }
0x2488   : > { %v10075_v6 = vcombine.low %v9331_v42, %v9339_v19 }
0x248a   : > { %v10083_v35 = vrot.slane %v10075_v6, %v19058_v5 }
0x248c   : > { %v20865_v11 = vcombine.low %v10083_v35, %v10090_v43 }
0x248d   : > { %v16757_v48 = vpop.f32.mrb[68].mxu1 }
0x248e   : > { %v9473_v39 = vpop.f32.mrb[69].mxu1  ;;  %v9611_v60 = vsel %vm1674_vm8, %v16757_v48, -inf }
0x248f   : > { %9612 = vmax.xlane.f32.xlu1 %v9611_v60  ;;  %v9608_v63 = vsel %vm1670_vm9, %v9473_v39, -inf }
0x2490   : > { %9609 = vmax.xlane.f32.xlu0 %v9608_v63 }
0x251c   : > { %v9613_v26 = vpop.xlane.xlu1 %9612 }
0x251d   : > { %v9610_v59 = vpop.xlane.xlu0 %9609  ;;  %v9621_v62 = vsub.f32 %v16757_v48, %v9613_v26 }
0x251e   : > { %v16778_v3 = vpop.f32.mrb[48].mxu0  ;;  %v9620_v2 = vsub.f32 %v9473_v39, %v9610_v59 }
0x251f   : > { %v20869_v14 = vpop.f32.mrb[49].mxu0  ;;  %v9626_v1 = vmul.f32 1.442695, %v9621_v62  ;;  %v9929_v25 = vrot.slane %v16778_v3, %v19058_v5 }
0x2520   : > { %v9906_v52 = vcombine.high %v20869_v14, %v20869_v14  ;;  %v9624_v51 = vmul.f32 1.442695, %v9620_v2 }
0x2521   : > { %18059 = vpow2.f32 %v9626_v1 }
0x2522   : > { %v20874_v13 = vrot.slane %v9906_v52, %v19058_v5  ;;  %18061 = vpow2.f32 %v9624_v51 }
0x2524   : > { %v9922_v29 = vcombine.high %v20874_v13, %v20874_v13 }
0x2526   : > { %v20879_v34 = vcombine.low %v9922_v29, %v9929_v25  ;;  %v16811_v54 = vpop.f32.mrb[50].mxu0 }
0x2527   : > { %v10303_v9 = vpop.f32.mrb[51].mxu0  ;;  %v10441_v41 = vsel %vm1674_vm8, %v16811_v54, -inf }
0x2528   : > { %v10438_v23 = vsel %vm1670_vm9, %v10303_v9, -inf }
0x2529   : > { %10439 = vmax.xlane.f32.xlu0 %v10438_v23 }
0x252b   : > { %v18060_v57 = vpop.eup %18059 }
0x252c   : > { %v18062_v6 = vpop.eup %18061  ;;  %v9635_v43 = vsel %vm1674_vm8, %v18060_v57, 0.0 }
0x252d   : > { %10442 = vmax.xlane.f32.xlu0 %v10441_v41  ;;  %v9632_v35 = vsel %vm1670_vm9, %v18062_v6, 0.0 }
0x252e   : > { %v16818_v19 = vpop.f32.mrb[52].mxu0 }
0x252f   : > { %v10429_v55 = vpop.f32.mrb[53].mxu0  ;;  %v10447_v32 = vsel %vm1674_vm8, %v16818_v19, -inf }
0x2530   : > { %10448 = vmax.xlane.f32.xlu1 %v10447_v32  ;;  %v10444_v42 = vsel %vm1670_vm9, %v10429_v55, -inf }
0x2531   : > { %10445 = vmax.xlane.f32.xlu0 %v10444_v42 }
0x2534   : > { %9636 = vadd.xlane.f32.xlu1 %v9635_v43 }
0x2535   : > { %9633 = vadd.xlane.f32.xlu0 %v9632_v35 }
0x25b6   : > { %v10440_v48 = vpop.xlane.xlu0 %10439 }
0x25b7   : > { %v10450_v39 = vsub.f32 %v10303_v9, %v10440_v48 }
0x25b9   : > { %v10454_v60 = vmul.f32 1.442695, %v10450_v39 }
0x25ba   : > { %v10443_v63 = vpop.xlane.xlu0 %10442 }
0x25bb   : > { %18063 = vpow2.f32 %v10454_v60  ;;  %v10451_v26 = vsub.f32 %v16811_v54, %v10443_v63  ;;  %v21864_v60 = vmov 0.0  }
0x25bd   : > { %v10456_v59 = vmul.f32 1.442695, %v10451_v26  ;;  %v10449_v62 = vpop.xlane.xlu1 %10448 }
0x25be   : > { %v10453_v3 = vsub.f32 %v16818_v19, %v10449_v62  ;;  %v10446_v2 = vpop.xlane.xlu0 %10445 }
0x25bf   : > { %18065 = vpow2.f32 %v10456_v59  ;;  %v10452_v52 = vsub.f32 %v10429_v55, %v10446_v2 }
0x25c0   : > { %v10460_v1 = vmul.f32 1.442695, %v10453_v3 }
0x25c1   : > { %v10458_v51 = vmul.f32 1.442695, %v10452_v52  ;;  %v9637_v25 = vpop.xlane.xlu1 %9636 }
0x25c2   : > { %18067 = vpow2.f32 %v10460_v1  ;;  %v9634_v29 = vpop.xlane.xlu0 %9633 }
0x25c3   : > { %18069 = vpow2.f32 %v10458_v51 }
0x25c4   : > { %18071 = vrcp.f32 %v9637_v25 }
0x25c5   : > { %v18064_v23 = vpop.eup %18063  ;;  %18073 = vrcp.f32 %v9634_v29 }
0x25c6   : > { %v10462_v9 = vsel %vm1670_vm9, %v18064_v23, 0.0 }
0x25c7   : > { %10463 = vadd.xlane.f32.xlu0 %v10462_v9 }
0x25c9   : > { %v18066_v41 = vpop.eup %18065 }
0x25ca   : > { %v10465_v54 = vsel %vm1674_vm8, %v18066_v41, 0.0 }
0x25cb   : > { %10466 = vadd.xlane.f32.xlu1 %v10465_v54 }
0x25cc   : > { %v20889_v19 = vpop.eup %18067 }
0x25cd   : > { %v20891_v32 = vpop.eup %18069  ;;  %v10471_v55 = vsel %vm1674_vm8, %v20889_v19, 0.0 }
0x25ce   : > { %v18072_v42 = vpop.eup %18071  ;;  %v10468_v43 = vsel %vm1670_vm9, %v20891_v32, 0.0 }
0x25cf   : > { %v18074_v35 = vpop.eup %18073  ;;  %10472 = vadd.xlane.f32.xlu1 %v10471_v55  ;;  %10469 = vadd.xlane.f32.xlu0 %v10468_v43  ;;  %v9649_v39 = vmul.f32 %v18072_v42, %v18060_v57  ;;  %v8738_v57 = vld [vmem:[#allocation10 + $0x90] sm:$0xff] }
0x25d0   : > { %v9648_v48 = vmul.f32 %v18074_v35, %v18062_v6  ;;  %v8739_v6 = vld [vmem:[#allocation10 + $0x98] sm:$0xff] }
0x25d1   : > { %v17417_v63 = vpack.c.bf16 %v8739_v6, %v8738_v57 }
0x25d2   : > { %16769 = vmatprep.mubr.msk.f32.mxu1 %vm1670_vm9, %v9648_v48 }
0x25d3   : > { %16770 = vmatmul.mubr.msk.f32.vlgmr.msra.gmra.mrb[70].mxu1 %vm1670_vm9, %v9649_v39 }
0x25d4   : > { %16783 = vmatprep.mubr.msk.f32.mxu1 %vm18608_vm2, %v21864_v60  ;;  %17418 = vmatpush3.bf16.msra.mxu1 %v17417_v63 }
0x25d5   : > { %17419 = vmatprep.subr.bf16.mxu1 %v21863_v0 }
0x25e0   : > { %10893 = vrot.lane.b32.xlu1 %v20577_v56, %s18612_s28 }
0x25e4   : > { %10895 = vrot.lane.b32.xlu1 %v20582_v37, %s18612_s28 }
0x25e5   : > { %10891 = vrot.lane.b32.xlu0 %v20575_v16, %s18612_s28 }
0x25e8   : > { %10897 = vrot.lane.b32.xlu1 %v20584_v36, %s18612_s28 }
0x25e9   : > { %10899 = vrot.lane.b32.xlu0 %v20592_v24, %s18612_s28 }
0x25ec   : > { %11017 = vrot.lane.b32.xlu1 %v20594_v20, %s18612_s28 }
0x25ed   : > { %11019 = vrot.lane.b32.xlu0 %v20600_v28, %s18612_s28 }
0x25f0   : > { %11021 = vrot.lane.b32.xlu1 %v20602_v18, %s18612_s28 }
0x25f1   : > { %11023 = vrot.lane.b32.xlu0 %v20607_v33, %s18612_s28 }
0x25f4   : > { %11025 = vrot.lane.b32.xlu1 %v20609_v7, %s18612_s28 }
0x25f5   : > { %10906 = vrot.lane.b32.xlu0 %v20621_v17, %s18612_s28 }
0x25f8   : > { %10908 = vrot.lane.b32.xlu1 %v20657_v46, %s18612_s28 }
0x25f9   : > { %11032 = vrot.lane.b32.xlu0 %v20645_v15, %s18612_s28 }
0x25fc   : > { %11034 = vrot.lane.b32.xlu1 %v20675_v21, %s18612_s28  ;;  %s18497_s28 = sshll.u32 %s18618_s0, 4  ;;  %s18498_s28 = int_to_ptr.vmem [resolvable:$false] %s18497_s28 }
0x25fd   : > { %p18500_p6 = scmp.lt.s32.totalorder %s21735_s11, %s18498_s28 }
0x2654   : > { %v10464_v26 = vpop.xlane.xlu0 %10463 }
0x2655   : > { %18075 = vrcp.f32 %v10464_v26 }
0x2658   : > { %v10467_v59 = vpop.xlane.xlu1 %10466 }
0x2659   : > { %18077 = vrcp.f32 %v10467_v59 }
0x265c   : > { %v10473_v62 = vpop.xlane.xlu1 %10472  ;;  %v10470_v3 = vpop.xlane.xlu0 %10469 }
0x265d   : > { %18079 = vrcp.f32 %v10473_v62 }
0x265e   : > { %18081 = vrcp.f32 %v10470_v3 }
0x265f   : > { %v18076_v2 = vpop.eup %18075 }
0x2660   : > { %v10894_v52 = vpop.permute.xlu1 %10893  ;;  %v10892_v1 = vpop.permute.xlu0 %10891  ;;  %v10478_v51 = vmul.f32 %v18076_v2, %v18064_v23 }
0x2661   : > { %v10902_v29 = vrot.slane %v10894_v52, 2  ;;  %v10901_v9 = vrot.slane %v10892_v1, 2  ;;  %v11188_v43 = vrot.slane %v10894_v52, 4  ;;  %v11187_v35 = vrot.slane %v10892_v1, 4 }
0x2662   : > { %16823 = vmatprep.mubr.msk.f32.mxu0 %vm1670_vm9, %v10478_v51 }
0x2663   : > { %v18078_v25 = vpop.eup %18077  ;;  %v10910_v57 = vcombine.low %v10901_v9, %v10902_v29  ;;  %v11192_v3 = vcombine.low %v11187_v35, %v11188_v43 }
0x2664   : > { %v10896_v54 = vpop.permute.xlu1 %10895  ;;  %v10900_v55 = vpop.permute.xlu0 %10899  ;;  %v10479_v42 = vmul.f32 %v18078_v25, %v18066_v41 }
0x2665   : > { %v10903_v23 = vrot.slane %v10896_v54, 2  ;;  %v11189_v26 = vrot.slane %v10896_v54, 4  ;;  %v10905_v51 = vrot.slane %v10900_v55, 2  ;;  %v10918_v29 = vrot.slane %v10910_v57, %v19058_v5 }
0x2666   : > { %16824 = vmatmul.mubr.msk.f32.vlgmr.msra.gmra.mrb[54].mxu0 %vm1670_vm9, %v10479_v42 }
0x2667   : > { %v18080_v48 = vpop.eup %18079  ;;  %17445 = vmatpush3.bf16.msk.msra.mxu0 %vm19314_vm7, %v20850_v4  ;;  %v10933_v35 = vrot.slane %v10905_v51, %v19058_v5 }
0x2668   : > { %v18082_v39 = vpop.eup %18081  ;;  %v10898_v6 = vpop.permute.xlu1 %10897  ;;  %v10481_v41 = vmul.f32 %v18080_v48, %v20889_v19  ;;  %v11200_v19 = vrot.slane %v11192_v3, %v19058_v5 }
0x2669   : > { %v20935_v63 = vpop.permute.xlu0 %11019  ;;  %v10904_v59 = vrot.slane %v10898_v6, 2  ;;  %v11190_v62 = vrot.slane %v10898_v6, 4  ;;  %v10480_v2 = vmul.f32 %v18082_v39, %v20891_v32  ;;  %v11191_v32 = vrot.slane %v10900_v55, 4 }
0x266a   : > { %v11301_v48 = vrot.slane %v20935_v63, 4 }
0x266b   : > { %v10911_v52 = vcombine.low %v10903_v23, %v10904_v59  ;;  %v11193_v1 = vcombine.low %v11189_v26, %v11190_v62  ;;  %16830 = vmatprep.mubr.msk.f32.mxu0 %vm1670_vm9, %v10480_v2  ;;  %v11215_v59 = vrot.slane %v11191_v32, %v19058_v5  ;;  %v9913_v32 = vrot.slane %v20869_v14, %v19058_v5 }
0x266c   : > { %v20940_v4 = vpop.permute.xlu1 %11017  ;;  %16831 = vmatmul.mubr.msk.f32.vlgmr.msra.gmra.mrb[56].mxu0 %vm1670_vm9, %v10481_v41 }
0x266d   : > { %v20942_v25 = vpop.permute.xlu0 %11023  ;;  %v10925_v9 = vrot.slane %v10911_v52, %v19058_v5  ;;  %v11207_v54 = vrot.slane %v11193_v1, %v19058_v5  ;;  %v11300_v42 = vrot.slane %v20940_v4, 4 }
0x266e   : > { %v11303_v57 = vrot.slane %v20942_v25, 4 }
0x266f   : > { %v10926_v43 = vcombine.low %v10918_v29, %v10925_v9  ;;  %v11208_v6 = vcombine.low %v11200_v19, %v11207_v54  ;;  %v11305_v62 = vcombine.low %v11300_v42, %v11301_v48  ;;  %v9921_v42 = vcombine.high %v9913_v32, %v9913_v32 }
0x2670   : > { %v11022_v39 = vpop.permute.xlu1 %11021 }
0x2671   : > { %v10907_v23 = vpop.permute.xlu0 %10906  ;;  %v11302_v26 = vrot.slane %v11022_v39, 4  ;;  %v17449_v41 = vpack.c.bf16 %v10933_v35, %v10926_v43  ;;  %v17461_v2 = vpack.c.bf16 %v11215_v59, %v11208_v6  ;;  %v11313_v51 = vrot.slane %v11305_v62, %v19058_v5 }
0x2672   : > { %16850 = vmatprep.mubr.msk.f32.mxu0 %vm1445_vm3, %v10907_v23  ;;  %v9948_v35 = vcombine.low %v9921_v42, %v20874_v13  ;;  %v9308_v59 = vcombine.high %v20861_v61, %v20861_v61 }
0x2673   : > { %v11306_v55 = vcombine.low %v11302_v26, %v11303_v57  ;;  %17451 = vmatprep.subr.msk.bf16.mxu0 %vm19291_vm4, %v17449_v41 }
0x2674   : > { %v20957_v3 = vpop.permute.xlu1 %11025  ;;  %17454 = vmatpush3.bf16.xpose.msk.msra.mxu0 %vm19291_vm4, %v17449_v41 }
0x2675   : > { %v11320_v52 = vrot.slane %v11306_v55, %v19058_v5  ;;  %v11304_v1 = vrot.slane %v20957_v3, 4  ;;  %17463 = vmatprep.subr.msk.bf16.mxu0 %vm19314_vm7, %v17461_v2  ;;  %v9962_v55 = vrot.slane %v9948_v35, %v19058_v5 }
0x2677   : > { %v11328_v29 = vrot.slane %v11304_v1, %v19058_v5  ;;  %v11321_v9 = vcombine.low %v11313_v51, %v11320_v52  ;;  %v9322_v1 = vrot.slane %v9308_v59, %v19058_v5  ;;  %v11028_v59 = vrot.slane %v20935_v63, 2 }
0x2678   : > { %v10909_v54 = vpop.permute.xlu1 %10908 }
0x2679   : > { %v20968_v19 = vpack.c.bf16 %v11328_v29, %v11321_v9  ;;  %v8736_v29 = vld [vmem:[#allocation10 + $0x80] sm:$0xff]  ;;  %v8737_v9 = vld [vmem:[#allocation10 + $0x88] sm:$0xff]  ;;  %v9324_v35 = vcombine.high %v9322_v1, %v9322_v1 }
0x267b   : > { %16851 = vmatmul.mubr.msk.f32.vlgmr.msra.gmra.mrb[58].mxu0 %vm1445_vm3, %v10909_v54  ;;  %v9315_v54 = vrot.slane %v20861_v61, %v19058_v5  ;;  %v10059_v61 = vcombine.low %v9322_v1, %v9324_v35 }
0x267c   : > { %17466 = vmatpush3.bf16.msk.msra.mxu0 %vm19314_vm7, %v17461_v2 }
0x267d   : > { %17469 = vmatprep.subr.msk.bf16.mxu0 %vm19314_vm7, %v20968_v19  ;;  %v10073_v63 = vrot.slane %v10059_v61, %v19058_v5 }
0x26a6   : > { %v16771_v43 = vpop.f32.mrb[70].mxu1 }
0x26a7   : > { %v9905_v48 = vrot.slane %v16771_v43, %v19058_v5  ;;  %v9756_v23 = vpop.f32.mrb[71].mxu1 }
0x26a8   : > { %v9882_v6 = vcombine.high %v9756_v23, %v9756_v23  ;;  %v9889_v57 = vrot.slane %v9756_v23, %v19058_v5  ;;  %v11027_v23 = vrot.slane %v20940_v4, 2 }
0x26a9   : > { %v9947_v26 = vcombine.low %v9905_v48, %v9913_v32  ;;  %v11029_v32 = vrot.slane %v11022_v39, 2  ;;  %v17420_v48 = vpack.c.bf16 %v8737_v9, %v8736_v29 }
0x26aa   : > { %v9896_v62 = vrot.slane %v9882_v6, %v19058_v5  ;;  %v9897_v41 = vcombine.high %v9889_v57, %v9889_v57  ;;  %v11030_v6 = vrot.slane %v20942_v25, 2  ;;  %v11036_v39 = vcombine.low %v11027_v23, %v11028_v59 }
0x26ab   : > { %v9955_v14 = vrot.slane %v9947_v26, %v19058_v5  ;;  %v9323_v26 = vcombine.high %v9315_v54, %v9315_v54  ;;  %v11031_v25 = vrot.slane %v20957_v3, 2 }
0x26ac   : > { %v9898_v2 = vcombine.high %v9896_v62, %v9896_v62  ;;  %v9930_v52 = vcombine.low %v9889_v57, %v9897_v41 }
0x26ad   : > { %v9963_v13 = vcombine.low %v9955_v14, %v9962_v55  ;;  %v10058_v41 = vcombine.low %v9315_v54, %v9323_v26  ;;  %v11044_v55 = vrot.slane %v11036_v39, %v19058_v5  ;;  %v9971_v14 = vrot.slane %v20879_v34, %v19058_v5 }
0x26ae   : > { %v9931_v51 = vcombine.low %v9896_v62, %v9898_v2  ;;  %v9938_v42 = vrot.slane %v9930_v52, %v19058_v5  ;;  %v11037_v62 = vcombine.low %v11029_v32, %v11030_v6  ;;  %v8740_v2 = vld [vmem:[#allocation10 + $0xa0] sm:$0xff]  ;;  %v8741_v52 = vld [vmem:[#allocation10 + $0xa8] sm:$0xff]  ;;  %v10099_v34 = vrot.slane %v20757_v40, %v19058_v5 }
0x26af   : > { %v10066_v1 = vrot.slane %v10058_v41, %v19058_v5 }
0x26b0   : > { %v9945_v43 = vrot.slane %v9931_v51, %v19058_v5  ;;  %v11051_v4 = vrot.slane %v11037_v62, %v19058_v5  ;;  %v11059_v51 = vrot.slane %v11031_v25, %v19058_v5 }
0x26b1   : > { %v10074_v29 = vcombine.low %v10066_v1, %v10073_v63 }
0x26b2   : > { %v9946_v57 = vcombine.low %v9938_v42, %v9945_v43  ;;  %v11052_v3 = vcombine.low %v11044_v55, %v11051_v4 }
0x26b4   : > { %16784 = vmatmul.mubr.msk.f32.vlgmr.msra.gmra.mrb[72].mxu1 %vm1445_vm3, %v9946_v57  ;;  %v17455_v9 = vpack.c.bf16 %v11059_v51, %v11052_v3 }
0x26b5   : > { %16786 = vmatprep.mubr.msk.f32.mxu1 %vm18608_vm2, %v21864_v60  ;;  %17421 = vmatpush3.bf16.msra.mxu1 %v17420_v48 }
0x26b6   : > { %17446 = vmatprep.subr.bf16.mxu1 %v21863_v0 }
0x26b8   : > { %16787 = vmatmul.mubr.msk.f32.gmra.mrb[74].mxu1 %vm1445_vm3, %v9963_v13  ;;  %v17447_v13 = vpack.c.bf16 %v8741_v52, %v8740_v2 }
0x26b9   : > { %16789 = vmatprep.mubr.msk.f32.mxu1 %vm18608_vm2, %v21864_v60 }
0x26bc   : > { %16790 = vmatmul.mubr.msk.f32.gmra.mrb[76].mxu1 %vm1445_vm3, %v9971_v14 }
0x26bd   : > { %16796 = vmatprep.mubr.msk.f32.mxu1 %vm18608_vm2, %v21864_v60 }
0x26c0   : > { %16797 = vmatmul.mubr.msk.f32.vlgmr.msra.gmra.mrb[72].mxu1 %vm1445_vm3, %v10074_v29 }
0x26c1   : > { %17448 = vmatpush3.bf16.msra.mxu1 %v17447_v13  ;;  %16799 = vmatprep.mubr.msk.f32.mxu1 %vm18608_vm2, %v21864_v60 }
0x26c2   : > { %17457 = vmatprep.subr.msk.bf16.mxu1 %vm19291_vm4, %v17455_v9 }
0x26c4   : > { %16800 = vmatmul.mubr.msk.f32.gmra.mrb[74].mxu1 %vm1445_vm3, %v20865_v11 }
0x26c5   : > { %16802 = vmatprep.mubr.msk.f32.mxu1 %vm18608_vm2, %v21864_v60 }
0x26c8   : > { %16803 = vmatmul.mubr.msk.f32.gmra.mrb[76].mxu1 %vm1445_vm3, %v10099_v34  ;;  %v11033_v34 = vpop.permute.xlu0 %11032 }
0x26c9   : > { %16837 = vmatprep.mubr.msk.f32.mxu1 %vm18608_vm2, %v21864_v60 }
0x2739   : > { %v16825_v54 = vpop.f32.mrb[54].mxu0 }
0x273a   : > { %v10586_v32 = vpop.f32.mrb[55].mxu0  ;;  %v10735_v40 = vrot.slane %v16825_v54, %v19058_v5 }
0x273b   : > { %v10712_v42 = vcombine.high %v10586_v32, %v10586_v32  ;;  %v10719_v43 = vrot.slane %v10586_v32, %v19058_v5 }
0x273d   : > { %v10726_v48 = vrot.slane %v10712_v42, %v19058_v5  ;;  %v10727_v35 = vcombine.high %v10719_v43, %v10719_v43  ;;  %v11035_v42 = vpop.permute.xlu1 %11034 }
0x273f   : > { %v10728_v11 = vcombine.high %v10726_v48, %v10726_v48  ;;  %v10760_v23 = vcombine.low %v10719_v43, %v10727_v35  ;;  %v16832_v6 = vpop.f32.mrb[56].mxu0 }
0x2740   : > { %v10699_v26 = vpop.f32.mrb[57].mxu0  ;;  %v10759_v55 = vrot.slane %v16832_v6, %v19058_v5 }
0x2741   : > { %v10761_v57 = vcombine.low %v10726_v48, %v10728_v11  ;;  %v10736_v59 = vcombine.high %v10699_v26, %v10699_v26  ;;  %v10743_v62 = vrot.slane %v10699_v26, %v19058_v5  ;;  %v10768_v61 = vrot.slane %v10760_v23, %v19058_v5 }
0x2743   : > { %v10775_v39 = vrot.slane %v10761_v57, %v19058_v5  ;;  %v10750_v41 = vrot.slane %v10736_v59, %v19058_v5  ;;  %v10751_v4 = vcombine.high %v10743_v62, %v10743_v62  ;;  %v10777_v25 = vcombine.low %v10735_v40, %v10743_v62 }
0x2745   : > { %v10776_v63 = vcombine.low %v10768_v61, %v10775_v39  ;;  %v10752_v14 = vcombine.high %v10750_v41, %v10750_v41  ;;  %v10778_v2 = vcombine.low %v10751_v4, %v10750_v41  ;;  %v10785_v52 = vrot.slane %v10777_v25, %v19058_v5 }
0x2747   : > { %16838 = vmatmul.mubr.msk.f32.vlgmr.msra.gmra.mrb[72].mxu1 %vm1445_vm3, %v10776_v63  ;;  %v10792_v1 = vrot.slane %v10778_v2, %v19058_v5  ;;  %v10794_v51 = vcombine.low %v10752_v14, %v10759_v55 }
0x2748   : > { %17460 = vmatpush3.bf16.xpose.msk.msra.mxu1 %vm19291_vm4, %v17455_v9  ;;  %16840 = vmatprep.mubr.msk.f32.mxu1 %vm18608_vm2, %v21864_v60 }
0x2749   : > { %17473 = vmatprep.subr.bf16.mxu1 %v21863_v0  ;;  %v10793_v3 = vcombine.low %v10785_v52, %v10792_v1  ;;  %v10801_v13 = vrot.slane %v10794_v51, %v19058_v5 }
0x274b   : > { %16841 = vmatmul.mubr.msk.f32.gmra.mrb[74].mxu1 %vm1445_vm3, %v10793_v3 }
0x274c   : > { %16843 = vmatprep.mubr.msk.f32.mxu1 %vm18608_vm2, %v21864_v60 }
0x274e   : > { %v16852_v29 = vpop.f32.mrb[58].mxu0 }
0x274f   : > { %16844 = vmatmul.mubr.msk.f32.gmra.mrb[76].mxu1 %vm1445_vm3, %v10801_v13  ;;  %v11008_v54 = vpop.f32.mrb[59].mxu0  ;;  %v11146_v9 = vsel %vm1674_vm8, %v16852_v29, -inf }
0x2750   : > { %11147 = vmax.xlane.f32.xlu1 %v11146_v9  ;;  %16857 = vmatprep.mubr.msk.f32.mxu1 %vm1445_vm3, %v11033_v34  ;;  %v11143_v32 = vsel %vm1670_vm9, %v11008_v54, -inf }
0x2751   : > { %11144 = vmax.xlane.f32.xlu0 %v11143_v32 }
0x2753   : > { %16858 = vmatmul.mubr.msk.f32.vlgmr.msra.gmra.mrb[78].mxu1 %vm1445_vm3, %v11035_v42  ;;  %v8743_v42 = vld [vmem:[#allocation10 + $0xb8] sm:$0xff] }
0x2754   : > { %16878 = vmatprep.mubr.msk.f32.mxu1 %vm18608_vm2, %v21864_v60 }
0x27dd   : > { %v11148_v43 = vpop.xlane.xlu1 %11147 }
0x27de   : > { %v11156_v48 = vsub.f32 %v16852_v29, %v11148_v43  ;;  %v11145_v6 = vpop.xlane.xlu0 %11144 }
0x27df   : > { %v11155_v57 = vsub.f32 %v11008_v54, %v11145_v6 }
0x27e0   : > { %v11161_v35 = vmul.f32 1.442695, %v11156_v48 }
0x27e1   : > { %v11159_v26 = vmul.f32 1.442695, %v11155_v57 }
0x27e2   : > { %18083 = vpow2.f32 %v11161_v35 }
0x27e3   : > { %18085 = vpow2.f32 %v11159_v26 }
0x27ec   : > { %v18084_v11 = vpop.eup %18083 }
0x27ed   : > { %v11170_v23 = vsel %vm1674_vm8, %v18084_v11, 0.0  ;;  %v18086_v39 = vpop.eup %18085 }
0x27ee   : > { %11171 = vadd.xlane.f32.xlu1 %v11170_v23  ;;  %v11167_v41 = vsel %vm1670_vm9, %v18086_v39, 0.0 }
0x2826   : > { %v16859_v40 = vpop.f32.mrb[78].mxu1 }
0x2827   : > { %v11134_v59 = vpop.f32.mrb[79].mxu1  ;;  %v11152_v61 = vsel %vm1674_vm8, %v16859_v40, -inf }
0x2828   : > { %v11149_v62 = vsel %vm1670_vm9, %v11134_v59, -inf }
0x2829   : > { %11150 = vmax.xlane.f32.xlu0 %v11149_v62 }
0x282d   : > { %11153 = vmax.xlane.f32.xlu0 %v11152_v61 }
0x2831   : > { %11168 = vadd.xlane.f32.xlu0 %v11167_v41 }
0x287b   : > { %v11172_v14 = vpop.xlane.xlu1 %11171 }
0x28b6   : > { %v11151_v4 = vpop.xlane.xlu0 %11150 }
0x28b7   : > { %v11157_v25 = vsub.f32 %v11134_v59, %v11151_v4 }
0x28b9   : > { %v11163_v63 = vmul.f32 1.442695, %v11157_v25 }
0x28ba   : > { %v11154_v55 = vpop.xlane.xlu0 %11153 }
0x28bb   : > { %18087 = vpow2.f32 %v11163_v63  ;;  %v11158_v2 = vsub.f32 %v16859_v40, %v11154_v55 }
0x28bc   : > { %18089 = vrcp.f32 %v11172_v14 }
0x28bd   : > { %v11165_v52 = vmul.f32 1.442695, %v11158_v2 }
0x28be   : > { %v11169_v1 = vpop.xlane.xlu0 %11168 }
0x28bf   : > { %18091 = vpow2.f32 %v11165_v52 }
0x28c0   : > { %18093 = vrcp.f32 %v11169_v1 }
0x28c5   : > { %v18088_v51 = vpop.eup %18087 }
0x28c6   : > { %v11173_v3 = vsel %vm1670_vm9, %v18088_v51, 0.0  ;;  %v18090_v13 = vpop.eup %18089 }
0x28c7   : > { %11174 = vadd.xlane.f32.xlu0 %v11173_v3  ;;  %v11184_v32 = vmul.f32 %v18090_v13, %v18084_v11 }
0x28c9   : > { %v18092_v29 = vpop.eup %18091 }
0x28ca   : > { %v18094_v34 = vpop.eup %18093  ;;  %v11176_v54 = vsel %vm1674_vm8, %v18092_v29, 0.0 }
0x28cb   : > { %11177 = vadd.xlane.f32.xlu1 %v11176_v54  ;;  %v11183_v9 = vmul.f32 %v18094_v34, %v18086_v39 }
0x28cd   : > { %16864 = vmatprep.mubr.msk.f32.mxu0 %vm1670_vm9, %v11183_v9 }
0x28ce   : > { %16865 = vmatmul.mubr.msk.f32.vlgmr.msra.gmra.mrb[60].mxu0 %vm1670_vm9, %v11184_v32 }
0x28cf   : > { %17472 = vmatpush3.bf16.msk.msra.mxu0 %vm19314_vm7, %v20968_v19  ;;  %v8742_v19 = vld [vmem:[#allocation10 + $0xb0] sm:$0xff] }
0x28d0   : > { %v17474_v43 = vpack.c.bf16 %v8743_v42, %v8742_v19 }
0x28d2   : > { %17475 = vmatpush3.bf16.msra.mxu1 %v17474_v43 }
0x28dc   : > { %11598 = vrot.lane.b32.xlu1 %v20577_v56, %s18613_s22 }
0x28dd   : > { %11596 = vrot.lane.b32.xlu0 %v20575_v16, %s18613_s22 }
0x28e0   : > { %11600 = vrot.lane.b32.xlu1 %v20582_v37, %s18613_s22 }
0x28e1   : > { %11604 = vrot.lane.b32.xlu0 %v20592_v24, %s18613_s22 }
0x28e4   : > { %11602 = vrot.lane.b32.xlu1 %v20584_v36, %s18613_s22 }
0x28e5   : > { %11724 = vrot.lane.b32.xlu0 %v20600_v28, %s18613_s22 }
0x28e8   : > { %11722 = vrot.lane.b32.xlu1 %v20594_v20, %s18613_s22 }
0x28e9   : > { %11728 = vrot.lane.b32.xlu0 %v20607_v33, %s18613_s22 }
0x28ec   : > { %11726 = vrot.lane.b32.xlu1 %v20602_v18, %s18613_s22 }
0x28ed   : > { %11611 = vrot.lane.b32.xlu0 %v20621_v17, %s18613_s22 }
0x28f0   : > { %11730 = vrot.lane.b32.xlu1 %v20609_v7, %s18613_s22 }
0x28f1   : > { %11737 = vrot.lane.b32.xlu0 %v20645_v15, %s18613_s22 }
0x28f4   : > { %11613 = vrot.lane.b32.xlu1 %v20657_v46, %s18613_s22 }
0x28f8   : > { %11739 = vrot.lane.b32.xlu1 %v20675_v21, %s18613_s22  ;;  %s18499_s22 = scalar_lea.vmem %s18498_s28, 1024 }
0x28f9   : > { %p18501_p9 = scmp.lt.s32.totalorder %s18499_s22, %s18493_s12 }
0x28fb   : > { %p18502_p4 = por %p18501_p9, %p18500_p6 }
0x28fd   : > { %p18503_p3 = pnand %p18502_p4, %p18496_p8 }
0x2954   : > { %v11175_v48 = vpop.xlane.xlu0 %11174 }
0x2955   : > { %18095 = vrcp.f32 %v11175_v48 }
0x2958   : > { %v11178_v35 = vpop.xlane.xlu1 %11177  ;;  %v11597_v11 = vpop.permute.xlu0 %11596 }
0x2959   : > { %18097 = vrcp.f32 %v11178_v35  ;;  %v11606_v61 = vrot.slane %v11597_v11, 2  ;;  %v11892_v25 = vrot.slane %v11597_v11, 4 }
0x295c   : > { %v11599_v23 = vpop.permute.xlu1 %11598  ;;  %v11605_v6 = vpop.permute.xlu0 %11604 }
0x295d   : > { %v11607_v26 = vrot.slane %v11599_v23, 2  ;;  %v11893_v39 = vrot.slane %v11599_v23, 4  ;;  %v11896_v35 = vrot.slane %v11605_v6, 4 }
0x295f   : > { %v18096_v57 = vpop.eup %18095  ;;  %v11615_v63 = vcombine.low %v11606_v61, %v11607_v26  ;;  %v11897_v13 = vcombine.low %v11892_v25, %v11893_v39 }
0x2960   : > { %v11601_v40 = vpop.permute.xlu1 %11600  ;;  %v11725_v59 = vpop.permute.xlu0 %11724  ;;  %v11185_v62 = vmul.f32 %v18096_v57, %v18088_v51  ;;  %v11610_v51 = vrot.slane %v11605_v6, 2 }
0x2961   : > { %v11608_v2 = vrot.slane %v11601_v40, 2  ;;  %v11894_v52 = vrot.slane %v11601_v40, 4  ;;  %v11623_v19 = vrot.slane %v11615_v63, %v19058_v5  ;;  %v11905_v48 = vrot.slane %v11897_v13, %v19058_v5 }
0x2962   : > { %16871 = vmatprep.mubr.msk.f32.mxu0 %vm1670_vm9, %v11185_v62  ;;  %v11733_v11 = vrot.slane %v11725_v59, 2  ;;  %v11638_v26 = vrot.slane %v11610_v51, %v19058_v5  ;;  %v12006_v40 = vrot.slane %v11725_v59, 4 }
0x2963   : > { %v18098_v41 = vpop.eup %18097 }
0x2964   : > { %v11186_v4 = vmul.f32 %v18098_v41, %v18092_v29  ;;  %v11603_v55 = vpop.permute.xlu1 %11602  ;;  %v11729_v14 = vpop.permute.xlu0 %11728 }
0x2965   : > { %v11609_v1 = vrot.slane %v11603_v55, 2  ;;  %v11895_v3 = vrot.slane %v11603_v55, 4  ;;  %v11735_v41 = vrot.slane %v11729_v14, 2  ;;  %v11920_v55 = vrot.slane %v11896_v35, %v19058_v5 }
0x2966   : > { %16872 = vmatmul.mubr.msk.f32.vlgmr.msra.gmra.mrb[62].mxu0 %vm1670_vm9, %v11186_v4  ;;  %v12008_v4 = vrot.slane %v11729_v14, 4 }
0x2967   : > { %v11616_v34 = vcombine.low %v11608_v2, %v11609_v1  ;;  %v11898_v54 = vcombine.low %v11894_v52, %v11895_v3 }
0x2968   : > { %v11723_v9 = vpop.permute.xlu1 %11722  ;;  %v11612_v32 = vpop.permute.xlu0 %11611 }
0x2969   : > { %v11630_v29 = vrot.slane %v11616_v34, %v19058_v5  ;;  %v11912_v42 = vrot.slane %v11898_v54, %v19058_v5  ;;  %v11732_v43 = vrot.slane %v11723_v9, 2  ;;  %16891 = vmatprep.mubr.msk.f32.mxu0 %vm1445_vm3, %v11612_v32  ;;  %v12005_v23 = vrot.slane %v11723_v9, 4 }
0x296b   : > { %v11631_v57 = vcombine.low %v11623_v19, %v11630_v29  ;;  %v11913_v62 = vcombine.low %v11905_v48, %v11912_v42  ;;  %v11741_v61 = vcombine.low %v11732_v43, %v11733_v11  ;;  %v12010_v2 = vcombine.low %v12005_v23, %v12006_v40 }
0x296c   : > { %v11727_v39 = vpop.permute.xlu1 %11726 }
0x296d   : > { %v11734_v25 = vrot.slane %v11727_v39, 2  ;;  %v12007_v63 = vrot.slane %v11727_v39, 4  ;;  %v17476_v52 = vpack.c.bf16 %v11638_v26, %v11631_v57  ;;  %v11749_v6 = vrot.slane %v11741_v61, %v19058_v5 }
0x296e   : > { %v17488_v59 = vpack.c.bf16 %v11920_v55, %v11913_v62  ;;  %v12018_v9 = vrot.slane %v12010_v2, %v19058_v5 }
0x296f   : > { %v11742_v1 = vcombine.low %v11734_v25, %v11735_v41  ;;  %v12011_v3 = vcombine.low %v12007_v63, %v12008_v4  ;;  %17478 = vmatprep.subr.msk.bf16.mxu0 %vm19291_vm4, %v17476_v52 }
0x2970   : > { %v11731_v13 = vpop.permute.xlu1 %11730  ;;  %17481 = vmatpush3.bf16.xpose.msk.msra.mxu0 %vm19291_vm4, %v17476_v52 }
0x2971   : > { %v11756_v34 = vrot.slane %v11742_v1, %v19058_v5  ;;  %v12025_v54 = vrot.slane %v12011_v3, %v19058_v5  ;;  %v11736_v14 = vrot.slane %v11731_v13, 2  ;;  %v12009_v51 = vrot.slane %v11731_v13, 4  ;;  %17490 = vmatprep.subr.msk.bf16.mxu0 %vm19314_vm7, %v17488_v59 }
0x2973   : > { %v11757_v32 = vcombine.low %v11749_v6, %v11756_v34  ;;  %v11764_v19 = vrot.slane %v11736_v14, %v19058_v5  ;;  %v12026_v29 = vcombine.low %v12018_v9, %v12025_v54  ;;  %v12033_v42 = vrot.slane %v12009_v51, %v19058_v5 }
0x2974   : > { %v11614_v48 = vpop.permute.xlu1 %11613 }
0x2975   : > { %v17482_v43 = vpack.c.bf16 %v11764_v19, %v11757_v32  ;;  %v21114_v35 = vpack.c.bf16 %v12033_v42, %v12026_v29  ;;  %v11738_v42 = vpop.permute.xlu0 %11737 }
0x2977   : > { %17484 = vmatprep.subr.msk.bf16.mxu1 %vm19291_vm4, %v17482_v43  ;;  %16892 = vmatmul.mubr.msk.f32.vlgmr.msra.gmra.mrb[64].mxu0 %vm1445_vm3, %v11614_v48 }
0x2978   : > { %17493 = vmatpush3.bf16.msk.msra.mxu0 %vm19314_vm7, %v17488_v59  ;;  %v11740_v48 = vpop.permute.xlu1 %11739 }
0x2979   : > { %17496 = vmatprep.subr.msk.bf16.mxu0 %vm19314_vm7, %v21114_v35 }
0x29a1   : > { %v16866_v11 = vpop.f32.mrb[60].mxu0 }
0x29a2   : > { %v11291_v23 = vpop.f32.mrb[61].mxu0  ;;  %v11440_v52 = vrot.slane %v16866_v11, %v19058_v5 }
0x29a3   : > { %v11417_v57 = vcombine.high %v11291_v23, %v11291_v23  ;;  %v11424_v26 = vrot.slane %v11291_v23, %v19058_v5 }
0x29a5   : > { %v11431_v40 = vrot.slane %v11417_v57, %v19058_v5  ;;  %v11432_v62 = vcombine.high %v11424_v26, %v11424_v26 }
0x29a7   : > { %v11433_v61 = vcombine.high %v11431_v40, %v11431_v40  ;;  %v11465_v39 = vcombine.low %v11424_v26, %v11432_v62 }
0x29a9   : > { %v11466_v41 = vcombine.low %v11431_v40, %v11433_v61  ;;  %v11473_v4 = vrot.slane %v11465_v39, %v19058_v5 }
0x29ab   : > { %v11480_v25 = vrot.slane %v11466_v41, %v19058_v5 }
0x29ad   : > { %v11481_v63 = vcombine.low %v11473_v4, %v11480_v25 }
0x29af   : > { %16879 = vmatmul.mubr.msk.f32.vlgmr.msra.gmra.mrb[72].mxu1 %vm1445_vm3, %v11481_v63 }
0x29b0   : > { %17487 = vmatpush3.bf16.xpose.msk.msra.mxu1 %vm19291_vm4, %v17482_v43  ;;  %16881 = vmatprep.mubr.msk.f32.mxu1 %vm18608_vm2, %v21864_v60 }
0x29b1   : > { %17500 = vmatprep.subr.bf16.mxu1 %v21863_v0 }
0x2a39   : > { %v16873_v55 = vpop.f32.mrb[62].mxu0 }
0x2a3a   : > { %v11404_v2 = vpop.f32.mrb[63].mxu0  ;;  %v11464_v34 = vrot.slane %v16873_v55, %v19058_v5 }
0x2a3b   : > { %v11441_v1 = vcombine.high %v11404_v2, %v11404_v2  ;;  %v11448_v3 = vrot.slane %v11404_v2, %v19058_v5 }
0x2a3d   : > { %v11455_v6 = vrot.slane %v11441_v1, %v19058_v5  ;;  %v11456_v13 = vcombine.high %v11448_v3, %v11448_v3  ;;  %v11482_v59 = vcombine.low %v11440_v52, %v11448_v3 }
0x2a3f   : > { %v11457_v54 = vcombine.high %v11455_v6, %v11455_v6  ;;  %v11483_v14 = vcombine.low %v11456_v13, %v11455_v6  ;;  %v11490_v51 = vrot.slane %v11482_v59, %v19058_v5 }
0x2a41   : > { %v11497_v9 = vrot.slane %v11483_v14, %v19058_v5  ;;  %v11499_v32 = vcombine.low %v11457_v54, %v11464_v34 }
0x2a43   : > { %v11498_v19 = vcombine.low %v11490_v51, %v11497_v9  ;;  %v11506_v29 = vrot.slane %v11499_v32, %v19058_v5 }
0x2a45   : > { %16882 = vmatmul.mubr.msk.f32.gmra.mrb[74].mxu1 %vm1445_vm3, %v11498_v19 }
0x2a46   : > { %16884 = vmatprep.mubr.msk.f32.mxu1 %vm18608_vm2, %v21864_v60 }
0x2a49   : > { %16885 = vmatmul.mubr.msk.f32.gmra.mrb[76].mxu1 %vm1445_vm3, %v11506_v29 }
0x2a4a   : > { %16898 = vmatprep.mubr.msk.f32.mxu1 %vm1445_vm3, %v11738_v42  ;;  %v16893_v43 = vpop.f32.mrb[64].mxu0 }
0x2a4b   : > { %v11713_v11 = vpop.f32.mrb[65].mxu0  ;;  %v11851_v23 = vsel %vm1674_vm8, %v16893_v43, -inf }
0x2a4c   : > { %11852 = vmax.xlane.f32.xlu1 %v11851_v23  ;;  %v11848_v57 = vsel %vm1670_vm9, %v11713_v11, -inf }
0x2a4d   : > { %16899 = vmatmul.mubr.msk.f32.vlgmr.msra.gmra.mrb[80].mxu1 %vm1445_vm3, %v11740_v48  ;;  %11849 = vmax.xlane.f32.xlu0 %v11848_v57  ;;  %v8745_v57 = vld [vmem:[#allocation10 + $0xc8] sm:$0xff] }
0x2a4e   : > { %16919 = vmatprep.mubr.msk.f32.mxu1 %vm18608_vm2, %v21864_v60 }
0x2ad9   : > { %v11853_v26 = vpop.xlane.xlu1 %11852 }
0x2ada   : > { %v11861_v40 = vsub.f32 %v16893_v43, %v11853_v26  ;;  %v11850_v41 = vpop.xlane.xlu0 %11849 }
0x2adb   : > { %v11860_v4 = vsub.f32 %v11713_v11, %v11850_v41 }
0x2adc   : > { %v11866_v62 = vmul.f32 1.442695, %v11861_v40 }
0x2add   : > { %v11864_v25 = vmul.f32 1.442695, %v11860_v4 }
0x2ade   : > { %18099 = vpow2.f32 %v11866_v62 }
0x2adf   : > { %18101 = vpow2.f32 %v11864_v25 }
0x2ae8   : > { %v18100_v61 = vpop.eup %18099 }
0x2ae9   : > { %v11875_v39 = vsel %vm1674_vm8, %v18100_v61, 0.0  ;;  %v18102_v1 = vpop.eup %18101 }
0x2aea   : > { %11876 = vadd.xlane.f32.xlu1 %v11875_v39  ;;  %v11872_v3 = vsel %vm1670_vm9, %v18102_v1, 0.0 }
0x2b20   : > { %v16900_v63 = vpop.f32.mrb[80].mxu1 }
0x2b21   : > { %v11839_v55 = vpop.f32.mrb[81].mxu1  ;;  %v11857_v52 = vsel %vm1674_vm8, %v16900_v63, -inf }
0x2b22   : > { %v11854_v2 = vsel %vm1670_vm9, %v11839_v55, -inf }
0x2b23   : > { %11855 = vmax.xlane.f32.xlu0 %v11854_v2 }
0x2b27   : > { %11858 = vmax.xlane.f32.xlu0 %v11857_v52 }
0x2b2b   : > { %11873 = vadd.xlane.f32.xlu0 %v11872_v3 }
0x2b77   : > { %v11877_v54 = vpop.xlane.xlu1 %11876 }
0x2bb0   : > { %v11856_v6 = vpop.xlane.xlu0 %11855 }
0x2bb1   : > { %v11862_v13 = vsub.f32 %v11839_v55, %v11856_v6 }
0x2bb3   : > { %v11868_v59 = vmul.f32 1.442695, %v11862_v13 }
0x2bb4   : > { %v11859_v34 = vpop.xlane.xlu0 %11858 }
0x2bb5   : > { %18103 = vpow2.f32 %v11868_v59  ;;  %v11863_v14 = vsub.f32 %v16900_v63, %v11859_v34 }
0x2bb6   : > { %18105 = vrcp.f32 %v11877_v54 }
0x2bb7   : > { %v11870_v51 = vmul.f32 1.442695, %v11863_v14 }
0x2bb8   : > { %v11874_v9 = vpop.xlane.xlu0 %11873 }
0x2bb9   : > { %18107 = vpow2.f32 %v11870_v51 }
0x2bba   : > { %18109 = vrcp.f32 %v11874_v9 }
0x2bbf   : > { %v18104_v32 = vpop.eup %18103 }
0x2bc0   : > { %v11878_v19 = vsel %vm1670_vm9, %v18104_v32, 0.0  ;;  %v18106_v29 = vpop.eup %18105 }
0x2bc1   : > { %11879 = vadd.xlane.f32.xlu0 %v11878_v19  ;;  %v11889_v23 = vmul.f32 %v18106_v29, %v18100_v61 }
0x2bc3   : > { %v18108_v42 = vpop.eup %18107 }
0x2bc4   : > { %v18110_v43 = vpop.eup %18109  ;;  %v11881_v48 = vsel %vm1674_vm8, %v18108_v42, 0.0 }
0x2bc5   : > { %11882 = vadd.xlane.f32.xlu1 %v11881_v48  ;;  %v11888_v11 = vmul.f32 %v18110_v43, %v18102_v1 }
0x2bc7   : > { %16905 = vmatprep.mubr.msk.f32.mxu0 %vm1670_vm9, %v11888_v11 }
0x2bc8   : > { %16906 = vmatmul.mubr.msk.f32.vlgmr.msra.gmra.mrb[66].mxu0 %vm1670_vm9, %v11889_v23 }
0x2bc9   : > { %17499 = vmatpush3.bf16.msk.msra.mxu0 %vm19314_vm7, %v21114_v35  ;;  %v8744_v35 = vld [vmem:[#allocation10 + $0xc0] sm:$0xff] }
0x2bca   : > { %v17501_v26 = vpack.c.bf16 %v8745_v57, %v8744_v35 }
0x2bcc   : > { %17502 = vmatpush3.bf16.msra.mxu1 %v17501_v26 }
0x2bd6   : > { %12303 = vrot.lane.b32.xlu1 %v20577_v56, %s18614_s3 }
0x2bd7   : > { %12301 = vrot.lane.b32.xlu0 %v20575_v16, %s18614_s3 }
0x2bda   : > { %12305 = vrot.lane.b32.xlu1 %v20582_v37, %s18614_s3 }
0x2bdb   : > { %12309 = vrot.lane.b32.xlu0 %v20592_v24, %s18614_s3 }
0x2bde   : > { %12307 = vrot.lane.b32.xlu1 %v20584_v36, %s18614_s3 }
0x2bdf   : > { %12429 = vrot.lane.b32.xlu0 %v20600_v28, %s18614_s3 }
0x2be2   : > { %12427 = vrot.lane.b32.xlu1 %v20594_v20, %s18614_s3 }
0x2be3   : > { %12433 = vrot.lane.b32.xlu0 %v20607_v33, %s18614_s3 }
0x2be6   : > { %12431 = vrot.lane.b32.xlu1 %v20602_v18, %s18614_s3 }
0x2be7   : > { %12316 = vrot.lane.b32.xlu0 %v20621_v17, %s18614_s3 }
0x2bea   : > { %12435 = vrot.lane.b32.xlu1 %v20609_v7, %s18614_s3 }
0x2beb   : > { %12442 = vrot.lane.b32.xlu0 %v20645_v15, %s18614_s3 }
0x2bee   : > { %12318 = vrot.lane.b32.xlu1 %v20657_v46, %s18614_s3 }
0x2bf2   : > { %12444 = vrot.lane.b32.xlu1 %v20675_v21, %s18614_s3 }
0x2c4e   : > { %v11880_v40 = vpop.xlane.xlu0 %11879 }
0x2c4f   : > { %18111 = vrcp.f32 %v11880_v40 }
0x2c52   : > { %v11883_v62 = vpop.xlane.xlu1 %11882  ;;  %v12302_v61 = vpop.permute.xlu0 %12301 }
0x2c53   : > { %18113 = vrcp.f32 %v11883_v62  ;;  %v12311_v52 = vrot.slane %v12302_v61, 2  ;;  %v12597_v13 = vrot.slane %v12302_v61, 4 }
0x2c56   : > { %v12304_v39 = vpop.permute.xlu1 %12303  ;;  %v12310_v41 = vpop.permute.xlu0 %12309 }
0x2c57   : > { %v12312_v25 = vrot.slane %v12304_v39, 2  ;;  %v12598_v1 = vrot.slane %v12304_v39, 4  ;;  %v12601_v62 = vrot.slane %v12310_v41, 4 }
0x2c59   : > { %v18112_v4 = vpop.eup %18111  ;;  %v12320_v59 = vcombine.low %v12311_v52, %v12312_v25  ;;  %v12602_v29 = vcombine.low %v12597_v13, %v12598_v1 }
0x2c5a   : > { %v12306_v63 = vpop.permute.xlu1 %12305  ;;  %v12430_v55 = vpop.permute.xlu0 %12429  ;;  %v11890_v2 = vmul.f32 %v18112_v4, %v18104_v32  ;;  %v12315_v32 = vrot.slane %v12310_v41, 2 }
0x2c5b   : > { %v12313_v14 = vrot.slane %v12306_v63, 2  ;;  %v12599_v51 = vrot.slane %v12306_v63, 4  ;;  %v12328_v35 = vrot.slane %v12320_v59, %v19058_v5  ;;  %v12610_v40 = vrot.slane %v12602_v29, %v19058_v5 }
0x2c5c   : > { %16912 = vmatprep.mubr.msk.f32.mxu0 %vm1670_vm9, %v11890_v2  ;;  %v12438_v61 = vrot.slane %v12430_v55, 2  ;;  %v12343_v25 = vrot.slane %v12315_v32, %v19058_v5  ;;  %v12711_v63 = vrot.slane %v12430_v55, 4 }
0x2c5d   : > { %v18114_v3 = vpop.eup %18113 }
0x2c5e   : > { %v11891_v6 = vmul.f32 %v18114_v3, %v18108_v42  ;;  %v12308_v34 = vpop.permute.xlu1 %12307  ;;  %v12434_v54 = vpop.permute.xlu0 %12433 }
0x2c5f   : > { %v12314_v9 = vrot.slane %v12308_v34, 2  ;;  %v12600_v19 = vrot.slane %v12308_v34, 4  ;;  %v12440_v3 = vrot.slane %v12434_v54, 2  ;;  %v12625_v34 = vrot.slane %v12601_v62, %v19058_v5 }
0x2c60   : > { %16913 = vmatmul.mubr.msk.f32.vlgmr.msra.gmra.mrb[68].mxu0 %vm1670_vm9, %v11891_v6  ;;  %v12713_v6 = vrot.slane %v12434_v54, 4 }
0x2c61   : > { %v12321_v43 = vcombine.low %v12313_v14, %v12314_v9  ;;  %v12603_v48 = vcombine.low %v12599_v51, %v12600_v19 }
0x2c62   : > { %v12428_v11 = vpop.permute.xlu1 %12427  ;;  %v12317_v23 = vpop.permute.xlu0 %12316 }
0x2c63   : > { %v12335_v42 = vrot.slane %v12321_v43, %v19058_v5  ;;  %v12617_v57 = vrot.slane %v12603_v48, %v19058_v5  ;;  %v12437_v26 = vrot.slane %v12428_v11, 2  ;;  %16932 = vmatprep.mubr.msk.f32.mxu0 %vm1445_vm3, %v12317_v23  ;;  %v12710_v39 = vrot.slane %v12428_v11, 4 }
0x2c65   : > { %v12336_v4 = vcombine.low %v12328_v35, %v12335_v42  ;;  %v12618_v2 = vcombine.low %v12610_v40, %v12617_v57  ;;  %v12446_v52 = vcombine.low %v12437_v26, %v12438_v61  ;;  %v12715_v14 = vcombine.low %v12710_v39, %v12711_v63 }
0x2c66   : > { %v12432_v1 = vpop.permute.xlu1 %12431 }
0x2c67   : > { %v12439_v13 = vrot.slane %v12432_v1, 2  ;;  %v12712_v59 = vrot.slane %v12432_v1, 4  ;;  %v17503_v51 = vpack.c.bf16 %v12343_v25, %v12336_v4  ;;  %v12454_v41 = vrot.slane %v12446_v52, %v19058_v5 }
0x2c68   : > { %v17515_v55 = vpack.c.bf16 %v12625_v34, %v12618_v2  ;;  %v12723_v11 = vrot.slane %v12715_v14, %v19058_v5 }
0x2c69   : > { %v12447_v9 = vcombine.low %v12439_v13, %v12440_v3  ;;  %v12716_v19 = vcombine.low %v12712_v59, %v12713_v6  ;;  %17505 = vmatprep.subr.msk.bf16.mxu0 %vm19291_vm4, %v17503_v51 }
0x2c6a   : > { %v12436_v29 = vpop.permute.xlu1 %12435  ;;  %17508 = vmatpush3.bf16.xpose.msk.msra.mxu0 %vm19291_vm4, %v17503_v51 }
0x2c6b   : > { %v12461_v43 = vrot.slane %v12447_v9, %v19058_v5  ;;  %v12730_v48 = vrot.slane %v12716_v19, %v19058_v5  ;;  %v12441_v54 = vrot.slane %v12436_v29, 2  ;;  %v12714_v32 = vrot.slane %v12436_v29, 4  ;;  %17517 = vmatprep.subr.msk.bf16.mxu0 %vm19314_vm7, %v17515_v55 }
0x2c6d   : > { %v12462_v23 = vcombine.low %v12454_v41, %v12461_v43  ;;  %v12469_v35 = vrot.slane %v12441_v54, %v19058_v5  ;;  %v12731_v42 = vcombine.low %v12723_v11, %v12730_v48  ;;  %v12738_v57 = vrot.slane %v12714_v32, %v19058_v5 }
0x2c6e   : > { %v12319_v40 = vpop.permute.xlu1 %12318 }
0x2c6f   : > { %v17509_v26 = vpack.c.bf16 %v12469_v35, %v12462_v23  ;;  %v21211_v62 = vpack.c.bf16 %v12738_v57, %v12731_v42  ;;  %v12443_v57 = vpop.permute.xlu0 %12442 }
0x2c71   : > { %17511 = vmatprep.subr.msk.bf16.mxu1 %vm19291_vm4, %v17509_v26  ;;  %16933 = vmatmul.mubr.msk.f32.vlgmr.msra.gmra.mrb[70].mxu0 %vm1445_vm3, %v12319_v40 }
0x2c72   : > { %17520 = vmatpush3.bf16.msk.msra.mxu0 %vm19314_vm7, %v17515_v55  ;;  %v12445_v40 = vpop.permute.xlu1 %12444 }
0x2c73   : > { %17523 = vmatprep.subr.msk.bf16.mxu0 %vm19314_vm7, %v21211_v62 }
0x2c9b   : > { %v16907_v61 = vpop.f32.mrb[66].mxu0 }
0x2c9c   : > { %v11996_v39 = vpop.f32.mrb[67].mxu0  ;;  %v12145_v51 = vrot.slane %v16907_v61, %v19058_v5 }
0x2c9d   : > { %v12122_v4 = vcombine.high %v11996_v39, %v11996_v39  ;;  %v12129_v25 = vrot.slane %v11996_v39, %v19058_v5 }
0x2c9f   : > { %v12136_v63 = vrot.slane %v12122_v4, %v19058_v5  ;;  %v12137_v2 = vcombine.high %v12129_v25, %v12129_v25 }
0x2ca1   : > { %v12138_v52 = vcombine.high %v12136_v63, %v12136_v63  ;;  %v12170_v1 = vcombine.low %v12129_v25, %v12137_v2 }
0x2ca3   : > { %v12171_v3 = vcombine.low %v12136_v63, %v12138_v52  ;;  %v12178_v6 = vrot.slane %v12170_v1, %v19058_v5 }
0x2ca5   : > { %v12185_v13 = vrot.slane %v12171_v3, %v19058_v5 }
0x2ca7   : > { %v12186_v59 = vcombine.low %v12178_v6, %v12185_v13 }
0x2ca9   : > { %16920 = vmatmul.mubr.msk.f32.vlgmr.msra.gmra.mrb[72].mxu1 %vm1445_vm3, %v12186_v59 }
0x2caa   : > { %17514 = vmatpush3.bf16.xpose.msk.msra.mxu1 %vm19291_vm4, %v17509_v26  ;;  %16922 = vmatprep.mubr.msk.f32.mxu1 %vm18608_vm2, %v21864_v60 }
0x2cab   : > { %17527 = vmatprep.subr.bf16.mxu1 %v21863_v0 }
0x2d33   : > { %v16914_v34 = vpop.f32.mrb[68].mxu0 }
0x2d34   : > { %v12109_v14 = vpop.f32.mrb[69].mxu0  ;;  %v12169_v43 = vrot.slane %v16914_v34, %v19058_v5 }
0x2d35   : > { %v12146_v9 = vcombine.high %v12109_v14, %v12109_v14  ;;  %v12153_v19 = vrot.slane %v12109_v14, %v19058_v5 }
0x2d37   : > { %v12160_v41 = vrot.slane %v12146_v9, %v19058_v5  ;;  %v12161_v29 = vcombine.high %v12153_v19, %v12153_v19  ;;  %v12187_v55 = vcombine.low %v12145_v51, %v12153_v19 }
0x2d39   : > { %v12162_v48 = vcombine.high %v12160_v41, %v12160_v41  ;;  %v12188_v54 = vcombine.low %v12161_v29, %v12160_v41  ;;  %v12195_v32 = vrot.slane %v12187_v55, %v19058_v5 }
0x2d3b   : > { %v12202_v11 = vrot.slane %v12188_v54, %v19058_v5  ;;  %v12204_v23 = vcombine.low %v12162_v48, %v12169_v43 }
0x2d3d   : > { %v12203_v35 = vcombine.low %v12195_v32, %v12202_v11  ;;  %v12211_v42 = vrot.slane %v12204_v23, %v19058_v5 }
0x2d3f   : > { %16923 = vmatmul.mubr.msk.f32.gmra.mrb[74].mxu1 %vm1445_vm3, %v12203_v35 }
0x2d40   : > { %16925 = vmatprep.mubr.msk.f32.mxu1 %vm18608_vm2, %v21864_v60 }
0x2d43   : > { %16926 = vmatmul.mubr.msk.f32.gmra.mrb[76].mxu1 %vm1445_vm3, %v12211_v42 }
0x2d44   : > { %16939 = vmatprep.mubr.msk.f32.mxu1 %vm1445_vm3, %v12443_v57  ;;  %v16934_v26 = vpop.f32.mrb[70].mxu0 }
0x2d45   : > { %v12418_v61 = vpop.f32.mrb[71].mxu0  ;;  %v12556_v39 = vsel %vm1674_vm8, %v16934_v26, -inf }
0x2d46   : > { %12557 = vmax.xlane.f32.xlu1 %v12556_v39  ;;  %v12553_v4 = vsel %vm1670_vm9, %v12418_v61, -inf }
0x2d47   : > { %16940 = vmatmul.mubr.msk.f32.vlgmr.msra.gmra.mrb[82].mxu1 %vm1445_vm3, %v12445_v40  ;;  %12554 = vmax.xlane.f32.xlu0 %v12553_v4  ;;  %v8747_v4 = vld [vmem:[#allocation10 + $0xd8] sm:$0xff] }
0x2d48   : > { %16960 = vmatprep.mubr.msk.f32.mxu1 %vm18608_vm2, %v21864_v60 }
0x2dd3   : > { %v12558_v25 = vpop.xlane.xlu1 %12557 }
0x2dd4   : > { %v12566_v63 = vsub.f32 %v16934_v26, %v12558_v25  ;;  %v12555_v3 = vpop.xlane.xlu0 %12554 }
0x2dd5   : > { %v12565_v6 = vsub.f32 %v12418_v61, %v12555_v3 }
0x2dd6   : > { %v12571_v2 = vmul.f32 1.442695, %v12566_v63 }
0x2dd7   : > { %v12569_v13 = vmul.f32 1.442695, %v12565_v6 }
0x2dd8   : > { %18115 = vpow2.f32 %v12571_v2 }
0x2dd9   : > { %18117 = vpow2.f32 %v12569_v13 }
0x2de2   : > { %v18116_v52 = vpop.eup %18115 }
0x2de3   : > { %v12580_v1 = vsel %vm1674_vm8, %v18116_v52, 0.0  ;;  %v18118_v9 = vpop.eup %18117 }
0x2de4   : > { %12581 = vadd.xlane.f32.xlu1 %v12580_v1  ;;  %v12577_v19 = vsel %vm1670_vm9, %v18118_v9, 0.0 }
0x2e1a   : > { %v16941_v59 = vpop.f32.mrb[82].mxu1 }
0x2e1b   : > { %v12544_v34 = vpop.f32.mrb[83].mxu1  ;;  %v12562_v51 = vsel %vm1674_vm8, %v16941_v59, -inf }
0x2e1c   : > { %v12559_v14 = vsel %vm1670_vm9, %v12544_v34, -inf }
0x2e1d   : > { %12560 = vmax.xlane.f32.xlu0 %v12559_v14 }
0x2e21   : > { %12563 = vmax.xlane.f32.xlu0 %v12562_v51 }
0x2e25   : > { %12578 = vadd.xlane.f32.xlu0 %v12577_v19 }
0x2e71   : > { %v12582_v48 = vpop.xlane.xlu1 %12581 }
0x2eaa   : > { %v12561_v41 = vpop.xlane.xlu0 %12560 }
0x2eab   : > { %v12567_v29 = vsub.f32 %v12544_v34, %v12561_v41 }
0x2ead   : > { %v12573_v55 = vmul.f32 1.442695, %v12567_v29 }
0x2eae   : > { %v12564_v43 = vpop.xlane.xlu0 %12563 }
0x2eaf   : > { %18119 = vpow2.f32 %v12573_v55  ;;  %v12568_v54 = vsub.f32 %v16941_v59, %v12564_v43 }
0x2eb0   : > { %18121 = vrcp.f32 %v12582_v48 }
0x2eb1   : > { %v12575_v32 = vmul.f32 1.442695, %v12568_v54 }
0x2eb2   : > { %v12579_v11 = vpop.xlane.xlu0 %12578 }
0x2eb3   : > { %18123 = vpow2.f32 %v12575_v32 }
0x2eb4   : > { %18125 = vrcp.f32 %v12579_v11 }
0x2eb9   : > { %v18120_v23 = vpop.eup %18119 }
0x2eba   : > { %v12583_v35 = vsel %vm1670_vm9, %v18120_v23, 0.0  ;;  %v18122_v42 = vpop.eup %18121 }
0x2ebb   : > { %12584 = vadd.xlane.f32.xlu0 %v12583_v35  ;;  %v12594_v39 = vmul.f32 %v18122_v42, %v18116_v52 }
0x2ebd   : > { %v18124_v57 = vpop.eup %18123 }
0x2ebe   : > { %v18126_v26 = vpop.eup %18125  ;;  %v12586_v40 = vsel %vm1674_vm8, %v18124_v57, 0.0 }
0x2ebf   : > { %12587 = vadd.xlane.f32.xlu1 %v12586_v40  ;;  %v12593_v61 = vmul.f32 %v18126_v26, %v18118_v9 }
0x2ec1   : > { %16946 = vmatprep.mubr.msk.f32.mxu0 %vm1670_vm9, %v12593_v61 }
0x2ec2   : > { %16947 = vmatmul.mubr.msk.f32.vlgmr.msra.gmra.mrb[72].mxu0 %vm1670_vm9, %v12594_v39 }
0x2ec3   : > { %17526 = vmatpush3.bf16.msk.msra.mxu0 %vm19314_vm7, %v21211_v62  ;;  %v8746_v62 = vld [vmem:[#allocation10 + $0xd0] sm:$0xff] }
0x2ec4   : > { %v17528_v25 = vpack.c.bf16 %v8747_v4, %v8746_v62 }
0x2ec6   : > { %17529 = vmatpush3.bf16.msra.mxu1 %v17528_v25 }
0x2ed0   : > { %13008 = vrot.lane.b32.xlu1 %v20577_v56, %s18615_s27 }
0x2ed1   : > { %13006 = vrot.lane.b32.xlu0 %v20575_v16, %s18615_s27 }
0x2ed4   : > { %13010 = vrot.lane.b32.xlu1 %v20582_v37, %s18615_s27 }
0x2ed5   : > { %13014 = vrot.lane.b32.xlu0 %v20592_v24, %s18615_s27 }
0x2ed8   : > { %13012 = vrot.lane.b32.xlu1 %v20584_v36, %s18615_s27 }
0x2ed9   : > { %13134 = vrot.lane.b32.xlu0 %v20600_v28, %s18615_s27 }
0x2edc   : > { %13132 = vrot.lane.b32.xlu1 %v20594_v20, %s18615_s27 }
0x2edd   : > { %13138 = vrot.lane.b32.xlu0 %v20607_v33, %s18615_s27 }
0x2ee0   : > { %13136 = vrot.lane.b32.xlu1 %v20602_v18, %s18615_s27 }
0x2ee1   : > { %13021 = vrot.lane.b32.xlu0 %v20621_v17, %s18615_s27 }
0x2ee4   : > { %13140 = vrot.lane.b32.xlu1 %v20609_v7, %s18615_s27 }
0x2ee5   : > { %13147 = vrot.lane.b32.xlu0 %v20645_v15, %s18615_s27 }
0x2ee8   : > { %13023 = vrot.lane.b32.xlu1 %v20657_v46, %s18615_s27 }
0x2eec   : > { %13149 = vrot.lane.b32.xlu1 %v20675_v21, %s18615_s27 }
0x2f48   : > { %v12585_v63 = vpop.xlane.xlu0 %12584 }
0x2f49   : > { %18127 = vrcp.f32 %v12585_v63 }
0x2f4c   : > { %v12588_v2 = vpop.xlane.xlu1 %12587  ;;  %v13007_v52 = vpop.permute.xlu0 %13006 }
0x2f4d   : > { %18129 = vrcp.f32 %v12588_v2  ;;  %v13016_v51 = vrot.slane %v13007_v52, 2  ;;  %v13302_v29 = vrot.slane %v13007_v52, 4 }
0x2f50   : > { %v13009_v1 = vpop.permute.xlu1 %13008  ;;  %v13015_v3 = vpop.permute.xlu0 %13014 }
0x2f51   : > { %v13017_v13 = vrot.slane %v13009_v1, 2  ;;  %v13303_v9 = vrot.slane %v13009_v1, 4  ;;  %v13306_v2 = vrot.slane %v13015_v3, 4 }
0x2f53   : > { %v18128_v6 = vpop.eup %18127  ;;  %v13025_v55 = vcombine.low %v13016_v51, %v13017_v13  ;;  %v13307_v42 = vcombine.low %v13302_v29, %v13303_v9 }
0x2f54   : > { %v13011_v59 = vpop.permute.xlu1 %13010  ;;  %v13135_v34 = vpop.permute.xlu0 %13134  ;;  %v12595_v14 = vmul.f32 %v18128_v6, %v18120_v23  ;;  %v13020_v23 = vrot.slane %v13015_v3, 2 }
0x2f55   : > { %v13018_v54 = vrot.slane %v13011_v59, 2  ;;  %v13304_v32 = vrot.slane %v13011_v59, 4  ;;  %v13033_v62 = vrot.slane %v13025_v55, %v19058_v5  ;;  %v13315_v63 = vrot.slane %v13307_v42, %v19058_v5 }
0x2f56   : > { %16953 = vmatprep.mubr.msk.f32.mxu0 %vm1670_vm9, %v12595_v14  ;;  %v13143_v52 = vrot.slane %v13135_v34, 2  ;;  %v13048_v13 = vrot.slane %v13020_v23, %v19058_v5  ;;  %v13416_v59 = vrot.slane %v13135_v34, 4 }
0x2f57   : > { %v18130_v19 = vpop.eup %18129 }
0x2f58   : > { %v12596_v41 = vmul.f32 %v18130_v19, %v18124_v57  ;;  %v13013_v43 = vpop.permute.xlu1 %13012  ;;  %v13139_v48 = vpop.permute.xlu0 %13138 }
0x2f59   : > { %v13019_v11 = vrot.slane %v13013_v43, 2  ;;  %v13305_v35 = vrot.slane %v13013_v43, 4  ;;  %v13145_v19 = vrot.slane %v13139_v48, 2  ;;  %v13330_v43 = vrot.slane %v13306_v2, %v19058_v5 }
0x2f5a   : > { %16954 = vmatmul.mubr.msk.f32.vlgmr.msra.gmra.mrb[74].mxu0 %vm1670_vm9, %v12596_v41  ;;  %v13418_v41 = vrot.slane %v13139_v48, 4 }
0x2f5b   : > { %v13026_v26 = vcombine.low %v13018_v54, %v13019_v11  ;;  %v13308_v40 = vcombine.low %v13304_v32, %v13305_v35 }
0x2f5c   : > { %v13133_v61 = vpop.permute.xlu1 %13132  ;;  %v13022_v39 = vpop.permute.xlu0 %13021 }
0x2f5d   : > { %v13040_v57 = vrot.slane %v13026_v26, %v19058_v5  ;;  %v13322_v4 = vrot.slane %v13308_v40, %v19058_v5  ;;  %v13142_v25 = vrot.slane %v13133_v61, 2  ;;  %16973 = vmatprep.mubr.msk.f32.mxu0 %vm1445_vm3, %v13022_v39  ;;  %v13415_v1 = vrot.slane %v13133_v61, 4 }
0x2f5f   : > { %v13041_v6 = vcombine.low %v13033_v62, %v13040_v57  ;;  %v13323_v14 = vcombine.low %v13315_v63, %v13322_v4  ;;  %v13151_v51 = vcombine.low %v13142_v25, %v13143_v52  ;;  %v13420_v54 = vcombine.low %v13415_v1, %v13416_v59 }
0x2f60   : > { %v13137_v9 = vpop.permute.xlu1 %13136 }
0x2f61   : > { %v13144_v29 = vrot.slane %v13137_v9, 2  ;;  %v13417_v55 = vrot.slane %v13137_v9, 4  ;;  %v17530_v32 = vpack.c.bf16 %v13048_v13, %v13041_v6  ;;  %v13159_v3 = vrot.slane %v13151_v51, %v19058_v5 }
0x2f62   : > { %v17542_v34 = vpack.c.bf16 %v13330_v43, %v13323_v14  ;;  %v13428_v61 = vrot.slane %v13420_v54, %v19058_v5 }
0x2f63   : > { %v13152_v11 = vcombine.low %v13144_v29, %v13145_v19  ;;  %v13421_v35 = vcombine.low %v13417_v55, %v13418_v41  ;;  %17532 = vmatprep.subr.msk.bf16.mxu0 %vm19291_vm4, %v17530_v32 }
0x2f64   : > { %v13141_v42 = vpop.permute.xlu1 %13140  ;;  %17535 = vmatpush3.bf16.xpose.msk.msra.mxu0 %vm19291_vm4, %v17530_v32 }
0x2f65   : > { %v13166_v26 = vrot.slane %v13152_v11, %v19058_v5  ;;  %v13435_v40 = vrot.slane %v13421_v35, %v19058_v5  ;;  %v13146_v48 = vrot.slane %v13141_v42, 2  ;;  %v13419_v23 = vrot.slane %v13141_v42, 4  ;;  %17544 = vmatprep.subr.msk.bf16.mxu0 %vm19314_vm7, %v17542_v34 }
0x2f67   : > { %v13167_v39 = vcombine.low %v13159_v3, %v13166_v26  ;;  %v13174_v62 = vrot.slane %v13146_v48, %v19058_v5  ;;  %v13436_v57 = vcombine.low %v13428_v61, %v13435_v40  ;;  %v13443_v4 = vrot.slane %v13419_v23, %v19058_v5 }
0x2f68   : > { %v13024_v63 = vpop.permute.xlu1 %13023 }
0x2f69   : > { %v17536_v25 = vpack.c.bf16 %v13174_v62, %v13167_v39  ;;  %v21308_v2 = vpack.c.bf16 %v13443_v4, %v13436_v57  ;;  %v13148_v4 = vpop.permute.xlu0 %13147 }
0x2f6b   : > { %17538 = vmatprep.subr.msk.bf16.mxu1 %vm19291_vm4, %v17536_v25  ;;  %16974 = vmatmul.mubr.msk.f32.vlgmr.msra.gmra.mrb[76].mxu0 %vm1445_vm3, %v13024_v63 }
0x2f6c   : > { %17547 = vmatpush3.bf16.msk.msra.mxu0 %vm19314_vm7, %v17542_v34  ;;  %v13150_v63 = vpop.permute.xlu1 %13149 }
0x2f6d   : > { %17550 = vmatprep.subr.msk.bf16.mxu0 %vm19314_vm7, %v21308_v2 }
0x2f95   : > { %v16948_v52 = vpop.f32.mrb[72].mxu0 }
0x2f96   : > { %v12701_v1 = vpop.f32.mrb[73].mxu0  ;;  %v12850_v32 = vrot.slane %v16948_v52, %v19058_v5 }
0x2f97   : > { %v12827_v6 = vcombine.high %v12701_v1, %v12701_v1  ;;  %v12834_v13 = vrot.slane %v12701_v1, %v19058_v5 }
0x2f99   : > { %v12841_v59 = vrot.slane %v12827_v6, %v19058_v5  ;;  %v12842_v14 = vcombine.high %v12834_v13, %v12834_v13 }
0x2f9b   : > { %v12843_v51 = vcombine.high %v12841_v59, %v12841_v59  ;;  %v12875_v9 = vcombine.low %v12834_v13, %v12842_v14 }
0x2f9d   : > { %v12876_v19 = vcombine.low %v12841_v59, %v12843_v51  ;;  %v12883_v41 = vrot.slane %v12875_v9, %v19058_v5 }
0x2f9f   : > { %v12890_v29 = vrot.slane %v12876_v19, %v19058_v5 }
0x2fa1   : > { %v12891_v55 = vcombine.low %v12883_v41, %v12890_v29 }
0x2fa3   : > { %16961 = vmatmul.mubr.msk.f32.vlgmr.msra.gmra.mrb[72].mxu1 %vm1445_vm3, %v12891_v55 }
0x2fa4   : > { %17541 = vmatpush3.bf16.xpose.msk.msra.mxu1 %vm19291_vm4, %v17536_v25  ;;  %16963 = vmatprep.mubr.msk.f32.mxu1 %vm18608_vm2, %v21864_v60 }
0x2fa5   : > { %17554 = vmatprep.subr.bf16.mxu1 %v21863_v0 }
0x302d   : > { %v16955_v43 = vpop.f32.mrb[74].mxu0 }
0x302e   : > { %v12814_v54 = vpop.f32.mrb[75].mxu0  ;;  %v12874_v26 = vrot.slane %v16955_v43, %v19058_v5 }
0x302f   : > { %v12851_v11 = vcombine.high %v12814_v54, %v12814_v54  ;;  %v12858_v35 = vrot.slane %v12814_v54, %v19058_v5 }
0x3031   : > { %v12865_v3 = vrot.slane %v12851_v11, %v19058_v5  ;;  %v12866_v42 = vcombine.high %v12858_v35, %v12858_v35  ;;  %v12892_v34 = vcombine.low %v12850_v32, %v12858_v35 }
0x3033   : > { %v12867_v40 = vcombine.high %v12865_v3, %v12865_v3  ;;  %v12893_v48 = vcombine.low %v12866_v42, %v12865_v3  ;;  %v12900_v23 = vrot.slane %v12892_v34, %v19058_v5 }
0x3035   : > { %v12907_v61 = vrot.slane %v12893_v48, %v19058_v5  ;;  %v12909_v39 = vcombine.low %v12867_v40, %v12874_v26 }
0x3037   : > { %v12908_v62 = vcombine.low %v12900_v23, %v12907_v61  ;;  %v12916_v57 = vrot.slane %v12909_v39, %v19058_v5 }
0x3039   : > { %16964 = vmatmul.mubr.msk.f32.gmra.mrb[74].mxu1 %vm1445_vm3, %v12908_v62 }
0x303a   : > { %16966 = vmatprep.mubr.msk.f32.mxu1 %vm18608_vm2, %v21864_v60 }
0x303d   : > { %16967 = vmatmul.mubr.msk.f32.gmra.mrb[76].mxu1 %vm1445_vm3, %v12916_v57 }
0x303e   : > { %16980 = vmatprep.mubr.msk.f32.mxu1 %vm1445_vm3, %v13148_v4  ;;  %v16975_v25 = vpop.f32.mrb[76].mxu0 }
0x303f   : > { %v13123_v52 = vpop.f32.mrb[77].mxu0  ;;  %v13261_v1 = vsel %vm1674_vm8, %v16975_v25, -inf }
0x3040   : > { %13262 = vmax.xlane.f32.xlu1 %v13261_v1  ;;  %v13258_v6 = vsel %vm1670_vm9, %v13123_v52, -inf }
0x3041   : > { %16981 = vmatmul.mubr.msk.f32.vlgmr.msra.gmra.mrb[84].mxu1 %vm1445_vm3, %v13150_v63  ;;  %13259 = vmax.xlane.f32.xlu0 %v13258_v6 }
0x3042   : > { %17001 = vmatprep.mubr.msk.f32.mxu1 %vm18608_vm2, %v21864_v60 }
0x30cd   : > { %v13263_v13 = vpop.xlane.xlu1 %13262 }
0x30ce   : > { %v13271_v59 = vsub.f32 %v16975_v25, %v13263_v13  ;;  %v13260_v19 = vpop.xlane.xlu0 %13259 }
0x30cf   : > { %v13270_v41 = vsub.f32 %v13123_v52, %v13260_v19 }
0x30d0   : > { %v13276_v14 = vmul.f32 1.442695, %v13271_v59 }
0x30d1   : > { %v13274_v29 = vmul.f32 1.442695, %v13270_v41 }
0x30d2   : > { %18131 = vpow2.f32 %v13276_v14 }
0x30d3   : > { %18133 = vpow2.f32 %v13274_v29 }
0x30dc   : > { %v18132_v51 = vpop.eup %18131 }
0x30dd   : > { %v13285_v9 = vsel %vm1674_vm8, %v18132_v51, 0.0  ;;  %v18134_v11 = vpop.eup %18133 }
0x30de   : > { %13286 = vadd.xlane.f32.xlu1 %v13285_v9  ;;  %v13282_v35 = vsel %vm1670_vm9, %v18134_v11, 0.0 }
0x3114   : > { %v16982_v55 = vpop.f32.mrb[84].mxu1 }
0x3115   : > { %v13249_v43 = vpop.f32.mrb[85].mxu1  ;;  %v13267_v32 = vsel %vm1674_vm8, %v16982_v55, -inf }
0x3116   : > { %v13264_v54 = vsel %vm1670_vm9, %v13249_v43, -inf }
0x3117   : > { %13265 = vmax.xlane.f32.xlu0 %v13264_v54 }
0x311b   : > { %13268 = vmax.xlane.f32.xlu0 %v13267_v32 }
0x311f   : > { %13283 = vadd.xlane.f32.xlu0 %v13282_v35 }
0x316b   : > { %v13287_v40 = vpop.xlane.xlu1 %13286 }
0x31a4   : > { %v13266_v3 = vpop.xlane.xlu0 %13265 }
0x31a5   : > { %v13272_v42 = vsub.f32 %v13249_v43, %v13266_v3 }
0x31a7   : > { %v13278_v34 = vmul.f32 1.442695, %v13272_v42 }
0x31a8   : > { %v13269_v26 = vpop.xlane.xlu0 %13268 }
0x31a9   : > { %18135 = vpow2.f32 %v13278_v34  ;;  %v13273_v48 = vsub.f32 %v16982_v55, %v13269_v26 }
0x31aa   : > { %18137 = vrcp.f32 %v13287_v40 }
0x31ab   : > { %v13280_v23 = vmul.f32 1.442695, %v13273_v48 }
0x31ac   : > { %v13284_v61 = vpop.xlane.xlu0 %13283 }
0x31ad   : > { %18139 = vpow2.f32 %v13280_v23 }
0x31ae   : > { %18141 = vrcp.f32 %v13284_v61 }
0x31b3   : > { %v18136_v39 = vpop.eup %18135 }
0x31b4   : > { %v13288_v62 = vsel %vm1670_vm9, %v18136_v39, 0.0  ;;  %v18138_v57 = vpop.eup %18137 }
0x31b5   : > { %13289 = vadd.xlane.f32.xlu0 %v13288_v62  ;;  %v13299_v1 = vmul.f32 %v18138_v57, %v18132_v51 }
0x31b7   : > { %v18140_v4 = vpop.eup %18139 }
0x31b8   : > { %v18142_v25 = vpop.eup %18141  ;;  %v13291_v63 = vsel %vm1674_vm8, %v18140_v4, 0.0 }
0x31b9   : > { %13292 = vadd.xlane.f32.xlu1 %v13291_v63  ;;  %v13298_v52 = vmul.f32 %v18142_v25, %v18134_v11 }
0x31bb   : > { %16987 = vmatprep.mubr.msk.f32.mxu0 %vm1670_vm9, %v13298_v52 }
0x31bc   : > { %16988 = vmatmul.mubr.msk.f32.vlgmr.msra.gmra.mrb[78].mxu0 %vm1670_vm9, %v13299_v1 }
0x31bd   : > { %17553 = vmatpush3.bf16.msk.msra.mxu0 %vm19314_vm7, %v21308_v2 }
0x31ca   : > { %13713 = vrot.lane.b32.xlu1 %v20577_v56, %s18616_s15  ;;  %v8749_v56 = vld [vmem:[#allocation10 + $0xe8] sm:$0xff] }
0x31cb   : > { %13711 = vrot.lane.b32.xlu0 %v20575_v16, %s18616_s15  ;;  %v8748_v16 = vld [vmem:[#allocation10 + $0xe0] sm:$0xff] }
0x31ce   : > { %13715 = vrot.lane.b32.xlu1 %v20582_v37, %s18616_s15  ;;  %v17555_v37 = vpack.c.bf16 %v8749_v56, %v8748_v16 }
0x31cf   : > { %13719 = vrot.lane.b32.xlu0 %v20592_v24, %s18616_s15 }
0x31d0   : > { %17556 = vmatpush3.bf16.msra.mxu1 %v17555_v37 }
0x31d2   : > { %13717 = vrot.lane.b32.xlu1 %v20584_v36, %s18616_s15 }
0x31d3   : > { %13839 = vrot.lane.b32.xlu0 %v20600_v28, %s18616_s15 }
0x31d6   : > { %13837 = vrot.lane.b32.xlu1 %v20594_v20, %s18616_s15 }
0x31d7   : > { %13843 = vrot.lane.b32.xlu0 %v20607_v33, %s18616_s15 }
0x31da   : > { %13841 = vrot.lane.b32.xlu1 %v20602_v18, %s18616_s15 }
0x31db   : > { %13726 = vrot.lane.b32.xlu0 %v20621_v17, %s18616_s15 }
0x31de   : > { %13845 = vrot.lane.b32.xlu1 %v20609_v7, %s18616_s15 }
0x31df   : > { %13852 = vrot.lane.b32.xlu0 %v20645_v15, %s18616_s15 }
0x31e2   : > { %13728 = vrot.lane.b32.xlu1 %v20657_v46, %s18616_s15 }
0x31e6   : > { %13854 = vrot.lane.b32.xlu1 %v20675_v21, %s18616_s15 }
0x3242   : > { %v13290_v36 = vpop.xlane.xlu0 %13289 }
0x3243   : > { %18143 = vrcp.f32 %v13290_v36 }
0x3246   : > { %v13293_v24 = vpop.xlane.xlu1 %13292  ;;  %v13712_v20 = vpop.permute.xlu0 %13711 }
0x3247   : > { %18145 = vrcp.f32 %v13293_v24  ;;  %v13721_v46 = vrot.slane %v13712_v20, 2  ;;  %v14007_v21 = vrot.slane %v13712_v20, 4 }
0x324a   : > { %v13714_v28 = vpop.permute.xlu1 %13713  ;;  %v13720_v18 = vpop.permute.xlu0 %13719 }
0x324b   : > { %v13722_v7 = vrot.slane %v13714_v28, 2  ;;  %v14008_v6 = vrot.slane %v13714_v28, 4  ;;  %v13725_v11 = vrot.slane %v13720_v18, 2  ;;  %v14011_v23 = vrot.slane %v13720_v18, 4 }
0x324d   : > { %v18144_v33 = vpop.eup %18143  ;;  %v13730_v14 = vcombine.low %v13721_v46, %v13722_v7  ;;  %v14012_v43 = vcombine.low %v14007_v21, %v14008_v6  ;;  %v13753_v57 = vrot.slane %v13725_v11, %v19058_v5  ;;  %v14035_v36 = vrot.slane %v14011_v23, %v19058_v5 }
0x324e   : > { %v13716_v17 = vpop.permute.xlu1 %13715  ;;  %v13840_v15 = vpop.permute.xlu0 %13839  ;;  %v13300_v2 = vmul.f32 %v18144_v33, %v18136_v39 }
0x324f   : > { %v13723_v19 = vrot.slane %v13716_v17, 2  ;;  %v14009_v41 = vrot.slane %v13716_v17, 4  ;;  %v13738_v42 = vrot.slane %v13730_v14, %v19058_v5  ;;  %v14020_v48 = vrot.slane %v14012_v43, %v19058_v5 }
0x3250   : > { %16994 = vmatprep.mubr.msk.f32.mxu0 %vm1670_vm9, %v13300_v2  ;;  %v13848_v61 = vrot.slane %v13840_v15, 2 }
0x3251   : > { %v18146_v13 = vpop.eup %18145 }
0x3252   : > { %v13301_v59 = vmul.f32 %v18146_v13, %v18140_v4  ;;  %v13718_v51 = vpop.permute.xlu1 %13717  ;;  %v13844_v9 = vpop.permute.xlu0 %13843  ;;  %v14121_v4 = vrot.slane %v13840_v15, 4 }
0x3253   : > { %v13724_v29 = vrot.slane %v13718_v51, 2  ;;  %v14010_v55 = vrot.slane %v13718_v51, 4  ;;  %v13850_v1 = vrot.slane %v13844_v9, 2  ;;  %v14123_v16 = vrot.slane %v13844_v9, 4 }
0x3254   : > { %16995 = vmatmul.mubr.msk.f32.vlgmr.msra.gmra.mrb[80].mxu0 %vm1670_vm9, %v13301_v59 }
0x3255   : > { %v13731_v54 = vcombine.low %v13723_v19, %v13724_v29  ;;  %v14013_v32 = vcombine.low %v14009_v41, %v14010_v55 }
0x3256   : > { %v13838_v35 = vpop.permute.xlu1 %13837  ;;  %v13727_v3 = vpop.permute.xlu0 %13726 }
0x3257   : > { %v13745_v34 = vrot.slane %v13731_v54, %v19058_v5  ;;  %v14027_v26 = vrot.slane %v14013_v32, %v19058_v5  ;;  %v13847_v40 = vrot.slane %v13838_v35, 2  ;;  %17014 = vmatprep.mubr.msk.f32.mxu0 %vm1445_vm3, %v13727_v3  ;;  %v14120_v39 = vrot.slane %v13838_v35, 4 }
0x3259   : > { %v13746_v62 = vcombine.low %v13738_v42, %v13745_v34  ;;  %v14028_v25 = vcombine.low %v14020_v48, %v14027_v26  ;;  %v13856_v63 = vcombine.low %v13847_v40, %v13848_v61  ;;  %v14125_v24 = vcombine.low %v14120_v39, %v14121_v4 }
0x325a   : > { %v13842_v52 = vpop.permute.xlu1 %13841 }
0x325b   : > { %v13849_v56 = vrot.slane %v13842_v52, 2  ;;  %v14122_v37 = vrot.slane %v13842_v52, 4  ;;  %v17557_v20 = vpack.c.bf16 %v13753_v57, %v13746_v62  ;;  %v13864_v18 = vrot.slane %v13856_v63, %v19058_v5 }
0x325c   : > { %v17569_v17 = vpack.c.bf16 %v14035_v36, %v14028_v25  ;;  %v14133_v13 = vrot.slane %v14125_v24, %v19058_v5  ;;  %v13853_v24 = vpop.permute.xlu0 %13852 }
0x325d   : > { %v13857_v28 = vcombine.low %v13849_v56, %v13850_v1  ;;  %v14126_v33 = vcombine.low %v14122_v37, %v14123_v16  ;;  %17559 = vmatprep.subr.msk.bf16.mxu0 %vm19291_vm4, %v17557_v20 }
0x325e   : > { %v13846_v7 = vpop.permute.xlu1 %13845  ;;  %17562 = vmatpush3.bf16.xpose.msk.msra.mxu0 %vm19291_vm4, %v17557_v20 }
0x325f   : > { %v13871_v15 = vrot.slane %v13857_v28, %v19058_v5  ;;  %v14140_v2 = vrot.slane %v14126_v33, %v19058_v5  ;;  %v13851_v46 = vrot.slane %v13846_v7, 2  ;;  %v14124_v6 = vrot.slane %v13846_v7, 4  ;;  %17571 = vmatprep.subr.msk.bf16.mxu0 %vm19314_vm7, %v17569_v17 }
0x3261   : > { %v13872_v59 = vcombine.low %v13864_v18, %v13871_v15  ;;  %v13879_v21 = vrot.slane %v13851_v46, %v19058_v5  ;;  %v14141_v14 = vcombine.low %v14133_v13, %v14140_v2  ;;  %v14148_v51 = vrot.slane %v14124_v6, %v19058_v5 }
0x3262   : > { %v13729_v19 = vpop.permute.xlu1 %13728 }
0x3263   : > { %v17563_v9 = vpack.c.bf16 %v13879_v21, %v13872_v59  ;;  %v21405_v41 = vpack.c.bf16 %v14148_v51, %v14141_v14 }
0x3265   : > { %17565 = vmatprep.subr.msk.bf16.mxu1 %vm19291_vm4, %v17563_v9  ;;  %17015 = vmatmul.mubr.msk.f32.vlgmr.msra.gmra.mrb[82].mxu0 %vm1445_vm3, %v13729_v19 }
0x3266   : > { %17574 = vmatpush3.bf16.msk.msra.mxu0 %vm19314_vm7, %v17569_v17  ;;  %v13855_v28 = vpop.permute.xlu1 %13854 }
0x3267   : > { %17577 = vmatprep.subr.msk.bf16.mxu0 %vm19314_vm7, %v21405_v41 }
0x328f   : > { %v16989_v29 = vpop.f32.mrb[78].mxu0 }
0x3290   : > { %v13406_v55 = vpop.f32.mrb[79].mxu0  ;;  %v13555_v61 = vrot.slane %v16989_v29, %v19058_v5 }
0x3291   : > { %v13532_v43 = vcombine.high %v13406_v55, %v13406_v55  ;;  %v13539_v54 = vrot.slane %v13406_v55, %v19058_v5 }
0x3293   : > { %v13546_v32 = vrot.slane %v13532_v43, %v19058_v5  ;;  %v13547_v11 = vcombine.high %v13539_v54, %v13539_v54 }
0x3295   : > { %v13548_v35 = vcombine.high %v13546_v32, %v13546_v32  ;;  %v13580_v3 = vcombine.low %v13539_v54, %v13547_v11 }
0x3297   : > { %v13581_v42 = vcombine.low %v13546_v32, %v13548_v35  ;;  %v13588_v34 = vrot.slane %v13580_v3, %v19058_v5 }
0x3299   : > { %v13595_v26 = vrot.slane %v13581_v42, %v19058_v5 }
0x329b   : > { %v13596_v40 = vcombine.low %v13588_v34, %v13595_v26 }
0x329d   : > { %17002 = vmatmul.mubr.msk.f32.vlgmr.msra.gmra.mrb[72].mxu1 %vm1445_vm3, %v13596_v40 }
0x329e   : > { %17568 = vmatpush3.bf16.xpose.msk.msra.mxu1 %vm19291_vm4, %v17563_v9  ;;  %17004 = vmatprep.mubr.msk.f32.mxu1 %vm18608_vm2, %v21864_v60 }
0x329f   : > { %17581 = vmatprep.subr.bf16.mxu1 %v21863_v0 }
0x3327   : > { %v16996_v48 = vpop.f32.mrb[80].mxu0 }
0x3328   : > { %v13519_v23 = vpop.f32.mrb[81].mxu0  ;;  %v13579_v63 = vrot.slane %v16996_v48, %v19058_v5 }
0x3329   : > { %v13556_v39 = vcombine.high %v13519_v23, %v13519_v23  ;;  %v13563_v62 = vrot.slane %v13519_v23, %v19058_v5 }
0x332b   : > { %v13570_v57 = vrot.slane %v13556_v39, %v19058_v5  ;;  %v13571_v4 = vcombine.high %v13563_v62, %v13563_v62  ;;  %v13597_v25 = vcombine.low %v13555_v61, %v13563_v62 }
0x332d   : > { %v13572_v38 = vcombine.high %v13570_v57, %v13570_v57  ;;  %v13598_v52 = vcombine.low %v13571_v4, %v13570_v57  ;;  %v13605_v1 = vrot.slane %v13597_v25, %v19058_v5  ;;  %v8750_v4 = vld [vmem:[#allocation10 + $0xf0] sm:$0xff]  ;;  %v8751_v25 = vld [vmem:[#allocation10 + $0xf8] sm:$0xff] }
0x332f   : > { %v13612_v16 = vrot.slane %v13598_v52, %v19058_v5  ;;  %v13614_v56 = vcombine.low %v13572_v38, %v13579_v63  ;;  %v17582_v63 = vpack.c.bf16 %v8751_v25, %v8750_v4 }
0x3331   : > { %v13613_v37 = vcombine.low %v13605_v1, %v13612_v16  ;;  %v13621_v36 = vrot.slane %v13614_v56, %v19058_v5 }
0x3333   : > { %17005 = vmatmul.mubr.msk.f32.gmra.mrb[74].mxu1 %vm1445_vm3, %v13613_v37 }
0x3334   : > { %17007 = vmatprep.mubr.msk.f32.mxu1 %vm18608_vm2, %v21864_v60 }
0x3337   : > { %17008 = vmatmul.mubr.msk.f32.gmra.mrb[76].mxu1 %vm1445_vm3, %v13621_v36 }
0x3338   : > { %17021 = vmatprep.mubr.msk.f32.mxu1 %vm1445_vm3, %v13853_v24  ;;  %v17016_v20 = vpop.f32.mrb[82].mxu0 }
0x3339   : > { %v13828_v33 = vpop.f32.mrb[83].mxu0  ;;  %v13966_v18 = vsel %vm1674_vm8, %v17016_v20, -inf }
0x333a   : > { %13967 = vmax.xlane.f32.xlu1 %v13966_v18  ;;  %v13963_v7 = vsel %vm1670_vm9, %v13828_v33, -inf }
0x333b   : > { %17022 = vmatmul.mubr.msk.f32.vlgmr.msra.gmra.mrb[86].mxu1 %vm1445_vm3, %v13855_v28  ;;  %13964 = vmax.xlane.f32.xlu0 %v13963_v7 }
0x333c   : > { %17042 = vmatprep.mubr.msk.f32.mxu1 %vm18608_vm2, %v21864_v60  ;;  %17583 = vmatpush3.bf16.msra.mxu1 %v17582_v63 }
0x333d   : > { %17592 = vmatprep.subr.bf16.mxu1 %v21863_v0 }
0x33c7   : > { %v13968_v17 = vpop.xlane.xlu1 %13967 }
0x33c8   : > { %v13976_v15 = vsub.f32 %v17016_v20, %v13968_v17  ;;  %v13965_v13 = vpop.xlane.xlu0 %13964 }
0x33c9   : > { %v13975_v59 = vsub.f32 %v13828_v33, %v13965_v13 }
0x33ca   : > { %v13981_v2 = vmul.f32 1.442695, %v13976_v15 }
0x33cb   : > { %v13979_v21 = vmul.f32 1.442695, %v13975_v59 }
0x33cc   : > { %18147 = vpow2.f32 %v13981_v2 }
0x33cd   : > { %18149 = vpow2.f32 %v13979_v21 }
0x33d6   : > { %v18148_v46 = vpop.eup %18147 }
0x33d7   : > { %v13990_v6 = vsel %vm1674_vm8, %v18148_v46, 0.0  ;;  %v18150_v29 = vpop.eup %18149 }
0x33d8   : > { %13991 = vadd.xlane.f32.xlu1 %v13990_v6  ;;  %v13987_v55 = vsel %vm1670_vm9, %v18150_v29, 0.0 }
0x340e   : > { %v17023_v14 = vpop.f32.mrb[86].mxu1 }
0x340f   : > { %v13954_v51 = vpop.f32.mrb[87].mxu1  ;;  %v13972_v19 = vsel %vm1674_vm8, %v17023_v14, -inf }
0x3410   : > { %v13969_v9 = vsel %vm1670_vm9, %v13954_v51, -inf }
0x3411   : > { %13970 = vmax.xlane.f32.xlu0 %v13969_v9 }
0x3415   : > { %13973 = vmax.xlane.f32.xlu0 %v13972_v19 }
0x3419   : > { %13988 = vadd.xlane.f32.xlu0 %v13987_v55 }
0x3465   : > { %v13992_v35 = vpop.xlane.xlu1 %13991 }
0x349e   : > { %v13971_v43 = vpop.xlane.xlu0 %13970 }
0x349f   : > { %v13977_v54 = vsub.f32 %v13954_v51, %v13971_v43 }
0x34a1   : > { %v13983_v32 = vmul.f32 1.442695, %v13977_v54 }
0x34a2   : > { %v13974_v11 = vpop.xlane.xlu0 %13973 }
0x34a3   : > { %18151 = vpow2.f32 %v13983_v32  ;;  %v13978_v3 = vsub.f32 %v17023_v14, %v13974_v11 }
0x34a4   : > { %18153 = vrcp.f32 %v13992_v35 }
0x34a5   : > { %v13985_v42 = vmul.f32 1.442695, %v13978_v3 }
0x34a6   : > { %v13989_v34 = vpop.xlane.xlu0 %13988 }
0x34a7   : > { %18155 = vpow2.f32 %v13985_v42 }
0x34a8   : > { %18157 = vrcp.f32 %v13989_v34 }
0x34ad   : > { %v18152_v26 = vpop.eup %18151 }
0x34ae   : > { %v13993_v40 = vsel %vm1670_vm9, %v18152_v26, 0.0  ;;  %v18154_v48 = vpop.eup %18153 }
0x34af   : > { %13994 = vadd.xlane.f32.xlu0 %v13993_v40  ;;  %v14004_v57 = vmul.f32 %v18154_v48, %v18148_v46 }
0x34b1   : > { %v18156_v23 = vpop.eup %18155 }
0x34b2   : > { %v18158_v61 = vpop.eup %18157  ;;  %v13996_v39 = vsel %vm1674_vm8, %v18156_v23, 0.0 }
0x34b3   : > { %13997 = vadd.xlane.f32.xlu1 %v13996_v39  ;;  %v14003_v62 = vmul.f32 %v18158_v61, %v18150_v29 }
0x34b5   : > { %17028 = vmatprep.mubr.msk.f32.mxu0 %vm1670_vm9, %v14003_v62 }
0x34b6   : > { %17029 = vmatmul.mubr.msk.f32.vlgmr.msra.gmra.mrb[84].mxu0 %vm1670_vm9, %v14004_v57 }
0x34b7   : > { %17580 = vmatpush3.bf16.msk.msra.mxu0 %vm19314_vm7, %v21405_v41 }
0x353c   : > { %v13995_v38 = vpop.xlane.xlu0 %13994 }
0x353d   : > { %18159 = vrcp.f32 %v13995_v38 }
0x3540   : > { %v13998_v52 = vpop.xlane.xlu1 %13997 }
0x3541   : > { %18161 = vrcp.f32 %v13998_v52 }
0x3547   : > { %v18160_v1 = vpop.eup %18159 }
0x3548   : > { %v14005_v16 = vmul.f32 %v18160_v1, %v18152_v26 }
0x354a   : > { %17035 = vmatprep.mubr.msk.f32.mxu0 %vm1670_vm9, %v14005_v16 }
0x354b   : > { %v18162_v56 = vpop.eup %18161 }
0x354c   : > { %v14006_v37 = vmul.f32 %v18162_v56, %v18156_v23 }
0x354e   : > { %17036 = vmatmul.mubr.msk.f32.vlgmr.msra.gmra.mrb[86].mxu0 %vm1670_vm9, %v14006_v37 }
0x354f   : > { %15037 = vmatprep.mubr.f32.mxu0 %v21864_v60 }
0x3589   : > { %v17030_v45 = vpop.f32.mrb[84].mxu0 }
0x358a   : > { %v14111_v41 = vpop.f32.mrb[85].mxu0  ;;  %v14260_v13 = vrot.slane %v17030_v45, %v19058_v5 }
0x358b   : > { %v14237_v36 = vcombine.high %v14111_v41, %v14111_v41  ;;  %v14244_v24 = vrot.slane %v14111_v41, %v19058_v5 }
0x358d   : > { %v14251_v20 = vrot.slane %v14237_v36, %v19058_v5  ;;  %v14252_v28 = vcombine.high %v14244_v24, %v14244_v24 }
0x358f   : > { %v14253_v33 = vcombine.high %v14251_v20, %v14251_v20  ;;  %v14285_v18 = vcombine.low %v14244_v24, %v14252_v28 }
0x3591   : > { %v14286_v7 = vcombine.low %v14251_v20, %v14253_v33  ;;  %v14293_v17 = vrot.slane %v14285_v18, %v19058_v5 }
0x3593   : > { %v14300_v15 = vrot.slane %v14286_v7, %v19058_v5 }
0x3595   : > { %v14301_v2 = vcombine.low %v14293_v17, %v14300_v15 }
0x3597   : > { %17043 = vmatmul.mubr.msk.f32.vlgmr.msra.gmra.mrb[72].mxu1 %vm1445_vm3, %v14301_v2 }
0x3598   : > { %17045 = vmatprep.mubr.msk.f32.mxu1 %vm18608_vm2, %v21864_v60 }
0x3621   : > { %v17037_v46 = vpop.f32.mrb[86].mxu0 }
0x3622   : > { %v14224_v6 = vpop.f32.mrb[87].mxu0  ;;  %v14284_v19 = vrot.slane %v17037_v46, %v19058_v5 }
0x3623   : > { %v14261_v59 = vcombine.high %v14224_v6, %v14224_v6  ;;  %v14268_v21 = vrot.slane %v14224_v6, %v19058_v5  ;;  %v21865_v6 = vld [vmem:[#allocation30_spill] sm:$0xff] }
0x3625   : > { %v14275_v14 = vrot.slane %v14261_v59, %v19058_v5  ;;  %v14276_v51 = vcombine.high %v14268_v21, %v14268_v21  ;;  %v14302_v9 = vcombine.low %v14260_v13, %v14268_v21 }
0x3627   : > { %v14277_v29 = vcombine.high %v14275_v14, %v14275_v14  ;;  %v14303_v55 = vcombine.low %v14276_v51, %v14275_v14  ;;  %v14310_v43 = vrot.slane %v14302_v9, %v19058_v5 }
0x3629   : > { %v14317_v54 = vrot.slane %v14303_v55, %v19058_v5  ;;  %v14319_v32 = vcombine.low %v14277_v29, %v14284_v19 }
0x362b   : > { %v14318_v11 = vcombine.low %v14310_v43, %v14317_v54  ;;  %v14326_v35 = vrot.slane %v14319_v32, %v19058_v5 }
0x362d   : > { %17046 = vmatmul.mubr.msk.f32.gmra.mrb[74].mxu1 %vm1445_vm3, %v14318_v11 }
0x362e   : > { %17048 = vmatprep.mubr.msk.f32.mxu1 %vm18608_vm2, %v21864_v60 }
0x3631   : > { %17049 = vmatmul.mubr.msk.f32.gmra.mrb[76].mxu1 %vm1445_vm3, %v14326_v35 }
0x3632   : > { %17083 = vmatprep.mubr.msk.f32.mxu1 %vm18608_vm2, %v21864_v60 }
0x366a   : > { %v14399_v3 = vpop.f32.mrb[72].mxu1 }
0x366b   : > { %v14419_v42 = vcombine.high %v14399_v3, %v14399_v3  ;;  %v14426_v34 = vrot.slane %v14399_v3, %v19058_v5  ;;  %v17044_v26 = vpop.f32.mrb[73].mxu1 }
0x366d   : > { %v14433_v40 = vrot.slane %v14419_v42, %v19058_v5  ;;  %v14434_v48 = vcombine.high %v14426_v34, %v14426_v34  ;;  %v21478_v61 = vadd.f32 %v14426_v34, %v20380_v58 }
0x366f   : > { %v14435_v23 = vcombine.high %v14433_v40, %v14433_v40  ;;  %v21481_v39 = vadd.f32 %v14434_v48, %v20382_v30  ;;  %v21484_v62 = vadd.f32 %v14433_v40, %v20384_v22 }
0x3671   : > { %v21487_v57 = vadd.f32 %v14435_v23, %v20386_v53  ;;  %v14495_v4 = vcombine.low %v21478_v61, %v21481_v39  ;;  %v14895_v23 = vld [vmem:[#allocation14 + $0x48] sm:$0xff] }
0x3673   : > { %v14496_v25 = vcombine.low %v21484_v62, %v21487_v57  ;;  %v14503_v63 = vrot.slane %v14495_v4, %v19058_v5  ;;  %v14897_v4 = vld [vmem:[#allocation14 + $0x58] sm:$0xff] }
0x3675   : > { %v14510_v58 = vrot.slane %v14496_v25, %v19058_v5  ;;  %v14894_v25 = vld [vmem:[#allocation14 + $0x40] sm:$0xff] }
0x3677   : > { %v14511_v38 = vcombine.low %v14503_v63, %v14510_v58  ;;  %v17584_v63 = vpack.c.bf16 %v14897_v4, %v14895_v23  ;;  %v14896_v58 = vld [vmem:[#allocation14 + $0x50] sm:$0xff] }
0x3679   : > { %v14540_v30 = vsel %vm666_vm1, %v14511_v38, 0.0  ;;  %v14899_v38 = vld [vmem:[#allocation14 + $0x68] sm:$0xff]  ;;  %17585 = vmatprep.subr.bf16.mxu0 %v17584_v63 }
0x367a   : > { %14541 = vadd.xlane.f32.xlu0 %v14540_v30  ;;  %v14901_v30 = vld [vmem:[#allocation14 + $0x78] sm:$0xff] }
0x3700   : > { %v14404_v52 = vpop.f32.mrb[74].mxu1 }
0x3701   : > { %v14436_v22 = vcombine.high %v14404_v52, %v14404_v52  ;;  %v14443_v1 = vrot.slane %v14404_v52, %v19058_v5  ;;  %v17047_v53 = vpop.f32.mrb[75].mxu1  ;;  %v17586_v52 = vpack.c.bf16 %v14896_v58, %v14894_v25  ;;  %v15917_v25 = vld [vmem:[#allocation13 + $0x1] ss:$0 sm:$0xff] }
0x3702   : > { %v14900_v53 = vld [vmem:[#allocation14 + $0x70] sm:$0xff] }
0x3703   : > { %v14450_v16 = vrot.slane %v14436_v22, %v19058_v5  ;;  %v14451_v56 = vcombine.high %v14443_v1, %v14443_v1  ;;  %v21499_v41 = vadd.f32 %v14443_v1, %v20402_v27  ;;  %v17588_v22 = vpack.c.bf16 %v14901_v30, %v14899_v38  ;;  %v14898_v1 = vld [vmem:[#allocation14 + $0x60] sm:$0xff]  ;;  %17587 = vmatpush1.bf16.msra.mxu0 %v17586_v52 }
0x3704   : > { %v14409_v37 = vpop.f32.mrb[76].mxu1  ;;  %v14862_v30 = vcombine.high %v15917_v25, %v15917_v25 }
0x3705   : > { %v14452_v45 = vcombine.high %v14450_v16, %v14450_v16  ;;  %v21502_v36 = vadd.f32 %v14451_v56, %v20404_v44  ;;  %v14459_v24 = vrot.slane %v14409_v37, %v19058_v5  ;;  %v17050_v20 = vpop.f32.mrb[77].mxu1  ;;  %v21506_v28 = vadd.f32 %v14450_v16, %v20407_v10  ;;  %17589 = vmatprep.subr.bf16.mxu0 %v17588_v22 }
0x3706   : > { %v17590_v16 = vpack.c.bf16 %v14900_v53, %v14898_v1  ;;  %v21603_v1 = vrot.slane %v15917_v25, %v19058_v5  ;;  %v21606_v53 = vrot.slane %v14862_v30, %v19058_v5  ;;  %v15145_v25 = vld [vmem:[#allocation17 + $0xa0] sm:$0xff]  ;;  %v15148_v30 = vld [vmem:[#allocation17 + $0xb8] sm:$0xff] }
0x3707   : > { %v21509_v33 = vadd.f32 %v14452_v45, %v20409_v8  ;;  %v14460_v18 = vcombine.high %v14459_v24, %v14459_v24  ;;  %v14542_v7 = vpop.xlane.xlu0 %14541  ;;  %v14512_v17 = vcombine.low %v21499_v41, %v21502_v36  ;;  %v21514_v27 = vadd.f32 %v14459_v24, %v20414_v31 }
0x3708   : > { %v14549_v15 = vmul.f32 0.03125, %v14542_v7  ;;  %17591 = vmatpush1.bf16.msra.mxu0 %v17590_v16 }
0x3709   : > { %v21517_v44 = vadd.f32 %v14460_v18, %v20418_v12  ;;  %v14513_v2 = vcombine.low %v21506_v28, %v21509_v33  ;;  %v14520_v59 = vrot.slane %v14512_v17, %v19058_v5 }
0x370a   : > { %v14561_v10 = vrot.slane %v14549_v15, %v19112_v47  ;;  %v14568_v8 = vrot.slane %v14549_v15, %v19115_v49  ;;  %v14575_v46 = vrot.slane %v14549_v15, %v19118_v50  ;;  %v14582_v13 = vrot.slane %v14549_v15, %v21865_v6 }
0x370b   : > { %v14527_v21 = vrot.slane %v14513_v2, %v19058_v5  ;;  %v14529_v31 = vcombine.low %v21514_v27, %v21517_v44 }
0x370c   : > { %v21530_v12 = vsub.f32 %v21478_v61, %v14561_v10  ;;  %v21533_v14 = vsub.f32 %v21481_v39, %v14568_v8  ;;  %v21536_v51 = vsub.f32 %v21484_v62, %v14575_v46  ;;  %v21539_v9 = vsub.f32 %v21487_v57, %v14582_v13 }
0x370d   : > { %v14528_v19 = vcombine.low %v14520_v59, %v14527_v21  ;;  %v14536_v29 = vrot.slane %v14529_v31, %v19058_v5 }
0x370e   : > { %v14645_v55 = vmul.f32 %v21530_v12, %v21530_v12  ;;  %v14646_v43 = vmul.f32 %v21533_v14, %v21533_v14  ;;  %v14647_v54 = vmul.f32 %v21536_v51, %v21536_v51  ;;  %v14648_v32 = vmul.f32 %v21539_v9, %v21539_v9 }
0x370f   : > { %v14543_v11 = vsel %vm666_vm1, %v14528_v19, 0.0  ;;  %v14546_v35 = vsel %vm673_vm0, %v14536_v29, 0.0 }
0x3710   : > { %14544 = vadd.xlane.f32.xlu1 %v14543_v11  ;;  %14547 = vadd.xlane.f32.xlu0 %v14546_v35  ;;  %v14665_v3 = vcombine.low %v14645_v55, %v14646_v43  ;;  %v14666_v42 = vcombine.low %v14647_v54, %v14648_v32 }
0x3712   : > { %v14673_v34 = vrot.slane %v14665_v3, %v19058_v5  ;;  %v14680_v26 = vrot.slane %v14666_v42, %v19058_v5 }
0x3714   : > { %v14681_v40 = vcombine.low %v14673_v34, %v14680_v26 }
0x3716   : > { %v14710_v48 = vsel %vm666_vm1, %v14681_v40, 0.0 }
0x3717   : > { %14711 = vadd.xlane.f32.xlu1 %v14710_v48  ;;  %v15916_v48 = vld [vmem:[#allocation11 + $0x1] ss:$0 sm:$0xff] }
0x3718   : > { %v14826_v58 = vcombine.high %v15916_v48, %v15916_v48  ;;  %v21597_v52 = vrot.slane %v15916_v48, %v19058_v5  ;;  %v15143_v48 = vld [vmem:[#allocation17 + $0x90] sm:$0xff] }
0x371a   : > { %v21600_v22 = vrot.slane %v14826_v58, %v19058_v5 }
0x379d   : > { %v14545_v56 = vpop.xlane.xlu1 %14544  ;;  %v14548_v37 = vpop.xlane.xlu0 %14547 }
0x379e   : > { %v14550_v45 = vmul.f32 0.03125, %v14545_v56  ;;  %v14551_v24 = vmul.f32 0.03125, %v14548_v37  ;;  %v21610_v56 = vcombine.high %v21597_v52, %v21597_v52  ;;  %v21614_v37 = vcombine.high %v21600_v22, %v21600_v22 }
0x37a0   : > { %v14589_v20 = vrot.slane %v14550_v45, %v19112_v47  ;;  %v14596_v18 = vrot.slane %v14550_v45, %v19115_v49  ;;  %v14603_v7 = vrot.slane %v14550_v45, %v19118_v50  ;;  %v14610_v17 = vrot.slane %v14550_v45, %v21865_v6 }
0x37a1   : > { %v14617_v15 = vrot.slane %v14551_v24, %v19112_v47  ;;  %v14624_v2 = vrot.slane %v14551_v24, %v19115_v49 }
0x37a2   : > { %v21562_v10 = vsub.f32 %v21499_v41, %v14589_v20  ;;  %v21565_v8 = vsub.f32 %v21502_v36, %v14596_v18  ;;  %v21568_v46 = vsub.f32 %v21506_v28, %v14603_v7  ;;  %v21571_v13 = vsub.f32 %v21509_v33, %v14610_v17 }
0x37a3   : > { %v21574_v59 = vsub.f32 %v21514_v27, %v14617_v15  ;;  %v21577_v21 = vsub.f32 %v21517_v44, %v14624_v2  ;;  %v21622_v7 = vcombine.high %v21603_v1, %v21603_v1  ;;  %v21626_v17 = vcombine.high %v21606_v53, %v21606_v53 }
0x37a4   : > { %v14712_v31 = vpop.xlane.xlu1 %14711  ;;  %v14649_v19 = vmul.f32 %v21562_v10, %v21562_v10  ;;  %v14650_v29 = vmul.f32 %v21565_v8, %v21565_v8  ;;  %v14651_v55 = vmul.f32 %v21568_v46, %v21568_v46  ;;  %v14652_v43 = vmul.f32 %v21571_v13, %v21571_v13 }
0x37a5   : > { %v14653_v54 = vmul.f32 %v21574_v59, %v21574_v59  ;;  %v14654_v32 = vmul.f32 %v21577_v21, %v21577_v21  ;;  %v14719_v11 = vmul.f32 0.03125, %v14712_v31 }
0x37a6   : > { %v14682_v35 = vcombine.low %v14649_v19, %v14650_v29  ;;  %v14683_v3 = vcombine.low %v14651_v55, %v14652_v43 }
0x37a7   : > { %v14722_v42 = vadd.f32 1e-05, %v14719_v11  ;;  %v14699_v34 = vcombine.low %v14653_v54, %v14654_v32 }
0x37a8   : > { %v14690_v26 = vrot.slane %v14682_v35, %v19058_v5  ;;  %v14697_v40 = vrot.slane %v14683_v3, %v19058_v5 }
0x37a9   : > { %18163 = vrsqrt.f32 %v14722_v42  ;;  %v14706_v23 = vrot.slane %v14699_v34, %v19058_v5  ;;  %v15141_v34 = vld [vmem:[#allocation17 + $0x80] sm:$0xff] }
0x37aa   : > { %v14698_v4 = vcombine.low %v14690_v26, %v14697_v40  ;;  %v15142_v26 = vld [vmem:[#allocation17 + $0x88] sm:$0xff] }
0x37ab   : > { %v14716_v63 = vsel %vm673_vm0, %v14706_v23, 0.0  ;;  %v17593_v40 = vpack.c.bf16 %v15142_v26, %v15141_v34  ;;  %v15144_v23 = vld [vmem:[#allocation17 + $0x98] sm:$0xff]  ;;  %vm15403_vm0 = vcmask 254976  }
0x37ac   : > { %14717 = vadd.xlane.f32.xlu1 %v14716_v63  ;;  %v14713_v38 = vsel %vm666_vm1, %v14698_v4, 0.0  ;;  %v17596_v4 = vpack.c.bf16 %v15144_v23, %v15143_v48  ;;  %v15146_v63 = vld [vmem:[#allocation17 + $0xa8] sm:$0xff] }
0x37ad   : > { %14714 = vadd.xlane.f32.xlu0 %v14713_v38  ;;  %17594 = vmatpush3.bf16.msra.mxu1 %v17593_v40  ;;  %v17599_v58 = vpack.c.bf16 %v15146_v63, %v15145_v25  ;;  %v15147_v38 = vld [vmem:[#allocation17 + $0xb0] sm:$0xff] }
0x37ae   : > { %17595 = vmatprep.subr.bf16.mxu1 %v21863_v0 }
0x37b1   : > { %17597 = vmatpush3.bf16.msra.mxu1 %v17596_v4 }
0x37b2   : > { %17598 = vmatprep.subr.bf16.mxu1 %v21863_v0 }
0x37b3   : > { %v18164_v16 = vpop.eup %18163 }
0x37b4   : > { %v14737_v45 = vrot.slane %v18164_v16, %v19112_v47  ;;  %v14744_v24 = vrot.slane %v18164_v16, %v19115_v49  ;;  %v14751_v20 = vrot.slane %v18164_v16, %v19118_v50  ;;  %v14758_v18 = vrot.slane %v18164_v16, %v21865_v6 }
0x37b5   : > { %17600 = vmatpush3.bf16.msra.mxu1 %v17599_v58  ;;  %v17602_v16 = vpack.c.bf16 %v15148_v30, %v15147_v38 }
0x37b6   : > { %v14811_v15 = vmul.f32 %v14737_v45, %v21530_v12  ;;  %v14812_v2 = vmul.f32 %v14744_v24, %v21533_v14  ;;  %v14813_v31 = vmul.f32 %v14751_v20, %v21536_v51  ;;  %v14814_v19 = vmul.f32 %v14758_v18, %v21539_v9  ;;  %17601 = vmatprep.subr.bf16.mxu1 %v21863_v0  ;;  %v15149_v24 = vld [vmem:[#allocation17 + $0xc0] sm:$0xff]  ;;  %v15150_v20 = vld [vmem:[#allocation17 + $0xc8] sm:$0xff] }
0x37b8   : > { %v14847_v29 = vmul.f32 %v21597_v52, %v14811_v15  ;;  %v14848_v55 = vmul.f32 %v21610_v56, %v14812_v2  ;;  %v14849_v43 = vmul.f32 %v21600_v22, %v14813_v31  ;;  %v14850_v54 = vmul.f32 %v21614_v37, %v14814_v19 }
0x37b9   : > { %17603 = vmatpush3.bf16.msra.mxu1 %v17602_v16  ;;  %v17605_v2 = vpack.c.bf16 %v15150_v20, %v15149_v24  ;;  %v21866_v20 = vld [vmem:[#allocation29_spill] sm:$0xff] }
0x37ba   : > { %v14883_v32 = vadd.f32 %v21603_v1, %v14847_v29  ;;  %v14884_v11 = vadd.f32 %v21622_v7, %v14848_v55  ;;  %v14885_v12 = vadd.f32 %v21606_v53, %v14849_v43  ;;  %v14886_v14 = vadd.f32 %v21626_v17, %v14850_v54  ;;  %17604 = vmatprep.subr.bf16.mxu1 %v21863_v0  ;;  %v15151_v55 = vld [vmem:[#allocation17 + $0xd0] sm:$0xff]  ;;  %v15152_v43 = vld [vmem:[#allocation17 + $0xd8] sm:$0xff] }
0x37bb   : > { %v17608_v54 = vpack.c.bf16 %v15152_v43, %v15151_v55 }
0x37bc   : > { %v14925_v35 = vcombine.low %v14883_v32, %v14884_v11  ;;  %v14926_v51 = vcombine.low %v14885_v12, %v14886_v14  ;;  %v15153_v32 = vld [vmem:[#allocation17 + $0xe0] sm:$0xff]  ;;  %v15154_v11 = vld [vmem:[#allocation17 + $0xe8] sm:$0xff]  ;;  %v15155_v14 = vld [vmem:[#allocation17 + $0xf0] sm:$0xff] }
0x37bd   : > { %17606 = vmatpush3.bf16.msra.mxu1 %v17605_v2  ;;  %v17611_v12 = vpack.c.bf16 %v15154_v11, %v15153_v32 }
0x37be   : > { %v14933_v9 = vrot.slane %v14925_v35, %v19058_v5  ;;  %v14940_v3 = vrot.slane %v14926_v51, %v19058_v5  ;;  %17607 = vmatprep.subr.bf16.mxu1 %v21863_v0  ;;  %v15156_v35 = vld [vmem:[#allocation17 + $0xf8] sm:$0xff] }
0x37bf   : > { %v17614_v51 = vpack.c.bf16 %v15156_v35, %v15155_v14 }
0x37c0   : > { %v14941_v42 = vcombine.low %v14933_v9, %v14940_v3 }
0x37c1   : > { %17609 = vmatpush3.bf16.msra.mxu1 %v17608_v54 }
0x37c2   : > { %15918 = vmatmul.mubr.msk.f32.vlgmr.msra.gmra.mrb[88].mxu0 %vm666_vm1, %v14941_v42  ;;  %17610 = vmatprep.subr.bf16.mxu1 %v21863_v0 }
0x37c3   : > { %15043 = vmatprep.mubr.f32.mxu0 %v21864_v60 }
0x37c5   : > { %17612 = vmatpush3.bf16.msra.mxu1 %v17611_v12 }
0x37c6   : > { %17613 = vmatprep.subr.bf16.mxu1 %v21863_v0 }
0x37c9   : > { %17615 = vmatpush3.bf16.msra.mxu1 %v17614_v51 }
0x3839   : > { %v14718_v45 = vpop.xlane.xlu1 %14717 }
0x383a   : > { %v14721_v18 = vmul.f32 0.03125, %v14718_v45  ;;  %v14715_v15 = vpop.xlane.xlu0 %14714 }
0x383b   : > { %v14720_v31 = vmul.f32 0.03125, %v14715_v15 }
0x383c   : > { %v14724_v19 = vadd.f32 1e-05, %v14721_v18  ;;  %v21867_v18 = vsub.s32 1, %v21866_v20 }
0x383d   : > { %v14723_v29 = vadd.f32 1e-05, %v14720_v31 }
0x383e   : > { %18165 = vrsqrt.f32 %v14724_v19 }
0x383f   : > { %18167 = vrsqrt.f32 %v14723_v29 }
0x3848   : > { %v18166_v9 = vpop.eup %18165 }
0x3849   : > { %v18168_v3 = vpop.eup %18167  ;;  %v14793_v42 = vrot.slane %v18166_v9, %v19112_v47  ;;  %v14800_v34 = vrot.slane %v18166_v9, %v19115_v49 }
0x384a   : > { %v14765_v26 = vrot.slane %v18168_v3, %v19112_v47  ;;  %v14772_v40 = vrot.slane %v18168_v3, %v19115_v49  ;;  %v14779_v48 = vrot.slane %v18168_v3, %v19118_v50  ;;  %v14786_v23 = vrot.slane %v18168_v3, %v21865_v6 }
0x384b   : > { %v14819_v0 = vmul.f32 %v14793_v42, %v21574_v59  ;;  %v14820_v4 = vmul.f32 %v14800_v34, %v21577_v21 }
0x384c   : > { %v14815_v25 = vmul.f32 %v14765_v26, %v21562_v10  ;;  %v14816_v63 = vmul.f32 %v14772_v40, %v21565_v8  ;;  %v14817_v58 = vmul.f32 %v14779_v48, %v21568_v46  ;;  %v14818_v38 = vmul.f32 %v14786_v23, %v21571_v13 }
0x384d   : > { %v14855_v47 = vmul.f32 %v21597_v52, %v14819_v0  ;;  %v14856_v49 = vmul.f32 %v21610_v56, %v14820_v4  ;;  %v21868_v0 = vmov -1.0  }
0x384e   : > { %v14851_v50 = vmul.f32 %v21597_v52, %v14815_v25  ;;  %v14852_v6 = vmul.f32 %v21610_v56, %v14816_v63  ;;  %v14853_v59 = vmul.f32 %v21600_v22, %v14817_v58  ;;  %v14854_v21 = vmul.f32 %v21614_v37, %v14818_v38 }
0x384f   : > { %v14891_v45 = vadd.f32 %v21603_v1, %v14855_v47  ;;  %v14892_v52 = vadd.f32 %v21622_v7, %v14856_v49  ;;  %v21869_v25 = vsub.s32 0, %v21866_v20 }
0x3850   : > { %v14887_v10 = vadd.f32 %v21603_v1, %v14851_v50  ;;  %v14888_v8 = vadd.f32 %v21622_v7, %v14852_v6  ;;  %v14889_v46 = vadd.f32 %v21606_v53, %v14853_v59  ;;  %v14890_v13 = vadd.f32 %v21626_v17, %v14854_v21  ;;  %v14903_v17 = vld [vmem:[#allocation16 + $0x2] sm:$0x3] }
0x3851   : > { %v14959_v37 = vcombine.low %v14891_v45, %v14892_v52  ;;  %v14912_v1 = vrot.slane %v14903_v17, %v21867_v18  ;;  %v21686_v63 = vrot.slane %v14903_v17, %v21869_v25 }
0x3852   : > { %v14942_v30 = vcombine.low %v14887_v10, %v14888_v8  ;;  %v14943_v16 = vcombine.low %v14889_v46, %v14890_v13 }
0x3853   : > { %v14966_v53 = vrot.slane %v14959_v37, %v19058_v5 }
0x3854   : > { %v14950_v56 = vrot.slane %v14942_v30, %v19058_v5  ;;  %v14957_v22 = vrot.slane %v14943_v16, %v19058_v5 }
0x3856   : > { %v14958_v24 = vcombine.low %v14950_v56, %v14957_v22 }
0x3858   : > { %15919 = vmatmul.mubr.msk.f32.gmra.mrb[90].mxu0 %vm666_vm1, %v14958_v24 }
0x3859   : > { %15049 = vmatprep.mubr.f32.mxu0 %v21864_v60 }
0x385c   : > { %15920 = vmatmul.mubr.msk.f32.gmra.mrb[92].mxu0 %vm666_vm1, %v14966_v53 }
0x3895   : > { %v15039_v15 = vpop.f32.mrb[88].mxu0 }
0x3896   : > { %v15041_v7 = vpop.f32.mrb[89].mxu0  ;;  %v15040_v49 = vadd.f32 %v15039_v15, %v21686_v63 }
0x3897   : > { %v15042_v2 = vadd.f32 %v15041_v7, %v14912_v1 }
0x3899   : > { %v15059_v31 = vmul.f32 0.70710677, %v15042_v2  ;;  %v15056_v38 = vmul.f32 0.5, %v15042_v2 }
0x389b   : > { %v15068_v19 = vand.u32 2147483647, %v15059_v31  ;;  %vm15062_vm13 = vcmp.ge.f32.partialorder %v15059_v31, 0.0 }
0x389c   : > { %v15065_v4 = vsel %vm15062_vm13, 1.0, %v21868_v0 }
0x389d   : > { %v15071_v29 = vmul.f32 0.3275911, %v15068_v19  ;;  %v15110_v43 = vsub.f32 0.0, %v15068_v19 }
0x389f   : > { %v15074_v55 = vadd.f32 1.0, %v15071_v29  ;;  %v15113_v32 = vmul.f32 %v15110_v43, %v15068_v19 }
0x38a1   : > { %18169 = vrcp.f32 %v15074_v55  ;;  %v15116_v14 = vmul.f32 1.442695, %v15113_v32 }
0x38a3   : > { %18171 = vpow2.f32 %v15116_v14 }
0x38ab   : > { %v18170_v54 = vpop.eup %18169 }
0x38ac   : > { %v15083_v11 = vmul.f32 1.0614054, %v18170_v54 }
0x38ad   : > { %v18172_v40 = vpop.eup %18171 }
0x38ae   : > { %v15086_v12 = vadd.f32 -1.4531521, %v15083_v11 }
0x38b0   : > { %v15089_v35 = vmul.f32 %v18170_v54, %v15086_v12 }
0x38b2   : > { %v15092_v51 = vadd.f32 1.4214138, %v15089_v35 }
0x38b4   : > { %v15095_v9 = vmul.f32 %v18170_v54, %v15092_v51 }
0x38b6   : > { %v15098_v3 = vadd.f32 -0.28449672, %v15095_v9 }
0x38b8   : > { %v15101_v42 = vmul.f32 %v18170_v54, %v15098_v3 }
0x38ba   : > { %v15104_v34 = vadd.f32 0.2548296, %v15101_v42 }
0x38bc   : > { %v15107_v26 = vmul.f32 %v18170_v54, %v15104_v34 }
0x38be   : > { %v15122_v48 = vmul.f32 %v18172_v40, %v15107_v26 }
0x38c0   : > { %v15125_v23 = vsub.f32 1.0, %v15122_v48 }
0x38c2   : > { %v15128_v58 = vmul.f32 %v15125_v23, %v15065_v4 }
0x38c4   : > { %v15131_v47 = vadd.f32 1.0, %v15128_v58 }
0x38c6   : > { %v15134_v50 = vmul.f32 %v15131_v47, %v15056_v38 }
0x38c8   : > { %v15137_v6 = vmul.f32 %v15134_v50, %v15040_v49 }
0x38ca   : > { %17084 = vmatmul.mubr.f32.vlgmr.msra.gmra.mrb[88].mxu1 %v15137_v6 }
0x38cb   : > { %17086 = vmatprep.mubr.msk.f32.mxu1 %vm18608_vm2, %v21864_v60 }
0x392b   : > { %v15045_v59 = vpop.f32.mrb[90].mxu0 }
0x392c   : > { %v15047_v21 = vpop.f32.mrb[91].mxu0 }
0x392d   : > { %v15048_v10 = vadd.f32 %v15047_v21, %v14912_v1 }
0x392f   : > { %v15060_v8 = vmul.f32 0.70710677, %v15048_v10  ;;  %v15051_v46 = vpop.f32.mrb[92].mxu0  ;;  %v15057_v49 = vmul.f32 0.5, %v15048_v10  ;;  %v15921_v10 = vld [vmem:[#allocation19 + $0x1] ss:$0 sm:$0xff] }
0x3930   : > { %v15053_v13 = vpop.f32.mrb[93].mxu0 }
0x3931   : > { %v15069_v30 = vand.u32 2147483647, %v15060_v8  ;;  %v15054_v16 = vadd.f32 %v15053_v13, %v14912_v1  ;;  %vm15063_vm14 = vcmp.ge.f32.partialorder %v15060_v8, 0.0  ;;  %v15046_v13 = vadd.f32 %v15045_v59, %v21686_v63 }
0x3932   : > { %v15066_v58 = vsel %vm15063_vm14, 1.0, %v21868_v0 }
0x3933   : > { %v15072_v45 = vmul.f32 0.3275911, %v15069_v30  ;;  %v15061_v52 = vmul.f32 0.70710677, %v15054_v16  ;;  %v15111_v53 = vsub.f32 0.0, %v15069_v30  ;;  %v15058_v8 = vmul.f32 0.5, %v15054_v16 }
0x3935   : > { %v15075_v56 = vadd.f32 1.0, %v15072_v45  ;;  %v15070_v22 = vand.u32 2147483647, %v15061_v52  ;;  %v15114_v20 = vmul.f32 %v15111_v53, %v15069_v30  ;;  %vm15064_vm15 = vcmp.ge.f32.partialorder %v15061_v52, 0.0 }
0x3936   : > { %v15067_v21 = vsel %vm15064_vm15, 1.0, %v21868_v0  ;;  %v15309_v53 = vcombine.high %v15921_v10, %v15921_v10  ;;  %v15316_v0 = vrot.slane %v15921_v10, %v19058_v5 }
0x3937   : > { %18173 = vrcp.f32 %v15075_v56  ;;  %v15073_v24 = vmul.f32 0.3275911, %v15070_v22  ;;  %v15112_v18 = vsub.f32 0.0, %v15070_v22  ;;  %v15118_v31 = vmul.f32 1.442695, %v15114_v20 }
0x3938   : > { %v15323_v16 = vrot.slane %v15309_v53, %v19058_v5 }
0x3939   : > { %v15076_v37 = vadd.f32 1.0, %v15073_v24  ;;  %v15115_v19 = vmul.f32 %v15112_v18, %v15070_v22  ;;  %v15052_v24 = vadd.f32 %v15051_v46, %v21686_v63 }
0x393b   : > { %18175 = vrcp.f32 %v15076_v37  ;;  %v15120_v54 = vmul.f32 1.442695, %v15115_v19  ;;  %v15325_v19 = vcombine.high %v15323_v16, %v15323_v16 }
0x393c   : > { %18177 = vpow2.f32 %v15118_v31 }
0x393d   : > { %18179 = vpow2.f32 %v15120_v54 }
0x3941   : > { %v18174_v17 = vpop.eup %18173 }
0x3942   : > { %v15084_v15 = vmul.f32 1.0614054, %v18174_v17 }
0x3944   : > { %v15087_v7 = vadd.f32 -1.4531521, %v15084_v15 }
0x3945   : > { %v18176_v2 = vpop.eup %18175 }
0x3946   : > { %v15090_v29 = vmul.f32 %v18174_v17, %v15087_v7  ;;  %v15085_v55 = vmul.f32 1.0614054, %v18176_v2  ;;  %v18178_v26 = vpop.eup %18177 }
0x3947   : > { %v18180_v25 = vpop.eup %18179 }
0x3948   : > { %v15093_v1 = vadd.f32 1.4214138, %v15090_v29  ;;  %v15088_v43 = vadd.f32 -1.4531521, %v15085_v55 }
0x394a   : > { %v15096_v32 = vmul.f32 %v18174_v17, %v15093_v1  ;;  %v15091_v11 = vmul.f32 %v18176_v2, %v15088_v43 }
0x394c   : > { %v15099_v12 = vadd.f32 -0.28449672, %v15096_v32  ;;  %v15094_v14 = vadd.f32 1.4214138, %v15091_v11 }
0x394e   : > { %v15102_v35 = vmul.f32 %v18174_v17, %v15099_v12  ;;  %v15097_v51 = vmul.f32 %v18176_v2, %v15094_v14 }
0x3950   : > { %v15105_v9 = vadd.f32 0.2548296, %v15102_v35  ;;  %v15100_v3 = vadd.f32 -0.28449672, %v15097_v51 }
0x3952   : > { %v15108_v42 = vmul.f32 %v18174_v17, %v15105_v9  ;;  %v15103_v34 = vmul.f32 %v18176_v2, %v15100_v3 }
0x3954   : > { %v15123_v40 = vmul.f32 %v18178_v26, %v15108_v42  ;;  %v15106_v48 = vadd.f32 0.2548296, %v15103_v34 }
0x3956   : > { %v15126_v23 = vsub.f32 1.0, %v15123_v40  ;;  %v15109_v4 = vmul.f32 %v18176_v2, %v15106_v48 }
0x3958   : > { %v15129_v38 = vmul.f32 %v15126_v23, %v15066_v58  ;;  %v15124_v47 = vmul.f32 %v18180_v25, %v15109_v4 }
0x395a   : > { %v15132_v50 = vadd.f32 1.0, %v15129_v38  ;;  %v15127_v6 = vsub.f32 1.0, %v15124_v47 }
0x395c   : > { %v15135_v30 = vmul.f32 %v15132_v50, %v15057_v49  ;;  %v15130_v45 = vmul.f32 %v15127_v6, %v15067_v21 }
0x395e   : > { %v15133_v56 = vadd.f32 1.0, %v15130_v45  ;;  %v15138_v22 = vmul.f32 %v15135_v30, %v15046_v13 }
0x3960   : > { %v15136_v37 = vmul.f32 %v15133_v56, %v15058_v8  ;;  %17087 = vmatmul.mubr.f32.gmra.mrb[90].mxu1 %v15138_v22 }
0x3961   : > { %17089 = vmatprep.mubr.msk.f32.mxu1 %vm18608_vm2, %v21864_v60  ;;  %v15324_v60 = vcombine.high %v15316_v0, %v15316_v0 }
0x3962   : > { %v15139_v52 = vmul.f32 %v15136_v37, %v15052_v24 }
0x3964   : > { %17090 = vmatmul.mubr.f32.gmra.mrb[92].mxu1 %v15139_v52 }
0x399d   : > { %v15223_v17 = vpop.f32.mrb[88].mxu1 }
0x399e   : > { %v15240_v59 = vcombine.high %v15223_v17, %v15223_v17  ;;  %v15247_v20 = vrot.slane %v15223_v17, %v19058_v5  ;;  %v17085_v18 = vpop.f32.mrb[89].mxu1 }
0x39a0   : > { %v15254_v63 = vrot.slane %v15240_v59, %v19058_v5  ;;  %v15255_v46 = vcombine.high %v15247_v20, %v15247_v20  ;;  %v15292_v15 = vadd.f32 %v15247_v20, %v21478_v61 }
0x39a2   : > { %v15256_v7 = vcombine.high %v15254_v63, %v15254_v63  ;;  %v15293_v2 = vadd.f32 %v15255_v46, %v21481_v39  ;;  %v15294_v31 = vadd.f32 %v15254_v63, %v21484_v62  ;;  %v15330_v55 = vadd.f32 %v15316_v0, %v15292_v15 }
0x39a4   : > { %v15295_v29 = vadd.f32 %v15256_v7, %v21487_v57  ;;  %v15331_v1 = vadd.f32 %v15324_v60, %v15293_v2  ;;  %v15332_v43 = vadd.f32 %v15323_v16, %v15294_v31 }
0x39a6   : > { %v15333_v54 = vadd.f32 %v15325_v19, %v15295_v29  ;;  %v15350_v32 = vcombine.low %v15330_v55, %v15331_v1 }
0x39a8   : > { %v15351_v11 = vcombine.low %v15332_v43, %v15333_v54  ;;  %v15358_v12 = vrot.slane %v15350_v32, %v19058_v5 }
0x39aa   : > { %v15365_v61 = vrot.slane %v15351_v11, %v19058_v5 }
0x39ac   : > { %v15366_v14 = vcombine.low %v15358_v12, %v15365_v61 }
0x39ae   : > { %15402 = vst.msk [vmem:[%s21709_s24] sm:$0xff] %vm666_vm1, %v15366_v14 }
0x3a33   : > { %v15228_v39 = vpop.f32.mrb[90].mxu1 }
0x3a34   : > { %v15257_v62 = vcombine.high %v15228_v39, %v15228_v39  ;;  %v15264_v57 = vrot.slane %v15228_v39, %v19058_v5  ;;  %v17088_v35 = vpop.f32.mrb[91].mxu1 }
0x3a36   : > { %v15271_v51 = vrot.slane %v15257_v62, %v19058_v5  ;;  %v15272_v9 = vcombine.high %v15264_v57, %v15264_v57  ;;  %v15296_v3 = vadd.f32 %v15264_v57, %v21499_v41 }
0x3a37   : > { %v15233_v42 = vpop.f32.mrb[92].mxu1 }
0x3a38   : > { %v15273_v34 = vcombine.high %v15271_v51, %v15271_v51  ;;  %v15297_v26 = vadd.f32 %v15272_v9, %v21502_v36  ;;  %v15298_v40 = vadd.f32 %v15271_v51, %v21506_v28  ;;  %v15334_v48 = vadd.f32 %v15316_v0, %v15296_v3  ;;  %v17091_v23 = vpop.f32.mrb[93].mxu1 }
0x3a39   : > { %v15280_v4 = vrot.slane %v15233_v42, %v19058_v5 }
0x3a3a   : > { %v15299_v25 = vadd.f32 %v15273_v34, %v21509_v33  ;;  %v15335_v58 = vadd.f32 %v15324_v60, %v15297_v26  ;;  %v15336_v38 = vadd.f32 %v15323_v16, %v15298_v40  ;;  %v15373_v47 = vrot.slane %v15334_v48, %v19058_v5 }
0x3a3b   : > { %v15281_v41 = vcombine.high %v15280_v4, %v15280_v4  ;;  %v15300_v49 = vadd.f32 %v15280_v4, %v21514_v27 }
0x3a3c   : > { %15404 = vst.msk [vmem:[%s21709_s24 + $0x8] sm:$0x3] %vm15403_vm0, %v15373_v47  ;;  %v15337_v36 = vadd.f32 %v15325_v19, %v15299_v25  ;;  %v15374_v28 = vcombine.low %v15335_v58, %v15336_v38 }
0x3a3d   : > { %v15301_v50 = vadd.f32 %v15281_v41, %v21517_v44  ;;  %v15338_v6 = vadd.f32 %v15316_v0, %v15300_v49 }
0x3a3e   : > { %v15382_v13 = vrot.slane %v15374_v28, %v19058_v5 }
0x3a3f   : > { %v15339_v21 = vadd.f32 %v15324_v60, %v15301_v50  ;;  %v15375_v33 = vcombine.low %v15337_v36, %v15338_v6 }
0x3a41   : > { %v15389_v30 = vrot.slane %v15375_v33, %v19058_v5  ;;  %v15397_v27 = vrot.slane %v15339_v21, %v19058_v5 }
0x3a43   : > { %v15390_v44 = vcombine.low %v15382_v13, %v15389_v30  ;;  %15406 = vst.msk [vmem:[%s21709_s24 + $0x18] sm:$0x3] %vm15403_vm0, %v15397_v27 }
0x3a45   : > { %15405 = vst.msk [vmem:[%s21709_s24 + $0x10] sm:$0xff] %vm666_vm1, %v15390_v44 }
0x3a46   : > { %18506 = shalt.err (!%p18503_p3)
}
0x3a47   : > { %s18507_s3 = scalar_lea.hbm %s21733_s4, 512  ;;  %s18511_s24 = scalar_lea.hbm %s21870_s25, 1024 }
0x3a48   : > { %p18508_p0 = scmp.ne.s32.totalorder %s21733_s4, %s18507_s3  ;;  %p18512_p7 = scmp.lt.u32.totalorder %s21733_s4, %s21870_s25 }
0x3a49   : > { %p18513_p10 = scmp.lt.u32.totalorder %s18511_s24, %s18507_s3  ;;  %p18515_p11 = scmp.lt.u32.totalorder %s18507_s3, %s21733_s4 }
0x3a4a   : > { %p18509_p5 = pnand %p18508_p0, %p21871_p12 }
0x3a4b   : > { %p18514_p1 = por %p18513_p10, %p18512_p7 }
0x3a4c   : > { %p18510_p2 = pneg %p18509_p5 }
0x3a4d   : > { %p18516_p13 = por %p18515_p11, %p18514_p1 }
0x3a4f   : > { %p18517_p8 = pnand %p18516_p13, %p18510_p2 }
0x3a51   : > { %18520 = shalt.err (!%p18517_p8)
}
0x3a52   : > { %s18619_s1 = smov 128   ;;  %s18620_s12 = smov 8  }
0x3a53   : > { %17742 = dma.vmem_to_hbm [thread:$0]  (%p21871_p12), %s21735_s11, 512, %s21733_s4, %s15408_s23, %s18619_s1, %s18619_s1, %s18620_s12  }
0x3a54 PF: > { %s15437_s0 = sand.u32 1, %s18567_s17   ;;  %p21872_p6 = scmp.ne.s32.totalorder %s21842_s29, 0 }
0x3a55   : > { %p21873_p9 = scmp.ge.s32.totalorder %s18579_s20, 2  ;;  %s15438_s28 = scalar_lea.sflag [#allocation4], %s15437_s0 }
0x3a57   : > { %p17780_p4 = pnand %p21873_p9, %p21872_p6 }
0x3a59   : > { %18562 = dma.done.wait (!%p17780_p4), %s15438_s28, 512  }
0x3a5a   : > { %18564 = vsyncadd (!%p17780_p4), %s15438_s28, 4294966784  ;;  %p29_p3 = scmp.ge.s32.totalorder %s18947_s16, 4   ;;  %s21874_s17 = smov %s18571_s18 }
0x3a5b   : > { %s21875_s18 = smov %s18575_s19  ;;  %s21876_s19 = smov %s18959_s2 }
0x3a5c   : > { %s21877_s20 = smov %s18947_s16  ;;  %31 = sbr.rel (!%p29_p3) target bundleno = 17 (0x11), region = 159 }
0x3a63   :  { %15443 = vsyncpa [#allocation3], 1 }
0x3a64   :  { %15445 = vsyncpa [#allocation3 + $0x1], 1 }
0x3a65   :  { %15446 = vsyncpa [#allocation6], 1 }
0x3a66   :  { %15447 = vsyncpa [#allocation9], 1 }
0x3a67   :  { %15448 = vsyncpa [#allocation12], 1 }
0x3a68   :  { %15449 = vsyncpa [#allocation15], 1 }
0x3a69   :  { %15450 = vsyncpa [#allocation18], 1 }
0x3a6a   :  { %15451 = vsyncpa [#allocation4], 1 }
0x3a6b   :  { %15453 = vsyncpa [#allocation4 + $0x1], 1 }

</bundles_post_ra>
